<compile_context>
chip_gen: v7x
topology: tpu7x:2x2x1
jax: 0.10.0
libtpu: 0.0.40
codegen_flags: <defaults>
</compile_context>

<pallas_src>
import jax
import jax.numpy as jnp
from jax.experimental import pallas as pl
from jax.experimental.pallas import tpu as pltpu

# ----------------------------- "config" ------------------------------------
HIDDEN_SIZE = 64                      # config.HIDDEN_SIZE
BERT_HIDDEN = 128                     # bert.config.hidden_size
ATTN_HIDDEN = 100                     # attn1 output size (hard-coded in module)
ATTN_PAD = 128                        # lane-padded attn hidden
REL_HIDDEN = 16                       # config.RELATION_LABEL_HIDDEN_SIZE
DIR_HIDDEN = 8                        # config.DIRECTION_HIDDEN_SIZE

ID_TO_ACTION = ["shift", "reduce"]
ACTION_TO_ID = {a: i for i, a in enumerate(ID_TO_ACTION)}
ID_TO_DIRECTION = ["None", "LeftToRight", "RightToLeft"]
ID_TO_LABEL = ["elaboration", "attribution", "joint", "same-unit",
               "contrast", "explanation", "background", "cause"]

N_ACTIONS = len(ID_TO_ACTION)
N_LABELS = len(ID_TO_LABEL)
N_DIRECTIONS = len(ID_TO_DIRECTION)

N_EDUS = 6
T_FULL = 17                           # tokens incl. [CLS]; DROP_CLS drops 1
T = T_FULL - 1
HALF = HIDDEN_SIZE // 2
REL_DIR = REL_HIDDEN + DIR_HIDDEN
GATES = 5 * HALF

# fused classifier lane layout (classifier heads padded to 128 lanes)
CLS_PAD = 128
ACT_OFF = 0
LAB_OFF = ACT_OFF + N_ACTIONS         # 2
DIR_OFF = LAB_OFF + N_LABELS          # 10
STEP_OUT = CLS_PAD + GATES            # 288 output lanes of the fused per-step matmul
FEAT = 3 * HIDDEN_SIZE                # 192 = [s1 | s0 | b]

NUM_STEPS = 2 * N_EDUS - 1            # exact number of shift-reduce transitions
REC_PAD = 16                          # padded record length (>= NUM_STEPS)


# --------------------------- parameter init --------------------------------
def _linear(key, fan_in, fan_out):
    kw, kb = jax.random.split(key)
    bound = 1.0 / jnp.sqrt(fan_in)
    w = jax.random.uniform(kw, (fan_in, fan_out), jnp.float32, -bound, bound)
    b = jax.random.uniform(kb, (1, fan_out), jnp.float32, -bound, bound)
    return w, b


def init_params(key):
    ks = jax.random.split(key, 12)
    p = {}
    p["attn1_w"], p["attn1_b"] = _linear(ks[0], BERT_HIDDEN, ATTN_HIDDEN)
    p["attn2_w"], p["attn2_b"] = _linear(ks[1], ATTN_HIDDEN, 1)
    p["proj_w"], p["proj_b"] = _linear(ks[2], BERT_HIDDEN, HIDDEN_SIZE)
    p["missing_node"] = jax.random.uniform(ks[3], (HIDDEN_SIZE,), jnp.float32)
    p["act_w"], p["act_b"] = _linear(ks[4], 3 * HIDDEN_SIZE, N_ACTIONS)
    p["lab_w"], p["lab_b"] = _linear(ks[5], 3 * HIDDEN_SIZE, N_LABELS)
    p["dir_w"], p["dir_b"] = _linear(ks[6], 3 * HIDDEN_SIZE, N_DIRECTIONS)
    # TreeLSTM: gates from [rel_dir_emb ; h1 ; h2] -> 5 * HALF
    tree_in = REL_DIR + 2 * HALF
    p["tree_w"], p["tree_b"] = _linear(ks[7], tree_in, GATES)
    p["rel_emb"] = jax.random.normal(ks[8], (N_LABELS, REL_HIDDEN), jnp.float32)
    p["dir_emb"] = jax.random.normal(ks[9], (N_DIRECTIONS, DIR_HIDDEN), jnp.float32)
    return p


# ------------------- the single fused forward kernel ------------------------
def _disco_kernel(seq_ref, maskc_ref, seg_ref,
                  w1_ref, b1_ref, w2_ref, b2_ref, wproj_ref, bproj_ref,
                  missing_ref, wstep_ref, bstep_ref, reltab_ref, dirtab_ref,
                  enc_out_ref, emb_out_ref, act_out_ref, lab_out_ref, dir_out_ref):
    f32 = jnp.float32

    # ---------------- EDU encoder (all EDUs in one batched pass) -------------
    seq = seq_ref[...]                                           # (N*T, 128)
    a1 = jnp.dot(seq, w1_ref[...], preferred_element_type=f32) + b1_ref[...]
    t1 = jnp.tanh(a1)                                            # (N*T, 128)
    # attn2 as VPU multiply + lane reduction (no N=1 matmul)
    a2 = jnp.sum(t1 * w2_ref[...], axis=-1, keepdims=True) + b2_ref[...]   # (N*T, 1)
    # multiplicative mask on the logits, exactly as in the PyTorch module
    masked = a2 * maskc_ref[...]                                 # (N*T, 1)
    # global max stabilizer cancels exactly in numer/denom per EDU
    gmax = jnp.max(masked, axis=0, keepdims=True)
    e = jnp.exp(masked - gmax)                                   # (N*T, 1)
    seg = seg_ref[...]                                           # (N, N*T) 0/1 segment matrix
    numer = jnp.dot(seg, e * seq, preferred_element_type=f32)    # (N, 128)
    denom = jnp.dot(seg, e, preferred_element_type=f32)          # (N, 1)
    pooled = numer / denom                                       # per-EDU softmax-weighted sum
    enc = jnp.dot(pooled, wproj_ref[...], preferred_element_type=f32) + bproj_ref[...]
    enc_out_ref[...] = enc                                       # (N, H)

    # ---------------- shift-reduce transition loop (on device) ---------------
    missing = missing_ref[...]                                   # (1, H)
    wstep = wstep_ref[...]                                       # (FEAT, STEP_OUT)
    bstep = bstep_ref[...]                                       # (1, STEP_OUT)
    reltab = reltab_ref[...]                                     # (N_LABELS, GATES) incl. tree bias
    dirtab = dirtab_ref[...]                                     # (N_DIRECTIONS, GATES)

    def gather_row(mat, idx):
        # one-hot select of a dynamic row; pure VPU + sublane reduce
        rows = jax.lax.broadcasted_iota(jnp.int32, mat.shape, 0)
        return jnp.sum(jnp.where(rows == idx, mat, f32(0.0)), axis=0, keepdims=True)

    lane_cls = jax.lax.broadcasted_iota(jnp.int32, (1, CLS_PAD), 1)
    rec_lane = jax.lax.broadcasted_iota(jnp.int32, (1, REC_PAD), 1)
    stack_rows = jax.lax.broadcasted_iota(jnp.int32, (N_EDUS, HIDDEN_SIZE), 0)
    rec_rows = jax.lax.broadcasted_iota(jnp.int32, (REC_PAD, HIDDEN_SIZE), 0)

    def head_argmax(scores, lo, size, extra_valid=None):
        valid = (lane_cls >= lo) & (lane_cls < lo + size)
        if extra_valid is not None:
            valid = valid & extra_valid
        s = jnp.where(valid, scores, f32(-1e30))
        m = jnp.max(s, axis=-1, keepdims=True)                   # (1,1)
        cand = jnp.where(valid & (s >= m), lane_cls.astype(f32), f32(1e9))
        first = jnp.min(cand, axis=-1, keepdims=True)            # first max lane
        return first.astype(jnp.int32) - lo                      # (1,1) head-local index

    def step(t, carry):
        stack, sp, bptr, emb_rec, act_rec, lab_rec, dir_rec = carry

        # parser state features: s1 = stack[-2], s0 = stack[-1], b = buffer[0]
        s1 = jnp.where(sp >= 2, gather_row(stack, sp - 2), missing)    # (1, H)
        s0 = jnp.where(sp >= 1, gather_row(stack, sp - 1), missing)
        bh = jnp.where(bptr < N_EDUS, gather_row(enc, bptr), missing)

        # ONE fused matmul: [s1|s0|b] @ [classifier heads (128 lanes) | gate proj (160 lanes)]
        feats = jnp.concatenate([s1, s0, bh], axis=-1)                  # (1, FEAT)
        fused = jnp.dot(feats, wstep, preferred_element_type=f32) + bstep  # (1, STEP_OUT)
        scores = fused[:, :CLS_PAD]                                     # (1, 128)
        zh = fused[:, CLS_PAD:]                                         # (1, GATES) h-contributions

        shift_ok = bptr < N_EDUS                                  # (1,1) bool
        reduce_ok = sp >= 2                                       # (1,1) bool
        act_valid = (((lane_cls == ACT_OFF) & shift_ok)
                     | ((lane_cls == ACT_OFF + 1) & reduce_ok))
        act_idx = head_argmax(scores, ACT_OFF, N_ACTIONS, act_valid)
        lab_idx = head_argmax(scores, LAB_OFF, N_LABELS)
        dir_idx = head_argmax(scores, DIR_OFF, N_DIRECTIONS)

        # TreeLSTM merge of (left = s1, right = s0); used only when reducing.
        # rel/dir embedding contribution (+ tree bias) via two tiny table gathers.
        x_contrib = gather_row(reltab, lab_idx) + gather_row(dirtab, dir_idx)  # (1, GATES)
        z = x_contrib + zh                                              # (1, GATES)
        i_g = jax.nn.sigmoid(z[:, 0 * HALF:1 * HALF])
        f1_g = jax.nn.sigmoid(z[:, 1 * HALF:2 * HALF])
        f2_g = jax.nn.sigmoid(z[:, 2 * HALF:3 * HALF])
        o_g = jax.nn.sigmoid(z[:, 3 * HALF:4 * HALF])
        u_g = jnp.tanh(z[:, 4 * HALF:5 * HALF])
        c1 = s1[:, HALF:]
        c2 = s0[:, HALF:]
        c_new = i_g * u_g + f1_g * c1 + f2_g * c2
        h_new = o_g * jnp.tanh(c_new)
        merged = jnp.concatenate([h_new, c_new], axis=-1)               # (1, H)

        # apply the chosen transition (fully vectorized select, no scalar extraction)
        is_shift = act_idx == 0                                         # (1,1) bool
        new_val = jnp.where(is_shift, bh, merged)                       # (1, H)
        write_idx = jnp.where(is_shift, sp, sp - 2)                     # (1,1)
        stack = jnp.where(stack_rows == write_idx, new_val, stack)      # (N_EDUS, H)
        sp = sp + jnp.where(is_shift, jnp.int32(1), jnp.int32(-1))
        bptr = bptr + jnp.where(is_shift, jnp.int32(1), jnp.int32(0))

        # record decisions + new node embedding for host-side tree reconstruction
        sel = rec_lane == t
        act_rec = jnp.where(sel, act_idx, act_rec)
        lab_rec = jnp.where(sel, lab_idx, lab_rec)
        dir_rec = jnp.where(sel, dir_idx, dir_rec)
        emb_rec = jnp.where(rec_rows == t, new_val, emb_rec)
        return (stack, sp, bptr, emb_rec, act_rec, lab_rec, dir_rec)

    carry0 = (jnp.zeros((N_EDUS, HIDDEN_SIZE), f32),
              jnp.zeros((1, 1), jnp.int32),
              jnp.zeros((1, 1), jnp.int32),
              jnp.zeros((REC_PAD, HIDDEN_SIZE), f32),
              jnp.zeros((1, REC_PAD), jnp.int32),
              jnp.zeros((1, REC_PAD), jnp.int32),
              jnp.zeros((1, REC_PAD), jnp.int32))
    (_, _, _, emb_rec, act_rec, lab_rec, dir_rec) = jax.lax.fori_loop(
        0, NUM_STEPS, step, carry0, unroll=True)

    emb_out_ref[...] = emb_rec
    act_out_ref[...] = act_rec
    lab_out_ref[...] = lab_rec
    dir_out_ref[...] = dir_rec


# ----------------------- device-side wrapper (one pallas_call) ---------------
@jax.jit
def _device_forward(sequence_output, attention_mask, params):
    # config.DROP_CLS == True
    seq = sequence_output[:, 1:, :]                               # (N, T, Hb)
    mask = attention_mask[:, 1:].astype(jnp.float32)              # (N, T)
    n, t, hb = seq.shape

    seq2 = seq.reshape(n * t, hb)                                 # (N*T, 128)
    maskc = mask.reshape(n * t, 1)                                # (N*T, 1)
    # per-EDU segment matrix: seg[e, r] = 1 iff token row r belongs to EDU e
    seg = (jnp.arange(n)[:, None] == (jnp.arange(n * t)[None, :] // t)).astype(jnp.float32)

    # --- pad / fuse parameters into lane-dense kernel operands ---
    w1p = jnp.zeros((BERT_HIDDEN, ATTN_PAD), jnp.float32).at[:, :ATTN_HIDDEN].set(params["attn1_w"])
    b1p = jnp.zeros((1, ATTN_PAD), jnp.float32).at[:, :ATTN_HIDDEN].set(params["attn1_b"])
    w2row = jnp.zeros((1, ATTN_PAD), jnp.float32).at[:, :ATTN_HIDDEN].set(params["attn2_w"][:, 0])
    b2 = params["attn2_b"].reshape(1, 1)

    # fused classifier columns: [action | label | direction | zero-pad] -> 128 lanes
    wcls = jnp.zeros((FEAT, CLS_PAD), jnp.float32)
    wcls = wcls.at[:, ACT_OFF:ACT_OFF + N_ACTIONS].set(params["act_w"])
    wcls = wcls.at[:, LAB_OFF:LAB_OFF + N_LABELS].set(params["lab_w"])
    wcls = wcls.at[:, DIR_OFF:DIR_OFF + N_DIRECTIONS].set(params["dir_w"])
    bcls = jnp.zeros((1, CLS_PAD), jnp.float32)
    bcls = bcls.at[:, ACT_OFF:ACT_OFF + N_ACTIONS].set(params["act_b"])
    bcls = bcls.at[:, LAB_OFF:LAB_OFF + N_LABELS].set(params["lab_b"])
    bcls = bcls.at[:, DIR_OFF:DIR_OFF + N_DIRECTIONS].set(params["dir_b"])

    # TreeLSTM weight split (input order [rel ; dir ; h1 ; h2]); exact refactor.
    tw = params["tree_w"]
    wxr = tw[:REL_HIDDEN]                                         # (16, GATES)
    wxd = tw[REL_HIDDEN:REL_DIR]                                  # (8,  GATES)
    wh1 = tw[REL_DIR:REL_DIR + HALF]                              # (HALF, GATES) acts on h(s1)
    wh2 = tw[REL_DIR + HALF:]                                     # (HALF, GATES) acts on h(s0)

    # ONE fused per-step weight: rows = [s1 | s0 | b] features, cols = [heads | gates]
    wstep = jnp.zeros((FEAT, STEP_OUT), jnp.float32)
    wstep = wstep.at[:, :CLS_PAD].set(wcls)
    wstep = wstep.at[:HALF, CLS_PAD:].set(wh1)                    # s1 hidden-part rows
    wstep = wstep.at[HIDDEN_SIZE:HIDDEN_SIZE + HALF, CLS_PAD:].set(wh2)  # s0 hidden-part rows
    bstep = jnp.zeros((1, STEP_OUT), jnp.float32).at[:, :CLS_PAD].set(bcls)

    # precomputed embedding tables: reltab[l] = rel_emb[l]@Wx_rel + tree_bias,
    #                               dirtab[d] = dir_emb[d]@Wx_dir
    reltab = params["rel_emb"] @ wxr + params["tree_b"]           # (8, GATES)
    dirtab = params["dir_emb"] @ wxd                              # (3, GATES)

    missing = params["missing_node"].reshape(1, HIDDEN_SIZE)

    out_shapes = (
        jax.ShapeDtypeStruct((n, HIDDEN_SIZE), jnp.float32),      # enc_edus
        jax.ShapeDtypeStruct((REC_PAD, HIDDEN_SIZE), jnp.float32),# per-step node embeddings
        jax.ShapeDtypeStruct((1, REC_PAD), jnp.int32),            # actions
        jax.ShapeDtypeStruct((1, REC_PAD), jnp.int32),            # labels
        jax.ShapeDtypeStruct((1, REC_PAD), jnp.int32),            # directions
    )
    return pl.pallas_call(
        _disco_kernel,
        out_shape=out_shapes,
        compiler_params=pltpu.CompilerParams(),
    )(seq2, maskc, seg,
      w1p, b1p, w2row, b2, params["proj_w"], params["proj_b"],
      missing, wstep, bstep, reltab, dirtab)


# ----------------------- host-side tree reconstruction -----------------------
class TreeNode:
    def __init__(self, embedding, leaf=None, children=None, label=None, direction=None):
        self.embedding = embedding
        self.leaf = leaf
        self.children = children or []
        self.label = label
        self.direction = direction


def disco_bert_forward(sequence_output, attention_mask, params):
    """Inference path of DiscoBertModel.forward (gold_tree=None)."""
    assert sequence_output.shape[0] == N_EDUS and sequence_output.shape[1] == T_FULL

    enc_edus, emb_rec, act_rec, lab_rec, dir_rec = _device_forward(
        sequence_output, attention_mask, params)

    # single device -> host sync for the recorded transition decisions
    acts, labs, dirs = jax.device_get((act_rec, lab_rec, dir_rec))
    acts, labs, dirs = acts[0], labs[0], dirs[0]

    # replay the (legality-checked, device-chosen) transitions to build the tree
    buffer = [TreeNode(leaf=i, embedding=enc_edus[i]) for i in range(enc_edus.shape[0])]
    stack = []
    for step in range(NUM_STEPS):
        if ID_TO_ACTION[int(acts[step])] == "shift":
            stack.append(buffer.pop(0))
        else:
            right = stack.pop()
            left = stack.pop()
            stack.append(TreeNode(embedding=emb_rec[step],
                                  children=[left, right],
                                  label=ID_TO_LABEL[int(labs[step])],
                                  direction=ID_TO_DIRECTION[int(dirs[step])]))
    assert len(buffer) == 0 and len(stack) == 1
    return (stack[0],)


# -------------------------------- main ---------------------------------------
if __name__ == "__main__":
    key = jax.random.PRNGKey(0)
    k_params, k_seq, k_mask = jax.random.split(key, 3)

    params = init_params(k_params)

    # TODO(synk): synthesized BERT encoder output (tokenizer + pretrained BERT
    # are external and cannot be loaded in-script).
    sequence_output = jax.random.normal(k_seq, (N_EDUS, T_FULL, BERT_HIDDEN),
                                        jnp.float32)
    # deterministic attention mask: last few tokens of odd rows are padding
    attention_mask = jnp.ones((N_EDUS, T_FULL), jnp.int32)
    attention_mask = attention_mask.at[1::2, -3:].set(0)

    (predicted_tree,) = disco_bert_forward(sequence_output, attention_mask, params)
    root_embedding = jax.block_until_ready(predicted_tree.embedding)

    assert root_embedding.shape == (HIDDEN_SIZE,)
    assert bool(jnp.all(jnp.isfinite(root_embedding)))
    print("KERNEL_OK")
</pallas_src>

<mosaic_0001>
module attributes {stable_mosaic.version = 11 : i64} {
  func.func @_disco_kernel(%arg0: memref<96x128xf32, #tpu.memory_space<vmem>>, %arg1: memref<96x1xf32, #tpu.memory_space<vmem>>, %arg2: memref<6x96xf32, #tpu.memory_space<vmem>>, %arg3: memref<128x128xf32, #tpu.memory_space<vmem>>, %arg4: memref<1x128xf32, #tpu.memory_space<vmem>>, %arg5: memref<1x128xf32, #tpu.memory_space<vmem>>, %arg6: memref<1x1xf32, #tpu.memory_space<vmem>>, %arg7: memref<128x64xf32, #tpu.memory_space<vmem>>, %arg8: memref<1x64xf32, #tpu.memory_space<vmem>>, %arg9: memref<1x64xf32, #tpu.memory_space<vmem>>, %arg10: memref<192x288xf32, #tpu.memory_space<vmem>>, %arg11: memref<1x288xf32, #tpu.memory_space<vmem>>, %arg12: memref<8x160xf32, #tpu.memory_space<vmem>>, %arg13: memref<3x160xf32, #tpu.memory_space<vmem>>, %arg14: memref<6x64xf32, #tpu.memory_space<vmem>>, %arg15: memref<16x64xf32, #tpu.memory_space<vmem>>, %arg16: memref<1x16xi32, #tpu.memory_space<vmem>>, %arg17: memref<1x16xi32, #tpu.memory_space<vmem>>, %arg18: memref<1x16xi32, #tpu.memory_space<vmem>>) attributes {dimension_semantics = [], scalar_prefetch = 0 : i64, scratch_operands = 0 : i64, tpu.core_type = #tpu.core_type<tc>} {
    %c0 = arith.constant 0 : index
    %c0_0 = arith.constant 0 : index
    %0 = vector.load %arg0[%c0, %c0_0] : memref<96x128xf32, #tpu.memory_space<vmem>>, vector<96x128xf32>
    %c0_1 = arith.constant 0 : index
    %c0_2 = arith.constant 0 : index
    %1 = vector.load %arg3[%c0_1, %c0_2] : memref<128x128xf32, #tpu.memory_space<vmem>>, vector<128x128xf32>
    %cst = arith.constant dense<0.000000e+00> : vector<96x128xf32>
    %2 = tpu.matmul %0, %1, %cst {dimension_numbers = #tpu.dot_dimension_numbers<[1], [0], [0], [1], [0, 0, 1, 1], [], []>} : vector<96x128xf32>, vector<128x128xf32>, vector<96x128xf32> -> vector<96x128xf32>
    %c0_3 = arith.constant 0 : index
    %c0_4 = arith.constant 0 : index
    %3 = vector.load %arg4[%c0_3, %c0_4] : memref<1x128xf32, #tpu.memory_space<vmem>>, vector<1x128xf32>
    %4 = vector.broadcast %3 : vector<1x128xf32> to vector<96x128xf32>
    %5 = arith.addf %2, %4 : vector<96x128xf32>
    %6 = math.tanh %5 : vector<96x128xf32>
    %c0_5 = arith.constant 0 : index
    %c0_6 = arith.constant 0 : index
    %7 = vector.load %arg5[%c0_5, %c0_6] : memref<1x128xf32, #tpu.memory_space<vmem>>, vector<1x128xf32>
    %8 = vector.broadcast %7 : vector<1x128xf32> to vector<96x128xf32>
    %9 = arith.mulf %6, %8 : vector<96x128xf32>
    %cst_7 = arith.constant dense<0.000000e+00> : vector<96xf32>
    %10 = vector.multi_reduction <add>, %9, %cst_7 [1] : vector<96x128xf32> to vector<96xf32>
    %11 = vector.shape_cast %10 : vector<96xf32> to vector<96x1xf32>
    %c0_8 = arith.constant 0 : index
    %c0_9 = arith.constant 0 : index
    %12 = vector.load %arg6[%c0_8, %c0_9] : memref<1x1xf32, #tpu.memory_space<vmem>>, vector<1x1xf32>
    %13 = vector.broadcast %12 : vector<1x1xf32> to vector<96x1xf32>
    %14 = arith.addf %11, %13 : vector<96x1xf32>
    %c0_10 = arith.constant 0 : index
    %c0_11 = arith.constant 0 : index
    %15 = vector.load %arg1[%c0_10, %c0_11] : memref<96x1xf32, #tpu.memory_space<vmem>>, vector<96x1xf32>
    %16 = arith.mulf %14, %15 : vector<96x1xf32>
    %cst_12 = arith.constant dense<0xFF800000> : vector<1xf32>
    %17 = vector.multi_reduction <maximumf>, %16, %cst_12 [0] : vector<96x1xf32> to vector<1xf32>
    %18 = vector.shape_cast %17 : vector<1xf32> to vector<1x1xf32>
    %19 = vector.broadcast %18 : vector<1x1xf32> to vector<96x1xf32>
    %20 = arith.subf %16, %19 : vector<96x1xf32>
    %21 = math.exp %20 : vector<96x1xf32>
    %c0_13 = arith.constant 0 : index
    %c0_14 = arith.constant 0 : index
    %22 = vector.load %arg2[%c0_13, %c0_14] : memref<6x96xf32, #tpu.memory_space<vmem>>, vector<6x96xf32>
    %23 = vector.broadcast %21 : vector<96x1xf32> to vector<96x128xf32>
    %24 = arith.mulf %23, %0 : vector<96x128xf32>
    %cst_15 = arith.constant dense<0.000000e+00> : vector<6x128xf32>
    %25 = tpu.matmul %22, %24, %cst_15 {dimension_numbers = #tpu.dot_dimension_numbers<[1], [0], [0], [1], [0, 0, 1, 1], [], []>} : vector<6x96xf32>, vector<96x128xf32>, vector<6x128xf32> -> vector<6x128xf32>
    %cst_16 = arith.constant dense<0.000000e+00> : vector<6x1xf32>
    %26 = tpu.matmul %22, %21, %cst_16 {dimension_numbers = #tpu.dot_dimension_numbers<[1], [0], [0], [1], [0, 0, 1, 1], [], []>} : vector<6x96xf32>, vector<96x1xf32>, vector<6x1xf32> -> vector<6x1xf32>
    %27 = vector.broadcast %26 : vector<6x1xf32> to vector<6x128xf32>
    %28 = arith.divf %25, %27 : vector<6x128xf32>
    %c0_17 = arith.constant 0 : index
    %c0_18 = arith.constant 0 : index
    %29 = vector.load %arg7[%c0_17, %c0_18] : memref<128x64xf32, #tpu.memory_space<vmem>>, vector<128x64xf32>
    %cst_19 = arith.constant dense<0.000000e+00> : vector<6x64xf32>
    %30 = tpu.matmul %28, %29, %cst_19 {dimension_numbers = #tpu.dot_dimension_numbers<[1], [0], [0], [1], [0, 0, 1, 1], [], []>} : vector<6x128xf32>, vector<128x64xf32>, vector<6x64xf32> -> vector<6x64xf32>
    %c0_20 = arith.constant 0 : index
    %c0_21 = arith.constant 0 : index
    %31 = vector.load %arg8[%c0_20, %c0_21] : memref<1x64xf32, #tpu.memory_space<vmem>>, vector<1x64xf32>
    %32 = vector.broadcast %31 : vector<1x64xf32> to vector<6x64xf32>
    %33 = arith.addf %30, %32 : vector<6x64xf32>
    %c0_22 = arith.constant 0 : index
    %c0_23 = arith.constant 0 : index
    %34 = vector.load %arg14[%c0_22, %c0_23] : memref<6x64xf32, #tpu.memory_space<vmem>>, vector<6x64xf32>
    tpu.vector_store %arg14[%c0_22, %c0_23], %33 {strides = array<i32>} : memref<6x64xf32, #tpu.memory_space<vmem>>, vector<6x64xf32>,
    %c0_24 = arith.constant 0 : index
    %c0_25 = arith.constant 0 : index
    %35 = vector.load %arg9[%c0_24, %c0_25] : memref<1x64xf32, #tpu.memory_space<vmem>>, vector<1x64xf32>
    %c0_26 = arith.constant 0 : index
    %c0_27 = arith.constant 0 : index
    %36 = vector.load %arg10[%c0_26, %c0_27] : memref<192x288xf32, #tpu.memory_space<vmem>>, vector<192x288xf32>
    %c0_28 = arith.constant 0 : index
    %c0_29 = arith.constant 0 : index
    %37 = vector.load %arg11[%c0_28, %c0_29] : memref<1x288xf32, #tpu.memory_space<vmem>>, vector<1x288xf32>
    %c0_30 = arith.constant 0 : index
    %c0_31 = arith.constant 0 : index
    %38 = vector.load %arg12[%c0_30, %c0_31] : memref<8x160xf32, #tpu.memory_space<vmem>>, vector<8x160xf32>
    %c0_32 = arith.constant 0 : index
    %c0_33 = arith.constant 0 : index
    %39 = vector.load %arg13[%c0_32, %c0_33] : memref<3x160xf32, #tpu.memory_space<vmem>>, vector<3x160xf32>
    %40 = tpu.iota {dimensions = array<i32: 1>} : vector<1x128xi32>
    %41 = tpu.iota {dimensions = array<i32: 1>} : vector<1x16xi32>
    %42 = tpu.iota {dimensions = array<i32: 0>} : vector<6x64xi32>
    %43 = tpu.iota {dimensions = array<i32: 0>} : vector<16x64xi32>
    %cst_34 = arith.constant 0.000000e+00 : f32
    %44 = vector.broadcast %cst_34 : f32 to vector<6x64xf32>
    %c0_i32 = arith.constant 0 : i32
    %45 = vector.broadcast %c0_i32 : i32 to vector<1x1xi32>
    %c0_i32_35 = arith.constant 0 : i32
    %46 = vector.broadcast %c0_i32_35 : i32 to vector<1x1xi32>
    %cst_36 = arith.constant 0.000000e+00 : f32
    %47 = vector.broadcast %cst_36 : f32 to vector<16x64xf32>
    %c0_i32_37 = arith.constant 0 : i32
    %48 = vector.broadcast %c0_i32_37 : i32 to vector<1x16xi32>
    %c0_i32_38 = arith.constant 0 : i32
    %49 = vector.broadcast %c0_i32_38 : i32 to vector<1x16xi32>
    %c0_i32_39 = arith.constant 0 : i32
    %50 = vector.broadcast %c0_i32_39 : i32 to vector<1x16xi32>
    %c0_i32_40 = arith.constant 0 : i32
    %c2_i32 = arith.constant 2 : i32
    %51 = vector.broadcast %c2_i32 : i32 to vector<1x1xi32>
    %52 = arith.cmpi sge, %45, %51 : vector<1x1xi32>
    %c2_i32_41 = arith.constant 2 : i32
    %53 = vector.broadcast %c2_i32_41 : i32 to vector<1x1xi32>
    %54 = arith.subi %45, %53 : vector<1x1xi32>
    %55 = tpu.iota {dimensions = array<i32: 0>} : vector<6x64xi32>
    %56 = vector.broadcast %54 : vector<1x1xi32> to vector<6x64xi32>
    %57 = arith.cmpi eq, %55, %56 : vector<6x64xi32>
    %cst_42 = arith.constant 0.000000e+00 : f32
    %58 = vector.broadcast %cst_42 : f32 to vector<6x64xf32>
    %59 = arith.select %57, %44, %58 : vector<6x64xi1>, vector<6x64xf32>
    %cst_43 = arith.constant dense<0.000000e+00> : vector<64xf32>
    %60 = vector.multi_reduction <add>, %59, %cst_43 [0] : vector<6x64xf32> to vector<64xf32>
    %61 = vector.shape_cast %60 : vector<64xf32> to vector<1x64xf32>
    %62 = vector.shape_cast %52 : vector<1x1xi1> to vector<1x1xi1>
    %63 = vector.broadcast %62 : vector<1x1xi1> to vector<1x64xi1>
    %64 = arith.select %63, %61, %35 : vector<1x64xi1>, vector<1x64xf32>
    %c1_i32 = arith.constant 1 : i32
    %65 = vector.broadcast %c1_i32 : i32 to vector<1x1xi32>
    %66 = arith.cmpi sge, %45, %65 : vector<1x1xi32>
    %c1_i32_44 = arith.constant 1 : i32
    %67 = vector.broadcast %c1_i32_44 : i32 to vector<1x1xi32>
    %68 = arith.subi %45, %67 : vector<1x1xi32>
    %69 = tpu.iota {dimensions = array<i32: 0>} : vector<6x64xi32>
    %70 = vector.broadcast %68 : vector<1x1xi32> to vector<6x64xi32>
    %71 = arith.cmpi eq, %69, %70 : vector<6x64xi32>
    %cst_45 = arith.constant 0.000000e+00 : f32
    %72 = vector.broadcast %cst_45 : f32 to vector<6x64xf32>
    %73 = arith.select %71, %44, %72 : vector<6x64xi1>, vector<6x64xf32>
    %cst_46 = arith.constant dense<0.000000e+00> : vector<64xf32>
    %74 = vector.multi_reduction <add>, %73, %cst_46 [0] : vector<6x64xf32> to vector<64xf32>
    %75 = vector.shape_cast %74 : vector<64xf32> to vector<1x64xf32>
    %76 = vector.shape_cast %66 : vector<1x1xi1> to vector<1x1xi1>
    %77 = vector.broadcast %76 : vector<1x1xi1> to vector<1x64xi1>
    %78 = arith.select %77, %75, %35 : vector<1x64xi1>, vector<1x64xf32>
    %c6_i32 = arith.constant 6 : i32
    %79 = vector.broadcast %c6_i32 : i32 to vector<1x1xi32>
    %80 = arith.cmpi slt, %46, %79 : vector<1x1xi32>
    %81 = tpu.iota {dimensions = array<i32: 0>} : vector<6x64xi32>
    %82 = vector.broadcast %46 : vector<1x1xi32> to vector<6x64xi32>
    %83 = arith.cmpi eq, %81, %82 : vector<6x64xi32>
    %cst_47 = arith.constant 0.000000e+00 : f32
    %84 = vector.broadcast %cst_47 : f32 to vector<6x64xf32>
    %85 = arith.select %83, %33, %84 : vector<6x64xi1>, vector<6x64xf32>
    %cst_48 = arith.constant dense<0.000000e+00> : vector<64xf32>
    %86 = vector.multi_reduction <add>, %85, %cst_48 [0] : vector<6x64xf32> to vector<64xf32>
    %87 = vector.shape_cast %86 : vector<64xf32> to vector<1x64xf32>
    %88 = vector.shape_cast %80 : vector<1x1xi1> to vector<1x1xi1>
    %89 = vector.broadcast %88 : vector<1x1xi1> to vector<1x64xi1>
    %90 = arith.select %89, %87, %35 : vector<1x64xi1>, vector<1x64xf32>
    %91 = tpu.concatenate %64, %78, %90 in 1 : vector<1x64xf32>, vector<1x64xf32>, vector<1x64xf32> -> vector<1x192xf32>
    %cst_49 = arith.constant dense<0.000000e+00> : vector<1x288xf32>
    %92 = tpu.matmul %91, %36, %cst_49 {dimension_numbers = #tpu.dot_dimension_numbers<[1], [0], [0], [1], [0, 0, 1, 1], [], []>} : vector<1x192xf32>, vector<192x288xf32>, vector<1x288xf32> -> vector<1x288xf32>
    %93 = arith.addf %92, %37 : vector<1x288xf32>
    %94 = vector.extract_strided_slice %93 {offsets = [0, 0], sizes = [1, 128], strides = [1, 1]} : vector<1x288xf32> to vector<1x128xf32>
    %95 = vector.extract_strided_slice %93 {offsets = [0, 128], sizes = [1, 160], strides = [1, 1]} : vector<1x288xf32> to vector<1x160xf32>
    %c6_i32_50 = arith.constant 6 : i32
    %96 = vector.broadcast %c6_i32_50 : i32 to vector<1x1xi32>
    %97 = arith.cmpi slt, %46, %96 : vector<1x1xi32>
    %c2_i32_51 = arith.constant 2 : i32
    %98 = vector.broadcast %c2_i32_51 : i32 to vector<1x1xi32>
    %99 = arith.cmpi sge, %45, %98 : vector<1x1xi32>
    %c0_i32_52 = arith.constant 0 : i32
    %100 = vector.broadcast %c0_i32_52 : i32 to vector<1x128xi32>
    %101 = arith.cmpi eq, %40, %100 : vector<1x128xi32>
    %102 = vector.broadcast %97 : vector<1x1xi1> to vector<1x128xi1>
    %103 = arith.andi %101, %102 : vector<1x128xi1>
    %c1_i32_53 = arith.constant 1 : i32
    %104 = vector.broadcast %c1_i32_53 : i32 to vector<1x128xi32>
    %105 = arith.cmpi eq, %40, %104 : vector<1x128xi32>
    %106 = vector.broadcast %99 : vector<1x1xi1> to vector<1x128xi1>
    %107 = arith.andi %105, %106 : vector<1x128xi1>
    %108 = arith.ori %103, %107 : vector<1x128xi1>
    %c0_i32_54 = arith.constant 0 : i32
    %109 = vector.broadcast %c0_i32_54 : i32 to vector<1x128xi32>
    %110 = arith.cmpi sge, %40, %109 : vector<1x128xi32>
    %c2_i32_55 = arith.constant 2 : i32
    %111 = vector.broadcast %c2_i32_55 : i32 to vector<1x128xi32>
    %112 = arith.cmpi slt, %40, %111 : vector<1x128xi32>
    %113 = arith.andi %110, %112 : vector<1x128xi1>
    %114 = arith.andi %113, %108 : vector<1x128xi1>
    %cst_56 = arith.constant -1.000000e+30 : f32
    %115 = vector.broadcast %cst_56 : f32 to vector<1x128xf32>
    %116 = arith.select %114, %94, %115 : vector<1x128xi1>, vector<1x128xf32>
    %cst_57 = arith.constant dense<0xFF800000> : vector<1xf32>
    %117 = vector.multi_reduction <maximumf>, %116, %cst_57 [1] : vector<1x128xf32> to vector<1xf32>
    %118 = vector.shape_cast %117 : vector<1xf32> to vector<1x1xf32>
    %119 = vector.broadcast %118 : vector<1x1xf32> to vector<1x128xf32>
    %120 = arith.cmpf oge, %116, %119 : vector<1x128xf32>
    %121 = arith.andi %114, %120 : vector<1x128xi1>
    %122 = arith.sitofp %40 : vector<1x128xi32> to vector<1x128xf32>
    %cst_58 = arith.constant 1.000000e+09 : f32
    %123 = vector.broadcast %cst_58 : f32 to vector<1x128xf32>
    %124 = arith.select %121, %122, %123 : vector<1x128xi1>, vector<1x128xf32>
    %cst_59 = arith.constant dense<0x7F800000> : vector<1xf32>
    %125 = vector.multi_reduction <minimumf>, %124, %cst_59 [1] : vector<1x128xf32> to vector<1xf32>
    %126 = vector.shape_cast %125 : vector<1xf32> to vector<1x1xf32>
    %127 = arith.fptosi %126 : vector<1x1xf32> to vector<1x1xi32>
    %c0_i32_60 = arith.constant 0 : i32
    %128 = vector.broadcast %c0_i32_60 : i32 to vector<1x1xi32>
    %129 = arith.subi %127, %128 : vector<1x1xi32>
    %c2_i32_61 = arith.constant 2 : i32
    %130 = vector.broadcast %c2_i32_61 : i32 to vector<1x128xi32>
    %131 = arith.cmpi sge, %40, %130 : vector<1x128xi32>
    %c10_i32 = arith.constant 10 : i32
    %132 = vector.broadcast %c10_i32 : i32 to vector<1x128xi32>
    %133 = arith.cmpi slt, %40, %132 : vector<1x128xi32>
    %134 = arith.andi %131, %133 : vector<1x128xi1>
    %cst_62 = arith.constant -1.000000e+30 : f32
    %135 = vector.broadcast %cst_62 : f32 to vector<1x128xf32>
    %136 = arith.select %134, %94, %135 : vector<1x128xi1>, vector<1x128xf32>
    %cst_63 = arith.constant dense<0xFF800000> : vector<1xf32>
    %137 = vector.multi_reduction <maximumf>, %136, %cst_63 [1] : vector<1x128xf32> to vector<1xf32>
    %138 = vector.shape_cast %137 : vector<1xf32> to vector<1x1xf32>
    %139 = vector.broadcast %138 : vector<1x1xf32> to vector<1x128xf32>
    %140 = arith.cmpf oge, %136, %139 : vector<1x128xf32>
    %141 = arith.andi %134, %140 : vector<1x128xi1>
    %142 = arith.sitofp %40 : vector<1x128xi32> to vector<1x128xf32>
    %cst_64 = arith.constant 1.000000e+09 : f32
    %143 = vector.broadcast %cst_64 : f32 to vector<1x128xf32>
    %144 = arith.select %141, %142, %143 : vector<1x128xi1>, vector<1x128xf32>
    %cst_65 = arith.constant dense<0x7F800000> : vector<1xf32>
    %145 = vector.multi_reduction <minimumf>, %144, %cst_65 [1] : vector<1x128xf32> to vector<1xf32>
    %146 = vector.shape_cast %145 : vector<1xf32> to vector<1x1xf32>
    %147 = arith.fptosi %146 : vector<1x1xf32> to vector<1x1xi32>
    %c2_i32_66 = arith.constant 2 : i32
    %148 = vector.broadcast %c2_i32_66 : i32 to vector<1x1xi32>
    %149 = arith.subi %147, %148 : vector<1x1xi32>
    %c10_i32_67 = arith.constant 10 : i32
    %150 = vector.broadcast %c10_i32_67 : i32 to vector<1x128xi32>
    %151 = arith.cmpi sge, %40, %150 : vector<1x128xi32>
    %c13_i32 = arith.constant 13 : i32
    %152 = vector.broadcast %c13_i32 : i32 to vector<1x128xi32>
    %153 = arith.cmpi slt, %40, %152 : vector<1x128xi32>
    %154 = arith.andi %151, %153 : vector<1x128xi1>
    %cst_68 = arith.constant -1.000000e+30 : f32
    %155 = vector.broadcast %cst_68 : f32 to vector<1x128xf32>
    %156 = arith.select %154, %94, %155 : vector<1x128xi1>, vector<1x128xf32>
    %cst_69 = arith.constant dense<0xFF800000> : vector<1xf32>
    %157 = vector.multi_reduction <maximumf>, %156, %cst_69 [1] : vector<1x128xf32> to vector<1xf32>
    %158 = vector.shape_cast %157 : vector<1xf32> to vector<1x1xf32>
    %159 = vector.broadcast %158 : vector<1x1xf32> to vector<1x128xf32>
    %160 = arith.cmpf oge, %156, %159 : vector<1x128xf32>
    %161 = arith.andi %154, %160 : vector<1x128xi1>
    %162 = arith.sitofp %40 : vector<1x128xi32> to vector<1x128xf32>
    %cst_70 = arith.constant 1.000000e+09 : f32
    %163 = vector.broadcast %cst_70 : f32 to vector<1x128xf32>
    %164 = arith.select %161, %162, %163 : vector<1x128xi1>, vector<1x128xf32>
    %cst_71 = arith.constant dense<0x7F800000> : vector<1xf32>
    %165 = vector.multi_reduction <minimumf>, %164, %cst_71 [1] : vector<1x128xf32> to vector<1xf32>
    %166 = vector.shape_cast %165 : vector<1xf32> to vector<1x1xf32>
    %167 = arith.fptosi %166 : vector<1x1xf32> to vector<1x1xi32>
    %c10_i32_72 = arith.constant 10 : i32
    %168 = vector.broadcast %c10_i32_72 : i32 to vector<1x1xi32>
    %169 = arith.subi %167, %168 : vector<1x1xi32>
    %170 = tpu.iota {dimensions = array<i32: 0>} : vector<8x160xi32>
    %171 = vector.broadcast %149 : vector<1x1xi32> to vector<8x160xi32>
    %172 = arith.cmpi eq, %170, %171 : vector<8x160xi32>
    %cst_73 = arith.constant 0.000000e+00 : f32
    %173 = vector.broadcast %cst_73 : f32 to vector<8x160xf32>
    %174 = arith.select %172, %38, %173 : vector<8x160xi1>, vector<8x160xf32>
    %cst_74 = arith.constant dense<0.000000e+00> : vector<160xf32>
    %175 = vector.multi_reduction <add>, %174, %cst_74 [0] : vector<8x160xf32> to vector<160xf32>
    %176 = vector.shape_cast %175 : vector<160xf32> to vector<1x160xf32>
    %177 = tpu.iota {dimensions = array<i32: 0>} : vector<3x160xi32>
    %178 = vector.broadcast %169 : vector<1x1xi32> to vector<3x160xi32>
    %179 = arith.cmpi eq, %177, %178 : vector<3x160xi32>
    %cst_75 = arith.constant 0.000000e+00 : f32
    %180 = vector.broadcast %cst_75 : f32 to vector<3x160xf32>
    %181 = arith.select %179, %39, %180 : vector<3x160xi1>, vector<3x160xf32>
    %cst_76 = arith.constant dense<0.000000e+00> : vector<160xf32>
    %182 = vector.multi_reduction <add>, %181, %cst_76 [0] : vector<3x160xf32> to vector<160xf32>
    %183 = vector.shape_cast %182 : vector<160xf32> to vector<1x160xf32>
    %184 = arith.addf %176, %183 : vector<1x160xf32>
    %185 = arith.addf %184, %95 : vector<1x160xf32>
    %186 = vector.extract_strided_slice %185 {offsets = [0, 0], sizes = [1, 32], strides = [1, 1]} : vector<1x160xf32> to vector<1x32xf32>
    %187 = arith.negf %186 : vector<1x32xf32>
    %188 = math.exp %187 : vector<1x32xf32>
    %cst_77 = arith.constant 1.000000e+00 : f32
    %189 = vector.broadcast %cst_77 : f32 to vector<1x32xf32>
    %190 = arith.addf %189, %188 : vector<1x32xf32>
    %191 = arith.divf %189, %190 : vector<1x32xf32>
    %192 = vector.extract_strided_slice %185 {offsets = [0, 32], sizes = [1, 32], strides = [1, 1]} : vector<1x160xf32> to vector<1x32xf32>
    %193 = arith.negf %192 : vector<1x32xf32>
    %194 = math.exp %193 : vector<1x32xf32>
    %cst_78 = arith.constant 1.000000e+00 : f32
    %195 = vector.broadcast %cst_78 : f32 to vector<1x32xf32>
    %196 = arith.addf %195, %194 : vector<1x32xf32>
    %197 = arith.divf %195, %196 : vector<1x32xf32>
    %198 = vector.extract_strided_slice %185 {offsets = [0, 64], sizes = [1, 32], strides = [1, 1]} : vector<1x160xf32> to vector<1x32xf32>
    %199 = arith.negf %198 : vector<1x32xf32>
    %200 = math.exp %199 : vector<1x32xf32>
    %cst_79 = arith.constant 1.000000e+00 : f32
    %201 = vector.broadcast %cst_79 : f32 to vector<1x32xf32>
    %202 = arith.addf %201, %200 : vector<1x32xf32>
    %203 = arith.divf %201, %202 : vector<1x32xf32>
    %204 = vector.extract_strided_slice %185 {offsets = [0, 96], sizes = [1, 32], strides = [1, 1]} : vector<1x160xf32> to vector<1x32xf32>
    %205 = arith.negf %204 : vector<1x32xf32>
    %206 = math.exp %205 : vector<1x32xf32>
    %cst_80 = arith.constant 1.000000e+00 : f32
    %207 = vector.broadcast %cst_80 : f32 to vector<1x32xf32>
    %208 = arith.addf %207, %206 : vector<1x32xf32>
    %209 = arith.divf %207, %208 : vector<1x32xf32>
    %210 = vector.extract_strided_slice %185 {offsets = [0, 128], sizes = [1, 32], strides = [1, 1]} : vector<1x160xf32> to vector<1x32xf32>
    %211 = math.tanh %210 : vector<1x32xf32>
    %212 = vector.extract_strided_slice %64 {offsets = [0, 32], sizes = [1, 32], strides = [1, 1]} : vector<1x64xf32> to vector<1x32xf32>
    %213 = vector.extract_strided_slice %78 {offsets = [0, 32], sizes = [1, 32], strides = [1, 1]} : vector<1x64xf32> to vector<1x32xf32>
    %214 = arith.mulf %191, %211 : vector<1x32xf32>
    %215 = arith.mulf %197, %212 : vector<1x32xf32>
    %216 = arith.addf %214, %215 : vector<1x32xf32>
    %217 = arith.mulf %203, %213 : vector<1x32xf32>
    %218 = arith.addf %216, %217 : vector<1x32xf32>
    %219 = math.tanh %218 : vector<1x32xf32>
    %220 = arith.mulf %209, %219 : vector<1x32xf32>
    %221 = tpu.concatenate %220, %218 in 1 : vector<1x32xf32>, vector<1x32xf32> -> vector<1x64xf32>
    %c0_i32_81 = arith.constant 0 : i32
    %222 = vector.broadcast %c0_i32_81 : i32 to vector<1x1xi32>
    %223 = arith.cmpi eq, %129, %222 : vector<1x1xi32>
    %224 = vector.shape_cast %223 : vector<1x1xi1> to vector<1x1xi1>
    %225 = vector.broadcast %224 : vector<1x1xi1> to vector<1x64xi1>
    %226 = arith.select %225, %90, %221 : vector<1x64xi1>, vector<1x64xf32>
    %c2_i32_82 = arith.constant 2 : i32
    %227 = vector.broadcast %c2_i32_82 : i32 to vector<1x1xi32>
    %228 = arith.subi %45, %227 : vector<1x1xi32>
    %229 = arith.select %223, %45, %228 : vector<1x1xi1>, vector<1x1xi32>
    %230 = vector.broadcast %229 : vector<1x1xi32> to vector<6x64xi32>
    %231 = arith.cmpi eq, %42, %230 : vector<6x64xi32>
    %232 = vector.shape_cast %226 : vector<1x64xf32> to vector<1x64xf32>
    %233 = vector.broadcast %232 : vector<1x64xf32> to vector<6x64xf32>
    %234 = arith.select %231, %233, %44 : vector<6x64xi1>, vector<6x64xf32>
    %c1_i32_83 = arith.constant 1 : i32
    %c-1_i32 = arith.constant -1 : i32
    %235 = vector.broadcast %c1_i32_83 : i32 to vector<1x1xi32>
    %236 = vector.broadcast %c-1_i32 : i32 to vector<1x1xi32>
    %237 = arith.select %223, %235, %236 : vector<1x1xi1>, vector<1x1xi32>
    %238 = arith.addi %45, %237 : vector<1x1xi32>
    %c1_i32_84 = arith.constant 1 : i32
    %c0_i32_85 = arith.constant 0 : i32
    %239 = vector.broadcast %c1_i32_84 : i32 to vector<1x1xi32>
    %240 = vector.broadcast %c0_i32_85 : i32 to vector<1x1xi32>
    %241 = arith.select %223, %239, %240 : vector<1x1xi1>, vector<1x1xi32>
    %242 = arith.addi %46, %241 : vector<1x1xi32>
    %243 = vector.broadcast %c0_i32_40 : i32 to vector<1x16xi32>
    %244 = arith.cmpi eq, %41, %243 : vector<1x16xi32>
    %245 = vector.shape_cast %129 : vector<1x1xi32> to vector<1x1xi32>
    %246 = vector.broadcast %245 : vector<1x1xi32> to vector<1x16xi32>
    %247 = arith.select %244, %246, %48 : vector<1x16xi1>, vector<1x16xi32>
    %248 = vector.shape_cast %149 : vector<1x1xi32> to vector<1x1xi32>
    %249 = vector.broadcast %248 : vector<1x1xi32> to vector<1x16xi32>
    %250 = arith.select %244, %249, %49 : vector<1x16xi1>, vector<1x16xi32>
    %251 = vector.shape_cast %169 : vector<1x1xi32> to vector<1x1xi32>
    %252 = vector.broadcast %251 : vector<1x1xi32> to vector<1x16xi32>
    %253 = arith.select %244, %252, %50 : vector<1x16xi1>, vector<1x16xi32>
    %254 = vector.broadcast %c0_i32_40 : i32 to vector<16x64xi32>
    %255 = arith.cmpi eq, %43, %254 : vector<16x64xi32>
    %256 = vector.shape_cast %226 : vector<1x64xf32> to vector<1x64xf32>
    %257 = vector.broadcast %256 : vector<1x64xf32> to vector<16x64xf32>
    %258 = arith.select %255, %257, %47 : vector<16x64xi1>, vector<16x64xf32>
    %c1_i32_86 = arith.constant 1 : i32
    %c2_i32_87 = arith.constant 2 : i32
    %259 = vector.broadcast %c2_i32_87 : i32 to vector<1x1xi32>
    %260 = arith.cmpi sge, %238, %259 : vector<1x1xi32>
    %c2_i32_88 = arith.constant 2 : i32
    %261 = vector.broadcast %c2_i32_88 : i32 to vector<1x1xi32>
    %262 = arith.subi %238, %261 : vector<1x1xi32>
    %263 = tpu.iota {dimensions = array<i32: 0>} : vector<6x64xi32>
    %264 = vector.broadcast %262 : vector<1x1xi32> to vector<6x64xi32>
    %265 = arith.cmpi eq, %263, %264 : vector<6x64xi32>
    %cst_89 = arith.constant 0.000000e+00 : f32
    %266 = vector.broadcast %cst_89 : f32 to vector<6x64xf32>
    %267 = arith.select %265, %234, %266 : vector<6x64xi1>, vector<6x64xf32>
    %cst_90 = arith.constant dense<0.000000e+00> : vector<64xf32>
    %268 = vector.multi_reduction <add>, %267, %cst_90 [0] : vector<6x64xf32> to vector<64xf32>
    %269 = vector.shape_cast %268 : vector<64xf32> to vector<1x64xf32>
    %270 = vector.shape_cast %260 : vector<1x1xi1> to vector<1x1xi1>
    %271 = vector.broadcast %270 : vector<1x1xi1> to vector<1x64xi1>
    %272 = arith.select %271, %269, %35 : vector<1x64xi1>, vector<1x64xf32>
    %c1_i32_91 = arith.constant 1 : i32
    %273 = vector.broadcast %c1_i32_91 : i32 to vector<1x1xi32>
    %274 = arith.cmpi sge, %238, %273 : vector<1x1xi32>
    %c1_i32_92 = arith.constant 1 : i32
    %275 = vector.broadcast %c1_i32_92 : i32 to vector<1x1xi32>
    %276 = arith.subi %238, %275 : vector<1x1xi32>
    %277 = tpu.iota {dimensions = array<i32: 0>} : vector<6x64xi32>
    %278 = vector.broadcast %276 : vector<1x1xi32> to vector<6x64xi32>
    %279 = arith.cmpi eq, %277, %278 : vector<6x64xi32>
    %cst_93 = arith.constant 0.000000e+00 : f32
    %280 = vector.broadcast %cst_93 : f32 to vector<6x64xf32>
    %281 = arith.select %279, %234, %280 : vector<6x64xi1>, vector<6x64xf32>
    %cst_94 = arith.constant dense<0.000000e+00> : vector<64xf32>
    %282 = vector.multi_reduction <add>, %281, %cst_94 [0] : vector<6x64xf32> to vector<64xf32>
    %283 = vector.shape_cast %282 : vector<64xf32> to vector<1x64xf32>
    %284 = vector.shape_cast %274 : vector<1x1xi1> to vector<1x1xi1>
    %285 = vector.broadcast %284 : vector<1x1xi1> to vector<1x64xi1>
    %286 = arith.select %285, %283, %35 : vector<1x64xi1>, vector<1x64xf32>
    %c6_i32_95 = arith.constant 6 : i32
    %287 = vector.broadcast %c6_i32_95 : i32 to vector<1x1xi32>
    %288 = arith.cmpi slt, %242, %287 : vector<1x1xi32>
    %289 = tpu.iota {dimensions = array<i32: 0>} : vector<6x64xi32>
    %290 = vector.broadcast %242 : vector<1x1xi32> to vector<6x64xi32>
    %291 = arith.cmpi eq, %289, %290 : vector<6x64xi32>
    %cst_96 = arith.constant 0.000000e+00 : f32
    %292 = vector.broadcast %cst_96 : f32 to vector<6x64xf32>
    %293 = arith.select %291, %33, %292 : vector<6x64xi1>, vector<6x64xf32>
    %cst_97 = arith.constant dense<0.000000e+00> : vector<64xf32>
    %294 = vector.multi_reduction <add>, %293, %cst_97 [0] : vector<6x64xf32> to vector<64xf32>
    %295 = vector.shape_cast %294 : vector<64xf32> to vector<1x64xf32>
    %296 = vector.shape_cast %288 : vector<1x1xi1> to vector<1x1xi1>
    %297 = vector.broadcast %296 : vector<1x1xi1> to vector<1x64xi1>
    %298 = arith.select %297, %295, %35 : vector<1x64xi1>, vector<1x64xf32>
    %299 = tpu.concatenate %272, %286, %298 in 1 : vector<1x64xf32>, vector<1x64xf32>, vector<1x64xf32> -> vector<1x192xf32>
    %cst_98 = arith.constant dense<0.000000e+00> : vector<1x288xf32>
    %300 = tpu.matmul %299, %36, %cst_98 {dimension_numbers = #tpu.dot_dimension_numbers<[1], [0], [0], [1], [0, 0, 1, 1], [], []>} : vector<1x192xf32>, vector<192x288xf32>, vector<1x288xf32> -> vector<1x288xf32>
    %301 = arith.addf %300, %37 : vector<1x288xf32>
    %302 = vector.extract_strided_slice %301 {offsets = [0, 0], sizes = [1, 128], strides = [1, 1]} : vector<1x288xf32> to vector<1x128xf32>
    %303 = vector.extract_strided_slice %301 {offsets = [0, 128], sizes = [1, 160], strides = [1, 1]} : vector<1x288xf32> to vector<1x160xf32>
    %c6_i32_99 = arith.constant 6 : i32
    %304 = vector.broadcast %c6_i32_99 : i32 to vector<1x1xi32>
    %305 = arith.cmpi slt, %242, %304 : vector<1x1xi32>
    %c2_i32_100 = arith.constant 2 : i32
    %306 = vector.broadcast %c2_i32_100 : i32 to vector<1x1xi32>
    %307 = arith.cmpi sge, %238, %306 : vector<1x1xi32>
    %c0_i32_101 = arith.constant 0 : i32
    %308 = vector.broadcast %c0_i32_101 : i32 to vector<1x128xi32>
    %309 = arith.cmpi eq, %40, %308 : vector<1x128xi32>
    %310 = vector.broadcast %305 : vector<1x1xi1> to vector<1x128xi1>
    %311 = arith.andi %309, %310 : vector<1x128xi1>
    %c1_i32_102 = arith.constant 1 : i32
    %312 = vector.broadcast %c1_i32_102 : i32 to vector<1x128xi32>
    %313 = arith.cmpi eq, %40, %312 : vector<1x128xi32>
    %314 = vector.broadcast %307 : vector<1x1xi1> to vector<1x128xi1>
    %315 = arith.andi %313, %314 : vector<1x128xi1>
    %316 = arith.ori %311, %315 : vector<1x128xi1>
    %c0_i32_103 = arith.constant 0 : i32
    %317 = vector.broadcast %c0_i32_103 : i32 to vector<1x128xi32>
    %318 = arith.cmpi sge, %40, %317 : vector<1x128xi32>
    %c2_i32_104 = arith.constant 2 : i32
    %319 = vector.broadcast %c2_i32_104 : i32 to vector<1x128xi32>
    %320 = arith.cmpi slt, %40, %319 : vector<1x128xi32>
    %321 = arith.andi %318, %320 : vector<1x128xi1>
    %322 = arith.andi %321, %316 : vector<1x128xi1>
    %cst_105 = arith.constant -1.000000e+30 : f32
    %323 = vector.broadcast %cst_105 : f32 to vector<1x128xf32>
    %324 = arith.select %322, %302, %323 : vector<1x128xi1>, vector<1x128xf32>
    %cst_106 = arith.constant dense<0xFF800000> : vector<1xf32>
    %325 = vector.multi_reduction <maximumf>, %324, %cst_106 [1] : vector<1x128xf32> to vector<1xf32>
    %326 = vector.shape_cast %325 : vector<1xf32> to vector<1x1xf32>
    %327 = vector.broadcast %326 : vector<1x1xf32> to vector<1x128xf32>
    %328 = arith.cmpf oge, %324, %327 : vector<1x128xf32>
    %329 = arith.andi %322, %328 : vector<1x128xi1>
    %330 = arith.sitofp %40 : vector<1x128xi32> to vector<1x128xf32>
    %cst_107 = arith.constant 1.000000e+09 : f32
    %331 = vector.broadcast %cst_107 : f32 to vector<1x128xf32>
    %332 = arith.select %329, %330, %331 : vector<1x128xi1>, vector<1x128xf32>
    %cst_108 = arith.constant dense<0x7F800000> : vector<1xf32>
    %333 = vector.multi_reduction <minimumf>, %332, %cst_108 [1] : vector<1x128xf32> to vector<1xf32>
    %334 = vector.shape_cast %333 : vector<1xf32> to vector<1x1xf32>
    %335 = arith.fptosi %334 : vector<1x1xf32> to vector<1x1xi32>
    %c0_i32_109 = arith.constant 0 : i32
    %336 = vector.broadcast %c0_i32_109 : i32 to vector<1x1xi32>
    %337 = arith.subi %335, %336 : vector<1x1xi32>
    %c2_i32_110 = arith.constant 2 : i32
    %338 = vector.broadcast %c2_i32_110 : i32 to vector<1x128xi32>
    %339 = arith.cmpi sge, %40, %338 : vector<1x128xi32>
    %c10_i32_111 = arith.constant 10 : i32
    %340 = vector.broadcast %c10_i32_111 : i32 to vector<1x128xi32>
    %341 = arith.cmpi slt, %40, %340 : vector<1x128xi32>
    %342 = arith.andi %339, %341 : vector<1x128xi1>
    %cst_112 = arith.constant -1.000000e+30 : f32
    %343 = vector.broadcast %cst_112 : f32 to vector<1x128xf32>
    %344 = arith.select %342, %302, %343 : vector<1x128xi1>, vector<1x128xf32>
    %cst_113 = arith.constant dense<0xFF800000> : vector<1xf32>
    %345 = vector.multi_reduction <maximumf>, %344, %cst_113 [1] : vector<1x128xf32> to vector<1xf32>
    %346 = vector.shape_cast %345 : vector<1xf32> to vector<1x1xf32>
    %347 = vector.broadcast %346 : vector<1x1xf32> to vector<1x128xf32>
    %348 = arith.cmpf oge, %344, %347 : vector<1x128xf32>
    %349 = arith.andi %342, %348 : vector<1x128xi1>
    %350 = arith.sitofp %40 : vector<1x128xi32> to vector<1x128xf32>
    %cst_114 = arith.constant 1.000000e+09 : f32
    %351 = vector.broadcast %cst_114 : f32 to vector<1x128xf32>
    %352 = arith.select %349, %350, %351 : vector<1x128xi1>, vector<1x128xf32>
    %cst_115 = arith.constant dense<0x7F800000> : vector<1xf32>
    %353 = vector.multi_reduction <minimumf>, %352, %cst_115 [1] : vector<1x128xf32> to vector<1xf32>
    %354 = vector.shape_cast %353 : vector<1xf32> to vector<1x1xf32>
    %355 = arith.fptosi %354 : vector<1x1xf32> to vector<1x1xi32>
    %c2_i32_116 = arith.constant 2 : i32
    %356 = vector.broadcast %c2_i32_116 : i32 to vector<1x1xi32>
    %357 = arith.subi %355, %356 : vector<1x1xi32>
    %c10_i32_117 = arith.constant 10 : i32
    %358 = vector.broadcast %c10_i32_117 : i32 to vector<1x128xi32>
    %359 = arith.cmpi sge, %40, %358 : vector<1x128xi32>
    %c13_i32_118 = arith.constant 13 : i32
    %360 = vector.broadcast %c13_i32_118 : i32 to vector<1x128xi32>
    %361 = arith.cmpi slt, %40, %360 : vector<1x128xi32>
    %362 = arith.andi %359, %361 : vector<1x128xi1>
    %cst_119 = arith.constant -1.000000e+30 : f32
    %363 = vector.broadcast %cst_119 : f32 to vector<1x128xf32>
    %364 = arith.select %362, %302, %363 : vector<1x128xi1>, vector<1x128xf32>
    %cst_120 = arith.constant dense<0xFF800000> : vector<1xf32>
    %365 = vector.multi_reduction <maximumf>, %364, %cst_120 [1] : vector<1x128xf32> to vector<1xf32>
    %366 = vector.shape_cast %365 : vector<1xf32> to vector<1x1xf32>
    %367 = vector.broadcast %366 : vector<1x1xf32> to vector<1x128xf32>
    %368 = arith.cmpf oge, %364, %367 : vector<1x128xf32>
    %369 = arith.andi %362, %368 : vector<1x128xi1>
    %370 = arith.sitofp %40 : vector<1x128xi32> to vector<1x128xf32>
    %cst_121 = arith.constant 1.000000e+09 : f32
    %371 = vector.broadcast %cst_121 : f32 to vector<1x128xf32>
    %372 = arith.select %369, %370, %371 : vector<1x128xi1>, vector<1x128xf32>
    %cst_122 = arith.constant dense<0x7F800000> : vector<1xf32>
    %373 = vector.multi_reduction <minimumf>, %372, %cst_122 [1] : vector<1x128xf32> to vector<1xf32>
    %374 = vector.shape_cast %373 : vector<1xf32> to vector<1x1xf32>
    %375 = arith.fptosi %374 : vector<1x1xf32> to vector<1x1xi32>
    %c10_i32_123 = arith.constant 10 : i32
    %376 = vector.broadcast %c10_i32_123 : i32 to vector<1x1xi32>
    %377 = arith.subi %375, %376 : vector<1x1xi32>
    %378 = tpu.iota {dimensions = array<i32: 0>} : vector<8x160xi32>
    %379 = vector.broadcast %357 : vector<1x1xi32> to vector<8x160xi32>
    %380 = arith.cmpi eq, %378, %379 : vector<8x160xi32>
    %cst_124 = arith.constant 0.000000e+00 : f32
    %381 = vector.broadcast %cst_124 : f32 to vector<8x160xf32>
    %382 = arith.select %380, %38, %381 : vector<8x160xi1>, vector<8x160xf32>
    %cst_125 = arith.constant dense<0.000000e+00> : vector<160xf32>
    %383 = vector.multi_reduction <add>, %382, %cst_125 [0] : vector<8x160xf32> to vector<160xf32>
    %384 = vector.shape_cast %383 : vector<160xf32> to vector<1x160xf32>
    %385 = tpu.iota {dimensions = array<i32: 0>} : vector<3x160xi32>
    %386 = vector.broadcast %377 : vector<1x1xi32> to vector<3x160xi32>
    %387 = arith.cmpi eq, %385, %386 : vector<3x160xi32>
    %cst_126 = arith.constant 0.000000e+00 : f32
    %388 = vector.broadcast %cst_126 : f32 to vector<3x160xf32>
    %389 = arith.select %387, %39, %388 : vector<3x160xi1>, vector<3x160xf32>
    %cst_127 = arith.constant dense<0.000000e+00> : vector<160xf32>
    %390 = vector.multi_reduction <add>, %389, %cst_127 [0] : vector<3x160xf32> to vector<160xf32>
    %391 = vector.shape_cast %390 : vector<160xf32> to vector<1x160xf32>
    %392 = arith.addf %384, %391 : vector<1x160xf32>
    %393 = arith.addf %392, %303 : vector<1x160xf32>
    %394 = vector.extract_strided_slice %393 {offsets = [0, 0], sizes = [1, 32], strides = [1, 1]} : vector<1x160xf32> to vector<1x32xf32>
    %395 = arith.negf %394 : vector<1x32xf32>
    %396 = math.exp %395 : vector<1x32xf32>
    %cst_128 = arith.constant 1.000000e+00 : f32
    %397 = vector.broadcast %cst_128 : f32 to vector<1x32xf32>
    %398 = arith.addf %397, %396 : vector<1x32xf32>
    %399 = arith.divf %397, %398 : vector<1x32xf32>
    %400 = vector.extract_strided_slice %393 {offsets = [0, 32], sizes = [1, 32], strides = [1, 1]} : vector<1x160xf32> to vector<1x32xf32>
    %401 = arith.negf %400 : vector<1x32xf32>
    %402 = math.exp %401 : vector<1x32xf32>
    %cst_129 = arith.constant 1.000000e+00 : f32
    %403 = vector.broadcast %cst_129 : f32 to vector<1x32xf32>
    %404 = arith.addf %403, %402 : vector<1x32xf32>
    %405 = arith.divf %403, %404 : vector<1x32xf32>
    %406 = vector.extract_strided_slice %393 {offsets = [0, 64], sizes = [1, 32], strides = [1, 1]} : vector<1x160xf32> to vector<1x32xf32>
    %407 = arith.negf %406 : vector<1x32xf32>
    %408 = math.exp %407 : vector<1x32xf32>
    %cst_130 = arith.constant 1.000000e+00 : f32
    %409 = vector.broadcast %cst_130 : f32 to vector<1x32xf32>
    %410 = arith.addf %409, %408 : vector<1x32xf32>
    %411 = arith.divf %409, %410 : vector<1x32xf32>
    %412 = vector.extract_strided_slice %393 {offsets = [0, 96], sizes = [1, 32], strides = [1, 1]} : vector<1x160xf32> to vector<1x32xf32>
    %413 = arith.negf %412 : vector<1x32xf32>
    %414 = math.exp %413 : vector<1x32xf32>
    %cst_131 = arith.constant 1.000000e+00 : f32
    %415 = vector.broadcast %cst_131 : f32 to vector<1x32xf32>
    %416 = arith.addf %415, %414 : vector<1x32xf32>
    %417 = arith.divf %415, %416 : vector<1x32xf32>
    %418 = vector.extract_strided_slice %393 {offsets = [0, 128], sizes = [1, 32], strides = [1, 1]} : vector<1x160xf32> to vector<1x32xf32>
    %419 = math.tanh %418 : vector<1x32xf32>
    %420 = vector.extract_strided_slice %272 {offsets = [0, 32], sizes = [1, 32], strides = [1, 1]} : vector<1x64xf32> to vector<1x32xf32>
    %421 = vector.extract_strided_slice %286 {offsets = [0, 32], sizes = [1, 32], strides = [1, 1]} : vector<1x64xf32> to vector<1x32xf32>
    %422 = arith.mulf %399, %419 : vector<1x32xf32>
    %423 = arith.mulf %405, %420 : vector<1x32xf32>
    %424 = arith.addf %422, %423 : vector<1x32xf32>
    %425 = arith.mulf %411, %421 : vector<1x32xf32>
    %426 = arith.addf %424, %425 : vector<1x32xf32>
    %427 = math.tanh %426 : vector<1x32xf32>
    %428 = arith.mulf %417, %427 : vector<1x32xf32>
    %429 = tpu.concatenate %428, %426 in 1 : vector<1x32xf32>, vector<1x32xf32> -> vector<1x64xf32>
    %c0_i32_132 = arith.constant 0 : i32
    %430 = vector.broadcast %c0_i32_132 : i32 to vector<1x1xi32>
    %431 = arith.cmpi eq, %337, %430 : vector<1x1xi32>
    %432 = vector.shape_cast %431 : vector<1x1xi1> to vector<1x1xi1>
    %433 = vector.broadcast %432 : vector<1x1xi1> to vector<1x64xi1>
    %434 = arith.select %433, %298, %429 : vector<1x64xi1>, vector<1x64xf32>
    %c2_i32_133 = arith.constant 2 : i32
    %435 = vector.broadcast %c2_i32_133 : i32 to vector<1x1xi32>
    %436 = arith.subi %238, %435 : vector<1x1xi32>
    %437 = arith.select %431, %238, %436 : vector<1x1xi1>, vector<1x1xi32>
    %438 = vector.broadcast %437 : vector<1x1xi32> to vector<6x64xi32>
    %439 = arith.cmpi eq, %42, %438 : vector<6x64xi32>
    %440 = vector.shape_cast %434 : vector<1x64xf32> to vector<1x64xf32>
    %441 = vector.broadcast %440 : vector<1x64xf32> to vector<6x64xf32>
    %442 = arith.select %439, %441, %234 : vector<6x64xi1>, vector<6x64xf32>
    %c1_i32_134 = arith.constant 1 : i32
    %c-1_i32_135 = arith.constant -1 : i32
    %443 = vector.broadcast %c1_i32_134 : i32 to vector<1x1xi32>
    %444 = vector.broadcast %c-1_i32_135 : i32 to vector<1x1xi32>
    %445 = arith.select %431, %443, %444 : vector<1x1xi1>, vector<1x1xi32>
    %446 = arith.addi %238, %445 : vector<1x1xi32>
    %c1_i32_136 = arith.constant 1 : i32
    %c0_i32_137 = arith.constant 0 : i32
    %447 = vector.broadcast %c1_i32_136 : i32 to vector<1x1xi32>
    %448 = vector.broadcast %c0_i32_137 : i32 to vector<1x1xi32>
    %449 = arith.select %431, %447, %448 : vector<1x1xi1>, vector<1x1xi32>
    %450 = arith.addi %242, %449 : vector<1x1xi32>
    %451 = vector.broadcast %c1_i32_86 : i32 to vector<1x16xi32>
    %452 = arith.cmpi eq, %41, %451 : vector<1x16xi32>
    %453 = vector.shape_cast %337 : vector<1x1xi32> to vector<1x1xi32>
    %454 = vector.broadcast %453 : vector<1x1xi32> to vector<1x16xi32>
    %455 = arith.select %452, %454, %247 : vector<1x16xi1>, vector<1x16xi32>
    %456 = vector.shape_cast %357 : vector<1x1xi32> to vector<1x1xi32>
    %457 = vector.broadcast %456 : vector<1x1xi32> to vector<1x16xi32>
    %458 = arith.select %452, %457, %250 : vector<1x16xi1>, vector<1x16xi32>
    %459 = vector.shape_cast %377 : vector<1x1xi32> to vector<1x1xi32>
    %460 = vector.broadcast %459 : vector<1x1xi32> to vector<1x16xi32>
    %461 = arith.select %452, %460, %253 : vector<1x16xi1>, vector<1x16xi32>
    %462 = vector.broadcast %c1_i32_86 : i32 to vector<16x64xi32>
    %463 = arith.cmpi eq, %43, %462 : vector<16x64xi32>
    %464 = vector.shape_cast %434 : vector<1x64xf32> to vector<1x64xf32>
    %465 = vector.broadcast %464 : vector<1x64xf32> to vector<16x64xf32>
    %466 = arith.select %463, %465, %258 : vector<16x64xi1>, vector<16x64xf32>
    %c2_i32_138 = arith.constant 2 : i32
    %c2_i32_139 = arith.constant 2 : i32
    %467 = vector.broadcast %c2_i32_139 : i32 to vector<1x1xi32>
    %468 = arith.cmpi sge, %446, %467 : vector<1x1xi32>
    %c2_i32_140 = arith.constant 2 : i32
    %469 = vector.broadcast %c2_i32_140 : i32 to vector<1x1xi32>
    %470 = arith.subi %446, %469 : vector<1x1xi32>
    %471 = tpu.iota {dimensions = array<i32: 0>} : vector<6x64xi32>
    %472 = vector.broadcast %470 : vector<1x1xi32> to vector<6x64xi32>
    %473 = arith.cmpi eq, %471, %472 : vector<6x64xi32>
    %cst_141 = arith.constant 0.000000e+00 : f32
    %474 = vector.broadcast %cst_141 : f32 to vector<6x64xf32>
    %475 = arith.select %473, %442, %474 : vector<6x64xi1>, vector<6x64xf32>
    %cst_142 = arith.constant dense<0.000000e+00> : vector<64xf32>
    %476 = vector.multi_reduction <add>, %475, %cst_142 [0] : vector<6x64xf32> to vector<64xf32>
    %477 = vector.shape_cast %476 : vector<64xf32> to vector<1x64xf32>
    %478 = vector.shape_cast %468 : vector<1x1xi1> to vector<1x1xi1>
    %479 = vector.broadcast %478 : vector<1x1xi1> to vector<1x64xi1>
    %480 = arith.select %479, %477, %35 : vector<1x64xi1>, vector<1x64xf32>
    %c1_i32_143 = arith.constant 1 : i32
    %481 = vector.broadcast %c1_i32_143 : i32 to vector<1x1xi32>
    %482 = arith.cmpi sge, %446, %481 : vector<1x1xi32>
    %c1_i32_144 = arith.constant 1 : i32
    %483 = vector.broadcast %c1_i32_144 : i32 to vector<1x1xi32>
    %484 = arith.subi %446, %483 : vector<1x1xi32>
    %485 = tpu.iota {dimensions = array<i32: 0>} : vector<6x64xi32>
    %486 = vector.broadcast %484 : vector<1x1xi32> to vector<6x64xi32>
    %487 = arith.cmpi eq, %485, %486 : vector<6x64xi32>
    %cst_145 = arith.constant 0.000000e+00 : f32
    %488 = vector.broadcast %cst_145 : f32 to vector<6x64xf32>
    %489 = arith.select %487, %442, %488 : vector<6x64xi1>, vector<6x64xf32>
    %cst_146 = arith.constant dense<0.000000e+00> : vector<64xf32>
    %490 = vector.multi_reduction <add>, %489, %cst_146 [0] : vector<6x64xf32> to vector<64xf32>
    %491 = vector.shape_cast %490 : vector<64xf32> to vector<1x64xf32>
    %492 = vector.shape_cast %482 : vector<1x1xi1> to vector<1x1xi1>
    %493 = vector.broadcast %492 : vector<1x1xi1> to vector<1x64xi1>
    %494 = arith.select %493, %491, %35 : vector<1x64xi1>, vector<1x64xf32>
    %c6_i32_147 = arith.constant 6 : i32
    %495 = vector.broadcast %c6_i32_147 : i32 to vector<1x1xi32>
    %496 = arith.cmpi slt, %450, %495 : vector<1x1xi32>
    %497 = tpu.iota {dimensions = array<i32: 0>} : vector<6x64xi32>
    %498 = vector.broadcast %450 : vector<1x1xi32> to vector<6x64xi32>
    %499 = arith.cmpi eq, %497, %498 : vector<6x64xi32>
    %cst_148 = arith.constant 0.000000e+00 : f32
    %500 = vector.broadcast %cst_148 : f32 to vector<6x64xf32>
    %501 = arith.select %499, %33, %500 : vector<6x64xi1>, vector<6x64xf32>
    %cst_149 = arith.constant dense<0.000000e+00> : vector<64xf32>
    %502 = vector.multi_reduction <add>, %501, %cst_149 [0] : vector<6x64xf32> to vector<64xf32>
    %503 = vector.shape_cast %502 : vector<64xf32> to vector<1x64xf32>
    %504 = vector.shape_cast %496 : vector<1x1xi1> to vector<1x1xi1>
    %505 = vector.broadcast %504 : vector<1x1xi1> to vector<1x64xi1>
    %506 = arith.select %505, %503, %35 : vector<1x64xi1>, vector<1x64xf32>
    %507 = tpu.concatenate %480, %494, %506 in 1 : vector<1x64xf32>, vector<1x64xf32>, vector<1x64xf32> -> vector<1x192xf32>
    %cst_150 = arith.constant dense<0.000000e+00> : vector<1x288xf32>
    %508 = tpu.matmul %507, %36, %cst_150 {dimension_numbers = #tpu.dot_dimension_numbers<[1], [0], [0], [1], [0, 0, 1, 1], [], []>} : vector<1x192xf32>, vector<192x288xf32>, vector<1x288xf32> -> vector<1x288xf32>
    %509 = arith.addf %508, %37 : vector<1x288xf32>
    %510 = vector.extract_strided_slice %509 {offsets = [0, 0], sizes = [1, 128], strides = [1, 1]} : vector<1x288xf32> to vector<1x128xf32>
    %511 = vector.extract_strided_slice %509 {offsets = [0, 128], sizes = [1, 160], strides = [1, 1]} : vector<1x288xf32> to vector<1x160xf32>
    %c6_i32_151 = arith.constant 6 : i32
    %512 = vector.broadcast %c6_i32_151 : i32 to vector<1x1xi32>
    %513 = arith.cmpi slt, %450, %512 : vector<1x1xi32>
    %c2_i32_152 = arith.constant 2 : i32
    %514 = vector.broadcast %c2_i32_152 : i32 to vector<1x1xi32>
    %515 = arith.cmpi sge, %446, %514 : vector<1x1xi32>
    %c0_i32_153 = arith.constant 0 : i32
    %516 = vector.broadcast %c0_i32_153 : i32 to vector<1x128xi32>
    %517 = arith.cmpi eq, %40, %516 : vector<1x128xi32>
    %518 = vector.broadcast %513 : vector<1x1xi1> to vector<1x128xi1>
    %519 = arith.andi %517, %518 : vector<1x128xi1>
    %c1_i32_154 = arith.constant 1 : i32
    %520 = vector.broadcast %c1_i32_154 : i32 to vector<1x128xi32>
    %521 = arith.cmpi eq, %40, %520 : vector<1x128xi32>
    %522 = vector.broadcast %515 : vector<1x1xi1> to vector<1x128xi1>
    %523 = arith.andi %521, %522 : vector<1x128xi1>
    %524 = arith.ori %519, %523 : vector<1x128xi1>
    %c0_i32_155 = arith.constant 0 : i32
    %525 = vector.broadcast %c0_i32_155 : i32 to vector<1x128xi32>
    %526 = arith.cmpi sge, %40, %525 : vector<1x128xi32>
    %c2_i32_156 = arith.constant 2 : i32
    %527 = vector.broadcast %c2_i32_156 : i32 to vector<1x128xi32>
    %528 = arith.cmpi slt, %40, %527 : vector<1x128xi32>
    %529 = arith.andi %526, %528 : vector<1x128xi1>
    %530 = arith.andi %529, %524 : vector<1x128xi1>
    %cst_157 = arith.constant -1.000000e+30 : f32
    %531 = vector.broadcast %cst_157 : f32 to vector<1x128xf32>
    %532 = arith.select %530, %510, %531 : vector<1x128xi1>, vector<1x128xf32>
    %cst_158 = arith.constant dense<0xFF800000> : vector<1xf32>
    %533 = vector.multi_reduction <maximumf>, %532, %cst_158 [1] : vector<1x128xf32> to vector<1xf32>
    %534 = vector.shape_cast %533 : vector<1xf32> to vector<1x1xf32>
    %535 = vector.broadcast %534 : vector<1x1xf32> to vector<1x128xf32>
    %536 = arith.cmpf oge, %532, %535 : vector<1x128xf32>
    %537 = arith.andi %530, %536 : vector<1x128xi1>
    %538 = arith.sitofp %40 : vector<1x128xi32> to vector<1x128xf32>
    %cst_159 = arith.constant 1.000000e+09 : f32
    %539 = vector.broadcast %cst_159 : f32 to vector<1x128xf32>
    %540 = arith.select %537, %538, %539 : vector<1x128xi1>, vector<1x128xf32>
    %cst_160 = arith.constant dense<0x7F800000> : vector<1xf32>
    %541 = vector.multi_reduction <minimumf>, %540, %cst_160 [1] : vector<1x128xf32> to vector<1xf32>
    %542 = vector.shape_cast %541 : vector<1xf32> to vector<1x1xf32>
    %543 = arith.fptosi %542 : vector<1x1xf32> to vector<1x1xi32>
    %c0_i32_161 = arith.constant 0 : i32
    %544 = vector.broadcast %c0_i32_161 : i32 to vector<1x1xi32>
    %545 = arith.subi %543, %544 : vector<1x1xi32>
    %c2_i32_162 = arith.constant 2 : i32
    %546 = vector.broadcast %c2_i32_162 : i32 to vector<1x128xi32>
    %547 = arith.cmpi sge, %40, %546 : vector<1x128xi32>
    %c10_i32_163 = arith.constant 10 : i32
    %548 = vector.broadcast %c10_i32_163 : i32 to vector<1x128xi32>
    %549 = arith.cmpi slt, %40, %548 : vector<1x128xi32>
    %550 = arith.andi %547, %549 : vector<1x128xi1>
    %cst_164 = arith.constant -1.000000e+30 : f32
    %551 = vector.broadcast %cst_164 : f32 to vector<1x128xf32>
    %552 = arith.select %550, %510, %551 : vector<1x128xi1>, vector<1x128xf32>
    %cst_165 = arith.constant dense<0xFF800000> : vector<1xf32>
    %553 = vector.multi_reduction <maximumf>, %552, %cst_165 [1] : vector<1x128xf32> to vector<1xf32>
    %554 = vector.shape_cast %553 : vector<1xf32> to vector<1x1xf32>
    %555 = vector.broadcast %554 : vector<1x1xf32> to vector<1x128xf32>
    %556 = arith.cmpf oge, %552, %555 : vector<1x128xf32>
    %557 = arith.andi %550, %556 : vector<1x128xi1>
    %558 = arith.sitofp %40 : vector<1x128xi32> to vector<1x128xf32>
    %cst_166 = arith.constant 1.000000e+09 : f32
    %559 = vector.broadcast %cst_166 : f32 to vector<1x128xf32>
    %560 = arith.select %557, %558, %559 : vector<1x128xi1>, vector<1x128xf32>
    %cst_167 = arith.constant dense<0x7F800000> : vector<1xf32>
    %561 = vector.multi_reduction <minimumf>, %560, %cst_167 [1] : vector<1x128xf32> to vector<1xf32>
    %562 = vector.shape_cast %561 : vector<1xf32> to vector<1x1xf32>
    %563 = arith.fptosi %562 : vector<1x1xf32> to vector<1x1xi32>
    %c2_i32_168 = arith.constant 2 : i32
    %564 = vector.broadcast %c2_i32_168 : i32 to vector<1x1xi32>
    %565 = arith.subi %563, %564 : vector<1x1xi32>
    %c10_i32_169 = arith.constant 10 : i32
    %566 = vector.broadcast %c10_i32_169 : i32 to vector<1x128xi32>
    %567 = arith.cmpi sge, %40, %566 : vector<1x128xi32>
    %c13_i32_170 = arith.constant 13 : i32
    %568 = vector.broadcast %c13_i32_170 : i32 to vector<1x128xi32>
    %569 = arith.cmpi slt, %40, %568 : vector<1x128xi32>
    %570 = arith.andi %567, %569 : vector<1x128xi1>
    %cst_171 = arith.constant -1.000000e+30 : f32
    %571 = vector.broadcast %cst_171 : f32 to vector<1x128xf32>
    %572 = arith.select %570, %510, %571 : vector<1x128xi1>, vector<1x128xf32>
    %cst_172 = arith.constant dense<0xFF800000> : vector<1xf32>
    %573 = vector.multi_reduction <maximumf>, %572, %cst_172 [1] : vector<1x128xf32> to vector<1xf32>
    %574 = vector.shape_cast %573 : vector<1xf32> to vector<1x1xf32>
    %575 = vector.broadcast %574 : vector<1x1xf32> to vector<1x128xf32>
    %576 = arith.cmpf oge, %572, %575 : vector<1x128xf32>
    %577 = arith.andi %570, %576 : vector<1x128xi1>
    %578 = arith.sitofp %40 : vector<1x128xi32> to vector<1x128xf32>
    %cst_173 = arith.constant 1.000000e+09 : f32
    %579 = vector.broadcast %cst_173 : f32 to vector<1x128xf32>
    %580 = arith.select %577, %578, %579 : vector<1x128xi1>, vector<1x128xf32>
    %cst_174 = arith.constant dense<0x7F800000> : vector<1xf32>
    %581 = vector.multi_reduction <minimumf>, %580, %cst_174 [1] : vector<1x128xf32> to vector<1xf32>
    %582 = vector.shape_cast %581 : vector<1xf32> to vector<1x1xf32>
    %583 = arith.fptosi %582 : vector<1x1xf32> to vector<1x1xi32>
    %c10_i32_175 = arith.constant 10 : i32
    %584 = vector.broadcast %c10_i32_175 : i32 to vector<1x1xi32>
    %585 = arith.subi %583, %584 : vector<1x1xi32>
    %586 = tpu.iota {dimensions = array<i32: 0>} : vector<8x160xi32>
    %587 = vector.broadcast %565 : vector<1x1xi32> to vector<8x160xi32>
    %588 = arith.cmpi eq, %586, %587 : vector<8x160xi32>
    %cst_176 = arith.constant 0.000000e+00 : f32
    %589 = vector.broadcast %cst_176 : f32 to vector<8x160xf32>
    %590 = arith.select %588, %38, %589 : vector<8x160xi1>, vector<8x160xf32>
    %cst_177 = arith.constant dense<0.000000e+00> : vector<160xf32>
    %591 = vector.multi_reduction <add>, %590, %cst_177 [0] : vector<8x160xf32> to vector<160xf32>
    %592 = vector.shape_cast %591 : vector<160xf32> to vector<1x160xf32>
    %593 = tpu.iota {dimensions = array<i32: 0>} : vector<3x160xi32>
    %594 = vector.broadcast %585 : vector<1x1xi32> to vector<3x160xi32>
    %595 = arith.cmpi eq, %593, %594 : vector<3x160xi32>
    %cst_178 = arith.constant 0.000000e+00 : f32
    %596 = vector.broadcast %cst_178 : f32 to vector<3x160xf32>
    %597 = arith.select %595, %39, %596 : vector<3x160xi1>, vector<3x160xf32>
    %cst_179 = arith.constant dense<0.000000e+00> : vector<160xf32>
    %598 = vector.multi_reduction <add>, %597, %cst_179 [0] : vector<3x160xf32> to vector<160xf32>
    %599 = vector.shape_cast %598 : vector<160xf32> to vector<1x160xf32>
    %600 = arith.addf %592, %599 : vector<1x160xf32>
    %601 = arith.addf %600, %511 : vector<1x160xf32>
    %602 = vector.extract_strided_slice %601 {offsets = [0, 0], sizes = [1, 32], strides = [1, 1]} : vector<1x160xf32> to vector<1x32xf32>
    %603 = arith.negf %602 : vector<1x32xf32>
    %604 = math.exp %603 : vector<1x32xf32>
    %cst_180 = arith.constant 1.000000e+00 : f32
    %605 = vector.broadcast %cst_180 : f32 to vector<1x32xf32>
    %606 = arith.addf %605, %604 : vector<1x32xf32>
    %607 = arith.divf %605, %606 : vector<1x32xf32>
    %608 = vector.extract_strided_slice %601 {offsets = [0, 32], sizes = [1, 32], strides = [1, 1]} : vector<1x160xf32> to vector<1x32xf32>
    %609 = arith.negf %608 : vector<1x32xf32>
    %610 = math.exp %609 : vector<1x32xf32>
    %cst_181 = arith.constant 1.000000e+00 : f32
    %611 = vector.broadcast %cst_181 : f32 to vector<1x32xf32>
    %612 = arith.addf %611, %610 : vector<1x32xf32>
    %613 = arith.divf %611, %612 : vector<1x32xf32>
    %614 = vector.extract_strided_slice %601 {offsets = [0, 64], sizes = [1, 32], strides = [1, 1]} : vector<1x160xf32> to vector<1x32xf32>
    %615 = arith.negf %614 : vector<1x32xf32>
    %616 = math.exp %615 : vector<1x32xf32>
    %cst_182 = arith.constant 1.000000e+00 : f32
    %617 = vector.broadcast %cst_182 : f32 to vector<1x32xf32>
    %618 = arith.addf %617, %616 : vector<1x32xf32>
    %619 = arith.divf %617, %618 : vector<1x32xf32>
    %620 = vector.extract_strided_slice %601 {offsets = [0, 96], sizes = [1, 32], strides = [1, 1]} : vector<1x160xf32> to vector<1x32xf32>
    %621 = arith.negf %620 : vector<1x32xf32>
    %622 = math.exp %621 : vector<1x32xf32>
    %cst_183 = arith.constant 1.000000e+00 : f32
    %623 = vector.broadcast %cst_183 : f32 to vector<1x32xf32>
    %624 = arith.addf %623, %622 : vector<1x32xf32>
    %625 = arith.divf %623, %624 : vector<1x32xf32>
    %626 = vector.extract_strided_slice %601 {offsets = [0, 128], sizes = [1, 32], strides = [1, 1]} : vector<1x160xf32> to vector<1x32xf32>
    %627 = math.tanh %626 : vector<1x32xf32>
    %628 = vector.extract_strided_slice %480 {offsets = [0, 32], sizes = [1, 32], strides = [1, 1]} : vector<1x64xf32> to vector<1x32xf32>
    %629 = vector.extract_strided_slice %494 {offsets = [0, 32], sizes = [1, 32], strides = [1, 1]} : vector<1x64xf32> to vector<1x32xf32>
    %630 = arith.mulf %607, %627 : vector<1x32xf32>
    %631 = arith.mulf %613, %628 : vector<1x32xf32>
    %632 = arith.addf %630, %631 : vector<1x32xf32>
    %633 = arith.mulf %619, %629 : vector<1x32xf32>
    %634 = arith.addf %632, %633 : vector<1x32xf32>
    %635 = math.tanh %634 : vector<1x32xf32>
    %636 = arith.mulf %625, %635 : vector<1x32xf32>
    %637 = tpu.concatenate %636, %634 in 1 : vector<1x32xf32>, vector<1x32xf32> -> vector<1x64xf32>
    %c0_i32_184 = arith.constant 0 : i32
    %638 = vector.broadcast %c0_i32_184 : i32 to vector<1x1xi32>
    %639 = arith.cmpi eq, %545, %638 : vector<1x1xi32>
    %640 = vector.shape_cast %639 : vector<1x1xi1> to vector<1x1xi1>
    %641 = vector.broadcast %640 : vector<1x1xi1> to vector<1x64xi1>
    %642 = arith.select %641, %506, %637 : vector<1x64xi1>, vector<1x64xf32>
    %c2_i32_185 = arith.constant 2 : i32
    %643 = vector.broadcast %c2_i32_185 : i32 to vector<1x1xi32>
    %644 = arith.subi %446, %643 : vector<1x1xi32>
    %645 = arith.select %639, %446, %644 : vector<1x1xi1>, vector<1x1xi32>
    %646 = vector.broadcast %645 : vector<1x1xi32> to vector<6x64xi32>
    %647 = arith.cmpi eq, %42, %646 : vector<6x64xi32>
    %648 = vector.shape_cast %642 : vector<1x64xf32> to vector<1x64xf32>
    %649 = vector.broadcast %648 : vector<1x64xf32> to vector<6x64xf32>
    %650 = arith.select %647, %649, %442 : vector<6x64xi1>, vector<6x64xf32>
    %c1_i32_186 = arith.constant 1 : i32
    %c-1_i32_187 = arith.constant -1 : i32
    %651 = vector.broadcast %c1_i32_186 : i32 to vector<1x1xi32>
    %652 = vector.broadcast %c-1_i32_187 : i32 to vector<1x1xi32>
    %653 = arith.select %639, %651, %652 : vector<1x1xi1>, vector<1x1xi32>
    %654 = arith.addi %446, %653 : vector<1x1xi32>
    %c1_i32_188 = arith.constant 1 : i32
    %c0_i32_189 = arith.constant 0 : i32
    %655 = vector.broadcast %c1_i32_188 : i32 to vector<1x1xi32>
    %656 = vector.broadcast %c0_i32_189 : i32 to vector<1x1xi32>
    %657 = arith.select %639, %655, %656 : vector<1x1xi1>, vector<1x1xi32>
    %658 = arith.addi %450, %657 : vector<1x1xi32>
    %659 = vector.broadcast %c2_i32_138 : i32 to vector<1x16xi32>
    %660 = arith.cmpi eq, %41, %659 : vector<1x16xi32>
    %661 = vector.shape_cast %545 : vector<1x1xi32> to vector<1x1xi32>
    %662 = vector.broadcast %661 : vector<1x1xi32> to vector<1x16xi32>
    %663 = arith.select %660, %662, %455 : vector<1x16xi1>, vector<1x16xi32>
    %664 = vector.shape_cast %565 : vector<1x1xi32> to vector<1x1xi32>
    %665 = vector.broadcast %664 : vector<1x1xi32> to vector<1x16xi32>
    %666 = arith.select %660, %665, %458 : vector<1x16xi1>, vector<1x16xi32>
    %667 = vector.shape_cast %585 : vector<1x1xi32> to vector<1x1xi32>
    %668 = vector.broadcast %667 : vector<1x1xi32> to vector<1x16xi32>
    %669 = arith.select %660, %668, %461 : vector<1x16xi1>, vector<1x16xi32>
    %670 = vector.broadcast %c2_i32_138 : i32 to vector<16x64xi32>
    %671 = arith.cmpi eq, %43, %670 : vector<16x64xi32>
    %672 = vector.shape_cast %642 : vector<1x64xf32> to vector<1x64xf32>
    %673 = vector.broadcast %672 : vector<1x64xf32> to vector<16x64xf32>
    %674 = arith.select %671, %673, %466 : vector<16x64xi1>, vector<16x64xf32>
    %c3_i32 = arith.constant 3 : i32
    %c2_i32_190 = arith.constant 2 : i32
    %675 = vector.broadcast %c2_i32_190 : i32 to vector<1x1xi32>
    %676 = arith.cmpi sge, %654, %675 : vector<1x1xi32>
    %c2_i32_191 = arith.constant 2 : i32
    %677 = vector.broadcast %c2_i32_191 : i32 to vector<1x1xi32>
    %678 = arith.subi %654, %677 : vector<1x1xi32>
    %679 = tpu.iota {dimensions = array<i32: 0>} : vector<6x64xi32>
    %680 = vector.broadcast %678 : vector<1x1xi32> to vector<6x64xi32>
    %681 = arith.cmpi eq, %679, %680 : vector<6x64xi32>
    %cst_192 = arith.constant 0.000000e+00 : f32
    %682 = vector.broadcast %cst_192 : f32 to vector<6x64xf32>
    %683 = arith.select %681, %650, %682 : vector<6x64xi1>, vector<6x64xf32>
    %cst_193 = arith.constant dense<0.000000e+00> : vector<64xf32>
    %684 = vector.multi_reduction <add>, %683, %cst_193 [0] : vector<6x64xf32> to vector<64xf32>
    %685 = vector.shape_cast %684 : vector<64xf32> to vector<1x64xf32>
    %686 = vector.shape_cast %676 : vector<1x1xi1> to vector<1x1xi1>
    %687 = vector.broadcast %686 : vector<1x1xi1> to vector<1x64xi1>
    %688 = arith.select %687, %685, %35 : vector<1x64xi1>, vector<1x64xf32>
    %c1_i32_194 = arith.constant 1 : i32
    %689 = vector.broadcast %c1_i32_194 : i32 to vector<1x1xi32>
    %690 = arith.cmpi sge, %654, %689 : vector<1x1xi32>
    %c1_i32_195 = arith.constant 1 : i32
    %691 = vector.broadcast %c1_i32_195 : i32 to vector<1x1xi32>
    %692 = arith.subi %654, %691 : vector<1x1xi32>
    %693 = tpu.iota {dimensions = array<i32: 0>} : vector<6x64xi32>
    %694 = vector.broadcast %692 : vector<1x1xi32> to vector<6x64xi32>
    %695 = arith.cmpi eq, %693, %694 : vector<6x64xi32>
    %cst_196 = arith.constant 0.000000e+00 : f32
    %696 = vector.broadcast %cst_196 : f32 to vector<6x64xf32>
    %697 = arith.select %695, %650, %696 : vector<6x64xi1>, vector<6x64xf32>
    %cst_197 = arith.constant dense<0.000000e+00> : vector<64xf32>
    %698 = vector.multi_reduction <add>, %697, %cst_197 [0] : vector<6x64xf32> to vector<64xf32>
    %699 = vector.shape_cast %698 : vector<64xf32> to vector<1x64xf32>
    %700 = vector.shape_cast %690 : vector<1x1xi1> to vector<1x1xi1>
    %701 = vector.broadcast %700 : vector<1x1xi1> to vector<1x64xi1>
    %702 = arith.select %701, %699, %35 : vector<1x64xi1>, vector<1x64xf32>
    %c6_i32_198 = arith.constant 6 : i32
    %703 = vector.broadcast %c6_i32_198 : i32 to vector<1x1xi32>
    %704 = arith.cmpi slt, %658, %703 : vector<1x1xi32>
    %705 = tpu.iota {dimensions = array<i32: 0>} : vector<6x64xi32>
    %706 = vector.broadcast %658 : vector<1x1xi32> to vector<6x64xi32>
    %707 = arith.cmpi eq, %705, %706 : vector<6x64xi32>
    %cst_199 = arith.constant 0.000000e+00 : f32
    %708 = vector.broadcast %cst_199 : f32 to vector<6x64xf32>
    %709 = arith.select %707, %33, %708 : vector<6x64xi1>, vector<6x64xf32>
    %cst_200 = arith.constant dense<0.000000e+00> : vector<64xf32>
    %710 = vector.multi_reduction <add>, %709, %cst_200 [0] : vector<6x64xf32> to vector<64xf32>
    %711 = vector.shape_cast %710 : vector<64xf32> to vector<1x64xf32>
    %712 = vector.shape_cast %704 : vector<1x1xi1> to vector<1x1xi1>
    %713 = vector.broadcast %712 : vector<1x1xi1> to vector<1x64xi1>
    %714 = arith.select %713, %711, %35 : vector<1x64xi1>, vector<1x64xf32>
    %715 = tpu.concatenate %688, %702, %714 in 1 : vector<1x64xf32>, vector<1x64xf32>, vector<1x64xf32> -> vector<1x192xf32>
    %cst_201 = arith.constant dense<0.000000e+00> : vector<1x288xf32>
    %716 = tpu.matmul %715, %36, %cst_201 {dimension_numbers = #tpu.dot_dimension_numbers<[1], [0], [0], [1], [0, 0, 1, 1], [], []>} : vector<1x192xf32>, vector<192x288xf32>, vector<1x288xf32> -> vector<1x288xf32>
    %717 = arith.addf %716, %37 : vector<1x288xf32>
    %718 = vector.extract_strided_slice %717 {offsets = [0, 0], sizes = [1, 128], strides = [1, 1]} : vector<1x288xf32> to vector<1x128xf32>
    %719 = vector.extract_strided_slice %717 {offsets = [0, 128], sizes = [1, 160], strides = [1, 1]} : vector<1x288xf32> to vector<1x160xf32>
    %c6_i32_202 = arith.constant 6 : i32
    %720 = vector.broadcast %c6_i32_202 : i32 to vector<1x1xi32>
    %721 = arith.cmpi slt, %658, %720 : vector<1x1xi32>
    %c2_i32_203 = arith.constant 2 : i32
    %722 = vector.broadcast %c2_i32_203 : i32 to vector<1x1xi32>
    %723 = arith.cmpi sge, %654, %722 : vector<1x1xi32>
    %c0_i32_204 = arith.constant 0 : i32
    %724 = vector.broadcast %c0_i32_204 : i32 to vector<1x128xi32>
    %725 = arith.cmpi eq, %40, %724 : vector<1x128xi32>
    %726 = vector.broadcast %721 : vector<1x1xi1> to vector<1x128xi1>
    %727 = arith.andi %725, %726 : vector<1x128xi1>
    %c1_i32_205 = arith.constant 1 : i32
    %728 = vector.broadcast %c1_i32_205 : i32 to vector<1x128xi32>
    %729 = arith.cmpi eq, %40, %728 : vector<1x128xi32>
    %730 = vector.broadcast %723 : vector<1x1xi1> to vector<1x128xi1>
    %731 = arith.andi %729, %730 : vector<1x128xi1>
    %732 = arith.ori %727, %731 : vector<1x128xi1>
    %c0_i32_206 = arith.constant 0 : i32
    %733 = vector.broadcast %c0_i32_206 : i32 to vector<1x128xi32>
    %734 = arith.cmpi sge, %40, %733 : vector<1x128xi32>
    %c2_i32_207 = arith.constant 2 : i32
    %735 = vector.broadcast %c2_i32_207 : i32 to vector<1x128xi32>
    %736 = arith.cmpi slt, %40, %735 : vector<1x128xi32>
    %737 = arith.andi %734, %736 : vector<1x128xi1>
    %738 = arith.andi %737, %732 : vector<1x128xi1>
    %cst_208 = arith.constant -1.000000e+30 : f32
    %739 = vector.broadcast %cst_208 : f32 to vector<1x128xf32>
    %740 = arith.select %738, %718, %739 : vector<1x128xi1>, vector<1x128xf32>
    %cst_209 = arith.constant dense<0xFF800000> : vector<1xf32>
    %741 = vector.multi_reduction <maximumf>, %740, %cst_209 [1] : vector<1x128xf32> to vector<1xf32>
    %742 = vector.shape_cast %741 : vector<1xf32> to vector<1x1xf32>
    %743 = vector.broadcast %742 : vector<1x1xf32> to vector<1x128xf32>
    %744 = arith.cmpf oge, %740, %743 : vector<1x128xf32>
    %745 = arith.andi %738, %744 : vector<1x128xi1>
    %746 = arith.sitofp %40 : vector<1x128xi32> to vector<1x128xf32>
    %cst_210 = arith.constant 1.000000e+09 : f32
    %747 = vector.broadcast %cst_210 : f32 to vector<1x128xf32>
    %748 = arith.select %745, %746, %747 : vector<1x128xi1>, vector<1x128xf32>
    %cst_211 = arith.constant dense<0x7F800000> : vector<1xf32>
    %749 = vector.multi_reduction <minimumf>, %748, %cst_211 [1] : vector<1x128xf32> to vector<1xf32>
    %750 = vector.shape_cast %749 : vector<1xf32> to vector<1x1xf32>
    %751 = arith.fptosi %750 : vector<1x1xf32> to vector<1x1xi32>
    %c0_i32_212 = arith.constant 0 : i32
    %752 = vector.broadcast %c0_i32_212 : i32 to vector<1x1xi32>
    %753 = arith.subi %751, %752 : vector<1x1xi32>
    %c2_i32_213 = arith.constant 2 : i32
    %754 = vector.broadcast %c2_i32_213 : i32 to vector<1x128xi32>
    %755 = arith.cmpi sge, %40, %754 : vector<1x128xi32>
    %c10_i32_214 = arith.constant 10 : i32
    %756 = vector.broadcast %c10_i32_214 : i32 to vector<1x128xi32>
    %757 = arith.cmpi slt, %40, %756 : vector<1x128xi32>
    %758 = arith.andi %755, %757 : vector<1x128xi1>
    %cst_215 = arith.constant -1.000000e+30 : f32
    %759 = vector.broadcast %cst_215 : f32 to vector<1x128xf32>
    %760 = arith.select %758, %718, %759 : vector<1x128xi1>, vector<1x128xf32>
    %cst_216 = arith.constant dense<0xFF800000> : vector<1xf32>
    %761 = vector.multi_reduction <maximumf>, %760, %cst_216 [1] : vector<1x128xf32> to vector<1xf32>
    %762 = vector.shape_cast %761 : vector<1xf32> to vector<1x1xf32>
    %763 = vector.broadcast %762 : vector<1x1xf32> to vector<1x128xf32>
    %764 = arith.cmpf oge, %760, %763 : vector<1x128xf32>
    %765 = arith.andi %758, %764 : vector<1x128xi1>
    %766 = arith.sitofp %40 : vector<1x128xi32> to vector<1x128xf32>
    %cst_217 = arith.constant 1.000000e+09 : f32
    %767 = vector.broadcast %cst_217 : f32 to vector<1x128xf32>
    %768 = arith.select %765, %766, %767 : vector<1x128xi1>, vector<1x128xf32>
    %cst_218 = arith.constant dense<0x7F800000> : vector<1xf32>
    %769 = vector.multi_reduction <minimumf>, %768, %cst_218 [1] : vector<1x128xf32> to vector<1xf32>
    %770 = vector.shape_cast %769 : vector<1xf32> to vector<1x1xf32>
    %771 = arith.fptosi %770 : vector<1x1xf32> to vector<1x1xi32>
    %c2_i32_219 = arith.constant 2 : i32
    %772 = vector.broadcast %c2_i32_219 : i32 to vector<1x1xi32>
    %773 = arith.subi %771, %772 : vector<1x1xi32>
    %c10_i32_220 = arith.constant 10 : i32
    %774 = vector.broadcast %c10_i32_220 : i32 to vector<1x128xi32>
    %775 = arith.cmpi sge, %40, %774 : vector<1x128xi32>
    %c13_i32_221 = arith.constant 13 : i32
    %776 = vector.broadcast %c13_i32_221 : i32 to vector<1x128xi32>
    %777 = arith.cmpi slt, %40, %776 : vector<1x128xi32>
    %778 = arith.andi %775, %777 : vector<1x128xi1>
    %cst_222 = arith.constant -1.000000e+30 : f32
    %779 = vector.broadcast %cst_222 : f32 to vector<1x128xf32>
    %780 = arith.select %778, %718, %779 : vector<1x128xi1>, vector<1x128xf32>
    %cst_223 = arith.constant dense<0xFF800000> : vector<1xf32>
    %781 = vector.multi_reduction <maximumf>, %780, %cst_223 [1] : vector<1x128xf32> to vector<1xf32>
    %782 = vector.shape_cast %781 : vector<1xf32> to vector<1x1xf32>
    %783 = vector.broadcast %782 : vector<1x1xf32> to vector<1x128xf32>
    %784 = arith.cmpf oge, %780, %783 : vector<1x128xf32>
    %785 = arith.andi %778, %784 : vector<1x128xi1>
    %786 = arith.sitofp %40 : vector<1x128xi32> to vector<1x128xf32>
    %cst_224 = arith.constant 1.000000e+09 : f32
    %787 = vector.broadcast %cst_224 : f32 to vector<1x128xf32>
    %788 = arith.select %785, %786, %787 : vector<1x128xi1>, vector<1x128xf32>
    %cst_225 = arith.constant dense<0x7F800000> : vector<1xf32>
    %789 = vector.multi_reduction <minimumf>, %788, %cst_225 [1] : vector<1x128xf32> to vector<1xf32>
    %790 = vector.shape_cast %789 : vector<1xf32> to vector<1x1xf32>
    %791 = arith.fptosi %790 : vector<1x1xf32> to vector<1x1xi32>
    %c10_i32_226 = arith.constant 10 : i32
    %792 = vector.broadcast %c10_i32_226 : i32 to vector<1x1xi32>
    %793 = arith.subi %791, %792 : vector<1x1xi32>
    %794 = tpu.iota {dimensions = array<i32: 0>} : vector<8x160xi32>
    %795 = vector.broadcast %773 : vector<1x1xi32> to vector<8x160xi32>
    %796 = arith.cmpi eq, %794, %795 : vector<8x160xi32>
    %cst_227 = arith.constant 0.000000e+00 : f32
    %797 = vector.broadcast %cst_227 : f32 to vector<8x160xf32>
    %798 = arith.select %796, %38, %797 : vector<8x160xi1>, vector<8x160xf32>
    %cst_228 = arith.constant dense<0.000000e+00> : vector<160xf32>
    %799 = vector.multi_reduction <add>, %798, %cst_228 [0] : vector<8x160xf32> to vector<160xf32>
    %800 = vector.shape_cast %799 : vector<160xf32> to vector<1x160xf32>
    %801 = tpu.iota {dimensions = array<i32: 0>} : vector<3x160xi32>
    %802 = vector.broadcast %793 : vector<1x1xi32> to vector<3x160xi32>
    %803 = arith.cmpi eq, %801, %802 : vector<3x160xi32>
    %cst_229 = arith.constant 0.000000e+00 : f32
    %804 = vector.broadcast %cst_229 : f32 to vector<3x160xf32>
    %805 = arith.select %803, %39, %804 : vector<3x160xi1>, vector<3x160xf32>
    %cst_230 = arith.constant dense<0.000000e+00> : vector<160xf32>
    %806 = vector.multi_reduction <add>, %805, %cst_230 [0] : vector<3x160xf32> to vector<160xf32>
    %807 = vector.shape_cast %806 : vector<160xf32> to vector<1x160xf32>
    %808 = arith.addf %800, %807 : vector<1x160xf32>
    %809 = arith.addf %808, %719 : vector<1x160xf32>
    %810 = vector.extract_strided_slice %809 {offsets = [0, 0], sizes = [1, 32], strides = [1, 1]} : vector<1x160xf32> to vector<1x32xf32>
    %811 = arith.negf %810 : vector<1x32xf32>
    %812 = math.exp %811 : vector<1x32xf32>
    %cst_231 = arith.constant 1.000000e+00 : f32
    %813 = vector.broadcast %cst_231 : f32 to vector<1x32xf32>
    %814 = arith.addf %813, %812 : vector<1x32xf32>
    %815 = arith.divf %813, %814 : vector<1x32xf32>
    %816 = vector.extract_strided_slice %809 {offsets = [0, 32], sizes = [1, 32], strides = [1, 1]} : vector<1x160xf32> to vector<1x32xf32>
    %817 = arith.negf %816 : vector<1x32xf32>
    %818 = math.exp %817 : vector<1x32xf32>
    %cst_232 = arith.constant 1.000000e+00 : f32
    %819 = vector.broadcast %cst_232 : f32 to vector<1x32xf32>
    %820 = arith.addf %819, %818 : vector<1x32xf32>
    %821 = arith.divf %819, %820 : vector<1x32xf32>
    %822 = vector.extract_strided_slice %809 {offsets = [0, 64], sizes = [1, 32], strides = [1, 1]} : vector<1x160xf32> to vector<1x32xf32>
    %823 = arith.negf %822 : vector<1x32xf32>
    %824 = math.exp %823 : vector<1x32xf32>
    %cst_233 = arith.constant 1.000000e+00 : f32
    %825 = vector.broadcast %cst_233 : f32 to vector<1x32xf32>
    %826 = arith.addf %825, %824 : vector<1x32xf32>
    %827 = arith.divf %825, %826 : vector<1x32xf32>
    %828 = vector.extract_strided_slice %809 {offsets = [0, 96], sizes = [1, 32], strides = [1, 1]} : vector<1x160xf32> to vector<1x32xf32>
    %829 = arith.negf %828 : vector<1x32xf32>
    %830 = math.exp %829 : vector<1x32xf32>
    %cst_234 = arith.constant 1.000000e+00 : f32
    %831 = vector.broadcast %cst_234 : f32 to vector<1x32xf32>
    %832 = arith.addf %831, %830 : vector<1x32xf32>
    %833 = arith.divf %831, %832 : vector<1x32xf32>
    %834 = vector.extract_strided_slice %809 {offsets = [0, 128], sizes = [1, 32], strides = [1, 1]} : vector<1x160xf32> to vector<1x32xf32>
    %835 = math.tanh %834 : vector<1x32xf32>
    %836 = vector.extract_strided_slice %688 {offsets = [0, 32], sizes = [1, 32], strides = [1, 1]} : vector<1x64xf32> to vector<1x32xf32>
    %837 = vector.extract_strided_slice %702 {offsets = [0, 32], sizes = [1, 32], strides = [1, 1]} : vector<1x64xf32> to vector<1x32xf32>
    %838 = arith.mulf %815, %835 : vector<1x32xf32>
    %839 = arith.mulf %821, %836 : vector<1x32xf32>
    %840 = arith.addf %838, %839 : vector<1x32xf32>
    %841 = arith.mulf %827, %837 : vector<1x32xf32>
    %842 = arith.addf %840, %841 : vector<1x32xf32>
    %843 = math.tanh %842 : vector<1x32xf32>
    %844 = arith.mulf %833, %843 : vector<1x32xf32>
    %845 = tpu.concatenate %844, %842 in 1 : vector<1x32xf32>, vector<1x32xf32> -> vector<1x64xf32>
    %c0_i32_235 = arith.constant 0 : i32
    %846 = vector.broadcast %c0_i32_235 : i32 to vector<1x1xi32>
    %847 = arith.cmpi eq, %753, %846 : vector<1x1xi32>
    %848 = vector.shape_cast %847 : vector<1x1xi1> to vector<1x1xi1>
    %849 = vector.broadcast %848 : vector<1x1xi1> to vector<1x64xi1>
    %850 = arith.select %849, %714, %845 : vector<1x64xi1>, vector<1x64xf32>
    %c2_i32_236 = arith.constant 2 : i32
    %851 = vector.broadcast %c2_i32_236 : i32 to vector<1x1xi32>
    %852 = arith.subi %654, %851 : vector<1x1xi32>
    %853 = arith.select %847, %654, %852 : vector<1x1xi1>, vector<1x1xi32>
    %854 = vector.broadcast %853 : vector<1x1xi32> to vector<6x64xi32>
    %855 = arith.cmpi eq, %42, %854 : vector<6x64xi32>
    %856 = vector.shape_cast %850 : vector<1x64xf32> to vector<1x64xf32>
    %857 = vector.broadcast %856 : vector<1x64xf32> to vector<6x64xf32>
    %858 = arith.select %855, %857, %650 : vector<6x64xi1>, vector<6x64xf32>
    %c1_i32_237 = arith.constant 1 : i32
    %c-1_i32_238 = arith.constant -1 : i32
    %859 = vector.broadcast %c1_i32_237 : i32 to vector<1x1xi32>
    %860 = vector.broadcast %c-1_i32_238 : i32 to vector<1x1xi32>
    %861 = arith.select %847, %859, %860 : vector<1x1xi1>, vector<1x1xi32>
    %862 = arith.addi %654, %861 : vector<1x1xi32>
    %c1_i32_239 = arith.constant 1 : i32
    %c0_i32_240 = arith.constant 0 : i32
    %863 = vector.broadcast %c1_i32_239 : i32 to vector<1x1xi32>
    %864 = vector.broadcast %c0_i32_240 : i32 to vector<1x1xi32>
    %865 = arith.select %847, %863, %864 : vector<1x1xi1>, vector<1x1xi32>
    %866 = arith.addi %658, %865 : vector<1x1xi32>
    %867 = vector.broadcast %c3_i32 : i32 to vector<1x16xi32>
    %868 = arith.cmpi eq, %41, %867 : vector<1x16xi32>
    %869 = vector.shape_cast %753 : vector<1x1xi32> to vector<1x1xi32>
    %870 = vector.broadcast %869 : vector<1x1xi32> to vector<1x16xi32>
    %871 = arith.select %868, %870, %663 : vector<1x16xi1>, vector<1x16xi32>
    %872 = vector.shape_cast %773 : vector<1x1xi32> to vector<1x1xi32>
    %873 = vector.broadcast %872 : vector<1x1xi32> to vector<1x16xi32>
    %874 = arith.select %868, %873, %666 : vector<1x16xi1>, vector<1x16xi32>
    %875 = vector.shape_cast %793 : vector<1x1xi32> to vector<1x1xi32>
    %876 = vector.broadcast %875 : vector<1x1xi32> to vector<1x16xi32>
    %877 = arith.select %868, %876, %669 : vector<1x16xi1>, vector<1x16xi32>
    %878 = vector.broadcast %c3_i32 : i32 to vector<16x64xi32>
    %879 = arith.cmpi eq, %43, %878 : vector<16x64xi32>
    %880 = vector.shape_cast %850 : vector<1x64xf32> to vector<1x64xf32>
    %881 = vector.broadcast %880 : vector<1x64xf32> to vector<16x64xf32>
    %882 = arith.select %879, %881, %674 : vector<16x64xi1>, vector<16x64xf32>
    %c4_i32 = arith.constant 4 : i32
    %c2_i32_241 = arith.constant 2 : i32
    %883 = vector.broadcast %c2_i32_241 : i32 to vector<1x1xi32>
    %884 = arith.cmpi sge, %862, %883 : vector<1x1xi32>
    %c2_i32_242 = arith.constant 2 : i32
    %885 = vector.broadcast %c2_i32_242 : i32 to vector<1x1xi32>
    %886 = arith.subi %862, %885 : vector<1x1xi32>
    %887 = tpu.iota {dimensions = array<i32: 0>} : vector<6x64xi32>
    %888 = vector.broadcast %886 : vector<1x1xi32> to vector<6x64xi32>
    %889 = arith.cmpi eq, %887, %888 : vector<6x64xi32>
    %cst_243 = arith.constant 0.000000e+00 : f32
    %890 = vector.broadcast %cst_243 : f32 to vector<6x64xf32>
    %891 = arith.select %889, %858, %890 : vector<6x64xi1>, vector<6x64xf32>
    %cst_244 = arith.constant dense<0.000000e+00> : vector<64xf32>
    %892 = vector.multi_reduction <add>, %891, %cst_244 [0] : vector<6x64xf32> to vector<64xf32>
    %893 = vector.shape_cast %892 : vector<64xf32> to vector<1x64xf32>
    %894 = vector.shape_cast %884 : vector<1x1xi1> to vector<1x1xi1>
    %895 = vector.broadcast %894 : vector<1x1xi1> to vector<1x64xi1>
    %896 = arith.select %895, %893, %35 : vector<1x64xi1>, vector<1x64xf32>
    %c1_i32_245 = arith.constant 1 : i32
    %897 = vector.broadcast %c1_i32_245 : i32 to vector<1x1xi32>
    %898 = arith.cmpi sge, %862, %897 : vector<1x1xi32>
    %c1_i32_246 = arith.constant 1 : i32
    %899 = vector.broadcast %c1_i32_246 : i32 to vector<1x1xi32>
    %900 = arith.subi %862, %899 : vector<1x1xi32>
    %901 = tpu.iota {dimensions = array<i32: 0>} : vector<6x64xi32>
    %902 = vector.broadcast %900 : vector<1x1xi32> to vector<6x64xi32>
    %903 = arith.cmpi eq, %901, %902 : vector<6x64xi32>
    %cst_247 = arith.constant 0.000000e+00 : f32
    %904 = vector.broadcast %cst_247 : f32 to vector<6x64xf32>
    %905 = arith.select %903, %858, %904 : vector<6x64xi1>, vector<6x64xf32>
    %cst_248 = arith.constant dense<0.000000e+00> : vector<64xf32>
    %906 = vector.multi_reduction <add>, %905, %cst_248 [0] : vector<6x64xf32> to vector<64xf32>
    %907 = vector.shape_cast %906 : vector<64xf32> to vector<1x64xf32>
    %908 = vector.shape_cast %898 : vector<1x1xi1> to vector<1x1xi1>
    %909 = vector.broadcast %908 : vector<1x1xi1> to vector<1x64xi1>
    %910 = arith.select %909, %907, %35 : vector<1x64xi1>, vector<1x64xf32>
    %c6_i32_249 = arith.constant 6 : i32
    %911 = vector.broadcast %c6_i32_249 : i32 to vector<1x1xi32>
    %912 = arith.cmpi slt, %866, %911 : vector<1x1xi32>
    %913 = tpu.iota {dimensions = array<i32: 0>} : vector<6x64xi32>
    %914 = vector.broadcast %866 : vector<1x1xi32> to vector<6x64xi32>
    %915 = arith.cmpi eq, %913, %914 : vector<6x64xi32>
    %cst_250 = arith.constant 0.000000e+00 : f32
    %916 = vector.broadcast %cst_250 : f32 to vector<6x64xf32>
    %917 = arith.select %915, %33, %916 : vector<6x64xi1>, vector<6x64xf32>
    %cst_251 = arith.constant dense<0.000000e+00> : vector<64xf32>
    %918 = vector.multi_reduction <add>, %917, %cst_251 [0] : vector<6x64xf32> to vector<64xf32>
    %919 = vector.shape_cast %918 : vector<64xf32> to vector<1x64xf32>
    %920 = vector.shape_cast %912 : vector<1x1xi1> to vector<1x1xi1>
    %921 = vector.broadcast %920 : vector<1x1xi1> to vector<1x64xi1>
    %922 = arith.select %921, %919, %35 : vector<1x64xi1>, vector<1x64xf32>
    %923 = tpu.concatenate %896, %910, %922 in 1 : vector<1x64xf32>, vector<1x64xf32>, vector<1x64xf32> -> vector<1x192xf32>
    %cst_252 = arith.constant dense<0.000000e+00> : vector<1x288xf32>
    %924 = tpu.matmul %923, %36, %cst_252 {dimension_numbers = #tpu.dot_dimension_numbers<[1], [0], [0], [1], [0, 0, 1, 1], [], []>} : vector<1x192xf32>, vector<192x288xf32>, vector<1x288xf32> -> vector<1x288xf32>
    %925 = arith.addf %924, %37 : vector<1x288xf32>
    %926 = vector.extract_strided_slice %925 {offsets = [0, 0], sizes = [1, 128], strides = [1, 1]} : vector<1x288xf32> to vector<1x128xf32>
    %927 = vector.extract_strided_slice %925 {offsets = [0, 128], sizes = [1, 160], strides = [1, 1]} : vector<1x288xf32> to vector<1x160xf32>
    %c6_i32_253 = arith.constant 6 : i32
    %928 = vector.broadcast %c6_i32_253 : i32 to vector<1x1xi32>
    %929 = arith.cmpi slt, %866, %928 : vector<1x1xi32>
    %c2_i32_254 = arith.constant 2 : i32
    %930 = vector.broadcast %c2_i32_254 : i32 to vector<1x1xi32>
    %931 = arith.cmpi sge, %862, %930 : vector<1x1xi32>
    %c0_i32_255 = arith.constant 0 : i32
    %932 = vector.broadcast %c0_i32_255 : i32 to vector<1x128xi32>
    %933 = arith.cmpi eq, %40, %932 : vector<1x128xi32>
    %934 = vector.broadcast %929 : vector<1x1xi1> to vector<1x128xi1>
    %935 = arith.andi %933, %934 : vector<1x128xi1>
    %c1_i32_256 = arith.constant 1 : i32
    %936 = vector.broadcast %c1_i32_256 : i32 to vector<1x128xi32>
    %937 = arith.cmpi eq, %40, %936 : vector<1x128xi32>
    %938 = vector.broadcast %931 : vector<1x1xi1> to vector<1x128xi1>
    %939 = arith.andi %937, %938 : vector<1x128xi1>
    %940 = arith.ori %935, %939 : vector<1x128xi1>
    %c0_i32_257 = arith.constant 0 : i32
    %941 = vector.broadcast %c0_i32_257 : i32 to vector<1x128xi32>
    %942 = arith.cmpi sge, %40, %941 : vector<1x128xi32>
    %c2_i32_258 = arith.constant 2 : i32
    %943 = vector.broadcast %c2_i32_258 : i32 to vector<1x128xi32>
    %944 = arith.cmpi slt, %40, %943 : vector<1x128xi32>
    %945 = arith.andi %942, %944 : vector<1x128xi1>
    %946 = arith.andi %945, %940 : vector<1x128xi1>
    %cst_259 = arith.constant -1.000000e+30 : f32
    %947 = vector.broadcast %cst_259 : f32 to vector<1x128xf32>
    %948 = arith.select %946, %926, %947 : vector<1x128xi1>, vector<1x128xf32>
    %cst_260 = arith.constant dense<0xFF800000> : vector<1xf32>
    %949 = vector.multi_reduction <maximumf>, %948, %cst_260 [1] : vector<1x128xf32> to vector<1xf32>
    %950 = vector.shape_cast %949 : vector<1xf32> to vector<1x1xf32>
    %951 = vector.broadcast %950 : vector<1x1xf32> to vector<1x128xf32>
    %952 = arith.cmpf oge, %948, %951 : vector<1x128xf32>
    %953 = arith.andi %946, %952 : vector<1x128xi1>
    %954 = arith.sitofp %40 : vector<1x128xi32> to vector<1x128xf32>
    %cst_261 = arith.constant 1.000000e+09 : f32
    %955 = vector.broadcast %cst_261 : f32 to vector<1x128xf32>
    %956 = arith.select %953, %954, %955 : vector<1x128xi1>, vector<1x128xf32>
    %cst_262 = arith.constant dense<0x7F800000> : vector<1xf32>
    %957 = vector.multi_reduction <minimumf>, %956, %cst_262 [1] : vector<1x128xf32> to vector<1xf32>
    %958 = vector.shape_cast %957 : vector<1xf32> to vector<1x1xf32>
    %959 = arith.fptosi %958 : vector<1x1xf32> to vector<1x1xi32>
    %c0_i32_263 = arith.constant 0 : i32
    %960 = vector.broadcast %c0_i32_263 : i32 to vector<1x1xi32>
    %961 = arith.subi %959, %960 : vector<1x1xi32>
    %c2_i32_264 = arith.constant 2 : i32
    %962 = vector.broadcast %c2_i32_264 : i32 to vector<1x128xi32>
    %963 = arith.cmpi sge, %40, %962 : vector<1x128xi32>
    %c10_i32_265 = arith.constant 10 : i32
    %964 = vector.broadcast %c10_i32_265 : i32 to vector<1x128xi32>
    %965 = arith.cmpi slt, %40, %964 : vector<1x128xi32>
    %966 = arith.andi %963, %965 : vector<1x128xi1>
    %cst_266 = arith.constant -1.000000e+30 : f32
    %967 = vector.broadcast %cst_266 : f32 to vector<1x128xf32>
    %968 = arith.select %966, %926, %967 : vector<1x128xi1>, vector<1x128xf32>
    %cst_267 = arith.constant dense<0xFF800000> : vector<1xf32>
    %969 = vector.multi_reduction <maximumf>, %968, %cst_267 [1] : vector<1x128xf32> to vector<1xf32>
    %970 = vector.shape_cast %969 : vector<1xf32> to vector<1x1xf32>
    %971 = vector.broadcast %970 : vector<1x1xf32> to vector<1x128xf32>
    %972 = arith.cmpf oge, %968, %971 : vector<1x128xf32>
    %973 = arith.andi %966, %972 : vector<1x128xi1>
    %974 = arith.sitofp %40 : vector<1x128xi32> to vector<1x128xf32>
    %cst_268 = arith.constant 1.000000e+09 : f32
    %975 = vector.broadcast %cst_268 : f32 to vector<1x128xf32>
    %976 = arith.select %973, %974, %975 : vector<1x128xi1>, vector<1x128xf32>
    %cst_269 = arith.constant dense<0x7F800000> : vector<1xf32>
    %977 = vector.multi_reduction <minimumf>, %976, %cst_269 [1] : vector<1x128xf32> to vector<1xf32>
    %978 = vector.shape_cast %977 : vector<1xf32> to vector<1x1xf32>
    %979 = arith.fptosi %978 : vector<1x1xf32> to vector<1x1xi32>
    %c2_i32_270 = arith.constant 2 : i32
    %980 = vector.broadcast %c2_i32_270 : i32 to vector<1x1xi32>
    %981 = arith.subi %979, %980 : vector<1x1xi32>
    %c10_i32_271 = arith.constant 10 : i32
    %982 = vector.broadcast %c10_i32_271 : i32 to vector<1x128xi32>
    %983 = arith.cmpi sge, %40, %982 : vector<1x128xi32>
    %c13_i32_272 = arith.constant 13 : i32
    %984 = vector.broadcast %c13_i32_272 : i32 to vector<1x128xi32>
    %985 = arith.cmpi slt, %40, %984 : vector<1x128xi32>
    %986 = arith.andi %983, %985 : vector<1x128xi1>
    %cst_273 = arith.constant -1.000000e+30 : f32
    %987 = vector.broadcast %cst_273 : f32 to vector<1x128xf32>
    %988 = arith.select %986, %926, %987 : vector<1x128xi1>, vector<1x128xf32>
    %cst_274 = arith.constant dense<0xFF800000> : vector<1xf32>
    %989 = vector.multi_reduction <maximumf>, %988, %cst_274 [1] : vector<1x128xf32> to vector<1xf32>
    %990 = vector.shape_cast %989 : vector<1xf32> to vector<1x1xf32>
    %991 = vector.broadcast %990 : vector<1x1xf32> to vector<1x128xf32>
    %992 = arith.cmpf oge, %988, %991 : vector<1x128xf32>
    %993 = arith.andi %986, %992 : vector<1x128xi1>
    %994 = arith.sitofp %40 : vector<1x128xi32> to vector<1x128xf32>
    %cst_275 = arith.constant 1.000000e+09 : f32
    %995 = vector.broadcast %cst_275 : f32 to vector<1x128xf32>
    %996 = arith.select %993, %994, %995 : vector<1x128xi1>, vector<1x128xf32>
    %cst_276 = arith.constant dense<0x7F800000> : vector<1xf32>
    %997 = vector.multi_reduction <minimumf>, %996, %cst_276 [1] : vector<1x128xf32> to vector<1xf32>
    %998 = vector.shape_cast %997 : vector<1xf32> to vector<1x1xf32>
    %999 = arith.fptosi %998 : vector<1x1xf32> to vector<1x1xi32>
    %c10_i32_277 = arith.constant 10 : i32
    %1000 = vector.broadcast %c10_i32_277 : i32 to vector<1x1xi32>
    %1001 = arith.subi %999, %1000 : vector<1x1xi32>
    %1002 = tpu.iota {dimensions = array<i32: 0>} : vector<8x160xi32>
    %1003 = vector.broadcast %981 : vector<1x1xi32> to vector<8x160xi32>
    %1004 = arith.cmpi eq, %1002, %1003 : vector<8x160xi32>
    %cst_278 = arith.constant 0.000000e+00 : f32
    %1005 = vector.broadcast %cst_278 : f32 to vector<8x160xf32>
    %1006 = arith.select %1004, %38, %1005 : vector<8x160xi1>, vector<8x160xf32>
    %cst_279 = arith.constant dense<0.000000e+00> : vector<160xf32>
    %1007 = vector.multi_reduction <add>, %1006, %cst_279 [0] : vector<8x160xf32> to vector<160xf32>
    %1008 = vector.shape_cast %1007 : vector<160xf32> to vector<1x160xf32>
    %1009 = tpu.iota {dimensions = array<i32: 0>} : vector<3x160xi32>
    %1010 = vector.broadcast %1001 : vector<1x1xi32> to vector<3x160xi32>
    %1011 = arith.cmpi eq, %1009, %1010 : vector<3x160xi32>
    %cst_280 = arith.constant 0.000000e+00 : f32
    %1012 = vector.broadcast %cst_280 : f32 to vector<3x160xf32>
    %1013 = arith.select %1011, %39, %1012 : vector<3x160xi1>, vector<3x160xf32>
    %cst_281 = arith.constant dense<0.000000e+00> : vector<160xf32>
    %1014 = vector.multi_reduction <add>, %1013, %cst_281 [0] : vector<3x160xf32> to vector<160xf32>
    %1015 = vector.shape_cast %1014 : vector<160xf32> to vector<1x160xf32>
    %1016 = arith.addf %1008, %1015 : vector<1x160xf32>
    %1017 = arith.addf %1016, %927 : vector<1x160xf32>
    %1018 = vector.extract_strided_slice %1017 {offsets = [0, 0], sizes = [1, 32], strides = [1, 1]} : vector<1x160xf32> to vector<1x32xf32>
    %1019 = arith.negf %1018 : vector<1x32xf32>
    %1020 = math.exp %1019 : vector<1x32xf32>
    %cst_282 = arith.constant 1.000000e+00 : f32
    %1021 = vector.broadcast %cst_282 : f32 to vector<1x32xf32>
    %1022 = arith.addf %1021, %1020 : vector<1x32xf32>
    %1023 = arith.divf %1021, %1022 : vector<1x32xf32>
    %1024 = vector.extract_strided_slice %1017 {offsets = [0, 32], sizes = [1, 32], strides = [1, 1]} : vector<1x160xf32> to vector<1x32xf32>
    %1025 = arith.negf %1024 : vector<1x32xf32>
    %1026 = math.exp %1025 : vector<1x32xf32>
    %cst_283 = arith.constant 1.000000e+00 : f32
    %1027 = vector.broadcast %cst_283 : f32 to vector<1x32xf32>
    %1028 = arith.addf %1027, %1026 : vector<1x32xf32>
    %1029 = arith.divf %1027, %1028 : vector<1x32xf32>
    %1030 = vector.extract_strided_slice %1017 {offsets = [0, 64], sizes = [1, 32], strides = [1, 1]} : vector<1x160xf32> to vector<1x32xf32>
    %1031 = arith.negf %1030 : vector<1x32xf32>
    %1032 = math.exp %1031 : vector<1x32xf32>
    %cst_284 = arith.constant 1.000000e+00 : f32
    %1033 = vector.broadcast %cst_284 : f32 to vector<1x32xf32>
    %1034 = arith.addf %1033, %1032 : vector<1x32xf32>
    %1035 = arith.divf %1033, %1034 : vector<1x32xf32>
    %1036 = vector.extract_strided_slice %1017 {offsets = [0, 96], sizes = [1, 32], strides = [1, 1]} : vector<1x160xf32> to vector<1x32xf32>
    %1037 = arith.negf %1036 : vector<1x32xf32>
    %1038 = math.exp %1037 : vector<1x32xf32>
    %cst_285 = arith.constant 1.000000e+00 : f32
    %1039 = vector.broadcast %cst_285 : f32 to vector<1x32xf32>
    %1040 = arith.addf %1039, %1038 : vector<1x32xf32>
    %1041 = arith.divf %1039, %1040 : vector<1x32xf32>
    %1042 = vector.extract_strided_slice %1017 {offsets = [0, 128], sizes = [1, 32], strides = [1, 1]} : vector<1x160xf32> to vector<1x32xf32>
    %1043 = math.tanh %1042 : vector<1x32xf32>
    %1044 = vector.extract_strided_slice %896 {offsets = [0, 32], sizes = [1, 32], strides = [1, 1]} : vector<1x64xf32> to vector<1x32xf32>
    %1045 = vector.extract_strided_slice %910 {offsets = [0, 32], sizes = [1, 32], strides = [1, 1]} : vector<1x64xf32> to vector<1x32xf32>
    %1046 = arith.mulf %1023, %1043 : vector<1x32xf32>
    %1047 = arith.mulf %1029, %1044 : vector<1x32xf32>
    %1048 = arith.addf %1046, %1047 : vector<1x32xf32>
    %1049 = arith.mulf %1035, %1045 : vector<1x32xf32>
    %1050 = arith.addf %1048, %1049 : vector<1x32xf32>
    %1051 = math.tanh %1050 : vector<1x32xf32>
    %1052 = arith.mulf %1041, %1051 : vector<1x32xf32>
    %1053 = tpu.concatenate %1052, %1050 in 1 : vector<1x32xf32>, vector<1x32xf32> -> vector<1x64xf32>
    %c0_i32_286 = arith.constant 0 : i32
    %1054 = vector.broadcast %c0_i32_286 : i32 to vector<1x1xi32>
    %1055 = arith.cmpi eq, %961, %1054 : vector<1x1xi32>
    %1056 = vector.shape_cast %1055 : vector<1x1xi1> to vector<1x1xi1>
    %1057 = vector.broadcast %1056 : vector<1x1xi1> to vector<1x64xi1>
    %1058 = arith.select %1057, %922, %1053 : vector<1x64xi1>, vector<1x64xf32>
    %c2_i32_287 = arith.constant 2 : i32
    %1059 = vector.broadcast %c2_i32_287 : i32 to vector<1x1xi32>
    %1060 = arith.subi %862, %1059 : vector<1x1xi32>
    %1061 = arith.select %1055, %862, %1060 : vector<1x1xi1>, vector<1x1xi32>
    %1062 = vector.broadcast %1061 : vector<1x1xi32> to vector<6x64xi32>
    %1063 = arith.cmpi eq, %42, %1062 : vector<6x64xi32>
    %1064 = vector.shape_cast %1058 : vector<1x64xf32> to vector<1x64xf32>
    %1065 = vector.broadcast %1064 : vector<1x64xf32> to vector<6x64xf32>
    %1066 = arith.select %1063, %1065, %858 : vector<6x64xi1>, vector<6x64xf32>
    %c1_i32_288 = arith.constant 1 : i32
    %c-1_i32_289 = arith.constant -1 : i32
    %1067 = vector.broadcast %c1_i32_288 : i32 to vector<1x1xi32>
    %1068 = vector.broadcast %c-1_i32_289 : i32 to vector<1x1xi32>
    %1069 = arith.select %1055, %1067, %1068 : vector<1x1xi1>, vector<1x1xi32>
    %1070 = arith.addi %862, %1069 : vector<1x1xi32>
    %c1_i32_290 = arith.constant 1 : i32
    %c0_i32_291 = arith.constant 0 : i32
    %1071 = vector.broadcast %c1_i32_290 : i32 to vector<1x1xi32>
    %1072 = vector.broadcast %c0_i32_291 : i32 to vector<1x1xi32>
    %1073 = arith.select %1055, %1071, %1072 : vector<1x1xi1>, vector<1x1xi32>
    %1074 = arith.addi %866, %1073 : vector<1x1xi32>
    %1075 = vector.broadcast %c4_i32 : i32 to vector<1x16xi32>
    %1076 = arith.cmpi eq, %41, %1075 : vector<1x16xi32>
    %1077 = vector.shape_cast %961 : vector<1x1xi32> to vector<1x1xi32>
    %1078 = vector.broadcast %1077 : vector<1x1xi32> to vector<1x16xi32>
    %1079 = arith.select %1076, %1078, %871 : vector<1x16xi1>, vector<1x16xi32>
    %1080 = vector.shape_cast %981 : vector<1x1xi32> to vector<1x1xi32>
    %1081 = vector.broadcast %1080 : vector<1x1xi32> to vector<1x16xi32>
    %1082 = arith.select %1076, %1081, %874 : vector<1x16xi1>, vector<1x16xi32>
    %1083 = vector.shape_cast %1001 : vector<1x1xi32> to vector<1x1xi32>
    %1084 = vector.broadcast %1083 : vector<1x1xi32> to vector<1x16xi32>
    %1085 = arith.select %1076, %1084, %877 : vector<1x16xi1>, vector<1x16xi32>
    %1086 = vector.broadcast %c4_i32 : i32 to vector<16x64xi32>
    %1087 = arith.cmpi eq, %43, %1086 : vector<16x64xi32>
    %1088 = vector.shape_cast %1058 : vector<1x64xf32> to vector<1x64xf32>
    %1089 = vector.broadcast %1088 : vector<1x64xf32> to vector<16x64xf32>
    %1090 = arith.select %1087, %1089, %882 : vector<16x64xi1>, vector<16x64xf32>
    %c5_i32 = arith.constant 5 : i32
    %c2_i32_292 = arith.constant 2 : i32
    %1091 = vector.broadcast %c2_i32_292 : i32 to vector<1x1xi32>
    %1092 = arith.cmpi sge, %1070, %1091 : vector<1x1xi32>
    %c2_i32_293 = arith.constant 2 : i32
    %1093 = vector.broadcast %c2_i32_293 : i32 to vector<1x1xi32>
    %1094 = arith.subi %1070, %1093 : vector<1x1xi32>
    %1095 = tpu.iota {dimensions = array<i32: 0>} : vector<6x64xi32>
    %1096 = vector.broadcast %1094 : vector<1x1xi32> to vector<6x64xi32>
    %1097 = arith.cmpi eq, %1095, %1096 : vector<6x64xi32>
    %cst_294 = arith.constant 0.000000e+00 : f32
    %1098 = vector.broadcast %cst_294 : f32 to vector<6x64xf32>
    %1099 = arith.select %1097, %1066, %1098 : vector<6x64xi1>, vector<6x64xf32>
    %cst_295 = arith.constant dense<0.000000e+00> : vector<64xf32>
    %1100 = vector.multi_reduction <add>, %1099, %cst_295 [0] : vector<6x64xf32> to vector<64xf32>
    %1101 = vector.shape_cast %1100 : vector<64xf32> to vector<1x64xf32>
    %1102 = vector.shape_cast %1092 : vector<1x1xi1> to vector<1x1xi1>
    %1103 = vector.broadcast %1102 : vector<1x1xi1> to vector<1x64xi1>
    %1104 = arith.select %1103, %1101, %35 : vector<1x64xi1>, vector<1x64xf32>
    %c1_i32_296 = arith.constant 1 : i32
    %1105 = vector.broadcast %c1_i32_296 : i32 to vector<1x1xi32>
    %1106 = arith.cmpi sge, %1070, %1105 : vector<1x1xi32>
    %c1_i32_297 = arith.constant 1 : i32
    %1107 = vector.broadcast %c1_i32_297 : i32 to vector<1x1xi32>
    %1108 = arith.subi %1070, %1107 : vector<1x1xi32>
    %1109 = tpu.iota {dimensions = array<i32: 0>} : vector<6x64xi32>
    %1110 = vector.broadcast %1108 : vector<1x1xi32> to vector<6x64xi32>
    %1111 = arith.cmpi eq, %1109, %1110 : vector<6x64xi32>
    %cst_298 = arith.constant 0.000000e+00 : f32
    %1112 = vector.broadcast %cst_298 : f32 to vector<6x64xf32>
    %1113 = arith.select %1111, %1066, %1112 : vector<6x64xi1>, vector<6x64xf32>
    %cst_299 = arith.constant dense<0.000000e+00> : vector<64xf32>
    %1114 = vector.multi_reduction <add>, %1113, %cst_299 [0] : vector<6x64xf32> to vector<64xf32>
    %1115 = vector.shape_cast %1114 : vector<64xf32> to vector<1x64xf32>
    %1116 = vector.shape_cast %1106 : vector<1x1xi1> to vector<1x1xi1>
    %1117 = vector.broadcast %1116 : vector<1x1xi1> to vector<1x64xi1>
    %1118 = arith.select %1117, %1115, %35 : vector<1x64xi1>, vector<1x64xf32>
    %c6_i32_300 = arith.constant 6 : i32
    %1119 = vector.broadcast %c6_i32_300 : i32 to vector<1x1xi32>
    %1120 = arith.cmpi slt, %1074, %1119 : vector<1x1xi32>
    %1121 = tpu.iota {dimensions = array<i32: 0>} : vector<6x64xi32>
    %1122 = vector.broadcast %1074 : vector<1x1xi32> to vector<6x64xi32>
    %1123 = arith.cmpi eq, %1121, %1122 : vector<6x64xi32>
    %cst_301 = arith.constant 0.000000e+00 : f32
    %1124 = vector.broadcast %cst_301 : f32 to vector<6x64xf32>
    %1125 = arith.select %1123, %33, %1124 : vector<6x64xi1>, vector<6x64xf32>
    %cst_302 = arith.constant dense<0.000000e+00> : vector<64xf32>
    %1126 = vector.multi_reduction <add>, %1125, %cst_302 [0] : vector<6x64xf32> to vector<64xf32>
    %1127 = vector.shape_cast %1126 : vector<64xf32> to vector<1x64xf32>
    %1128 = vector.shape_cast %1120 : vector<1x1xi1> to vector<1x1xi1>
    %1129 = vector.broadcast %1128 : vector<1x1xi1> to vector<1x64xi1>
    %1130 = arith.select %1129, %1127, %35 : vector<1x64xi1>, vector<1x64xf32>
    %1131 = tpu.concatenate %1104, %1118, %1130 in 1 : vector<1x64xf32>, vector<1x64xf32>, vector<1x64xf32> -> vector<1x192xf32>
    %cst_303 = arith.constant dense<0.000000e+00> : vector<1x288xf32>
    %1132 = tpu.matmul %1131, %36, %cst_303 {dimension_numbers = #tpu.dot_dimension_numbers<[1], [0], [0], [1], [0, 0, 1, 1], [], []>} : vector<1x192xf32>, vector<192x288xf32>, vector<1x288xf32> -> vector<1x288xf32>
    %1133 = arith.addf %1132, %37 : vector<1x288xf32>
    %1134 = vector.extract_strided_slice %1133 {offsets = [0, 0], sizes = [1, 128], strides = [1, 1]} : vector<1x288xf32> to vector<1x128xf32>
    %1135 = vector.extract_strided_slice %1133 {offsets = [0, 128], sizes = [1, 160], strides = [1, 1]} : vector<1x288xf32> to vector<1x160xf32>
    %c6_i32_304 = arith.constant 6 : i32
    %1136 = vector.broadcast %c6_i32_304 : i32 to vector<1x1xi32>
    %1137 = arith.cmpi slt, %1074, %1136 : vector<1x1xi32>
    %c2_i32_305 = arith.constant 2 : i32
    %1138 = vector.broadcast %c2_i32_305 : i32 to vector<1x1xi32>
    %1139 = arith.cmpi sge, %1070, %1138 : vector<1x1xi32>
    %c0_i32_306 = arith.constant 0 : i32
    %1140 = vector.broadcast %c0_i32_306 : i32 to vector<1x128xi32>
    %1141 = arith.cmpi eq, %40, %1140 : vector<1x128xi32>
    %1142 = vector.broadcast %1137 : vector<1x1xi1> to vector<1x128xi1>
    %1143 = arith.andi %1141, %1142 : vector<1x128xi1>
    %c1_i32_307 = arith.constant 1 : i32
    %1144 = vector.broadcast %c1_i32_307 : i32 to vector<1x128xi32>
    %1145 = arith.cmpi eq, %40, %1144 : vector<1x128xi32>
    %1146 = vector.broadcast %1139 : vector<1x1xi1> to vector<1x128xi1>
    %1147 = arith.andi %1145, %1146 : vector<1x128xi1>
    %1148 = arith.ori %1143, %1147 : vector<1x128xi1>
    %c0_i32_308 = arith.constant 0 : i32
    %1149 = vector.broadcast %c0_i32_308 : i32 to vector<1x128xi32>
    %1150 = arith.cmpi sge, %40, %1149 : vector<1x128xi32>
    %c2_i32_309 = arith.constant 2 : i32
    %1151 = vector.broadcast %c2_i32_309 : i32 to vector<1x128xi32>
    %1152 = arith.cmpi slt, %40, %1151 : vector<1x128xi32>
    %1153 = arith.andi %1150, %1152 : vector<1x128xi1>
    %1154 = arith.andi %1153, %1148 : vector<1x128xi1>
    %cst_310 = arith.constant -1.000000e+30 : f32
    %1155 = vector.broadcast %cst_310 : f32 to vector<1x128xf32>
    %1156 = arith.select %1154, %1134, %1155 : vector<1x128xi1>, vector<1x128xf32>
    %cst_311 = arith.constant dense<0xFF800000> : vector<1xf32>
    %1157 = vector.multi_reduction <maximumf>, %1156, %cst_311 [1] : vector<1x128xf32> to vector<1xf32>
    %1158 = vector.shape_cast %1157 : vector<1xf32> to vector<1x1xf32>
    %1159 = vector.broadcast %1158 : vector<1x1xf32> to vector<1x128xf32>
    %1160 = arith.cmpf oge, %1156, %1159 : vector<1x128xf32>
    %1161 = arith.andi %1154, %1160 : vector<1x128xi1>
    %1162 = arith.sitofp %40 : vector<1x128xi32> to vector<1x128xf32>
    %cst_312 = arith.constant 1.000000e+09 : f32
    %1163 = vector.broadcast %cst_312 : f32 to vector<1x128xf32>
    %1164 = arith.select %1161, %1162, %1163 : vector<1x128xi1>, vector<1x128xf32>
    %cst_313 = arith.constant dense<0x7F800000> : vector<1xf32>
    %1165 = vector.multi_reduction <minimumf>, %1164, %cst_313 [1] : vector<1x128xf32> to vector<1xf32>
    %1166 = vector.shape_cast %1165 : vector<1xf32> to vector<1x1xf32>
    %1167 = arith.fptosi %1166 : vector<1x1xf32> to vector<1x1xi32>
    %c0_i32_314 = arith.constant 0 : i32
    %1168 = vector.broadcast %c0_i32_314 : i32 to vector<1x1xi32>
    %1169 = arith.subi %1167, %1168 : vector<1x1xi32>
    %c2_i32_315 = arith.constant 2 : i32
    %1170 = vector.broadcast %c2_i32_315 : i32 to vector<1x128xi32>
    %1171 = arith.cmpi sge, %40, %1170 : vector<1x128xi32>
    %c10_i32_316 = arith.constant 10 : i32
    %1172 = vector.broadcast %c10_i32_316 : i32 to vector<1x128xi32>
    %1173 = arith.cmpi slt, %40, %1172 : vector<1x128xi32>
    %1174 = arith.andi %1171, %1173 : vector<1x128xi1>
    %cst_317 = arith.constant -1.000000e+30 : f32
    %1175 = vector.broadcast %cst_317 : f32 to vector<1x128xf32>
    %1176 = arith.select %1174, %1134, %1175 : vector<1x128xi1>, vector<1x128xf32>
    %cst_318 = arith.constant dense<0xFF800000> : vector<1xf32>
    %1177 = vector.multi_reduction <maximumf>, %1176, %cst_318 [1] : vector<1x128xf32> to vector<1xf32>
    %1178 = vector.shape_cast %1177 : vector<1xf32> to vector<1x1xf32>
    %1179 = vector.broadcast %1178 : vector<1x1xf32> to vector<1x128xf32>
    %1180 = arith.cmpf oge, %1176, %1179 : vector<1x128xf32>
    %1181 = arith.andi %1174, %1180 : vector<1x128xi1>
    %1182 = arith.sitofp %40 : vector<1x128xi32> to vector<1x128xf32>
    %cst_319 = arith.constant 1.000000e+09 : f32
    %1183 = vector.broadcast %cst_319 : f32 to vector<1x128xf32>
    %1184 = arith.select %1181, %1182, %1183 : vector<1x128xi1>, vector<1x128xf32>
    %cst_320 = arith.constant dense<0x7F800000> : vector<1xf32>
    %1185 = vector.multi_reduction <minimumf>, %1184, %cst_320 [1] : vector<1x128xf32> to vector<1xf32>
    %1186 = vector.shape_cast %1185 : vector<1xf32> to vector<1x1xf32>
    %1187 = arith.fptosi %1186 : vector<1x1xf32> to vector<1x1xi32>
    %c2_i32_321 = arith.constant 2 : i32
    %1188 = vector.broadcast %c2_i32_321 : i32 to vector<1x1xi32>
    %1189 = arith.subi %1187, %1188 : vector<1x1xi32>
    %c10_i32_322 = arith.constant 10 : i32
    %1190 = vector.broadcast %c10_i32_322 : i32 to vector<1x128xi32>
    %1191 = arith.cmpi sge, %40, %1190 : vector<1x128xi32>
    %c13_i32_323 = arith.constant 13 : i32
    %1192 = vector.broadcast %c13_i32_323 : i32 to vector<1x128xi32>
    %1193 = arith.cmpi slt, %40, %1192 : vector<1x128xi32>
    %1194 = arith.andi %1191, %1193 : vector<1x128xi1>
    %cst_324 = arith.constant -1.000000e+30 : f32
    %1195 = vector.broadcast %cst_324 : f32 to vector<1x128xf32>
    %1196 = arith.select %1194, %1134, %1195 : vector<1x128xi1>, vector<1x128xf32>
    %cst_325 = arith.constant dense<0xFF800000> : vector<1xf32>
    %1197 = vector.multi_reduction <maximumf>, %1196, %cst_325 [1] : vector<1x128xf32> to vector<1xf32>
    %1198 = vector.shape_cast %1197 : vector<1xf32> to vector<1x1xf32>
    %1199 = vector.broadcast %1198 : vector<1x1xf32> to vector<1x128xf32>
    %1200 = arith.cmpf oge, %1196, %1199 : vector<1x128xf32>
    %1201 = arith.andi %1194, %1200 : vector<1x128xi1>
    %1202 = arith.sitofp %40 : vector<1x128xi32> to vector<1x128xf32>
    %cst_326 = arith.constant 1.000000e+09 : f32
    %1203 = vector.broadcast %cst_326 : f32 to vector<1x128xf32>
    %1204 = arith.select %1201, %1202, %1203 : vector<1x128xi1>, vector<1x128xf32>
    %cst_327 = arith.constant dense<0x7F800000> : vector<1xf32>
    %1205 = vector.multi_reduction <minimumf>, %1204, %cst_327 [1] : vector<1x128xf32> to vector<1xf32>
    %1206 = vector.shape_cast %1205 : vector<1xf32> to vector<1x1xf32>
    %1207 = arith.fptosi %1206 : vector<1x1xf32> to vector<1x1xi32>
    %c10_i32_328 = arith.constant 10 : i32
    %1208 = vector.broadcast %c10_i32_328 : i32 to vector<1x1xi32>
    %1209 = arith.subi %1207, %1208 : vector<1x1xi32>
    %1210 = tpu.iota {dimensions = array<i32: 0>} : vector<8x160xi32>
    %1211 = vector.broadcast %1189 : vector<1x1xi32> to vector<8x160xi32>
    %1212 = arith.cmpi eq, %1210, %1211 : vector<8x160xi32>
    %cst_329 = arith.constant 0.000000e+00 : f32
    %1213 = vector.broadcast %cst_329 : f32 to vector<8x160xf32>
    %1214 = arith.select %1212, %38, %1213 : vector<8x160xi1>, vector<8x160xf32>
    %cst_330 = arith.constant dense<0.000000e+00> : vector<160xf32>
    %1215 = vector.multi_reduction <add>, %1214, %cst_330 [0] : vector<8x160xf32> to vector<160xf32>
    %1216 = vector.shape_cast %1215 : vector<160xf32> to vector<1x160xf32>
    %1217 = tpu.iota {dimensions = array<i32: 0>} : vector<3x160xi32>
    %1218 = vector.broadcast %1209 : vector<1x1xi32> to vector<3x160xi32>
    %1219 = arith.cmpi eq, %1217, %1218 : vector<3x160xi32>
    %cst_331 = arith.constant 0.000000e+00 : f32
    %1220 = vector.broadcast %cst_331 : f32 to vector<3x160xf32>
    %1221 = arith.select %1219, %39, %1220 : vector<3x160xi1>, vector<3x160xf32>
    %cst_332 = arith.constant dense<0.000000e+00> : vector<160xf32>
    %1222 = vector.multi_reduction <add>, %1221, %cst_332 [0] : vector<3x160xf32> to vector<160xf32>
    %1223 = vector.shape_cast %1222 : vector<160xf32> to vector<1x160xf32>
    %1224 = arith.addf %1216, %1223 : vector<1x160xf32>
    %1225 = arith.addf %1224, %1135 : vector<1x160xf32>
    %1226 = vector.extract_strided_slice %1225 {offsets = [0, 0], sizes = [1, 32], strides = [1, 1]} : vector<1x160xf32> to vector<1x32xf32>
    %1227 = arith.negf %1226 : vector<1x32xf32>
    %1228 = math.exp %1227 : vector<1x32xf32>
    %cst_333 = arith.constant 1.000000e+00 : f32
    %1229 = vector.broadcast %cst_333 : f32 to vector<1x32xf32>
    %1230 = arith.addf %1229, %1228 : vector<1x32xf32>
    %1231 = arith.divf %1229, %1230 : vector<1x32xf32>
    %1232 = vector.extract_strided_slice %1225 {offsets = [0, 32], sizes = [1, 32], strides = [1, 1]} : vector<1x160xf32> to vector<1x32xf32>
    %1233 = arith.negf %1232 : vector<1x32xf32>
    %1234 = math.exp %1233 : vector<1x32xf32>
    %cst_334 = arith.constant 1.000000e+00 : f32
    %1235 = vector.broadcast %cst_334 : f32 to vector<1x32xf32>
    %1236 = arith.addf %1235, %1234 : vector<1x32xf32>
    %1237 = arith.divf %1235, %1236 : vector<1x32xf32>
    %1238 = vector.extract_strided_slice %1225 {offsets = [0, 64], sizes = [1, 32], strides = [1, 1]} : vector<1x160xf32> to vector<1x32xf32>
    %1239 = arith.negf %1238 : vector<1x32xf32>
    %1240 = math.exp %1239 : vector<1x32xf32>
    %cst_335 = arith.constant 1.000000e+00 : f32
    %1241 = vector.broadcast %cst_335 : f32 to vector<1x32xf32>
    %1242 = arith.addf %1241, %1240 : vector<1x32xf32>
    %1243 = arith.divf %1241, %1242 : vector<1x32xf32>
    %1244 = vector.extract_strided_slice %1225 {offsets = [0, 96], sizes = [1, 32], strides = [1, 1]} : vector<1x160xf32> to vector<1x32xf32>
    %1245 = arith.negf %1244 : vector<1x32xf32>
    %1246 = math.exp %1245 : vector<1x32xf32>
    %cst_336 = arith.constant 1.000000e+00 : f32
    %1247 = vector.broadcast %cst_336 : f32 to vector<1x32xf32>
    %1248 = arith.addf %1247, %1246 : vector<1x32xf32>
    %1249 = arith.divf %1247, %1248 : vector<1x32xf32>
    %1250 = vector.extract_strided_slice %1225 {offsets = [0, 128], sizes = [1, 32], strides = [1, 1]} : vector<1x160xf32> to vector<1x32xf32>
    %1251 = math.tanh %1250 : vector<1x32xf32>
    %1252 = vector.extract_strided_slice %1104 {offsets = [0, 32], sizes = [1, 32], strides = [1, 1]} : vector<1x64xf32> to vector<1x32xf32>
    %1253 = vector.extract_strided_slice %1118 {offsets = [0, 32], sizes = [1, 32], strides = [1, 1]} : vector<1x64xf32> to vector<1x32xf32>
    %1254 = arith.mulf %1231, %1251 : vector<1x32xf32>
    %1255 = arith.mulf %1237, %1252 : vector<1x32xf32>
    %1256 = arith.addf %1254, %1255 : vector<1x32xf32>
    %1257 = arith.mulf %1243, %1253 : vector<1x32xf32>
    %1258 = arith.addf %1256, %1257 : vector<1x32xf32>
    %1259 = math.tanh %1258 : vector<1x32xf32>
    %1260 = arith.mulf %1249, %1259 : vector<1x32xf32>
    %1261 = tpu.concatenate %1260, %1258 in 1 : vector<1x32xf32>, vector<1x32xf32> -> vector<1x64xf32>
    %c0_i32_337 = arith.constant 0 : i32
    %1262 = vector.broadcast %c0_i32_337 : i32 to vector<1x1xi32>
    %1263 = arith.cmpi eq, %1169, %1262 : vector<1x1xi32>
    %1264 = vector.shape_cast %1263 : vector<1x1xi1> to vector<1x1xi1>
    %1265 = vector.broadcast %1264 : vector<1x1xi1> to vector<1x64xi1>
    %1266 = arith.select %1265, %1130, %1261 : vector<1x64xi1>, vector<1x64xf32>
    %c2_i32_338 = arith.constant 2 : i32
    %1267 = vector.broadcast %c2_i32_338 : i32 to vector<1x1xi32>
    %1268 = arith.subi %1070, %1267 : vector<1x1xi32>
    %1269 = arith.select %1263, %1070, %1268 : vector<1x1xi1>, vector<1x1xi32>
    %1270 = vector.broadcast %1269 : vector<1x1xi32> to vector<6x64xi32>
    %1271 = arith.cmpi eq, %42, %1270 : vector<6x64xi32>
    %1272 = vector.shape_cast %1266 : vector<1x64xf32> to vector<1x64xf32>
    %1273 = vector.broadcast %1272 : vector<1x64xf32> to vector<6x64xf32>
    %1274 = arith.select %1271, %1273, %1066 : vector<6x64xi1>, vector<6x64xf32>
    %c1_i32_339 = arith.constant 1 : i32
    %c-1_i32_340 = arith.constant -1 : i32
    %1275 = vector.broadcast %c1_i32_339 : i32 to vector<1x1xi32>
    %1276 = vector.broadcast %c-1_i32_340 : i32 to vector<1x1xi32>
    %1277 = arith.select %1263, %1275, %1276 : vector<1x1xi1>, vector<1x1xi32>
    %1278 = arith.addi %1070, %1277 : vector<1x1xi32>
    %c1_i32_341 = arith.constant 1 : i32
    %c0_i32_342 = arith.constant 0 : i32
    %1279 = vector.broadcast %c1_i32_341 : i32 to vector<1x1xi32>
    %1280 = vector.broadcast %c0_i32_342 : i32 to vector<1x1xi32>
    %1281 = arith.select %1263, %1279, %1280 : vector<1x1xi1>, vector<1x1xi32>
    %1282 = arith.addi %1074, %1281 : vector<1x1xi32>
    %1283 = vector.broadcast %c5_i32 : i32 to vector<1x16xi32>
    %1284 = arith.cmpi eq, %41, %1283 : vector<1x16xi32>
    %1285 = vector.shape_cast %1169 : vector<1x1xi32> to vector<1x1xi32>
    %1286 = vector.broadcast %1285 : vector<1x1xi32> to vector<1x16xi32>
    %1287 = arith.select %1284, %1286, %1079 : vector<1x16xi1>, vector<1x16xi32>
    %1288 = vector.shape_cast %1189 : vector<1x1xi32> to vector<1x1xi32>
    %1289 = vector.broadcast %1288 : vector<1x1xi32> to vector<1x16xi32>
    %1290 = arith.select %1284, %1289, %1082 : vector<1x16xi1>, vector<1x16xi32>
    %1291 = vector.shape_cast %1209 : vector<1x1xi32> to vector<1x1xi32>
    %1292 = vector.broadcast %1291 : vector<1x1xi32> to vector<1x16xi32>
    %1293 = arith.select %1284, %1292, %1085 : vector<1x16xi1>, vector<1x16xi32>
    %1294 = vector.broadcast %c5_i32 : i32 to vector<16x64xi32>
    %1295 = arith.cmpi eq, %43, %1294 : vector<16x64xi32>
    %1296 = vector.shape_cast %1266 : vector<1x64xf32> to vector<1x64xf32>
    %1297 = vector.broadcast %1296 : vector<1x64xf32> to vector<16x64xf32>
    %1298 = arith.select %1295, %1297, %1090 : vector<16x64xi1>, vector<16x64xf32>
    %c6_i32_343 = arith.constant 6 : i32
    %c2_i32_344 = arith.constant 2 : i32
    %1299 = vector.broadcast %c2_i32_344 : i32 to vector<1x1xi32>
    %1300 = arith.cmpi sge, %1278, %1299 : vector<1x1xi32>
    %c2_i32_345 = arith.constant 2 : i32
    %1301 = vector.broadcast %c2_i32_345 : i32 to vector<1x1xi32>
    %1302 = arith.subi %1278, %1301 : vector<1x1xi32>
    %1303 = tpu.iota {dimensions = array<i32: 0>} : vector<6x64xi32>
    %1304 = vector.broadcast %1302 : vector<1x1xi32> to vector<6x64xi32>
    %1305 = arith.cmpi eq, %1303, %1304 : vector<6x64xi32>
    %cst_346 = arith.constant 0.000000e+00 : f32
    %1306 = vector.broadcast %cst_346 : f32 to vector<6x64xf32>
    %1307 = arith.select %1305, %1274, %1306 : vector<6x64xi1>, vector<6x64xf32>
    %cst_347 = arith.constant dense<0.000000e+00> : vector<64xf32>
    %1308 = vector.multi_reduction <add>, %1307, %cst_347 [0] : vector<6x64xf32> to vector<64xf32>
    %1309 = vector.shape_cast %1308 : vector<64xf32> to vector<1x64xf32>
    %1310 = vector.shape_cast %1300 : vector<1x1xi1> to vector<1x1xi1>
    %1311 = vector.broadcast %1310 : vector<1x1xi1> to vector<1x64xi1>
    %1312 = arith.select %1311, %1309, %35 : vector<1x64xi1>, vector<1x64xf32>
    %c1_i32_348 = arith.constant 1 : i32
    %1313 = vector.broadcast %c1_i32_348 : i32 to vector<1x1xi32>
    %1314 = arith.cmpi sge, %1278, %1313 : vector<1x1xi32>
    %c1_i32_349 = arith.constant 1 : i32
    %1315 = vector.broadcast %c1_i32_349 : i32 to vector<1x1xi32>
    %1316 = arith.subi %1278, %1315 : vector<1x1xi32>
    %1317 = tpu.iota {dimensions = array<i32: 0>} : vector<6x64xi32>
    %1318 = vector.broadcast %1316 : vector<1x1xi32> to vector<6x64xi32>
    %1319 = arith.cmpi eq, %1317, %1318 : vector<6x64xi32>
    %cst_350 = arith.constant 0.000000e+00 : f32
    %1320 = vector.broadcast %cst_350 : f32 to vector<6x64xf32>
    %1321 = arith.select %1319, %1274, %1320 : vector<6x64xi1>, vector<6x64xf32>
    %cst_351 = arith.constant dense<0.000000e+00> : vector<64xf32>
    %1322 = vector.multi_reduction <add>, %1321, %cst_351 [0] : vector<6x64xf32> to vector<64xf32>
    %1323 = vector.shape_cast %1322 : vector<64xf32> to vector<1x64xf32>
    %1324 = vector.shape_cast %1314 : vector<1x1xi1> to vector<1x1xi1>
    %1325 = vector.broadcast %1324 : vector<1x1xi1> to vector<1x64xi1>
    %1326 = arith.select %1325, %1323, %35 : vector<1x64xi1>, vector<1x64xf32>
    %c6_i32_352 = arith.constant 6 : i32
    %1327 = vector.broadcast %c6_i32_352 : i32 to vector<1x1xi32>
    %1328 = arith.cmpi slt, %1282, %1327 : vector<1x1xi32>
    %1329 = tpu.iota {dimensions = array<i32: 0>} : vector<6x64xi32>
    %1330 = vector.broadcast %1282 : vector<1x1xi32> to vector<6x64xi32>
    %1331 = arith.cmpi eq, %1329, %1330 : vector<6x64xi32>
    %cst_353 = arith.constant 0.000000e+00 : f32
    %1332 = vector.broadcast %cst_353 : f32 to vector<6x64xf32>
    %1333 = arith.select %1331, %33, %1332 : vector<6x64xi1>, vector<6x64xf32>
    %cst_354 = arith.constant dense<0.000000e+00> : vector<64xf32>
    %1334 = vector.multi_reduction <add>, %1333, %cst_354 [0] : vector<6x64xf32> to vector<64xf32>
    %1335 = vector.shape_cast %1334 : vector<64xf32> to vector<1x64xf32>
    %1336 = vector.shape_cast %1328 : vector<1x1xi1> to vector<1x1xi1>
    %1337 = vector.broadcast %1336 : vector<1x1xi1> to vector<1x64xi1>
    %1338 = arith.select %1337, %1335, %35 : vector<1x64xi1>, vector<1x64xf32>
    %1339 = tpu.concatenate %1312, %1326, %1338 in 1 : vector<1x64xf32>, vector<1x64xf32>, vector<1x64xf32> -> vector<1x192xf32>
    %cst_355 = arith.constant dense<0.000000e+00> : vector<1x288xf32>
    %1340 = tpu.matmul %1339, %36, %cst_355 {dimension_numbers = #tpu.dot_dimension_numbers<[1], [0], [0], [1], [0, 0, 1, 1], [], []>} : vector<1x192xf32>, vector<192x288xf32>, vector<1x288xf32> -> vector<1x288xf32>
    %1341 = arith.addf %1340, %37 : vector<1x288xf32>
    %1342 = vector.extract_strided_slice %1341 {offsets = [0, 0], sizes = [1, 128], strides = [1, 1]} : vector<1x288xf32> to vector<1x128xf32>
    %1343 = vector.extract_strided_slice %1341 {offsets = [0, 128], sizes = [1, 160], strides = [1, 1]} : vector<1x288xf32> to vector<1x160xf32>
    %c6_i32_356 = arith.constant 6 : i32
    %1344 = vector.broadcast %c6_i32_356 : i32 to vector<1x1xi32>
    %1345 = arith.cmpi slt, %1282, %1344 : vector<1x1xi32>
    %c2_i32_357 = arith.constant 2 : i32
    %1346 = vector.broadcast %c2_i32_357 : i32 to vector<1x1xi32>
    %1347 = arith.cmpi sge, %1278, %1346 : vector<1x1xi32>
    %c0_i32_358 = arith.constant 0 : i32
    %1348 = vector.broadcast %c0_i32_358 : i32 to vector<1x128xi32>
    %1349 = arith.cmpi eq, %40, %1348 : vector<1x128xi32>
    %1350 = vector.broadcast %1345 : vector<1x1xi1> to vector<1x128xi1>
    %1351 = arith.andi %1349, %1350 : vector<1x128xi1>
    %c1_i32_359 = arith.constant 1 : i32
    %1352 = vector.broadcast %c1_i32_359 : i32 to vector<1x128xi32>
    %1353 = arith.cmpi eq, %40, %1352 : vector<1x128xi32>
    %1354 = vector.broadcast %1347 : vector<1x1xi1> to vector<1x128xi1>
    %1355 = arith.andi %1353, %1354 : vector<1x128xi1>
    %1356 = arith.ori %1351, %1355 : vector<1x128xi1>
    %c0_i32_360 = arith.constant 0 : i32
    %1357 = vector.broadcast %c0_i32_360 : i32 to vector<1x128xi32>
    %1358 = arith.cmpi sge, %40, %1357 : vector<1x128xi32>
    %c2_i32_361 = arith.constant 2 : i32
    %1359 = vector.broadcast %c2_i32_361 : i32 to vector<1x128xi32>
    %1360 = arith.cmpi slt, %40, %1359 : vector<1x128xi32>
    %1361 = arith.andi %1358, %1360 : vector<1x128xi1>
    %1362 = arith.andi %1361, %1356 : vector<1x128xi1>
    %cst_362 = arith.constant -1.000000e+30 : f32
    %1363 = vector.broadcast %cst_362 : f32 to vector<1x128xf32>
    %1364 = arith.select %1362, %1342, %1363 : vector<1x128xi1>, vector<1x128xf32>
    %cst_363 = arith.constant dense<0xFF800000> : vector<1xf32>
    %1365 = vector.multi_reduction <maximumf>, %1364, %cst_363 [1] : vector<1x128xf32> to vector<1xf32>
    %1366 = vector.shape_cast %1365 : vector<1xf32> to vector<1x1xf32>
    %1367 = vector.broadcast %1366 : vector<1x1xf32> to vector<1x128xf32>
    %1368 = arith.cmpf oge, %1364, %1367 : vector<1x128xf32>
    %1369 = arith.andi %1362, %1368 : vector<1x128xi1>
    %1370 = arith.sitofp %40 : vector<1x128xi32> to vector<1x128xf32>
    %cst_364 = arith.constant 1.000000e+09 : f32
    %1371 = vector.broadcast %cst_364 : f32 to vector<1x128xf32>
    %1372 = arith.select %1369, %1370, %1371 : vector<1x128xi1>, vector<1x128xf32>
    %cst_365 = arith.constant dense<0x7F800000> : vector<1xf32>
    %1373 = vector.multi_reduction <minimumf>, %1372, %cst_365 [1] : vector<1x128xf32> to vector<1xf32>
    %1374 = vector.shape_cast %1373 : vector<1xf32> to vector<1x1xf32>
    %1375 = arith.fptosi %1374 : vector<1x1xf32> to vector<1x1xi32>
    %c0_i32_366 = arith.constant 0 : i32
    %1376 = vector.broadcast %c0_i32_366 : i32 to vector<1x1xi32>
    %1377 = arith.subi %1375, %1376 : vector<1x1xi32>
    %c2_i32_367 = arith.constant 2 : i32
    %1378 = vector.broadcast %c2_i32_367 : i32 to vector<1x128xi32>
    %1379 = arith.cmpi sge, %40, %1378 : vector<1x128xi32>
    %c10_i32_368 = arith.constant 10 : i32
    %1380 = vector.broadcast %c10_i32_368 : i32 to vector<1x128xi32>
    %1381 = arith.cmpi slt, %40, %1380 : vector<1x128xi32>
    %1382 = arith.andi %1379, %1381 : vector<1x128xi1>
    %cst_369 = arith.constant -1.000000e+30 : f32
    %1383 = vector.broadcast %cst_369 : f32 to vector<1x128xf32>
    %1384 = arith.select %1382, %1342, %1383 : vector<1x128xi1>, vector<1x128xf32>
    %cst_370 = arith.constant dense<0xFF800000> : vector<1xf32>
    %1385 = vector.multi_reduction <maximumf>, %1384, %cst_370 [1] : vector<1x128xf32> to vector<1xf32>
    %1386 = vector.shape_cast %1385 : vector<1xf32> to vector<1x1xf32>
    %1387 = vector.broadcast %1386 : vector<1x1xf32> to vector<1x128xf32>
    %1388 = arith.cmpf oge, %1384, %1387 : vector<1x128xf32>
    %1389 = arith.andi %1382, %1388 : vector<1x128xi1>
    %1390 = arith.sitofp %40 : vector<1x128xi32> to vector<1x128xf32>
    %cst_371 = arith.constant 1.000000e+09 : f32
    %1391 = vector.broadcast %cst_371 : f32 to vector<1x128xf32>
    %1392 = arith.select %1389, %1390, %1391 : vector<1x128xi1>, vector<1x128xf32>
    %cst_372 = arith.constant dense<0x7F800000> : vector<1xf32>
    %1393 = vector.multi_reduction <minimumf>, %1392, %cst_372 [1] : vector<1x128xf32> to vector<1xf32>
    %1394 = vector.shape_cast %1393 : vector<1xf32> to vector<1x1xf32>
    %1395 = arith.fptosi %1394 : vector<1x1xf32> to vector<1x1xi32>
    %c2_i32_373 = arith.constant 2 : i32
    %1396 = vector.broadcast %c2_i32_373 : i32 to vector<1x1xi32>
    %1397 = arith.subi %1395, %1396 : vector<1x1xi32>
    %c10_i32_374 = arith.constant 10 : i32
    %1398 = vector.broadcast %c10_i32_374 : i32 to vector<1x128xi32>
    %1399 = arith.cmpi sge, %40, %1398 : vector<1x128xi32>
    %c13_i32_375 = arith.constant 13 : i32
    %1400 = vector.broadcast %c13_i32_375 : i32 to vector<1x128xi32>
    %1401 = arith.cmpi slt, %40, %1400 : vector<1x128xi32>
    %1402 = arith.andi %1399, %1401 : vector<1x128xi1>
    %cst_376 = arith.constant -1.000000e+30 : f32
    %1403 = vector.broadcast %cst_376 : f32 to vector<1x128xf32>
    %1404 = arith.select %1402, %1342, %1403 : vector<1x128xi1>, vector<1x128xf32>
    %cst_377 = arith.constant dense<0xFF800000> : vector<1xf32>
    %1405 = vector.multi_reduction <maximumf>, %1404, %cst_377 [1] : vector<1x128xf32> to vector<1xf32>
    %1406 = vector.shape_cast %1405 : vector<1xf32> to vector<1x1xf32>
    %1407 = vector.broadcast %1406 : vector<1x1xf32> to vector<1x128xf32>
    %1408 = arith.cmpf oge, %1404, %1407 : vector<1x128xf32>
    %1409 = arith.andi %1402, %1408 : vector<1x128xi1>
    %1410 = arith.sitofp %40 : vector<1x128xi32> to vector<1x128xf32>
    %cst_378 = arith.constant 1.000000e+09 : f32
    %1411 = vector.broadcast %cst_378 : f32 to vector<1x128xf32>
    %1412 = arith.select %1409, %1410, %1411 : vector<1x128xi1>, vector<1x128xf32>
    %cst_379 = arith.constant dense<0x7F800000> : vector<1xf32>
    %1413 = vector.multi_reduction <minimumf>, %1412, %cst_379 [1] : vector<1x128xf32> to vector<1xf32>
    %1414 = vector.shape_cast %1413 : vector<1xf32> to vector<1x1xf32>
    %1415 = arith.fptosi %1414 : vector<1x1xf32> to vector<1x1xi32>
    %c10_i32_380 = arith.constant 10 : i32
    %1416 = vector.broadcast %c10_i32_380 : i32 to vector<1x1xi32>
    %1417 = arith.subi %1415, %1416 : vector<1x1xi32>
    %1418 = tpu.iota {dimensions = array<i32: 0>} : vector<8x160xi32>
    %1419 = vector.broadcast %1397 : vector<1x1xi32> to vector<8x160xi32>
    %1420 = arith.cmpi eq, %1418, %1419 : vector<8x160xi32>
    %cst_381 = arith.constant 0.000000e+00 : f32
    %1421 = vector.broadcast %cst_381 : f32 to vector<8x160xf32>
    %1422 = arith.select %1420, %38, %1421 : vector<8x160xi1>, vector<8x160xf32>
    %cst_382 = arith.constant dense<0.000000e+00> : vector<160xf32>
    %1423 = vector.multi_reduction <add>, %1422, %cst_382 [0] : vector<8x160xf32> to vector<160xf32>
    %1424 = vector.shape_cast %1423 : vector<160xf32> to vector<1x160xf32>
    %1425 = tpu.iota {dimensions = array<i32: 0>} : vector<3x160xi32>
    %1426 = vector.broadcast %1417 : vector<1x1xi32> to vector<3x160xi32>
    %1427 = arith.cmpi eq, %1425, %1426 : vector<3x160xi32>
    %cst_383 = arith.constant 0.000000e+00 : f32
    %1428 = vector.broadcast %cst_383 : f32 to vector<3x160xf32>
    %1429 = arith.select %1427, %39, %1428 : vector<3x160xi1>, vector<3x160xf32>
    %cst_384 = arith.constant dense<0.000000e+00> : vector<160xf32>
    %1430 = vector.multi_reduction <add>, %1429, %cst_384 [0] : vector<3x160xf32> to vector<160xf32>
    %1431 = vector.shape_cast %1430 : vector<160xf32> to vector<1x160xf32>
    %1432 = arith.addf %1424, %1431 : vector<1x160xf32>
    %1433 = arith.addf %1432, %1343 : vector<1x160xf32>
    %1434 = vector.extract_strided_slice %1433 {offsets = [0, 0], sizes = [1, 32], strides = [1, 1]} : vector<1x160xf32> to vector<1x32xf32>
    %1435 = arith.negf %1434 : vector<1x32xf32>
    %1436 = math.exp %1435 : vector<1x32xf32>
    %cst_385 = arith.constant 1.000000e+00 : f32
    %1437 = vector.broadcast %cst_385 : f32 to vector<1x32xf32>
    %1438 = arith.addf %1437, %1436 : vector<1x32xf32>
    %1439 = arith.divf %1437, %1438 : vector<1x32xf32>
    %1440 = vector.extract_strided_slice %1433 {offsets = [0, 32], sizes = [1, 32], strides = [1, 1]} : vector<1x160xf32> to vector<1x32xf32>
    %1441 = arith.negf %1440 : vector<1x32xf32>
    %1442 = math.exp %1441 : vector<1x32xf32>
    %cst_386 = arith.constant 1.000000e+00 : f32
    %1443 = vector.broadcast %cst_386 : f32 to vector<1x32xf32>
    %1444 = arith.addf %1443, %1442 : vector<1x32xf32>
    %1445 = arith.divf %1443, %1444 : vector<1x32xf32>
    %1446 = vector.extract_strided_slice %1433 {offsets = [0, 64], sizes = [1, 32], strides = [1, 1]} : vector<1x160xf32> to vector<1x32xf32>
    %1447 = arith.negf %1446 : vector<1x32xf32>
    %1448 = math.exp %1447 : vector<1x32xf32>
    %cst_387 = arith.constant 1.000000e+00 : f32
    %1449 = vector.broadcast %cst_387 : f32 to vector<1x32xf32>
    %1450 = arith.addf %1449, %1448 : vector<1x32xf32>
    %1451 = arith.divf %1449, %1450 : vector<1x32xf32>
    %1452 = vector.extract_strided_slice %1433 {offsets = [0, 96], sizes = [1, 32], strides = [1, 1]} : vector<1x160xf32> to vector<1x32xf32>
    %1453 = arith.negf %1452 : vector<1x32xf32>
    %1454 = math.exp %1453 : vector<1x32xf32>
    %cst_388 = arith.constant 1.000000e+00 : f32
    %1455 = vector.broadcast %cst_388 : f32 to vector<1x32xf32>
    %1456 = arith.addf %1455, %1454 : vector<1x32xf32>
    %1457 = arith.divf %1455, %1456 : vector<1x32xf32>
    %1458 = vector.extract_strided_slice %1433 {offsets = [0, 128], sizes = [1, 32], strides = [1, 1]} : vector<1x160xf32> to vector<1x32xf32>
    %1459 = math.tanh %1458 : vector<1x32xf32>
    %1460 = vector.extract_strided_slice %1312 {offsets = [0, 32], sizes = [1, 32], strides = [1, 1]} : vector<1x64xf32> to vector<1x32xf32>
    %1461 = vector.extract_strided_slice %1326 {offsets = [0, 32], sizes = [1, 32], strides = [1, 1]} : vector<1x64xf32> to vector<1x32xf32>
    %1462 = arith.mulf %1439, %1459 : vector<1x32xf32>
    %1463 = arith.mulf %1445, %1460 : vector<1x32xf32>
    %1464 = arith.addf %1462, %1463 : vector<1x32xf32>
    %1465 = arith.mulf %1451, %1461 : vector<1x32xf32>
    %1466 = arith.addf %1464, %1465 : vector<1x32xf32>
    %1467 = math.tanh %1466 : vector<1x32xf32>
    %1468 = arith.mulf %1457, %1467 : vector<1x32xf32>
    %1469 = tpu.concatenate %1468, %1466 in 1 : vector<1x32xf32>, vector<1x32xf32> -> vector<1x64xf32>
    %c0_i32_389 = arith.constant 0 : i32
    %1470 = vector.broadcast %c0_i32_389 : i32 to vector<1x1xi32>
    %1471 = arith.cmpi eq, %1377, %1470 : vector<1x1xi32>
    %1472 = vector.shape_cast %1471 : vector<1x1xi1> to vector<1x1xi1>
    %1473 = vector.broadcast %1472 : vector<1x1xi1> to vector<1x64xi1>
    %1474 = arith.select %1473, %1338, %1469 : vector<1x64xi1>, vector<1x64xf32>
    %c2_i32_390 = arith.constant 2 : i32
    %1475 = vector.broadcast %c2_i32_390 : i32 to vector<1x1xi32>
    %1476 = arith.subi %1278, %1475 : vector<1x1xi32>
    %1477 = arith.select %1471, %1278, %1476 : vector<1x1xi1>, vector<1x1xi32>
    %1478 = vector.broadcast %1477 : vector<1x1xi32> to vector<6x64xi32>
    %1479 = arith.cmpi eq, %42, %1478 : vector<6x64xi32>
    %1480 = vector.shape_cast %1474 : vector<1x64xf32> to vector<1x64xf32>
    %1481 = vector.broadcast %1480 : vector<1x64xf32> to vector<6x64xf32>
    %1482 = arith.select %1479, %1481, %1274 : vector<6x64xi1>, vector<6x64xf32>
    %c1_i32_391 = arith.constant 1 : i32
    %c-1_i32_392 = arith.constant -1 : i32
    %1483 = vector.broadcast %c1_i32_391 : i32 to vector<1x1xi32>
    %1484 = vector.broadcast %c-1_i32_392 : i32 to vector<1x1xi32>
    %1485 = arith.select %1471, %1483, %1484 : vector<1x1xi1>, vector<1x1xi32>
    %1486 = arith.addi %1278, %1485 : vector<1x1xi32>
    %c1_i32_393 = arith.constant 1 : i32
    %c0_i32_394 = arith.constant 0 : i32
    %1487 = vector.broadcast %c1_i32_393 : i32 to vector<1x1xi32>
    %1488 = vector.broadcast %c0_i32_394 : i32 to vector<1x1xi32>
    %1489 = arith.select %1471, %1487, %1488 : vector<1x1xi1>, vector<1x1xi32>
    %1490 = arith.addi %1282, %1489 : vector<1x1xi32>
    %1491 = vector.broadcast %c6_i32_343 : i32 to vector<1x16xi32>
    %1492 = arith.cmpi eq, %41, %1491 : vector<1x16xi32>
    %1493 = vector.shape_cast %1377 : vector<1x1xi32> to vector<1x1xi32>
    %1494 = vector.broadcast %1493 : vector<1x1xi32> to vector<1x16xi32>
    %1495 = arith.select %1492, %1494, %1287 : vector<1x16xi1>, vector<1x16xi32>
    %1496 = vector.shape_cast %1397 : vector<1x1xi32> to vector<1x1xi32>
    %1497 = vector.broadcast %1496 : vector<1x1xi32> to vector<1x16xi32>
    %1498 = arith.select %1492, %1497, %1290 : vector<1x16xi1>, vector<1x16xi32>
    %1499 = vector.shape_cast %1417 : vector<1x1xi32> to vector<1x1xi32>
    %1500 = vector.broadcast %1499 : vector<1x1xi32> to vector<1x16xi32>
    %1501 = arith.select %1492, %1500, %1293 : vector<1x16xi1>, vector<1x16xi32>
    %1502 = vector.broadcast %c6_i32_343 : i32 to vector<16x64xi32>
    %1503 = arith.cmpi eq, %43, %1502 : vector<16x64xi32>
    %1504 = vector.shape_cast %1474 : vector<1x64xf32> to vector<1x64xf32>
    %1505 = vector.broadcast %1504 : vector<1x64xf32> to vector<16x64xf32>
    %1506 = arith.select %1503, %1505, %1298 : vector<16x64xi1>, vector<16x64xf32>
    %c7_i32 = arith.constant 7 : i32
    %c2_i32_395 = arith.constant 2 : i32
    %1507 = vector.broadcast %c2_i32_395 : i32 to vector<1x1xi32>
    %1508 = arith.cmpi sge, %1486, %1507 : vector<1x1xi32>
    %c2_i32_396 = arith.constant 2 : i32
    %1509 = vector.broadcast %c2_i32_396 : i32 to vector<1x1xi32>
    %1510 = arith.subi %1486, %1509 : vector<1x1xi32>
    %1511 = tpu.iota {dimensions = array<i32: 0>} : vector<6x64xi32>
    %1512 = vector.broadcast %1510 : vector<1x1xi32> to vector<6x64xi32>
    %1513 = arith.cmpi eq, %1511, %1512 : vector<6x64xi32>
    %cst_397 = arith.constant 0.000000e+00 : f32
    %1514 = vector.broadcast %cst_397 : f32 to vector<6x64xf32>
    %1515 = arith.select %1513, %1482, %1514 : vector<6x64xi1>, vector<6x64xf32>
    %cst_398 = arith.constant dense<0.000000e+00> : vector<64xf32>
    %1516 = vector.multi_reduction <add>, %1515, %cst_398 [0] : vector<6x64xf32> to vector<64xf32>
    %1517 = vector.shape_cast %1516 : vector<64xf32> to vector<1x64xf32>
    %1518 = vector.shape_cast %1508 : vector<1x1xi1> to vector<1x1xi1>
    %1519 = vector.broadcast %1518 : vector<1x1xi1> to vector<1x64xi1>
    %1520 = arith.select %1519, %1517, %35 : vector<1x64xi1>, vector<1x64xf32>
    %c1_i32_399 = arith.constant 1 : i32
    %1521 = vector.broadcast %c1_i32_399 : i32 to vector<1x1xi32>
    %1522 = arith.cmpi sge, %1486, %1521 : vector<1x1xi32>
    %c1_i32_400 = arith.constant 1 : i32
    %1523 = vector.broadcast %c1_i32_400 : i32 to vector<1x1xi32>
    %1524 = arith.subi %1486, %1523 : vector<1x1xi32>
    %1525 = tpu.iota {dimensions = array<i32: 0>} : vector<6x64xi32>
    %1526 = vector.broadcast %1524 : vector<1x1xi32> to vector<6x64xi32>
    %1527 = arith.cmpi eq, %1525, %1526 : vector<6x64xi32>
    %cst_401 = arith.constant 0.000000e+00 : f32
    %1528 = vector.broadcast %cst_401 : f32 to vector<6x64xf32>
    %1529 = arith.select %1527, %1482, %1528 : vector<6x64xi1>, vector<6x64xf32>
    %cst_402 = arith.constant dense<0.000000e+00> : vector<64xf32>
    %1530 = vector.multi_reduction <add>, %1529, %cst_402 [0] : vector<6x64xf32> to vector<64xf32>
    %1531 = vector.shape_cast %1530 : vector<64xf32> to vector<1x64xf32>
    %1532 = vector.shape_cast %1522 : vector<1x1xi1> to vector<1x1xi1>
    %1533 = vector.broadcast %1532 : vector<1x1xi1> to vector<1x64xi1>
    %1534 = arith.select %1533, %1531, %35 : vector<1x64xi1>, vector<1x64xf32>
    %c6_i32_403 = arith.constant 6 : i32
    %1535 = vector.broadcast %c6_i32_403 : i32 to vector<1x1xi32>
    %1536 = arith.cmpi slt, %1490, %1535 : vector<1x1xi32>
    %1537 = tpu.iota {dimensions = array<i32: 0>} : vector<6x64xi32>
    %1538 = vector.broadcast %1490 : vector<1x1xi32> to vector<6x64xi32>
    %1539 = arith.cmpi eq, %1537, %1538 : vector<6x64xi32>
    %cst_404 = arith.constant 0.000000e+00 : f32
    %1540 = vector.broadcast %cst_404 : f32 to vector<6x64xf32>
    %1541 = arith.select %1539, %33, %1540 : vector<6x64xi1>, vector<6x64xf32>
    %cst_405 = arith.constant dense<0.000000e+00> : vector<64xf32>
    %1542 = vector.multi_reduction <add>, %1541, %cst_405 [0] : vector<6x64xf32> to vector<64xf32>
    %1543 = vector.shape_cast %1542 : vector<64xf32> to vector<1x64xf32>
    %1544 = vector.shape_cast %1536 : vector<1x1xi1> to vector<1x1xi1>
    %1545 = vector.broadcast %1544 : vector<1x1xi1> to vector<1x64xi1>
    %1546 = arith.select %1545, %1543, %35 : vector<1x64xi1>, vector<1x64xf32>
    %1547 = tpu.concatenate %1520, %1534, %1546 in 1 : vector<1x64xf32>, vector<1x64xf32>, vector<1x64xf32> -> vector<1x192xf32>
    %cst_406 = arith.constant dense<0.000000e+00> : vector<1x288xf32>
    %1548 = tpu.matmul %1547, %36, %cst_406 {dimension_numbers = #tpu.dot_dimension_numbers<[1], [0], [0], [1], [0, 0, 1, 1], [], []>} : vector<1x192xf32>, vector<192x288xf32>, vector<1x288xf32> -> vector<1x288xf32>
    %1549 = arith.addf %1548, %37 : vector<1x288xf32>
    %1550 = vector.extract_strided_slice %1549 {offsets = [0, 0], sizes = [1, 128], strides = [1, 1]} : vector<1x288xf32> to vector<1x128xf32>
    %1551 = vector.extract_strided_slice %1549 {offsets = [0, 128], sizes = [1, 160], strides = [1, 1]} : vector<1x288xf32> to vector<1x160xf32>
    %c6_i32_407 = arith.constant 6 : i32
    %1552 = vector.broadcast %c6_i32_407 : i32 to vector<1x1xi32>
    %1553 = arith.cmpi slt, %1490, %1552 : vector<1x1xi32>
    %c2_i32_408 = arith.constant 2 : i32
    %1554 = vector.broadcast %c2_i32_408 : i32 to vector<1x1xi32>
    %1555 = arith.cmpi sge, %1486, %1554 : vector<1x1xi32>
    %c0_i32_409 = arith.constant 0 : i32
    %1556 = vector.broadcast %c0_i32_409 : i32 to vector<1x128xi32>
    %1557 = arith.cmpi eq, %40, %1556 : vector<1x128xi32>
    %1558 = vector.broadcast %1553 : vector<1x1xi1> to vector<1x128xi1>
    %1559 = arith.andi %1557, %1558 : vector<1x128xi1>
    %c1_i32_410 = arith.constant 1 : i32
    %1560 = vector.broadcast %c1_i32_410 : i32 to vector<1x128xi32>
    %1561 = arith.cmpi eq, %40, %1560 : vector<1x128xi32>
    %1562 = vector.broadcast %1555 : vector<1x1xi1> to vector<1x128xi1>
    %1563 = arith.andi %1561, %1562 : vector<1x128xi1>
    %1564 = arith.ori %1559, %1563 : vector<1x128xi1>
    %c0_i32_411 = arith.constant 0 : i32
    %1565 = vector.broadcast %c0_i32_411 : i32 to vector<1x128xi32>
    %1566 = arith.cmpi sge, %40, %1565 : vector<1x128xi32>
    %c2_i32_412 = arith.constant 2 : i32
    %1567 = vector.broadcast %c2_i32_412 : i32 to vector<1x128xi32>
    %1568 = arith.cmpi slt, %40, %1567 : vector<1x128xi32>
    %1569 = arith.andi %1566, %1568 : vector<1x128xi1>
    %1570 = arith.andi %1569, %1564 : vector<1x128xi1>
    %cst_413 = arith.constant -1.000000e+30 : f32
    %1571 = vector.broadcast %cst_413 : f32 to vector<1x128xf32>
    %1572 = arith.select %1570, %1550, %1571 : vector<1x128xi1>, vector<1x128xf32>
    %cst_414 = arith.constant dense<0xFF800000> : vector<1xf32>
    %1573 = vector.multi_reduction <maximumf>, %1572, %cst_414 [1] : vector<1x128xf32> to vector<1xf32>
    %1574 = vector.shape_cast %1573 : vector<1xf32> to vector<1x1xf32>
    %1575 = vector.broadcast %1574 : vector<1x1xf32> to vector<1x128xf32>
    %1576 = arith.cmpf oge, %1572, %1575 : vector<1x128xf32>
    %1577 = arith.andi %1570, %1576 : vector<1x128xi1>
    %1578 = arith.sitofp %40 : vector<1x128xi32> to vector<1x128xf32>
    %cst_415 = arith.constant 1.000000e+09 : f32
    %1579 = vector.broadcast %cst_415 : f32 to vector<1x128xf32>
    %1580 = arith.select %1577, %1578, %1579 : vector<1x128xi1>, vector<1x128xf32>
    %cst_416 = arith.constant dense<0x7F800000> : vector<1xf32>
    %1581 = vector.multi_reduction <minimumf>, %1580, %cst_416 [1] : vector<1x128xf32> to vector<1xf32>
    %1582 = vector.shape_cast %1581 : vector<1xf32> to vector<1x1xf32>
    %1583 = arith.fptosi %1582 : vector<1x1xf32> to vector<1x1xi32>
    %c0_i32_417 = arith.constant 0 : i32
    %1584 = vector.broadcast %c0_i32_417 : i32 to vector<1x1xi32>
    %1585 = arith.subi %1583, %1584 : vector<1x1xi32>
    %c2_i32_418 = arith.constant 2 : i32
    %1586 = vector.broadcast %c2_i32_418 : i32 to vector<1x128xi32>
    %1587 = arith.cmpi sge, %40, %1586 : vector<1x128xi32>
    %c10_i32_419 = arith.constant 10 : i32
    %1588 = vector.broadcast %c10_i32_419 : i32 to vector<1x128xi32>
    %1589 = arith.cmpi slt, %40, %1588 : vector<1x128xi32>
    %1590 = arith.andi %1587, %1589 : vector<1x128xi1>
    %cst_420 = arith.constant -1.000000e+30 : f32
    %1591 = vector.broadcast %cst_420 : f32 to vector<1x128xf32>
    %1592 = arith.select %1590, %1550, %1591 : vector<1x128xi1>, vector<1x128xf32>
    %cst_421 = arith.constant dense<0xFF800000> : vector<1xf32>
    %1593 = vector.multi_reduction <maximumf>, %1592, %cst_421 [1] : vector<1x128xf32> to vector<1xf32>
    %1594 = vector.shape_cast %1593 : vector<1xf32> to vector<1x1xf32>
    %1595 = vector.broadcast %1594 : vector<1x1xf32> to vector<1x128xf32>
    %1596 = arith.cmpf oge, %1592, %1595 : vector<1x128xf32>
    %1597 = arith.andi %1590, %1596 : vector<1x128xi1>
    %1598 = arith.sitofp %40 : vector<1x128xi32> to vector<1x128xf32>
    %cst_422 = arith.constant 1.000000e+09 : f32
    %1599 = vector.broadcast %cst_422 : f32 to vector<1x128xf32>
    %1600 = arith.select %1597, %1598, %1599 : vector<1x128xi1>, vector<1x128xf32>
    %cst_423 = arith.constant dense<0x7F800000> : vector<1xf32>
    %1601 = vector.multi_reduction <minimumf>, %1600, %cst_423 [1] : vector<1x128xf32> to vector<1xf32>
    %1602 = vector.shape_cast %1601 : vector<1xf32> to vector<1x1xf32>
    %1603 = arith.fptosi %1602 : vector<1x1xf32> to vector<1x1xi32>
    %c2_i32_424 = arith.constant 2 : i32
    %1604 = vector.broadcast %c2_i32_424 : i32 to vector<1x1xi32>
    %1605 = arith.subi %1603, %1604 : vector<1x1xi32>
    %c10_i32_425 = arith.constant 10 : i32
    %1606 = vector.broadcast %c10_i32_425 : i32 to vector<1x128xi32>
    %1607 = arith.cmpi sge, %40, %1606 : vector<1x128xi32>
    %c13_i32_426 = arith.constant 13 : i32
    %1608 = vector.broadcast %c13_i32_426 : i32 to vector<1x128xi32>
    %1609 = arith.cmpi slt, %40, %1608 : vector<1x128xi32>
    %1610 = arith.andi %1607, %1609 : vector<1x128xi1>
    %cst_427 = arith.constant -1.000000e+30 : f32
    %1611 = vector.broadcast %cst_427 : f32 to vector<1x128xf32>
    %1612 = arith.select %1610, %1550, %1611 : vector<1x128xi1>, vector<1x128xf32>
    %cst_428 = arith.constant dense<0xFF800000> : vector<1xf32>
    %1613 = vector.multi_reduction <maximumf>, %1612, %cst_428 [1] : vector<1x128xf32> to vector<1xf32>
    %1614 = vector.shape_cast %1613 : vector<1xf32> to vector<1x1xf32>
    %1615 = vector.broadcast %1614 : vector<1x1xf32> to vector<1x128xf32>
    %1616 = arith.cmpf oge, %1612, %1615 : vector<1x128xf32>
    %1617 = arith.andi %1610, %1616 : vector<1x128xi1>
    %1618 = arith.sitofp %40 : vector<1x128xi32> to vector<1x128xf32>
    %cst_429 = arith.constant 1.000000e+09 : f32
    %1619 = vector.broadcast %cst_429 : f32 to vector<1x128xf32>
    %1620 = arith.select %1617, %1618, %1619 : vector<1x128xi1>, vector<1x128xf32>
    %cst_430 = arith.constant dense<0x7F800000> : vector<1xf32>
    %1621 = vector.multi_reduction <minimumf>, %1620, %cst_430 [1] : vector<1x128xf32> to vector<1xf32>
    %1622 = vector.shape_cast %1621 : vector<1xf32> to vector<1x1xf32>
    %1623 = arith.fptosi %1622 : vector<1x1xf32> to vector<1x1xi32>
    %c10_i32_431 = arith.constant 10 : i32
    %1624 = vector.broadcast %c10_i32_431 : i32 to vector<1x1xi32>
    %1625 = arith.subi %1623, %1624 : vector<1x1xi32>
    %1626 = tpu.iota {dimensions = array<i32: 0>} : vector<8x160xi32>
    %1627 = vector.broadcast %1605 : vector<1x1xi32> to vector<8x160xi32>
    %1628 = arith.cmpi eq, %1626, %1627 : vector<8x160xi32>
    %cst_432 = arith.constant 0.000000e+00 : f32
    %1629 = vector.broadcast %cst_432 : f32 to vector<8x160xf32>
    %1630 = arith.select %1628, %38, %1629 : vector<8x160xi1>, vector<8x160xf32>
    %cst_433 = arith.constant dense<0.000000e+00> : vector<160xf32>
    %1631 = vector.multi_reduction <add>, %1630, %cst_433 [0] : vector<8x160xf32> to vector<160xf32>
    %1632 = vector.shape_cast %1631 : vector<160xf32> to vector<1x160xf32>
    %1633 = tpu.iota {dimensions = array<i32: 0>} : vector<3x160xi32>
    %1634 = vector.broadcast %1625 : vector<1x1xi32> to vector<3x160xi32>
    %1635 = arith.cmpi eq, %1633, %1634 : vector<3x160xi32>
    %cst_434 = arith.constant 0.000000e+00 : f32
    %1636 = vector.broadcast %cst_434 : f32 to vector<3x160xf32>
    %1637 = arith.select %1635, %39, %1636 : vector<3x160xi1>, vector<3x160xf32>
    %cst_435 = arith.constant dense<0.000000e+00> : vector<160xf32>
    %1638 = vector.multi_reduction <add>, %1637, %cst_435 [0] : vector<3x160xf32> to vector<160xf32>
    %1639 = vector.shape_cast %1638 : vector<160xf32> to vector<1x160xf32>
    %1640 = arith.addf %1632, %1639 : vector<1x160xf32>
    %1641 = arith.addf %1640, %1551 : vector<1x160xf32>
    %1642 = vector.extract_strided_slice %1641 {offsets = [0, 0], sizes = [1, 32], strides = [1, 1]} : vector<1x160xf32> to vector<1x32xf32>
    %1643 = arith.negf %1642 : vector<1x32xf32>
    %1644 = math.exp %1643 : vector<1x32xf32>
    %cst_436 = arith.constant 1.000000e+00 : f32
    %1645 = vector.broadcast %cst_436 : f32 to vector<1x32xf32>
    %1646 = arith.addf %1645, %1644 : vector<1x32xf32>
    %1647 = arith.divf %1645, %1646 : vector<1x32xf32>
    %1648 = vector.extract_strided_slice %1641 {offsets = [0, 32], sizes = [1, 32], strides = [1, 1]} : vector<1x160xf32> to vector<1x32xf32>
    %1649 = arith.negf %1648 : vector<1x32xf32>
    %1650 = math.exp %1649 : vector<1x32xf32>
    %cst_437 = arith.constant 1.000000e+00 : f32
    %1651 = vector.broadcast %cst_437 : f32 to vector<1x32xf32>
    %1652 = arith.addf %1651, %1650 : vector<1x32xf32>
    %1653 = arith.divf %1651, %1652 : vector<1x32xf32>
    %1654 = vector.extract_strided_slice %1641 {offsets = [0, 64], sizes = [1, 32], strides = [1, 1]} : vector<1x160xf32> to vector<1x32xf32>
    %1655 = arith.negf %1654 : vector<1x32xf32>
    %1656 = math.exp %1655 : vector<1x32xf32>
    %cst_438 = arith.constant 1.000000e+00 : f32
    %1657 = vector.broadcast %cst_438 : f32 to vector<1x32xf32>
    %1658 = arith.addf %1657, %1656 : vector<1x32xf32>
    %1659 = arith.divf %1657, %1658 : vector<1x32xf32>
    %1660 = vector.extract_strided_slice %1641 {offsets = [0, 96], sizes = [1, 32], strides = [1, 1]} : vector<1x160xf32> to vector<1x32xf32>
    %1661 = arith.negf %1660 : vector<1x32xf32>
    %1662 = math.exp %1661 : vector<1x32xf32>
    %cst_439 = arith.constant 1.000000e+00 : f32
    %1663 = vector.broadcast %cst_439 : f32 to vector<1x32xf32>
    %1664 = arith.addf %1663, %1662 : vector<1x32xf32>
    %1665 = arith.divf %1663, %1664 : vector<1x32xf32>
    %1666 = vector.extract_strided_slice %1641 {offsets = [0, 128], sizes = [1, 32], strides = [1, 1]} : vector<1x160xf32> to vector<1x32xf32>
    %1667 = math.tanh %1666 : vector<1x32xf32>
    %1668 = vector.extract_strided_slice %1520 {offsets = [0, 32], sizes = [1, 32], strides = [1, 1]} : vector<1x64xf32> to vector<1x32xf32>
    %1669 = vector.extract_strided_slice %1534 {offsets = [0, 32], sizes = [1, 32], strides = [1, 1]} : vector<1x64xf32> to vector<1x32xf32>
    %1670 = arith.mulf %1647, %1667 : vector<1x32xf32>
    %1671 = arith.mulf %1653, %1668 : vector<1x32xf32>
    %1672 = arith.addf %1670, %1671 : vector<1x32xf32>
    %1673 = arith.mulf %1659, %1669 : vector<1x32xf32>
    %1674 = arith.addf %1672, %1673 : vector<1x32xf32>
    %1675 = math.tanh %1674 : vector<1x32xf32>
    %1676 = arith.mulf %1665, %1675 : vector<1x32xf32>
    %1677 = tpu.concatenate %1676, %1674 in 1 : vector<1x32xf32>, vector<1x32xf32> -> vector<1x64xf32>
    %c0_i32_440 = arith.constant 0 : i32
    %1678 = vector.broadcast %c0_i32_440 : i32 to vector<1x1xi32>
    %1679 = arith.cmpi eq, %1585, %1678 : vector<1x1xi32>
    %1680 = vector.shape_cast %1679 : vector<1x1xi1> to vector<1x1xi1>
    %1681 = vector.broadcast %1680 : vector<1x1xi1> to vector<1x64xi1>
    %1682 = arith.select %1681, %1546, %1677 : vector<1x64xi1>, vector<1x64xf32>
    %c2_i32_441 = arith.constant 2 : i32
    %1683 = vector.broadcast %c2_i32_441 : i32 to vector<1x1xi32>
    %1684 = arith.subi %1486, %1683 : vector<1x1xi32>
    %1685 = arith.select %1679, %1486, %1684 : vector<1x1xi1>, vector<1x1xi32>
    %1686 = vector.broadcast %1685 : vector<1x1xi32> to vector<6x64xi32>
    %1687 = arith.cmpi eq, %42, %1686 : vector<6x64xi32>
    %1688 = vector.shape_cast %1682 : vector<1x64xf32> to vector<1x64xf32>
    %1689 = vector.broadcast %1688 : vector<1x64xf32> to vector<6x64xf32>
    %1690 = arith.select %1687, %1689, %1482 : vector<6x64xi1>, vector<6x64xf32>
    %c1_i32_442 = arith.constant 1 : i32
    %c-1_i32_443 = arith.constant -1 : i32
    %1691 = vector.broadcast %c1_i32_442 : i32 to vector<1x1xi32>
    %1692 = vector.broadcast %c-1_i32_443 : i32 to vector<1x1xi32>
    %1693 = arith.select %1679, %1691, %1692 : vector<1x1xi1>, vector<1x1xi32>
    %1694 = arith.addi %1486, %1693 : vector<1x1xi32>
    %c1_i32_444 = arith.constant 1 : i32
    %c0_i32_445 = arith.constant 0 : i32
    %1695 = vector.broadcast %c1_i32_444 : i32 to vector<1x1xi32>
    %1696 = vector.broadcast %c0_i32_445 : i32 to vector<1x1xi32>
    %1697 = arith.select %1679, %1695, %1696 : vector<1x1xi1>, vector<1x1xi32>
    %1698 = arith.addi %1490, %1697 : vector<1x1xi32>
    %1699 = vector.broadcast %c7_i32 : i32 to vector<1x16xi32>
    %1700 = arith.cmpi eq, %41, %1699 : vector<1x16xi32>
    %1701 = vector.shape_cast %1585 : vector<1x1xi32> to vector<1x1xi32>
    %1702 = vector.broadcast %1701 : vector<1x1xi32> to vector<1x16xi32>
    %1703 = arith.select %1700, %1702, %1495 : vector<1x16xi1>, vector<1x16xi32>
    %1704 = vector.shape_cast %1605 : vector<1x1xi32> to vector<1x1xi32>
    %1705 = vector.broadcast %1704 : vector<1x1xi32> to vector<1x16xi32>
    %1706 = arith.select %1700, %1705, %1498 : vector<1x16xi1>, vector<1x16xi32>
    %1707 = vector.shape_cast %1625 : vector<1x1xi32> to vector<1x1xi32>
    %1708 = vector.broadcast %1707 : vector<1x1xi32> to vector<1x16xi32>
    %1709 = arith.select %1700, %1708, %1501 : vector<1x16xi1>, vector<1x16xi32>
    %1710 = vector.broadcast %c7_i32 : i32 to vector<16x64xi32>
    %1711 = arith.cmpi eq, %43, %1710 : vector<16x64xi32>
    %1712 = vector.shape_cast %1682 : vector<1x64xf32> to vector<1x64xf32>
    %1713 = vector.broadcast %1712 : vector<1x64xf32> to vector<16x64xf32>
    %1714 = arith.select %1711, %1713, %1506 : vector<16x64xi1>, vector<16x64xf32>
    %c8_i32 = arith.constant 8 : i32
    %c2_i32_446 = arith.constant 2 : i32
    %1715 = vector.broadcast %c2_i32_446 : i32 to vector<1x1xi32>
    %1716 = arith.cmpi sge, %1694, %1715 : vector<1x1xi32>
    %c2_i32_447 = arith.constant 2 : i32
    %1717 = vector.broadcast %c2_i32_447 : i32 to vector<1x1xi32>
    %1718 = arith.subi %1694, %1717 : vector<1x1xi32>
    %1719 = tpu.iota {dimensions = array<i32: 0>} : vector<6x64xi32>
    %1720 = vector.broadcast %1718 : vector<1x1xi32> to vector<6x64xi32>
    %1721 = arith.cmpi eq, %1719, %1720 : vector<6x64xi32>
    %cst_448 = arith.constant 0.000000e+00 : f32
    %1722 = vector.broadcast %cst_448 : f32 to vector<6x64xf32>
    %1723 = arith.select %1721, %1690, %1722 : vector<6x64xi1>, vector<6x64xf32>
    %cst_449 = arith.constant dense<0.000000e+00> : vector<64xf32>
    %1724 = vector.multi_reduction <add>, %1723, %cst_449 [0] : vector<6x64xf32> to vector<64xf32>
    %1725 = vector.shape_cast %1724 : vector<64xf32> to vector<1x64xf32>
    %1726 = vector.shape_cast %1716 : vector<1x1xi1> to vector<1x1xi1>
    %1727 = vector.broadcast %1726 : vector<1x1xi1> to vector<1x64xi1>
    %1728 = arith.select %1727, %1725, %35 : vector<1x64xi1>, vector<1x64xf32>
    %c1_i32_450 = arith.constant 1 : i32
    %1729 = vector.broadcast %c1_i32_450 : i32 to vector<1x1xi32>
    %1730 = arith.cmpi sge, %1694, %1729 : vector<1x1xi32>
    %c1_i32_451 = arith.constant 1 : i32
    %1731 = vector.broadcast %c1_i32_451 : i32 to vector<1x1xi32>
    %1732 = arith.subi %1694, %1731 : vector<1x1xi32>
    %1733 = tpu.iota {dimensions = array<i32: 0>} : vector<6x64xi32>
    %1734 = vector.broadcast %1732 : vector<1x1xi32> to vector<6x64xi32>
    %1735 = arith.cmpi eq, %1733, %1734 : vector<6x64xi32>
    %cst_452 = arith.constant 0.000000e+00 : f32
    %1736 = vector.broadcast %cst_452 : f32 to vector<6x64xf32>
    %1737 = arith.select %1735, %1690, %1736 : vector<6x64xi1>, vector<6x64xf32>
    %cst_453 = arith.constant dense<0.000000e+00> : vector<64xf32>
    %1738 = vector.multi_reduction <add>, %1737, %cst_453 [0] : vector<6x64xf32> to vector<64xf32>
    %1739 = vector.shape_cast %1738 : vector<64xf32> to vector<1x64xf32>
    %1740 = vector.shape_cast %1730 : vector<1x1xi1> to vector<1x1xi1>
    %1741 = vector.broadcast %1740 : vector<1x1xi1> to vector<1x64xi1>
    %1742 = arith.select %1741, %1739, %35 : vector<1x64xi1>, vector<1x64xf32>
    %c6_i32_454 = arith.constant 6 : i32
    %1743 = vector.broadcast %c6_i32_454 : i32 to vector<1x1xi32>
    %1744 = arith.cmpi slt, %1698, %1743 : vector<1x1xi32>
    %1745 = tpu.iota {dimensions = array<i32: 0>} : vector<6x64xi32>
    %1746 = vector.broadcast %1698 : vector<1x1xi32> to vector<6x64xi32>
    %1747 = arith.cmpi eq, %1745, %1746 : vector<6x64xi32>
    %cst_455 = arith.constant 0.000000e+00 : f32
    %1748 = vector.broadcast %cst_455 : f32 to vector<6x64xf32>
    %1749 = arith.select %1747, %33, %1748 : vector<6x64xi1>, vector<6x64xf32>
    %cst_456 = arith.constant dense<0.000000e+00> : vector<64xf32>
    %1750 = vector.multi_reduction <add>, %1749, %cst_456 [0] : vector<6x64xf32> to vector<64xf32>
    %1751 = vector.shape_cast %1750 : vector<64xf32> to vector<1x64xf32>
    %1752 = vector.shape_cast %1744 : vector<1x1xi1> to vector<1x1xi1>
    %1753 = vector.broadcast %1752 : vector<1x1xi1> to vector<1x64xi1>
    %1754 = arith.select %1753, %1751, %35 : vector<1x64xi1>, vector<1x64xf32>
    %1755 = tpu.concatenate %1728, %1742, %1754 in 1 : vector<1x64xf32>, vector<1x64xf32>, vector<1x64xf32> -> vector<1x192xf32>
    %cst_457 = arith.constant dense<0.000000e+00> : vector<1x288xf32>
    %1756 = tpu.matmul %1755, %36, %cst_457 {dimension_numbers = #tpu.dot_dimension_numbers<[1], [0], [0], [1], [0, 0, 1, 1], [], []>} : vector<1x192xf32>, vector<192x288xf32>, vector<1x288xf32> -> vector<1x288xf32>
    %1757 = arith.addf %1756, %37 : vector<1x288xf32>
    %1758 = vector.extract_strided_slice %1757 {offsets = [0, 0], sizes = [1, 128], strides = [1, 1]} : vector<1x288xf32> to vector<1x128xf32>
    %1759 = vector.extract_strided_slice %1757 {offsets = [0, 128], sizes = [1, 160], strides = [1, 1]} : vector<1x288xf32> to vector<1x160xf32>
    %c6_i32_458 = arith.constant 6 : i32
    %1760 = vector.broadcast %c6_i32_458 : i32 to vector<1x1xi32>
    %1761 = arith.cmpi slt, %1698, %1760 : vector<1x1xi32>
    %c2_i32_459 = arith.constant 2 : i32
    %1762 = vector.broadcast %c2_i32_459 : i32 to vector<1x1xi32>
    %1763 = arith.cmpi sge, %1694, %1762 : vector<1x1xi32>
    %c0_i32_460 = arith.constant 0 : i32
    %1764 = vector.broadcast %c0_i32_460 : i32 to vector<1x128xi32>
    %1765 = arith.cmpi eq, %40, %1764 : vector<1x128xi32>
    %1766 = vector.broadcast %1761 : vector<1x1xi1> to vector<1x128xi1>
    %1767 = arith.andi %1765, %1766 : vector<1x128xi1>
    %c1_i32_461 = arith.constant 1 : i32
    %1768 = vector.broadcast %c1_i32_461 : i32 to vector<1x128xi32>
    %1769 = arith.cmpi eq, %40, %1768 : vector<1x128xi32>
    %1770 = vector.broadcast %1763 : vector<1x1xi1> to vector<1x128xi1>
    %1771 = arith.andi %1769, %1770 : vector<1x128xi1>
    %1772 = arith.ori %1767, %1771 : vector<1x128xi1>
    %c0_i32_462 = arith.constant 0 : i32
    %1773 = vector.broadcast %c0_i32_462 : i32 to vector<1x128xi32>
    %1774 = arith.cmpi sge, %40, %1773 : vector<1x128xi32>
    %c2_i32_463 = arith.constant 2 : i32
    %1775 = vector.broadcast %c2_i32_463 : i32 to vector<1x128xi32>
    %1776 = arith.cmpi slt, %40, %1775 : vector<1x128xi32>
    %1777 = arith.andi %1774, %1776 : vector<1x128xi1>
    %1778 = arith.andi %1777, %1772 : vector<1x128xi1>
    %cst_464 = arith.constant -1.000000e+30 : f32
    %1779 = vector.broadcast %cst_464 : f32 to vector<1x128xf32>
    %1780 = arith.select %1778, %1758, %1779 : vector<1x128xi1>, vector<1x128xf32>
    %cst_465 = arith.constant dense<0xFF800000> : vector<1xf32>
    %1781 = vector.multi_reduction <maximumf>, %1780, %cst_465 [1] : vector<1x128xf32> to vector<1xf32>
    %1782 = vector.shape_cast %1781 : vector<1xf32> to vector<1x1xf32>
    %1783 = vector.broadcast %1782 : vector<1x1xf32> to vector<1x128xf32>
    %1784 = arith.cmpf oge, %1780, %1783 : vector<1x128xf32>
    %1785 = arith.andi %1778, %1784 : vector<1x128xi1>
    %1786 = arith.sitofp %40 : vector<1x128xi32> to vector<1x128xf32>
    %cst_466 = arith.constant 1.000000e+09 : f32
    %1787 = vector.broadcast %cst_466 : f32 to vector<1x128xf32>
    %1788 = arith.select %1785, %1786, %1787 : vector<1x128xi1>, vector<1x128xf32>
    %cst_467 = arith.constant dense<0x7F800000> : vector<1xf32>
    %1789 = vector.multi_reduction <minimumf>, %1788, %cst_467 [1] : vector<1x128xf32> to vector<1xf32>
    %1790 = vector.shape_cast %1789 : vector<1xf32> to vector<1x1xf32>
    %1791 = arith.fptosi %1790 : vector<1x1xf32> to vector<1x1xi32>
    %c0_i32_468 = arith.constant 0 : i32
    %1792 = vector.broadcast %c0_i32_468 : i32 to vector<1x1xi32>
    %1793 = arith.subi %1791, %1792 : vector<1x1xi32>
    %c2_i32_469 = arith.constant 2 : i32
    %1794 = vector.broadcast %c2_i32_469 : i32 to vector<1x128xi32>
    %1795 = arith.cmpi sge, %40, %1794 : vector<1x128xi32>
    %c10_i32_470 = arith.constant 10 : i32
    %1796 = vector.broadcast %c10_i32_470 : i32 to vector<1x128xi32>
    %1797 = arith.cmpi slt, %40, %1796 : vector<1x128xi32>
    %1798 = arith.andi %1795, %1797 : vector<1x128xi1>
    %cst_471 = arith.constant -1.000000e+30 : f32
    %1799 = vector.broadcast %cst_471 : f32 to vector<1x128xf32>
    %1800 = arith.select %1798, %1758, %1799 : vector<1x128xi1>, vector<1x128xf32>
    %cst_472 = arith.constant dense<0xFF800000> : vector<1xf32>
    %1801 = vector.multi_reduction <maximumf>, %1800, %cst_472 [1] : vector<1x128xf32> to vector<1xf32>
    %1802 = vector.shape_cast %1801 : vector<1xf32> to vector<1x1xf32>
    %1803 = vector.broadcast %1802 : vector<1x1xf32> to vector<1x128xf32>
    %1804 = arith.cmpf oge, %1800, %1803 : vector<1x128xf32>
    %1805 = arith.andi %1798, %1804 : vector<1x128xi1>
    %1806 = arith.sitofp %40 : vector<1x128xi32> to vector<1x128xf32>
    %cst_473 = arith.constant 1.000000e+09 : f32
    %1807 = vector.broadcast %cst_473 : f32 to vector<1x128xf32>
    %1808 = arith.select %1805, %1806, %1807 : vector<1x128xi1>, vector<1x128xf32>
    %cst_474 = arith.constant dense<0x7F800000> : vector<1xf32>
    %1809 = vector.multi_reduction <minimumf>, %1808, %cst_474 [1] : vector<1x128xf32> to vector<1xf32>
    %1810 = vector.shape_cast %1809 : vector<1xf32> to vector<1x1xf32>
    %1811 = arith.fptosi %1810 : vector<1x1xf32> to vector<1x1xi32>
    %c2_i32_475 = arith.constant 2 : i32
    %1812 = vector.broadcast %c2_i32_475 : i32 to vector<1x1xi32>
    %1813 = arith.subi %1811, %1812 : vector<1x1xi32>
    %c10_i32_476 = arith.constant 10 : i32
    %1814 = vector.broadcast %c10_i32_476 : i32 to vector<1x128xi32>
    %1815 = arith.cmpi sge, %40, %1814 : vector<1x128xi32>
    %c13_i32_477 = arith.constant 13 : i32
    %1816 = vector.broadcast %c13_i32_477 : i32 to vector<1x128xi32>
    %1817 = arith.cmpi slt, %40, %1816 : vector<1x128xi32>
    %1818 = arith.andi %1815, %1817 : vector<1x128xi1>
    %cst_478 = arith.constant -1.000000e+30 : f32
    %1819 = vector.broadcast %cst_478 : f32 to vector<1x128xf32>
    %1820 = arith.select %1818, %1758, %1819 : vector<1x128xi1>, vector<1x128xf32>
    %cst_479 = arith.constant dense<0xFF800000> : vector<1xf32>
    %1821 = vector.multi_reduction <maximumf>, %1820, %cst_479 [1] : vector<1x128xf32> to vector<1xf32>
    %1822 = vector.shape_cast %1821 : vector<1xf32> to vector<1x1xf32>
    %1823 = vector.broadcast %1822 : vector<1x1xf32> to vector<1x128xf32>
    %1824 = arith.cmpf oge, %1820, %1823 : vector<1x128xf32>
    %1825 = arith.andi %1818, %1824 : vector<1x128xi1>
    %1826 = arith.sitofp %40 : vector<1x128xi32> to vector<1x128xf32>
    %cst_480 = arith.constant 1.000000e+09 : f32
    %1827 = vector.broadcast %cst_480 : f32 to vector<1x128xf32>
    %1828 = arith.select %1825, %1826, %1827 : vector<1x128xi1>, vector<1x128xf32>
    %cst_481 = arith.constant dense<0x7F800000> : vector<1xf32>
    %1829 = vector.multi_reduction <minimumf>, %1828, %cst_481 [1] : vector<1x128xf32> to vector<1xf32>
    %1830 = vector.shape_cast %1829 : vector<1xf32> to vector<1x1xf32>
    %1831 = arith.fptosi %1830 : vector<1x1xf32> to vector<1x1xi32>
    %c10_i32_482 = arith.constant 10 : i32
    %1832 = vector.broadcast %c10_i32_482 : i32 to vector<1x1xi32>
    %1833 = arith.subi %1831, %1832 : vector<1x1xi32>
    %1834 = tpu.iota {dimensions = array<i32: 0>} : vector<8x160xi32>
    %1835 = vector.broadcast %1813 : vector<1x1xi32> to vector<8x160xi32>
    %1836 = arith.cmpi eq, %1834, %1835 : vector<8x160xi32>
    %cst_483 = arith.constant 0.000000e+00 : f32
    %1837 = vector.broadcast %cst_483 : f32 to vector<8x160xf32>
    %1838 = arith.select %1836, %38, %1837 : vector<8x160xi1>, vector<8x160xf32>
    %cst_484 = arith.constant dense<0.000000e+00> : vector<160xf32>
    %1839 = vector.multi_reduction <add>, %1838, %cst_484 [0] : vector<8x160xf32> to vector<160xf32>
    %1840 = vector.shape_cast %1839 : vector<160xf32> to vector<1x160xf32>
    %1841 = tpu.iota {dimensions = array<i32: 0>} : vector<3x160xi32>
    %1842 = vector.broadcast %1833 : vector<1x1xi32> to vector<3x160xi32>
    %1843 = arith.cmpi eq, %1841, %1842 : vector<3x160xi32>
    %cst_485 = arith.constant 0.000000e+00 : f32
    %1844 = vector.broadcast %cst_485 : f32 to vector<3x160xf32>
    %1845 = arith.select %1843, %39, %1844 : vector<3x160xi1>, vector<3x160xf32>
    %cst_486 = arith.constant dense<0.000000e+00> : vector<160xf32>
    %1846 = vector.multi_reduction <add>, %1845, %cst_486 [0] : vector<3x160xf32> to vector<160xf32>
    %1847 = vector.shape_cast %1846 : vector<160xf32> to vector<1x160xf32>
    %1848 = arith.addf %1840, %1847 : vector<1x160xf32>
    %1849 = arith.addf %1848, %1759 : vector<1x160xf32>
    %1850 = vector.extract_strided_slice %1849 {offsets = [0, 0], sizes = [1, 32], strides = [1, 1]} : vector<1x160xf32> to vector<1x32xf32>
    %1851 = arith.negf %1850 : vector<1x32xf32>
    %1852 = math.exp %1851 : vector<1x32xf32>
    %cst_487 = arith.constant 1.000000e+00 : f32
    %1853 = vector.broadcast %cst_487 : f32 to vector<1x32xf32>
    %1854 = arith.addf %1853, %1852 : vector<1x32xf32>
    %1855 = arith.divf %1853, %1854 : vector<1x32xf32>
    %1856 = vector.extract_strided_slice %1849 {offsets = [0, 32], sizes = [1, 32], strides = [1, 1]} : vector<1x160xf32> to vector<1x32xf32>
    %1857 = arith.negf %1856 : vector<1x32xf32>
    %1858 = math.exp %1857 : vector<1x32xf32>
    %cst_488 = arith.constant 1.000000e+00 : f32
    %1859 = vector.broadcast %cst_488 : f32 to vector<1x32xf32>
    %1860 = arith.addf %1859, %1858 : vector<1x32xf32>
    %1861 = arith.divf %1859, %1860 : vector<1x32xf32>
    %1862 = vector.extract_strided_slice %1849 {offsets = [0, 64], sizes = [1, 32], strides = [1, 1]} : vector<1x160xf32> to vector<1x32xf32>
    %1863 = arith.negf %1862 : vector<1x32xf32>
    %1864 = math.exp %1863 : vector<1x32xf32>
    %cst_489 = arith.constant 1.000000e+00 : f32
    %1865 = vector.broadcast %cst_489 : f32 to vector<1x32xf32>
    %1866 = arith.addf %1865, %1864 : vector<1x32xf32>
    %1867 = arith.divf %1865, %1866 : vector<1x32xf32>
    %1868 = vector.extract_strided_slice %1849 {offsets = [0, 96], sizes = [1, 32], strides = [1, 1]} : vector<1x160xf32> to vector<1x32xf32>
    %1869 = arith.negf %1868 : vector<1x32xf32>
    %1870 = math.exp %1869 : vector<1x32xf32>
    %cst_490 = arith.constant 1.000000e+00 : f32
    %1871 = vector.broadcast %cst_490 : f32 to vector<1x32xf32>
    %1872 = arith.addf %1871, %1870 : vector<1x32xf32>
    %1873 = arith.divf %1871, %1872 : vector<1x32xf32>
    %1874 = vector.extract_strided_slice %1849 {offsets = [0, 128], sizes = [1, 32], strides = [1, 1]} : vector<1x160xf32> to vector<1x32xf32>
    %1875 = math.tanh %1874 : vector<1x32xf32>
    %1876 = vector.extract_strided_slice %1728 {offsets = [0, 32], sizes = [1, 32], strides = [1, 1]} : vector<1x64xf32> to vector<1x32xf32>
    %1877 = vector.extract_strided_slice %1742 {offsets = [0, 32], sizes = [1, 32], strides = [1, 1]} : vector<1x64xf32> to vector<1x32xf32>
    %1878 = arith.mulf %1855, %1875 : vector<1x32xf32>
    %1879 = arith.mulf %1861, %1876 : vector<1x32xf32>
    %1880 = arith.addf %1878, %1879 : vector<1x32xf32>
    %1881 = arith.mulf %1867, %1877 : vector<1x32xf32>
    %1882 = arith.addf %1880, %1881 : vector<1x32xf32>
    %1883 = math.tanh %1882 : vector<1x32xf32>
    %1884 = arith.mulf %1873, %1883 : vector<1x32xf32>
    %1885 = tpu.concatenate %1884, %1882 in 1 : vector<1x32xf32>, vector<1x32xf32> -> vector<1x64xf32>
    %c0_i32_491 = arith.constant 0 : i32
    %1886 = vector.broadcast %c0_i32_491 : i32 to vector<1x1xi32>
    %1887 = arith.cmpi eq, %1793, %1886 : vector<1x1xi32>
    %1888 = vector.shape_cast %1887 : vector<1x1xi1> to vector<1x1xi1>
    %1889 = vector.broadcast %1888 : vector<1x1xi1> to vector<1x64xi1>
    %1890 = arith.select %1889, %1754, %1885 : vector<1x64xi1>, vector<1x64xf32>
    %c2_i32_492 = arith.constant 2 : i32
    %1891 = vector.broadcast %c2_i32_492 : i32 to vector<1x1xi32>
    %1892 = arith.subi %1694, %1891 : vector<1x1xi32>
    %1893 = arith.select %1887, %1694, %1892 : vector<1x1xi1>, vector<1x1xi32>
    %1894 = vector.broadcast %1893 : vector<1x1xi32> to vector<6x64xi32>
    %1895 = arith.cmpi eq, %42, %1894 : vector<6x64xi32>
    %1896 = vector.shape_cast %1890 : vector<1x64xf32> to vector<1x64xf32>
    %1897 = vector.broadcast %1896 : vector<1x64xf32> to vector<6x64xf32>
    %1898 = arith.select %1895, %1897, %1690 : vector<6x64xi1>, vector<6x64xf32>
    %c1_i32_493 = arith.constant 1 : i32
    %c-1_i32_494 = arith.constant -1 : i32
    %1899 = vector.broadcast %c1_i32_493 : i32 to vector<1x1xi32>
    %1900 = vector.broadcast %c-1_i32_494 : i32 to vector<1x1xi32>
    %1901 = arith.select %1887, %1899, %1900 : vector<1x1xi1>, vector<1x1xi32>
    %1902 = arith.addi %1694, %1901 : vector<1x1xi32>
    %c1_i32_495 = arith.constant 1 : i32
    %c0_i32_496 = arith.constant 0 : i32
    %1903 = vector.broadcast %c1_i32_495 : i32 to vector<1x1xi32>
    %1904 = vector.broadcast %c0_i32_496 : i32 to vector<1x1xi32>
    %1905 = arith.select %1887, %1903, %1904 : vector<1x1xi1>, vector<1x1xi32>
    %1906 = arith.addi %1698, %1905 : vector<1x1xi32>
    %1907 = vector.broadcast %c8_i32 : i32 to vector<1x16xi32>
    %1908 = arith.cmpi eq, %41, %1907 : vector<1x16xi32>
    %1909 = vector.shape_cast %1793 : vector<1x1xi32> to vector<1x1xi32>
    %1910 = vector.broadcast %1909 : vector<1x1xi32> to vector<1x16xi32>
    %1911 = arith.select %1908, %1910, %1703 : vector<1x16xi1>, vector<1x16xi32>
    %1912 = vector.shape_cast %1813 : vector<1x1xi32> to vector<1x1xi32>
    %1913 = vector.broadcast %1912 : vector<1x1xi32> to vector<1x16xi32>
    %1914 = arith.select %1908, %1913, %1706 : vector<1x16xi1>, vector<1x16xi32>
    %1915 = vector.shape_cast %1833 : vector<1x1xi32> to vector<1x1xi32>
    %1916 = vector.broadcast %1915 : vector<1x1xi32> to vector<1x16xi32>
    %1917 = arith.select %1908, %1916, %1709 : vector<1x16xi1>, vector<1x16xi32>
    %1918 = vector.broadcast %c8_i32 : i32 to vector<16x64xi32>
    %1919 = arith.cmpi eq, %43, %1918 : vector<16x64xi32>
    %1920 = vector.shape_cast %1890 : vector<1x64xf32> to vector<1x64xf32>
    %1921 = vector.broadcast %1920 : vector<1x64xf32> to vector<16x64xf32>
    %1922 = arith.select %1919, %1921, %1714 : vector<16x64xi1>, vector<16x64xf32>
    %c9_i32 = arith.constant 9 : i32
    %c2_i32_497 = arith.constant 2 : i32
    %1923 = vector.broadcast %c2_i32_497 : i32 to vector<1x1xi32>
    %1924 = arith.cmpi sge, %1902, %1923 : vector<1x1xi32>
    %c2_i32_498 = arith.constant 2 : i32
    %1925 = vector.broadcast %c2_i32_498 : i32 to vector<1x1xi32>
    %1926 = arith.subi %1902, %1925 : vector<1x1xi32>
    %1927 = tpu.iota {dimensions = array<i32: 0>} : vector<6x64xi32>
    %1928 = vector.broadcast %1926 : vector<1x1xi32> to vector<6x64xi32>
    %1929 = arith.cmpi eq, %1927, %1928 : vector<6x64xi32>
    %cst_499 = arith.constant 0.000000e+00 : f32
    %1930 = vector.broadcast %cst_499 : f32 to vector<6x64xf32>
    %1931 = arith.select %1929, %1898, %1930 : vector<6x64xi1>, vector<6x64xf32>
    %cst_500 = arith.constant dense<0.000000e+00> : vector<64xf32>
    %1932 = vector.multi_reduction <add>, %1931, %cst_500 [0] : vector<6x64xf32> to vector<64xf32>
    %1933 = vector.shape_cast %1932 : vector<64xf32> to vector<1x64xf32>
    %1934 = vector.shape_cast %1924 : vector<1x1xi1> to vector<1x1xi1>
    %1935 = vector.broadcast %1934 : vector<1x1xi1> to vector<1x64xi1>
    %1936 = arith.select %1935, %1933, %35 : vector<1x64xi1>, vector<1x64xf32>
    %c1_i32_501 = arith.constant 1 : i32
    %1937 = vector.broadcast %c1_i32_501 : i32 to vector<1x1xi32>
    %1938 = arith.cmpi sge, %1902, %1937 : vector<1x1xi32>
    %c1_i32_502 = arith.constant 1 : i32
    %1939 = vector.broadcast %c1_i32_502 : i32 to vector<1x1xi32>
    %1940 = arith.subi %1902, %1939 : vector<1x1xi32>
    %1941 = tpu.iota {dimensions = array<i32: 0>} : vector<6x64xi32>
    %1942 = vector.broadcast %1940 : vector<1x1xi32> to vector<6x64xi32>
    %1943 = arith.cmpi eq, %1941, %1942 : vector<6x64xi32>
    %cst_503 = arith.constant 0.000000e+00 : f32
    %1944 = vector.broadcast %cst_503 : f32 to vector<6x64xf32>
    %1945 = arith.select %1943, %1898, %1944 : vector<6x64xi1>, vector<6x64xf32>
    %cst_504 = arith.constant dense<0.000000e+00> : vector<64xf32>
    %1946 = vector.multi_reduction <add>, %1945, %cst_504 [0] : vector<6x64xf32> to vector<64xf32>
    %1947 = vector.shape_cast %1946 : vector<64xf32> to vector<1x64xf32>
    %1948 = vector.shape_cast %1938 : vector<1x1xi1> to vector<1x1xi1>
    %1949 = vector.broadcast %1948 : vector<1x1xi1> to vector<1x64xi1>
    %1950 = arith.select %1949, %1947, %35 : vector<1x64xi1>, vector<1x64xf32>
    %c6_i32_505 = arith.constant 6 : i32
    %1951 = vector.broadcast %c6_i32_505 : i32 to vector<1x1xi32>
    %1952 = arith.cmpi slt, %1906, %1951 : vector<1x1xi32>
    %1953 = tpu.iota {dimensions = array<i32: 0>} : vector<6x64xi32>
    %1954 = vector.broadcast %1906 : vector<1x1xi32> to vector<6x64xi32>
    %1955 = arith.cmpi eq, %1953, %1954 : vector<6x64xi32>
    %cst_506 = arith.constant 0.000000e+00 : f32
    %1956 = vector.broadcast %cst_506 : f32 to vector<6x64xf32>
    %1957 = arith.select %1955, %33, %1956 : vector<6x64xi1>, vector<6x64xf32>
    %cst_507 = arith.constant dense<0.000000e+00> : vector<64xf32>
    %1958 = vector.multi_reduction <add>, %1957, %cst_507 [0] : vector<6x64xf32> to vector<64xf32>
    %1959 = vector.shape_cast %1958 : vector<64xf32> to vector<1x64xf32>
    %1960 = vector.shape_cast %1952 : vector<1x1xi1> to vector<1x1xi1>
    %1961 = vector.broadcast %1960 : vector<1x1xi1> to vector<1x64xi1>
    %1962 = arith.select %1961, %1959, %35 : vector<1x64xi1>, vector<1x64xf32>
    %1963 = tpu.concatenate %1936, %1950, %1962 in 1 : vector<1x64xf32>, vector<1x64xf32>, vector<1x64xf32> -> vector<1x192xf32>
    %cst_508 = arith.constant dense<0.000000e+00> : vector<1x288xf32>
    %1964 = tpu.matmul %1963, %36, %cst_508 {dimension_numbers = #tpu.dot_dimension_numbers<[1], [0], [0], [1], [0, 0, 1, 1], [], []>} : vector<1x192xf32>, vector<192x288xf32>, vector<1x288xf32> -> vector<1x288xf32>
    %1965 = arith.addf %1964, %37 : vector<1x288xf32>
    %1966 = vector.extract_strided_slice %1965 {offsets = [0, 0], sizes = [1, 128], strides = [1, 1]} : vector<1x288xf32> to vector<1x128xf32>
    %1967 = vector.extract_strided_slice %1965 {offsets = [0, 128], sizes = [1, 160], strides = [1, 1]} : vector<1x288xf32> to vector<1x160xf32>
    %c6_i32_509 = arith.constant 6 : i32
    %1968 = vector.broadcast %c6_i32_509 : i32 to vector<1x1xi32>
    %1969 = arith.cmpi slt, %1906, %1968 : vector<1x1xi32>
    %c2_i32_510 = arith.constant 2 : i32
    %1970 = vector.broadcast %c2_i32_510 : i32 to vector<1x1xi32>
    %1971 = arith.cmpi sge, %1902, %1970 : vector<1x1xi32>
    %c0_i32_511 = arith.constant 0 : i32
    %1972 = vector.broadcast %c0_i32_511 : i32 to vector<1x128xi32>
    %1973 = arith.cmpi eq, %40, %1972 : vector<1x128xi32>
    %1974 = vector.broadcast %1969 : vector<1x1xi1> to vector<1x128xi1>
    %1975 = arith.andi %1973, %1974 : vector<1x128xi1>
    %c1_i32_512 = arith.constant 1 : i32
    %1976 = vector.broadcast %c1_i32_512 : i32 to vector<1x128xi32>
    %1977 = arith.cmpi eq, %40, %1976 : vector<1x128xi32>
    %1978 = vector.broadcast %1971 : vector<1x1xi1> to vector<1x128xi1>
    %1979 = arith.andi %1977, %1978 : vector<1x128xi1>
    %1980 = arith.ori %1975, %1979 : vector<1x128xi1>
    %c0_i32_513 = arith.constant 0 : i32
    %1981 = vector.broadcast %c0_i32_513 : i32 to vector<1x128xi32>
    %1982 = arith.cmpi sge, %40, %1981 : vector<1x128xi32>
    %c2_i32_514 = arith.constant 2 : i32
    %1983 = vector.broadcast %c2_i32_514 : i32 to vector<1x128xi32>
    %1984 = arith.cmpi slt, %40, %1983 : vector<1x128xi32>
    %1985 = arith.andi %1982, %1984 : vector<1x128xi1>
    %1986 = arith.andi %1985, %1980 : vector<1x128xi1>
    %cst_515 = arith.constant -1.000000e+30 : f32
    %1987 = vector.broadcast %cst_515 : f32 to vector<1x128xf32>
    %1988 = arith.select %1986, %1966, %1987 : vector<1x128xi1>, vector<1x128xf32>
    %cst_516 = arith.constant dense<0xFF800000> : vector<1xf32>
    %1989 = vector.multi_reduction <maximumf>, %1988, %cst_516 [1] : vector<1x128xf32> to vector<1xf32>
    %1990 = vector.shape_cast %1989 : vector<1xf32> to vector<1x1xf32>
    %1991 = vector.broadcast %1990 : vector<1x1xf32> to vector<1x128xf32>
    %1992 = arith.cmpf oge, %1988, %1991 : vector<1x128xf32>
    %1993 = arith.andi %1986, %1992 : vector<1x128xi1>
    %1994 = arith.sitofp %40 : vector<1x128xi32> to vector<1x128xf32>
    %cst_517 = arith.constant 1.000000e+09 : f32
    %1995 = vector.broadcast %cst_517 : f32 to vector<1x128xf32>
    %1996 = arith.select %1993, %1994, %1995 : vector<1x128xi1>, vector<1x128xf32>
    %cst_518 = arith.constant dense<0x7F800000> : vector<1xf32>
    %1997 = vector.multi_reduction <minimumf>, %1996, %cst_518 [1] : vector<1x128xf32> to vector<1xf32>
    %1998 = vector.shape_cast %1997 : vector<1xf32> to vector<1x1xf32>
    %1999 = arith.fptosi %1998 : vector<1x1xf32> to vector<1x1xi32>
    %c0_i32_519 = arith.constant 0 : i32
    %2000 = vector.broadcast %c0_i32_519 : i32 to vector<1x1xi32>
    %2001 = arith.subi %1999, %2000 : vector<1x1xi32>
    %c2_i32_520 = arith.constant 2 : i32
    %2002 = vector.broadcast %c2_i32_520 : i32 to vector<1x128xi32>
    %2003 = arith.cmpi sge, %40, %2002 : vector<1x128xi32>
    %c10_i32_521 = arith.constant 10 : i32
    %2004 = vector.broadcast %c10_i32_521 : i32 to vector<1x128xi32>
    %2005 = arith.cmpi slt, %40, %2004 : vector<1x128xi32>
    %2006 = arith.andi %2003, %2005 : vector<1x128xi1>
    %cst_522 = arith.constant -1.000000e+30 : f32
    %2007 = vector.broadcast %cst_522 : f32 to vector<1x128xf32>
    %2008 = arith.select %2006, %1966, %2007 : vector<1x128xi1>, vector<1x128xf32>
    %cst_523 = arith.constant dense<0xFF800000> : vector<1xf32>
    %2009 = vector.multi_reduction <maximumf>, %2008, %cst_523 [1] : vector<1x128xf32> to vector<1xf32>
    %2010 = vector.shape_cast %2009 : vector<1xf32> to vector<1x1xf32>
    %2011 = vector.broadcast %2010 : vector<1x1xf32> to vector<1x128xf32>
    %2012 = arith.cmpf oge, %2008, %2011 : vector<1x128xf32>
    %2013 = arith.andi %2006, %2012 : vector<1x128xi1>
    %2014 = arith.sitofp %40 : vector<1x128xi32> to vector<1x128xf32>
    %cst_524 = arith.constant 1.000000e+09 : f32
    %2015 = vector.broadcast %cst_524 : f32 to vector<1x128xf32>
    %2016 = arith.select %2013, %2014, %2015 : vector<1x128xi1>, vector<1x128xf32>
    %cst_525 = arith.constant dense<0x7F800000> : vector<1xf32>
    %2017 = vector.multi_reduction <minimumf>, %2016, %cst_525 [1] : vector<1x128xf32> to vector<1xf32>
    %2018 = vector.shape_cast %2017 : vector<1xf32> to vector<1x1xf32>
    %2019 = arith.fptosi %2018 : vector<1x1xf32> to vector<1x1xi32>
    %c2_i32_526 = arith.constant 2 : i32
    %2020 = vector.broadcast %c2_i32_526 : i32 to vector<1x1xi32>
    %2021 = arith.subi %2019, %2020 : vector<1x1xi32>
    %c10_i32_527 = arith.constant 10 : i32
    %2022 = vector.broadcast %c10_i32_527 : i32 to vector<1x128xi32>
    %2023 = arith.cmpi sge, %40, %2022 : vector<1x128xi32>
    %c13_i32_528 = arith.constant 13 : i32
    %2024 = vector.broadcast %c13_i32_528 : i32 to vector<1x128xi32>
    %2025 = arith.cmpi slt, %40, %2024 : vector<1x128xi32>
    %2026 = arith.andi %2023, %2025 : vector<1x128xi1>
    %cst_529 = arith.constant -1.000000e+30 : f32
    %2027 = vector.broadcast %cst_529 : f32 to vector<1x128xf32>
    %2028 = arith.select %2026, %1966, %2027 : vector<1x128xi1>, vector<1x128xf32>
    %cst_530 = arith.constant dense<0xFF800000> : vector<1xf32>
    %2029 = vector.multi_reduction <maximumf>, %2028, %cst_530 [1] : vector<1x128xf32> to vector<1xf32>
    %2030 = vector.shape_cast %2029 : vector<1xf32> to vector<1x1xf32>
    %2031 = vector.broadcast %2030 : vector<1x1xf32> to vector<1x128xf32>
    %2032 = arith.cmpf oge, %2028, %2031 : vector<1x128xf32>
    %2033 = arith.andi %2026, %2032 : vector<1x128xi1>
    %2034 = arith.sitofp %40 : vector<1x128xi32> to vector<1x128xf32>
    %cst_531 = arith.constant 1.000000e+09 : f32
    %2035 = vector.broadcast %cst_531 : f32 to vector<1x128xf32>
    %2036 = arith.select %2033, %2034, %2035 : vector<1x128xi1>, vector<1x128xf32>
    %cst_532 = arith.constant dense<0x7F800000> : vector<1xf32>
    %2037 = vector.multi_reduction <minimumf>, %2036, %cst_532 [1] : vector<1x128xf32> to vector<1xf32>
    %2038 = vector.shape_cast %2037 : vector<1xf32> to vector<1x1xf32>
    %2039 = arith.fptosi %2038 : vector<1x1xf32> to vector<1x1xi32>
    %c10_i32_533 = arith.constant 10 : i32
    %2040 = vector.broadcast %c10_i32_533 : i32 to vector<1x1xi32>
    %2041 = arith.subi %2039, %2040 : vector<1x1xi32>
    %2042 = tpu.iota {dimensions = array<i32: 0>} : vector<8x160xi32>
    %2043 = vector.broadcast %2021 : vector<1x1xi32> to vector<8x160xi32>
    %2044 = arith.cmpi eq, %2042, %2043 : vector<8x160xi32>
    %cst_534 = arith.constant 0.000000e+00 : f32
    %2045 = vector.broadcast %cst_534 : f32 to vector<8x160xf32>
    %2046 = arith.select %2044, %38, %2045 : vector<8x160xi1>, vector<8x160xf32>
    %cst_535 = arith.constant dense<0.000000e+00> : vector<160xf32>
    %2047 = vector.multi_reduction <add>, %2046, %cst_535 [0] : vector<8x160xf32> to vector<160xf32>
    %2048 = vector.shape_cast %2047 : vector<160xf32> to vector<1x160xf32>
    %2049 = tpu.iota {dimensions = array<i32: 0>} : vector<3x160xi32>
    %2050 = vector.broadcast %2041 : vector<1x1xi32> to vector<3x160xi32>
    %2051 = arith.cmpi eq, %2049, %2050 : vector<3x160xi32>
    %cst_536 = arith.constant 0.000000e+00 : f32
    %2052 = vector.broadcast %cst_536 : f32 to vector<3x160xf32>
    %2053 = arith.select %2051, %39, %2052 : vector<3x160xi1>, vector<3x160xf32>
    %cst_537 = arith.constant dense<0.000000e+00> : vector<160xf32>
    %2054 = vector.multi_reduction <add>, %2053, %cst_537 [0] : vector<3x160xf32> to vector<160xf32>
    %2055 = vector.shape_cast %2054 : vector<160xf32> to vector<1x160xf32>
    %2056 = arith.addf %2048, %2055 : vector<1x160xf32>
    %2057 = arith.addf %2056, %1967 : vector<1x160xf32>
    %2058 = vector.extract_strided_slice %2057 {offsets = [0, 0], sizes = [1, 32], strides = [1, 1]} : vector<1x160xf32> to vector<1x32xf32>
    %2059 = arith.negf %2058 : vector<1x32xf32>
    %2060 = math.exp %2059 : vector<1x32xf32>
    %cst_538 = arith.constant 1.000000e+00 : f32
    %2061 = vector.broadcast %cst_538 : f32 to vector<1x32xf32>
    %2062 = arith.addf %2061, %2060 : vector<1x32xf32>
    %2063 = arith.divf %2061, %2062 : vector<1x32xf32>
    %2064 = vector.extract_strided_slice %2057 {offsets = [0, 32], sizes = [1, 32], strides = [1, 1]} : vector<1x160xf32> to vector<1x32xf32>
    %2065 = arith.negf %2064 : vector<1x32xf32>
    %2066 = math.exp %2065 : vector<1x32xf32>
    %cst_539 = arith.constant 1.000000e+00 : f32
    %2067 = vector.broadcast %cst_539 : f32 to vector<1x32xf32>
    %2068 = arith.addf %2067, %2066 : vector<1x32xf32>
    %2069 = arith.divf %2067, %2068 : vector<1x32xf32>
    %2070 = vector.extract_strided_slice %2057 {offsets = [0, 64], sizes = [1, 32], strides = [1, 1]} : vector<1x160xf32> to vector<1x32xf32>
    %2071 = arith.negf %2070 : vector<1x32xf32>
    %2072 = math.exp %2071 : vector<1x32xf32>
    %cst_540 = arith.constant 1.000000e+00 : f32
    %2073 = vector.broadcast %cst_540 : f32 to vector<1x32xf32>
    %2074 = arith.addf %2073, %2072 : vector<1x32xf32>
    %2075 = arith.divf %2073, %2074 : vector<1x32xf32>
    %2076 = vector.extract_strided_slice %2057 {offsets = [0, 96], sizes = [1, 32], strides = [1, 1]} : vector<1x160xf32> to vector<1x32xf32>
    %2077 = arith.negf %2076 : vector<1x32xf32>
    %2078 = math.exp %2077 : vector<1x32xf32>
    %cst_541 = arith.constant 1.000000e+00 : f32
    %2079 = vector.broadcast %cst_541 : f32 to vector<1x32xf32>
    %2080 = arith.addf %2079, %2078 : vector<1x32xf32>
    %2081 = arith.divf %2079, %2080 : vector<1x32xf32>
    %2082 = vector.extract_strided_slice %2057 {offsets = [0, 128], sizes = [1, 32], strides = [1, 1]} : vector<1x160xf32> to vector<1x32xf32>
    %2083 = math.tanh %2082 : vector<1x32xf32>
    %2084 = vector.extract_strided_slice %1936 {offsets = [0, 32], sizes = [1, 32], strides = [1, 1]} : vector<1x64xf32> to vector<1x32xf32>
    %2085 = vector.extract_strided_slice %1950 {offsets = [0, 32], sizes = [1, 32], strides = [1, 1]} : vector<1x64xf32> to vector<1x32xf32>
    %2086 = arith.mulf %2063, %2083 : vector<1x32xf32>
    %2087 = arith.mulf %2069, %2084 : vector<1x32xf32>
    %2088 = arith.addf %2086, %2087 : vector<1x32xf32>
    %2089 = arith.mulf %2075, %2085 : vector<1x32xf32>
    %2090 = arith.addf %2088, %2089 : vector<1x32xf32>
    %2091 = math.tanh %2090 : vector<1x32xf32>
    %2092 = arith.mulf %2081, %2091 : vector<1x32xf32>
    %2093 = tpu.concatenate %2092, %2090 in 1 : vector<1x32xf32>, vector<1x32xf32> -> vector<1x64xf32>
    %c0_i32_542 = arith.constant 0 : i32
    %2094 = vector.broadcast %c0_i32_542 : i32 to vector<1x1xi32>
    %2095 = arith.cmpi eq, %2001, %2094 : vector<1x1xi32>
    %2096 = vector.shape_cast %2095 : vector<1x1xi1> to vector<1x1xi1>
    %2097 = vector.broadcast %2096 : vector<1x1xi1> to vector<1x64xi1>
    %2098 = arith.select %2097, %1962, %2093 : vector<1x64xi1>, vector<1x64xf32>
    %c2_i32_543 = arith.constant 2 : i32
    %2099 = vector.broadcast %c2_i32_543 : i32 to vector<1x1xi32>
    %2100 = arith.subi %1902, %2099 : vector<1x1xi32>
    %2101 = arith.select %2095, %1902, %2100 : vector<1x1xi1>, vector<1x1xi32>
    %2102 = vector.broadcast %2101 : vector<1x1xi32> to vector<6x64xi32>
    %2103 = arith.cmpi eq, %42, %2102 : vector<6x64xi32>
    %2104 = vector.shape_cast %2098 : vector<1x64xf32> to vector<1x64xf32>
    %2105 = vector.broadcast %2104 : vector<1x64xf32> to vector<6x64xf32>
    %2106 = arith.select %2103, %2105, %1898 : vector<6x64xi1>, vector<6x64xf32>
    %c1_i32_544 = arith.constant 1 : i32
    %c-1_i32_545 = arith.constant -1 : i32
    %2107 = vector.broadcast %c1_i32_544 : i32 to vector<1x1xi32>
    %2108 = vector.broadcast %c-1_i32_545 : i32 to vector<1x1xi32>
    %2109 = arith.select %2095, %2107, %2108 : vector<1x1xi1>, vector<1x1xi32>
    %2110 = arith.addi %1902, %2109 : vector<1x1xi32>
    %c1_i32_546 = arith.constant 1 : i32
    %c0_i32_547 = arith.constant 0 : i32
    %2111 = vector.broadcast %c1_i32_546 : i32 to vector<1x1xi32>
    %2112 = vector.broadcast %c0_i32_547 : i32 to vector<1x1xi32>
    %2113 = arith.select %2095, %2111, %2112 : vector<1x1xi1>, vector<1x1xi32>
    %2114 = arith.addi %1906, %2113 : vector<1x1xi32>
    %2115 = vector.broadcast %c9_i32 : i32 to vector<1x16xi32>
    %2116 = arith.cmpi eq, %41, %2115 : vector<1x16xi32>
    %2117 = vector.shape_cast %2001 : vector<1x1xi32> to vector<1x1xi32>
    %2118 = vector.broadcast %2117 : vector<1x1xi32> to vector<1x16xi32>
    %2119 = arith.select %2116, %2118, %1911 : vector<1x16xi1>, vector<1x16xi32>
    %2120 = vector.shape_cast %2021 : vector<1x1xi32> to vector<1x1xi32>
    %2121 = vector.broadcast %2120 : vector<1x1xi32> to vector<1x16xi32>
    %2122 = arith.select %2116, %2121, %1914 : vector<1x16xi1>, vector<1x16xi32>
    %2123 = vector.shape_cast %2041 : vector<1x1xi32> to vector<1x1xi32>
    %2124 = vector.broadcast %2123 : vector<1x1xi32> to vector<1x16xi32>
    %2125 = arith.select %2116, %2124, %1917 : vector<1x16xi1>, vector<1x16xi32>
    %2126 = vector.broadcast %c9_i32 : i32 to vector<16x64xi32>
    %2127 = arith.cmpi eq, %43, %2126 : vector<16x64xi32>
    %2128 = vector.shape_cast %2098 : vector<1x64xf32> to vector<1x64xf32>
    %2129 = vector.broadcast %2128 : vector<1x64xf32> to vector<16x64xf32>
    %2130 = arith.select %2127, %2129, %1922 : vector<16x64xi1>, vector<16x64xf32>
    %c10_i32_548 = arith.constant 10 : i32
    %c2_i32_549 = arith.constant 2 : i32
    %2131 = vector.broadcast %c2_i32_549 : i32 to vector<1x1xi32>
    %2132 = arith.cmpi sge, %2110, %2131 : vector<1x1xi32>
    %c2_i32_550 = arith.constant 2 : i32
    %2133 = vector.broadcast %c2_i32_550 : i32 to vector<1x1xi32>
    %2134 = arith.subi %2110, %2133 : vector<1x1xi32>
    %2135 = tpu.iota {dimensions = array<i32: 0>} : vector<6x64xi32>
    %2136 = vector.broadcast %2134 : vector<1x1xi32> to vector<6x64xi32>
    %2137 = arith.cmpi eq, %2135, %2136 : vector<6x64xi32>
    %cst_551 = arith.constant 0.000000e+00 : f32
    %2138 = vector.broadcast %cst_551 : f32 to vector<6x64xf32>
    %2139 = arith.select %2137, %2106, %2138 : vector<6x64xi1>, vector<6x64xf32>
    %cst_552 = arith.constant dense<0.000000e+00> : vector<64xf32>
    %2140 = vector.multi_reduction <add>, %2139, %cst_552 [0] : vector<6x64xf32> to vector<64xf32>
    %2141 = vector.shape_cast %2140 : vector<64xf32> to vector<1x64xf32>
    %2142 = vector.shape_cast %2132 : vector<1x1xi1> to vector<1x1xi1>
    %2143 = vector.broadcast %2142 : vector<1x1xi1> to vector<1x64xi1>
    %2144 = arith.select %2143, %2141, %35 : vector<1x64xi1>, vector<1x64xf32>
    %c1_i32_553 = arith.constant 1 : i32
    %2145 = vector.broadcast %c1_i32_553 : i32 to vector<1x1xi32>
    %2146 = arith.cmpi sge, %2110, %2145 : vector<1x1xi32>
    %c1_i32_554 = arith.constant 1 : i32
    %2147 = vector.broadcast %c1_i32_554 : i32 to vector<1x1xi32>
    %2148 = arith.subi %2110, %2147 : vector<1x1xi32>
    %2149 = tpu.iota {dimensions = array<i32: 0>} : vector<6x64xi32>
    %2150 = vector.broadcast %2148 : vector<1x1xi32> to vector<6x64xi32>
    %2151 = arith.cmpi eq, %2149, %2150 : vector<6x64xi32>
    %cst_555 = arith.constant 0.000000e+00 : f32
    %2152 = vector.broadcast %cst_555 : f32 to vector<6x64xf32>
    %2153 = arith.select %2151, %2106, %2152 : vector<6x64xi1>, vector<6x64xf32>
    %cst_556 = arith.constant dense<0.000000e+00> : vector<64xf32>
    %2154 = vector.multi_reduction <add>, %2153, %cst_556 [0] : vector<6x64xf32> to vector<64xf32>
    %2155 = vector.shape_cast %2154 : vector<64xf32> to vector<1x64xf32>
    %2156 = vector.shape_cast %2146 : vector<1x1xi1> to vector<1x1xi1>
    %2157 = vector.broadcast %2156 : vector<1x1xi1> to vector<1x64xi1>
    %2158 = arith.select %2157, %2155, %35 : vector<1x64xi1>, vector<1x64xf32>
    %c6_i32_557 = arith.constant 6 : i32
    %2159 = vector.broadcast %c6_i32_557 : i32 to vector<1x1xi32>
    %2160 = arith.cmpi slt, %2114, %2159 : vector<1x1xi32>
    %2161 = tpu.iota {dimensions = array<i32: 0>} : vector<6x64xi32>
    %2162 = vector.broadcast %2114 : vector<1x1xi32> to vector<6x64xi32>
    %2163 = arith.cmpi eq, %2161, %2162 : vector<6x64xi32>
    %cst_558 = arith.constant 0.000000e+00 : f32
    %2164 = vector.broadcast %cst_558 : f32 to vector<6x64xf32>
    %2165 = arith.select %2163, %33, %2164 : vector<6x64xi1>, vector<6x64xf32>
    %cst_559 = arith.constant dense<0.000000e+00> : vector<64xf32>
    %2166 = vector.multi_reduction <add>, %2165, %cst_559 [0] : vector<6x64xf32> to vector<64xf32>
    %2167 = vector.shape_cast %2166 : vector<64xf32> to vector<1x64xf32>
    %2168 = vector.shape_cast %2160 : vector<1x1xi1> to vector<1x1xi1>
    %2169 = vector.broadcast %2168 : vector<1x1xi1> to vector<1x64xi1>
    %2170 = arith.select %2169, %2167, %35 : vector<1x64xi1>, vector<1x64xf32>
    %2171 = tpu.concatenate %2144, %2158, %2170 in 1 : vector<1x64xf32>, vector<1x64xf32>, vector<1x64xf32> -> vector<1x192xf32>
    %cst_560 = arith.constant dense<0.000000e+00> : vector<1x288xf32>
    %2172 = tpu.matmul %2171, %36, %cst_560 {dimension_numbers = #tpu.dot_dimension_numbers<[1], [0], [0], [1], [0, 0, 1, 1], [], []>} : vector<1x192xf32>, vector<192x288xf32>, vector<1x288xf32> -> vector<1x288xf32>
    %2173 = arith.addf %2172, %37 : vector<1x288xf32>
    %2174 = vector.extract_strided_slice %2173 {offsets = [0, 0], sizes = [1, 128], strides = [1, 1]} : vector<1x288xf32> to vector<1x128xf32>
    %2175 = vector.extract_strided_slice %2173 {offsets = [0, 128], sizes = [1, 160], strides = [1, 1]} : vector<1x288xf32> to vector<1x160xf32>
    %c6_i32_561 = arith.constant 6 : i32
    %2176 = vector.broadcast %c6_i32_561 : i32 to vector<1x1xi32>
    %2177 = arith.cmpi slt, %2114, %2176 : vector<1x1xi32>
    %c2_i32_562 = arith.constant 2 : i32
    %2178 = vector.broadcast %c2_i32_562 : i32 to vector<1x1xi32>
    %2179 = arith.cmpi sge, %2110, %2178 : vector<1x1xi32>
    %c0_i32_563 = arith.constant 0 : i32
    %2180 = vector.broadcast %c0_i32_563 : i32 to vector<1x128xi32>
    %2181 = arith.cmpi eq, %40, %2180 : vector<1x128xi32>
    %2182 = vector.broadcast %2177 : vector<1x1xi1> to vector<1x128xi1>
    %2183 = arith.andi %2181, %2182 : vector<1x128xi1>
    %c1_i32_564 = arith.constant 1 : i32
    %2184 = vector.broadcast %c1_i32_564 : i32 to vector<1x128xi32>
    %2185 = arith.cmpi eq, %40, %2184 : vector<1x128xi32>
    %2186 = vector.broadcast %2179 : vector<1x1xi1> to vector<1x128xi1>
    %2187 = arith.andi %2185, %2186 : vector<1x128xi1>
    %2188 = arith.ori %2183, %2187 : vector<1x128xi1>
    %c0_i32_565 = arith.constant 0 : i32
    %2189 = vector.broadcast %c0_i32_565 : i32 to vector<1x128xi32>
    %2190 = arith.cmpi sge, %40, %2189 : vector<1x128xi32>
    %c2_i32_566 = arith.constant 2 : i32
    %2191 = vector.broadcast %c2_i32_566 : i32 to vector<1x128xi32>
    %2192 = arith.cmpi slt, %40, %2191 : vector<1x128xi32>
    %2193 = arith.andi %2190, %2192 : vector<1x128xi1>
    %2194 = arith.andi %2193, %2188 : vector<1x128xi1>
    %cst_567 = arith.constant -1.000000e+30 : f32
    %2195 = vector.broadcast %cst_567 : f32 to vector<1x128xf32>
    %2196 = arith.select %2194, %2174, %2195 : vector<1x128xi1>, vector<1x128xf32>
    %cst_568 = arith.constant dense<0xFF800000> : vector<1xf32>
    %2197 = vector.multi_reduction <maximumf>, %2196, %cst_568 [1] : vector<1x128xf32> to vector<1xf32>
    %2198 = vector.shape_cast %2197 : vector<1xf32> to vector<1x1xf32>
    %2199 = vector.broadcast %2198 : vector<1x1xf32> to vector<1x128xf32>
    %2200 = arith.cmpf oge, %2196, %2199 : vector<1x128xf32>
    %2201 = arith.andi %2194, %2200 : vector<1x128xi1>
    %2202 = arith.sitofp %40 : vector<1x128xi32> to vector<1x128xf32>
    %cst_569 = arith.constant 1.000000e+09 : f32
    %2203 = vector.broadcast %cst_569 : f32 to vector<1x128xf32>
    %2204 = arith.select %2201, %2202, %2203 : vector<1x128xi1>, vector<1x128xf32>
    %cst_570 = arith.constant dense<0x7F800000> : vector<1xf32>
    %2205 = vector.multi_reduction <minimumf>, %2204, %cst_570 [1] : vector<1x128xf32> to vector<1xf32>
    %2206 = vector.shape_cast %2205 : vector<1xf32> to vector<1x1xf32>
    %2207 = arith.fptosi %2206 : vector<1x1xf32> to vector<1x1xi32>
    %c0_i32_571 = arith.constant 0 : i32
    %2208 = vector.broadcast %c0_i32_571 : i32 to vector<1x1xi32>
    %2209 = arith.subi %2207, %2208 : vector<1x1xi32>
    %c2_i32_572 = arith.constant 2 : i32
    %2210 = vector.broadcast %c2_i32_572 : i32 to vector<1x128xi32>
    %2211 = arith.cmpi sge, %40, %2210 : vector<1x128xi32>
    %c10_i32_573 = arith.constant 10 : i32
    %2212 = vector.broadcast %c10_i32_573 : i32 to vector<1x128xi32>
    %2213 = arith.cmpi slt, %40, %2212 : vector<1x128xi32>
    %2214 = arith.andi %2211, %2213 : vector<1x128xi1>
    %cst_574 = arith.constant -1.000000e+30 : f32
    %2215 = vector.broadcast %cst_574 : f32 to vector<1x128xf32>
    %2216 = arith.select %2214, %2174, %2215 : vector<1x128xi1>, vector<1x128xf32>
    %cst_575 = arith.constant dense<0xFF800000> : vector<1xf32>
    %2217 = vector.multi_reduction <maximumf>, %2216, %cst_575 [1] : vector<1x128xf32> to vector<1xf32>
    %2218 = vector.shape_cast %2217 : vector<1xf32> to vector<1x1xf32>
    %2219 = vector.broadcast %2218 : vector<1x1xf32> to vector<1x128xf32>
    %2220 = arith.cmpf oge, %2216, %2219 : vector<1x128xf32>
    %2221 = arith.andi %2214, %2220 : vector<1x128xi1>
    %2222 = arith.sitofp %40 : vector<1x128xi32> to vector<1x128xf32>
    %cst_576 = arith.constant 1.000000e+09 : f32
    %2223 = vector.broadcast %cst_576 : f32 to vector<1x128xf32>
    %2224 = arith.select %2221, %2222, %2223 : vector<1x128xi1>, vector<1x128xf32>
    %cst_577 = arith.constant dense<0x7F800000> : vector<1xf32>
    %2225 = vector.multi_reduction <minimumf>, %2224, %cst_577 [1] : vector<1x128xf32> to vector<1xf32>
    %2226 = vector.shape_cast %2225 : vector<1xf32> to vector<1x1xf32>
    %2227 = arith.fptosi %2226 : vector<1x1xf32> to vector<1x1xi32>
    %c2_i32_578 = arith.constant 2 : i32
    %2228 = vector.broadcast %c2_i32_578 : i32 to vector<1x1xi32>
    %2229 = arith.subi %2227, %2228 : vector<1x1xi32>
    %c10_i32_579 = arith.constant 10 : i32
    %2230 = vector.broadcast %c10_i32_579 : i32 to vector<1x128xi32>
    %2231 = arith.cmpi sge, %40, %2230 : vector<1x128xi32>
    %c13_i32_580 = arith.constant 13 : i32
    %2232 = vector.broadcast %c13_i32_580 : i32 to vector<1x128xi32>
    %2233 = arith.cmpi slt, %40, %2232 : vector<1x128xi32>
    %2234 = arith.andi %2231, %2233 : vector<1x128xi1>
    %cst_581 = arith.constant -1.000000e+30 : f32
    %2235 = vector.broadcast %cst_581 : f32 to vector<1x128xf32>
    %2236 = arith.select %2234, %2174, %2235 : vector<1x128xi1>, vector<1x128xf32>
    %cst_582 = arith.constant dense<0xFF800000> : vector<1xf32>
    %2237 = vector.multi_reduction <maximumf>, %2236, %cst_582 [1] : vector<1x128xf32> to vector<1xf32>
    %2238 = vector.shape_cast %2237 : vector<1xf32> to vector<1x1xf32>
    %2239 = vector.broadcast %2238 : vector<1x1xf32> to vector<1x128xf32>
    %2240 = arith.cmpf oge, %2236, %2239 : vector<1x128xf32>
    %2241 = arith.andi %2234, %2240 : vector<1x128xi1>
    %2242 = arith.sitofp %40 : vector<1x128xi32> to vector<1x128xf32>
    %cst_583 = arith.constant 1.000000e+09 : f32
    %2243 = vector.broadcast %cst_583 : f32 to vector<1x128xf32>
    %2244 = arith.select %2241, %2242, %2243 : vector<1x128xi1>, vector<1x128xf32>
    %cst_584 = arith.constant dense<0x7F800000> : vector<1xf32>
    %2245 = vector.multi_reduction <minimumf>, %2244, %cst_584 [1] : vector<1x128xf32> to vector<1xf32>
    %2246 = vector.shape_cast %2245 : vector<1xf32> to vector<1x1xf32>
    %2247 = arith.fptosi %2246 : vector<1x1xf32> to vector<1x1xi32>
    %c10_i32_585 = arith.constant 10 : i32
    %2248 = vector.broadcast %c10_i32_585 : i32 to vector<1x1xi32>
    %2249 = arith.subi %2247, %2248 : vector<1x1xi32>
    %2250 = tpu.iota {dimensions = array<i32: 0>} : vector<8x160xi32>
    %2251 = vector.broadcast %2229 : vector<1x1xi32> to vector<8x160xi32>
    %2252 = arith.cmpi eq, %2250, %2251 : vector<8x160xi32>
    %cst_586 = arith.constant 0.000000e+00 : f32
    %2253 = vector.broadcast %cst_586 : f32 to vector<8x160xf32>
    %2254 = arith.select %2252, %38, %2253 : vector<8x160xi1>, vector<8x160xf32>
    %cst_587 = arith.constant dense<0.000000e+00> : vector<160xf32>
    %2255 = vector.multi_reduction <add>, %2254, %cst_587 [0] : vector<8x160xf32> to vector<160xf32>
    %2256 = vector.shape_cast %2255 : vector<160xf32> to vector<1x160xf32>
    %2257 = tpu.iota {dimensions = array<i32: 0>} : vector<3x160xi32>
    %2258 = vector.broadcast %2249 : vector<1x1xi32> to vector<3x160xi32>
    %2259 = arith.cmpi eq, %2257, %2258 : vector<3x160xi32>
    %cst_588 = arith.constant 0.000000e+00 : f32
    %2260 = vector.broadcast %cst_588 : f32 to vector<3x160xf32>
    %2261 = arith.select %2259, %39, %2260 : vector<3x160xi1>, vector<3x160xf32>
    %cst_589 = arith.constant dense<0.000000e+00> : vector<160xf32>
    %2262 = vector.multi_reduction <add>, %2261, %cst_589 [0] : vector<3x160xf32> to vector<160xf32>
    %2263 = vector.shape_cast %2262 : vector<160xf32> to vector<1x160xf32>
    %2264 = arith.addf %2256, %2263 : vector<1x160xf32>
    %2265 = arith.addf %2264, %2175 : vector<1x160xf32>
    %2266 = vector.extract_strided_slice %2265 {offsets = [0, 0], sizes = [1, 32], strides = [1, 1]} : vector<1x160xf32> to vector<1x32xf32>
    %2267 = arith.negf %2266 : vector<1x32xf32>
    %2268 = math.exp %2267 : vector<1x32xf32>
    %cst_590 = arith.constant 1.000000e+00 : f32
    %2269 = vector.broadcast %cst_590 : f32 to vector<1x32xf32>
    %2270 = arith.addf %2269, %2268 : vector<1x32xf32>
    %2271 = arith.divf %2269, %2270 : vector<1x32xf32>
    %2272 = vector.extract_strided_slice %2265 {offsets = [0, 32], sizes = [1, 32], strides = [1, 1]} : vector<1x160xf32> to vector<1x32xf32>
    %2273 = arith.negf %2272 : vector<1x32xf32>
    %2274 = math.exp %2273 : vector<1x32xf32>
    %cst_591 = arith.constant 1.000000e+00 : f32
    %2275 = vector.broadcast %cst_591 : f32 to vector<1x32xf32>
    %2276 = arith.addf %2275, %2274 : vector<1x32xf32>
    %2277 = arith.divf %2275, %2276 : vector<1x32xf32>
    %2278 = vector.extract_strided_slice %2265 {offsets = [0, 64], sizes = [1, 32], strides = [1, 1]} : vector<1x160xf32> to vector<1x32xf32>
    %2279 = arith.negf %2278 : vector<1x32xf32>
    %2280 = math.exp %2279 : vector<1x32xf32>
    %cst_592 = arith.constant 1.000000e+00 : f32
    %2281 = vector.broadcast %cst_592 : f32 to vector<1x32xf32>
    %2282 = arith.addf %2281, %2280 : vector<1x32xf32>
    %2283 = arith.divf %2281, %2282 : vector<1x32xf32>
    %2284 = vector.extract_strided_slice %2265 {offsets = [0, 96], sizes = [1, 32], strides = [1, 1]} : vector<1x160xf32> to vector<1x32xf32>
    %2285 = arith.negf %2284 : vector<1x32xf32>
    %2286 = math.exp %2285 : vector<1x32xf32>
    %cst_593 = arith.constant 1.000000e+00 : f32
    %2287 = vector.broadcast %cst_593 : f32 to vector<1x32xf32>
    %2288 = arith.addf %2287, %2286 : vector<1x32xf32>
    %2289 = arith.divf %2287, %2288 : vector<1x32xf32>
    %2290 = vector.extract_strided_slice %2265 {offsets = [0, 128], sizes = [1, 32], strides = [1, 1]} : vector<1x160xf32> to vector<1x32xf32>
    %2291 = math.tanh %2290 : vector<1x32xf32>
    %2292 = vector.extract_strided_slice %2144 {offsets = [0, 32], sizes = [1, 32], strides = [1, 1]} : vector<1x64xf32> to vector<1x32xf32>
    %2293 = vector.extract_strided_slice %2158 {offsets = [0, 32], sizes = [1, 32], strides = [1, 1]} : vector<1x64xf32> to vector<1x32xf32>
    %2294 = arith.mulf %2271, %2291 : vector<1x32xf32>
    %2295 = arith.mulf %2277, %2292 : vector<1x32xf32>
    %2296 = arith.addf %2294, %2295 : vector<1x32xf32>
    %2297 = arith.mulf %2283, %2293 : vector<1x32xf32>
    %2298 = arith.addf %2296, %2297 : vector<1x32xf32>
    %2299 = math.tanh %2298 : vector<1x32xf32>
    %2300 = arith.mulf %2289, %2299 : vector<1x32xf32>
    %2301 = tpu.concatenate %2300, %2298 in 1 : vector<1x32xf32>, vector<1x32xf32> -> vector<1x64xf32>
    %c0_i32_594 = arith.constant 0 : i32
    %2302 = vector.broadcast %c0_i32_594 : i32 to vector<1x1xi32>
    %2303 = arith.cmpi eq, %2209, %2302 : vector<1x1xi32>
    %2304 = vector.shape_cast %2303 : vector<1x1xi1> to vector<1x1xi1>
    %2305 = vector.broadcast %2304 : vector<1x1xi1> to vector<1x64xi1>
    %2306 = arith.select %2305, %2170, %2301 : vector<1x64xi1>, vector<1x64xf32>
    %c2_i32_595 = arith.constant 2 : i32
    %2307 = vector.broadcast %c2_i32_595 : i32 to vector<1x1xi32>
    %2308 = arith.subi %2110, %2307 : vector<1x1xi32>
    %2309 = arith.select %2303, %2110, %2308 : vector<1x1xi1>, vector<1x1xi32>
    %2310 = vector.broadcast %2309 : vector<1x1xi32> to vector<6x64xi32>
    %2311 = arith.cmpi eq, %42, %2310 : vector<6x64xi32>
    %2312 = vector.shape_cast %2306 : vector<1x64xf32> to vector<1x64xf32>
    %2313 = vector.broadcast %2312 : vector<1x64xf32> to vector<6x64xf32>
    %2314 = arith.select %2311, %2313, %2106 : vector<6x64xi1>, vector<6x64xf32>
    %c1_i32_596 = arith.constant 1 : i32
    %c-1_i32_597 = arith.constant -1 : i32
    %2315 = vector.broadcast %c1_i32_596 : i32 to vector<1x1xi32>
    %2316 = vector.broadcast %c-1_i32_597 : i32 to vector<1x1xi32>
    %2317 = arith.select %2303, %2315, %2316 : vector<1x1xi1>, vector<1x1xi32>
    %2318 = arith.addi %2110, %2317 : vector<1x1xi32>
    %c1_i32_598 = arith.constant 1 : i32
    %c0_i32_599 = arith.constant 0 : i32
    %2319 = vector.broadcast %c1_i32_598 : i32 to vector<1x1xi32>
    %2320 = vector.broadcast %c0_i32_599 : i32 to vector<1x1xi32>
    %2321 = arith.select %2303, %2319, %2320 : vector<1x1xi1>, vector<1x1xi32>
    %2322 = arith.addi %2114, %2321 : vector<1x1xi32>
    %2323 = vector.broadcast %c10_i32_548 : i32 to vector<1x16xi32>
    %2324 = arith.cmpi eq, %41, %2323 : vector<1x16xi32>
    %2325 = vector.shape_cast %2209 : vector<1x1xi32> to vector<1x1xi32>
    %2326 = vector.broadcast %2325 : vector<1x1xi32> to vector<1x16xi32>
    %2327 = arith.select %2324, %2326, %2119 : vector<1x16xi1>, vector<1x16xi32>
    %2328 = vector.shape_cast %2229 : vector<1x1xi32> to vector<1x1xi32>
    %2329 = vector.broadcast %2328 : vector<1x1xi32> to vector<1x16xi32>
    %2330 = arith.select %2324, %2329, %2122 : vector<1x16xi1>, vector<1x16xi32>
    %2331 = vector.shape_cast %2249 : vector<1x1xi32> to vector<1x1xi32>
    %2332 = vector.broadcast %2331 : vector<1x1xi32> to vector<1x16xi32>
    %2333 = arith.select %2324, %2332, %2125 : vector<1x16xi1>, vector<1x16xi32>
    %2334 = vector.broadcast %c10_i32_548 : i32 to vector<16x64xi32>
    %2335 = arith.cmpi eq, %43, %2334 : vector<16x64xi32>
    %2336 = vector.shape_cast %2306 : vector<1x64xf32> to vector<1x64xf32>
    %2337 = vector.broadcast %2336 : vector<1x64xf32> to vector<16x64xf32>
    %2338 = arith.select %2335, %2337, %2130 : vector<16x64xi1>, vector<16x64xf32>
    %c11_i32 = arith.constant 11 : i32
    %c0_600 = arith.constant 0 : index
    %c0_601 = arith.constant 0 : index
    %2339 = vector.load %arg15[%c0_600, %c0_601] : memref<16x64xf32, #tpu.memory_space<vmem>>, vector<16x64xf32>
    tpu.vector_store %arg15[%c0_600, %c0_601], %2338 {strides = array<i32>} : memref<16x64xf32, #tpu.memory_space<vmem>>, vector<16x64xf32>,
    %c0_602 = arith.constant 0 : index
    %c0_603 = arith.constant 0 : index
    %2340 = vector.load %arg16[%c0_602, %c0_603] : memref<1x16xi32, #tpu.memory_space<vmem>>, vector<1x16xi32>
    tpu.vector_store %arg16[%c0_602, %c0_603], %2327 {strides = array<i32>} : memref<1x16xi32, #tpu.memory_space<vmem>>, vector<1x16xi32>,
    %c0_604 = arith.constant 0 : index
    %c0_605 = arith.constant 0 : index
    %2341 = vector.load %arg17[%c0_604, %c0_605] : memref<1x16xi32, #tpu.memory_space<vmem>>, vector<1x16xi32>
    tpu.vector_store %arg17[%c0_604, %c0_605], %2330 {strides = array<i32>} : memref<1x16xi32, #tpu.memory_space<vmem>>, vector<1x16xi32>,
    %c0_606 = arith.constant 0 : index
    %c0_607 = arith.constant 0 : index
    %2342 = vector.load %arg18[%c0_606, %c0_607] : memref<1x16xi32, #tpu.memory_space<vmem>>, vector<1x16xi32>
    tpu.vector_store %arg18[%c0_606, %c0_607], %2333 {strides = array<i32>} : memref<1x16xi32, #tpu.memory_space<vmem>>, vector<1x16xi32>,
    return
  }
}

</mosaic_0001>

<bundles_post_ra>
// kernel: _device_forward.1
= control target key start
LH: loop header
LB: loop body
LE: loop exit
PB: predicated region body
PF: predicated region fallthrough
CT: control target
= control target key end

     0   :  { %s9537_s0 = inlined_call_operand.vmem [shape: f32[96,128], index: 0, kind: input, shape index: {}]   ;;  %s9538_s1 = inlined_call_operand.vmem [shape: f32[96,1], index: 1, kind: input, shape index: {}]   ;;  %s9539_s2 = inlined_call_operand.vmem [shape: f32[6,96], index: 2, kind: input, shape index: {}]   ;;  %s9540_s3 = inlined_call_operand.vmem [shape: f32[128,128], index: 3, kind: input, shape index: {}]   ;;  %s9541_s4 = inlined_call_operand.vmem [shape: f32[1,128], index: 4, kind: input, shape index: {}]   ;;  %s9542_s5 = inlined_call_operand.vmem [shape: f32[1,128], index: 5, kind: input, shape index: {}]   ;;  %s9543_s6 = inlined_call_operand.<no memory space> [shape: f32[1,1], index: 6, kind: input, shape index: {}]   ;;  %s9544_s7 = inlined_call_operand.vmem [shape: f32[128,64], index: 7, kind: input, shape index: {}]   ;;  %s9545_s8 = inlined_call_operand.vmem [shape: f32[1,64], index: 8, kind: input, shape index: {}]   ;;  %s9546_s9 = inlined_call_operand.vmem [shape: f32[1,64], index: 9, kind: input, shape index: {}]   ;;  %s9547_s10 = inlined_call_operand.vmem [shape: f32[192,288], index: 10, kind: input, shape index: {}]   ;;  %s9548_s11 = inlined_call_operand.vmem [shape: f32[1,288], index: 11, kind: input, shape index: {}]   ;;  %s9549_s12 = inlined_call_operand.vmem [shape: f32[8,160], index: 12, kind: input, shape index: {}]   ;;  %s9550_s13 = inlined_call_operand.vmem [shape: f32[3,160], index: 13, kind: input, shape index: {}]   ;;  %s9551_s14 = inlined_call_operand.hbm [shape: f32[6,64], index: 14, kind: output, shape index: {0}]   ;;  %s9552_s15 = inlined_call_operand.hbm [shape: f32[16,64], index: 15, kind: output, shape index: {1}]   ;;  %s9553_s16 = inlined_call_operand.hbm [shape: s32[1,16], index: 16, kind: output, shape index: {2}]   ;;  %s9554_s17 = inlined_call_operand.hbm [shape: s32[1,16], index: 17, kind: output, shape index: {3}]   ;;  %s9555_s18 = inlined_call_operand.hbm [shape: s32[1,16], index: 18, kind: output, shape index: {4}]  }
   0x1   :  { %9664 = sst [smem:[#allocation47_spill]] %s9537_s0  ;;  %v24_v0 = vstv %s9543_s6 }
   0x2   :  { %9665 = sst [smem:[#allocation48_spill]] %s9538_s1  ;;  %25 = vst [vmem:[#allocation2] sm:$0x1] %v24_v0 }
   0x3   :  { %9666 = sst [smem:[#allocation49_spill]] %s9539_s2 }
   0x4   :  { %26 = vsyncpa [#allocation4], 0 }
   0x5   :  { %27 = vsyncpa [#allocation6], 0  ;;  %v69_v1 = vld [vmem:[%s9540_s3] sm:$0xff]  ;;  %v70_v2 = vld [vmem:[%s9540_s3 + $0x8] sm:$0xff]  ;;  %s9667_s27 = sld [smem:[#allocation47_spill]] }
   0x6   :  { %v71_v3 = vld [vmem:[%s9540_s3 + $0x10] sm:$0xff]  ;;  %v4977_v4 = vpack.c.bf16 %v70_v2, %v69_v1  ;;  %v72_v5 = vld [vmem:[%s9540_s3 + $0x18] sm:$0xff]  ;;  %v73_v7 = vld [vmem:[%s9540_s3 + $0x20] sm:$0xff] }
   0x7   :  { %v4981_v6 = vpack.c.bf16 %v72_v5, %v71_v3  ;;  %v74_v8 = vld [vmem:[%s9540_s3 + $0x28] sm:$0xff]  ;;  %v75_v11 = vld [vmem:[%s9540_s3 + $0x30] sm:$0xff]  ;;  %v76_v12 = vld [vmem:[%s9540_s3 + $0x38] sm:$0xff] }
   0x8   :  { %4978 = vmatprep.subr.bf16.mxu0 %v4977_v4  ;;  %v4985_v9 = vpack.c.bf16 %v74_v8, %v73_v7  ;;  %v4989_v13 = vpack.c.bf16 %v76_v12, %v75_v11 }
   0x9   :  { %4980 = vmatpush3.bf16.msra.mxu0 %v4977_v4 }
   0xa   :  { %4982 = vmatprep.subr.bf16.mxu0 %v4981_v6 }
   0xb   :  { %v6479_v10 = vld [vmem:[%s9667_s27] sm:$0xff] }
   0xc   :  { %4870 = vmatprep.mubr.f32.mxu0 %v6479_v10 }
   0xd   :  { %4984 = vmatpush3.bf16.msra.mxu0 %v4981_v6 }
   0xe   :  { %4986 = vmatprep.subr.bf16.mxu0 %v4985_v9 }
   0xf   :  { %28 = vsyncpa [#allocation9], 0  ;;  %v77_v14 = vld [vmem:[%s9540_s3 + $0x40] sm:$0xff]  ;;  %v78_v15 = vld [vmem:[%s9540_s3 + $0x48] sm:$0xff]  ;;  %s9668_s25 = sld [smem:[#allocation48_spill]]  ;;  %vm315_vm0 = vcmask 7168  }
  0x10   :  { %v4993_v16 = vpack.c.bf16 %v78_v15, %v77_v14  ;;  %v79_v17 = vld [vmem:[%s9540_s3 + $0x50] sm:$0xff]  ;;  %v80_v18 = vld [vmem:[%s9540_s3 + $0x58] sm:$0xff]  ;;  %v81_v20 = vld [vmem:[%s9540_s3 + $0x60] sm:$0xff]  ;;  %vm6346_vm1 = vmmov 0   ;;  %s9669_s19 = sld [smem:[#allocation49_spill]]  ;;  %vm454_vm2 = vcmask 785408  }
  0x11   :  { %4988 = vmatpush3.bf16.msra.mxu0 %v4985_v9  ;;  %v4997_v19 = vpack.c.bf16 %v80_v18, %v79_v17  ;;  %v82_v21 = vld [vmem:[%s9540_s3 + $0x68] sm:$0xff]  ;;  %v83_v23 = vld [vmem:[%s9540_s3 + $0x70] sm:$0xff]  ;;  %v84_v24 = vld [vmem:[%s9540_s3 + $0x78] sm:$0xff]  ;;  %vm698_vm3 = vcmask 521216   ;;  %vm799_vm5 = vcmask 523264   ;;  %vm967_vm12 = vcmask 1040384  }
  0x12   :  { %4990 = vmatprep.subr.bf16.mxu0 %v4989_v13  ;;  %v5001_v22 = vpack.c.bf16 %v82_v21, %v81_v20  ;;  %v5005_v25 = vpack.c.bf16 %v84_v24, %v83_v23  ;;  %v6515_v26 = vld [vmem:[%s9667_s27 + $0x8] sm:$0xff]  ;;  %v6520_v27 = vld [vmem:[%s9667_s27 + $0x10] sm:$0xff]  ;;  %v6527_v28 = vld [vmem:[%s9667_s27 + $0x18] sm:$0xff]  ;;  %v9560_v24 = vmov 0   ;;  %s6350_s29 = smov 96   ;;  %s6354_s0 = smov [#allocation3]  }
  0x13   :  { %v6532_v29 = vld [vmem:[%s9667_s27 + $0x20] sm:$0xff]  ;;  %v6539_v30 = vld [vmem:[%s9667_s27 + $0x28] sm:$0xff]  ;;  %v6544_v31 = vld [vmem:[%s9667_s27 + $0x30] sm:$0xff]  ;;  %6076 = vset.pattern.permute.xlu1 %v9560_v24  ;;  %6075 = vset.pattern.permute.xlu0 %v9560_v24 }
  0x14   :  { %v6551_v32 = vld [vmem:[%s9667_s27 + $0x38] sm:$0xff]  ;;  %v6556_v33 = vld [vmem:[%s9667_s27 + $0x40] sm:$0xff]  ;;  %v6563_v34 = vld [vmem:[%s9667_s27 + $0x48] sm:$0xff] }
  0x15   :  { %4992 = vmatpush3.bf16.msra.mxu0 %v4989_v13  ;;  %v6568_v35 = vld [vmem:[%s9667_s27 + $0x50] sm:$0xff]  ;;  %v6575_v36 = vld [vmem:[%s9667_s27 + $0x58] sm:$0xff]  ;;  %v4686_v37 = vld [vmem:[%s9541_s4] ss:$0 sm:$0xff] }
  0x16   :  { %4994 = vmatprep.subr.bf16.mxu0 %v4993_v16  ;;  %v4687_v50 = vld [vmem:[%s9542_s5] ss:$0 sm:$0xff] }
  0x19   :  { %4996 = vmatpush3.bf16.msra.mxu0 %v4993_v16 }
  0x1a   :  { %4998 = vmatprep.subr.bf16.mxu0 %v4997_v19 }
  0x1d   :  { %5000 = vmatpush3.bf16.msra.mxu0 %v4997_v19 }
  0x1e   :  { %5002 = vmatprep.subr.bf16.mxu0 %v5001_v22 }
  0x21   :  { %5004 = vmatpush3.bf16.msra.mxu0 %v5001_v22 }
  0x22   :  { %5006 = vmatprep.subr.bf16.mxu0 %v5005_v25 }
  0x25   :  { %5008 = vmatpush3.bf16.msra.mxu0 %v5005_v25 }
  0x28   :  { %4871 = vmatmul.mubr.f32.vlgmr.msra.gmra.mrb[0].mxu0 %v6515_v26 }
  0x29   :  { %4873 = vmatprep.mubr.f32.mxu0 %v6520_v27 }
  0x2c   :  { %4874 = vmatmul.mubr.f32.gmra.mrb[2].mxu0 %v6527_v28 }
  0x2d   :  { %4876 = vmatprep.mubr.f32.mxu0 %v6532_v29 }
  0x30   :  { %4877 = vmatmul.mubr.f32.gmra.mrb[4].mxu0 %v6539_v30 }
  0x31   :  { %4879 = vmatprep.mubr.f32.mxu0 %v6544_v31 }
  0x34   :  { %4880 = vmatmul.mubr.f32.gmra.mrb[6].mxu0 %v6551_v32 }
  0x35   :  { %4882 = vmatprep.mubr.f32.mxu0 %v6556_v33 }
  0x38   :  { %4883 = vmatmul.mubr.f32.gmra.mrb[8].mxu0 %v6563_v34 }
  0x39   :  { %4885 = vmatprep.mubr.f32.mxu0 %v6568_v35 }
  0x3c   :  { %4886 = vmatmul.mubr.f32.gmra.mrb[10].mxu0 %v6575_v36 }
  0xfb   :  { %v4872_v38 = vpop.f32.mrb[0].mxu0 }
  0xfc   :  { %v164_v39 = vadd.f32 %v4872_v38, %v4686_v37  ;;  %v158_v40 = vpop.f32.mrb[1].mxu0 }
  0xfd   :  { %v159_v41 = vadd.f32 %v4686_v37, %v158_v40 }
  0xfe   :  { %6078 = vtanh.f32 %v164_v39 }
  0xff   :  { %v4875_v42 = vpop.f32.mrb[2].mxu0  ;;  %6080 = vtanh.f32 %v159_v41 }
 0x100   :  { %v174_v43 = vadd.f32 %v4875_v42, %v4686_v37  ;;  %v168_v44 = vpop.f32.mrb[3].mxu0  ;;  %v4688_v42 = vld [vmem:[#allocation2] ss:$0 sm:$0xff] }
 0x101   :  { %v169_v45 = vadd.f32 %v4686_v37, %v168_v44 }
 0x102   :  { %6082 = vtanh.f32 %v174_v43 }
 0x103   :  { %v4878_v46 = vpop.f32.mrb[4].mxu0  ;;  %6084 = vtanh.f32 %v169_v45 }
 0x104   :  { %v184_v47 = vadd.f32 %v4878_v46, %v4686_v37  ;;  %v178_v48 = vpop.f32.mrb[5].mxu0 }
 0x105   :  { %v179_v49 = vadd.f32 %v4686_v37, %v178_v48 }
 0x106   :  { %6086 = vtanh.f32 %v184_v47  ;;  %v296_v47 = vld [vmem:[%s9668_s25 + $0x28] sm:$0xff] }
 0x107   :  { %6088 = vtanh.f32 %v179_v49  ;;  %v4881_v51 = vpop.f32.mrb[6].mxu0  ;;  %v292_v49 = vld [vmem:[%s9668_s25 + $0x8] sm:$0xff] }
 0x108   :  { %v6079_v52 = vpop.eup %6078  ;;  %v194_v53 = vadd.f32 %v4881_v51, %v4686_v37  ;;  %v188_v54 = vpop.f32.mrb[7].mxu0 }
 0x109   :  { %v189_v55 = vadd.f32 %v4686_v37, %v188_v54  ;;  %v237_v56 = vmul.f32 %v6079_v52, %v4687_v50  ;;  %v6081_v57 = vpop.eup %6080 }
 0x10a   :  { %6090 = vtanh.f32 %v194_v53  ;;  %v236_v0 = vmul.f32 %v6081_v57, %v4687_v50  ;;  %v298_v57 = vld [vmem:[%s9668_s25 + $0x38] sm:$0xff] }
 0x10b   :  { %6092 = vtanh.f32 %v189_v55  ;;  %250 = vadd.xlane.f32.xlu0 %v237_v56  ;;  %v4884_v58 = vpop.f32.mrb[8].mxu0  ;;  %v297_v56 = vld [vmem:[%s9668_s25 + $0x30] sm:$0xff] }
 0x10c   :  { %v6083_v59 = vpop.eup %6082  ;;  %v204_v60 = vadd.f32 %v4884_v58, %v4686_v37  ;;  %v198_v61 = vpop.f32.mrb[9].mxu0  ;;  %v294_v58 = vld [vmem:[%s9668_s25 + $0x18] sm:$0xff] }
 0x10d   :  { %v199_v62 = vadd.f32 %v4686_v37, %v198_v61  ;;  %v239_v63 = vmul.f32 %v6083_v59, %v4687_v50  ;;  %v6085_v1 = vpop.eup %6084  ;;  %v291_v59 = vld [vmem:[%s9668_s25] sm:$0xff] }
 0x10e   :  { %6094 = vtanh.f32 %v204_v60  ;;  %v238_v8 = vmul.f32 %v6085_v1, %v4687_v50 }
 0x10f   :  { %6096 = vtanh.f32 %v199_v62  ;;  %254 = vadd.xlane.f32.xlu1 %v239_v63  ;;  %v4887_v2 = vpop.f32.mrb[10].mxu0  ;;  %248 = vadd.xlane.f32.xlu0 %v236_v0  ;;  %v293_v0 = vld [vmem:[%s9668_s25 + $0x10] sm:$0xff] }
 0x110   :  { %v6087_v3 = vpop.eup %6086  ;;  %v214_v4 = vadd.f32 %v4887_v2, %v4686_v37  ;;  %v208_v5 = vpop.f32.mrb[11].mxu0  ;;  %v299_v2 = vld [vmem:[%s9668_s25 + $0x40] sm:$0xff] }
 0x111   :  { %v6089_v6 = vpop.eup %6088  ;;  %v209_v7 = vadd.f32 %v4686_v37, %v208_v5  ;;  %v241_v11 = vmul.f32 %v6087_v3, %v4687_v50  ;;  %v300_v3 = vld [vmem:[%s9668_s25 + $0x48] sm:$0xff] }
 0x112   :  { %6098 = vtanh.f32 %v214_v4  ;;  %v240_v9 = vmul.f32 %v6089_v6, %v4687_v50 }
 0x113   :  { %6100 = vtanh.f32 %v209_v7  ;;  %252 = vadd.xlane.f32.xlu1 %v238_v8  ;;  %v301_v8 = vld [vmem:[%s9668_s25 + $0x50] sm:$0xff] }
 0x114   :  { %v6091_v12 = vpop.eup %6090  ;;  %256 = vadd.xlane.f32.xlu0 %v240_v9 }
 0x115   :  { %v6093_v13 = vpop.eup %6092  ;;  %v243_v15 = vmul.f32 %v6091_v12, %v4687_v50 }
 0x116   :  { %v242_v14 = vmul.f32 %v6093_v13, %v4687_v50 }
 0x117   :  { %258 = vadd.xlane.f32.xlu1 %v241_v11 }
 0x118   :  { %v6095_v16 = vpop.eup %6094  ;;  %260 = vadd.xlane.f32.xlu0 %v242_v14 }
 0x119   :  { %v6097_v17 = vpop.eup %6096  ;;  %v245_v19 = vmul.f32 %v6095_v16, %v4687_v50 }
 0x11a   :  { %v244_v18 = vmul.f32 %v6097_v17, %v4687_v50 }
 0x11b   :  { %262 = vadd.xlane.f32.xlu1 %v243_v15 }
 0x11c   :  { %v6099_v20 = vpop.eup %6098  ;;  %264 = vadd.xlane.f32.xlu0 %v244_v18 }
 0x11d   :  { %v6101_v21 = vpop.eup %6100  ;;  %v247_v23 = vmul.f32 %v6099_v20, %v4687_v50 }
 0x11e   :  { %v246_v22 = vmul.f32 %v6101_v21, %v4687_v50  ;;  %v295_v50 = vld [vmem:[%s9668_s25 + $0x20] sm:$0xff]  ;;  %v302_v21 = vld [vmem:[%s9668_s25 + $0x58] sm:$0xff] }
 0x11f   :  { %266 = vadd.xlane.f32.xlu1 %v245_v19 }
 0x120   :  { %268 = vadd.xlane.f32.xlu0 %v246_v22 }
 0x123   :  { %270 = vadd.xlane.f32.xlu1 %v247_v23 }
 0x198   :  { %v251_v25 = vpop.xlane.xlu0 %250 }
 0x199   :  { %v280_v45 = vadd.f32 %v4688_v42, %v251_v25 }
 0x19b   :  { %v304_v63 = vmul.f32 %v292_v49, %v280_v45 }
 0x19c   :  { %v255_v37 = vpop.xlane.xlu1 %254  ;;  %v249_v38 = vpop.xlane.xlu0 %248 }
 0x19d   :  { %v282_v54 = vadd.f32 %v4688_v42, %v255_v37  ;;  %v279_v55 = vadd.f32 %v4688_v42, %v249_v38  ;;  %v317_v18 = vsel %vm315_vm0, %v304_v63, -inf }
 0x19f   :  { %v306_v11 = vmul.f32 %v294_v58, %v282_v54  ;;  %v303_v12 = vmul.f32 %v291_v59, %v279_v55 }
 0x1a0   :  { %v253_v39 = vpop.xlane.xlu1 %252 }
 0x1a1   :  { %v257_v40 = vpop.xlane.xlu0 %256  ;;  %v281_v60 = vadd.f32 %v4688_v42, %v253_v39  ;;  %v319_v39 = vsel %vm315_vm0, %v306_v11, -inf }
 0x1a2   :  { %v283_v46 = vadd.f32 %v4688_v42, %v257_v40  ;;  %v316_v40 = vsel %vm315_vm0, %v303_v12, -inf }
 0x1a3   :  { %v305_v14 = vmul.f32 %v293_v0, %v281_v60 }
 0x1a4   :  { %v259_v41 = vpop.xlane.xlu1 %258  ;;  %v6612_v1 = vmul.f32 %v295_v50, %v283_v46 }
 0x1a5   :  { %v261_v43 = vpop.xlane.xlu0 %260  ;;  %v284_v44 = vadd.f32 %v4688_v42, %v259_v41 }
 0x1a6   :  { %v285_v51 = vadd.f32 %v4688_v42, %v261_v43  ;;  %v320_v19 = vsel %vm315_vm0, %v6612_v1, -inf  ;;  %v318_v43 = vsel %vm315_vm0, %v305_v14, -inf }
 0x1a7   :  { %v6607_v61 = vmul.f32 %v296_v47, %v284_v44  ;;  %v321_v47 = vmax.f32 %v316_v40, %v320_v19 }
 0x1a8   :  { %v263_v48 = vpop.xlane.xlu1 %262  ;;  %v6620_v5 = vmul.f32 %v297_v56, %v285_v51 }
 0x1a9   :  { %v286_v52 = vadd.f32 %v4688_v42, %v263_v48  ;;  %v265_v53 = vpop.xlane.xlu0 %264  ;;  %v322_v15 = vsel %vm315_vm0, %v6607_v61, -inf }
 0x1aa   :  { %v287_v62 = vadd.f32 %v4688_v42, %v265_v53  ;;  %v324_v23 = vsel %vm315_vm0, %v6620_v5, -inf  ;;  %v323_v41 = vmax.f32 %v317_v18, %v322_v15 }
 0x1ab   :  { %v6622_v6 = vmul.f32 %v298_v57, %v286_v52  ;;  %v325_v48 = vmax.f32 %v318_v43, %v324_v23  ;;  %v9558_v43 = vmov 0.0|0.0  }
 0x1ac   :  { %v267_v4 = vpop.xlane.xlu1 %266  ;;  %v6629_v16 = vmul.f32 %v299_v2, %v287_v62  ;;  %5009 = vmatprep.subr.bf16.mxu1 %v9558_v43  ;;  %5045 = vmatprep.subr.bf16.mxu0 %v9558_v43 }
 0x1ad   :  { %v288_v7 = vadd.f32 %v4688_v42, %v267_v4  ;;  %v269_v9 = vpop.xlane.xlu0 %268  ;;  %v326_v25 = vsel %vm315_vm0, %v6622_v6, -inf }
 0x1ae   :  { %v289_v13 = vadd.f32 %v4688_v42, %v269_v9  ;;  %v328_v44 = vsel %vm315_vm0, %v6629_v16, -inf  ;;  %v327_v49 = vmax.f32 %v319_v39, %v326_v25 }
 0x1af   :  { %v312_v17 = vmul.f32 %v300_v3, %v288_v7 }
 0x1b0   :  { %v313_v20 = vmul.f32 %v301_v8, %v289_v13  ;;  %v271_v22 = vpop.xlane.xlu1 %270 }
 0x1b1   :  { %v330_v37 = vsel %vm315_vm0, %v312_v17, -inf  ;;  %v290_v38 = vadd.f32 %v4688_v42, %v271_v22  ;;  %v329_v42 = vmax.f32 %v321_v47, %v328_v44 }
 0x1b2   :  { %v332_v45 = vsel %vm315_vm0, %v313_v20, -inf  ;;  %v331_v50 = vmax.f32 %v323_v41, %v330_v37 }
 0x1b3   :  { %v314_v46 = vmul.f32 %v302_v21, %v290_v38  ;;  %v333_v52 = vmax.f32 %v325_v48, %v332_v45 }
 0x1b4   :  { %v336_v54 = vmax.f32 %v329_v42, %v331_v50 }
 0x1b5   :  { %v334_v51 = vsel %vm315_vm0, %v314_v46, -inf }
 0x1b6   :  { %v335_v53 = vmax.f32 %v327_v49, %v334_v51 }
 0x1b8   :  { %v337_v55 = vmax.f32 %v333_v52, %v335_v53 }
 0x1ba   :  { %v338_v56 = vmax.f32 %v336_v54, %v337_v55  ;;  %v6347_v55 = vmov 0.0  }
 0x1bb   :  { %4912 = vmatprep.mubr.msk.f32.mxu1 %vm6346_vm1, %v6347_v55  ;;  %4974 = vmatprep.mubr.msk.f32.mxu0 %vm6346_vm1, %v6347_v55 }
 0x1bc   :  { %v339_v57 = vrot.slane %v338_v56, 4 }
 0x1be   :  { %v340_v58 = vmax.f32 %v338_v56, %v339_v57 }
 0x1c0   :  { %v341_v59 = vrot.slane %v340_v58, 2 }
 0x1c2   :  { %v342_v60 = vmax.f32 %v340_v58, %v341_v59 }
 0x1c4   :  { %v343_v62 = vrot.slane %v342_v60, 1 }
 0x1c6   :  { %v344_v0 = vmax.f32 %v342_v60, %v343_v62 }
 0x1c8   :  { %v356_v2 = vsub.f32 %v314_v46, %v344_v0  ;;  %v346_v3 = vsub.f32 %v304_v63, %v344_v0  ;;  %v345_v4 = vsub.f32 %v303_v12, %v344_v0  ;;  %v347_v7 = vsub.f32 %v305_v14, %v344_v0 }
 0x1c9   :  { %v354_v8 = vsub.f32 %v312_v17, %v344_v0  ;;  %v348_v9 = vsub.f32 %v306_v11, %v344_v0  ;;  %v349_v19 = vsub.f32 %v6612_v1, %v344_v0  ;;  %v350_v22 = vsub.f32 %v6607_v61, %v344_v0 }
 0x1ca   :  { %v379_v13 = vmul.f32 1.442695, %v356_v2  ;;  %v359_v15 = vmul.f32 1.442695, %v346_v3  ;;  %v357_v18 = vmul.f32 1.442695, %v345_v4  ;;  %v351_v25 = vsub.f32 %v6620_v5, %v344_v0 }
 0x1cb   :  { %v361_v21 = vmul.f32 1.442695, %v347_v7  ;;  %v375_v23 = vmul.f32 1.442695, %v354_v8  ;;  %v363_v37 = vmul.f32 1.442695, %v348_v9  ;;  %v352_v63 = vsub.f32 %v6622_v6, %v344_v0 }
 0x1cc   :  { %6102 = vpow2.f32 %v379_v13  ;;  %v365_v12 = vmul.f32 1.442695, %v349_v19  ;;  %v353_v11 = vsub.f32 %v6629_v16, %v344_v0  ;;  %v367_v14 = vmul.f32 1.442695, %v350_v22 }
 0x1cd   :  { %6104 = vpow2.f32 %v359_v15  ;;  %v355_v17 = vsub.f32 %v313_v20, %v344_v0  ;;  %v369_v1 = vmul.f32 1.442695, %v351_v25  ;;  %v371_v38 = vmul.f32 1.442695, %v352_v63 }
 0x1ce   :  { %6106 = vpow2.f32 %v357_v18  ;;  %v373_v61 = vmul.f32 1.442695, %v353_v11 }
 0x1cf   :  { %6108 = vpow2.f32 %v361_v21  ;;  %v377_v39 = vmul.f32 1.442695, %v355_v17  ;;  %v610_v17 = vld [vmem:[%s9544_s7 + $0x28] sm:$0xff] }
 0x1d0   :  { %6110 = vpow2.f32 %v375_v23 }
 0x1d1   :  { %6112 = vpow2.f32 %v363_v37 }
 0x1d2   :  { %6114 = vpow2.f32 %v365_v12  ;;  %v608_v12 = vld [vmem:[%s9544_s7 + $0x18] sm:$0xff] }
 0x1d3   :  { %6116 = vpow2.f32 %v367_v14  ;;  %v609_v14 = vld [vmem:[%s9544_s7 + $0x20] sm:$0xff] }
 0x1d4   :  { %6118 = vpow2.f32 %v369_v1  ;;  %v5052_v1 = vpack.c.bf16 %v610_v17, %v609_v14  ;;  %v738_v17 = vld [vmem:[%s9547_s10 + $0x128] sm:$0xff] }
 0x1d5   :  { %6120 = vpow2.f32 %v371_v38  ;;  %v611_v38 = vld [vmem:[%s9544_s7 + $0x30] sm:$0xff] }
 0x1d6   :  { %v6654_v5 = vpop.eup %6102  ;;  %6122 = vpow2.f32 %v373_v61  ;;  %v612_v61 = vld [vmem:[%s9544_s7 + $0x38] sm:$0xff] }
 0x1d7   :  { %v6656_v6 = vpop.eup %6104  ;;  %6124 = vpow2.f32 %v377_v39  ;;  %v5055_v39 = vpack.c.bf16 %v612_v61, %v611_v38  ;;  %v737_v61 = vld [vmem:[%s9547_s10 + $0x120] sm:$0xff] }
 0x1d8   :  { %v6658_v16 = vpop.eup %6106  ;;  %389 = vperm.xlu1 %6076, %v6656_v6  }
 0x1d9   :  { %v6661_v20 = vpop.eup %6108  ;;  %384 = vperm.xlu0 %6075, %v6658_v16   ;;  %v5028_v40 = vpack.c.bf16 %v6656_v6, %v6658_v16  ;;  %v614_v6 = vld [vmem:[%s9544_s7 + $0x48] sm:$0xff] }
 0x1da   :  { %v6666_v41 = vpop.eup %6110 }
 0x1db   :  { %v6670_v44 = vpop.eup %6112 }
 0x1dc   :  { %v6672_v45 = vpop.eup %6114  ;;  %394 = vperm.xlu1 %6076, %v6661_v20   ;;  %v5031_v46 = vpack.c.bf16 %v6670_v44, %v6661_v20 }
 0x1dd   :  { %v6677_v47 = vpop.eup %6116  ;;  %429 = vperm.xlu0 %6075, %v6666_v41  }
 0x1de   :  { %v6680_v48 = vpop.eup %6118  ;;  %v5034_v49 = vpack.c.bf16 %v6677_v47, %v6672_v45 }
 0x1df   :  { %v6684_v50 = vpop.eup %6120 }
 0x1e0   :  { %v6686_v51 = vpop.eup %6122  ;;  %399 = vperm.xlu1 %6076, %v6670_v44   ;;  %v5037_v42 = vpack.c.bf16 %v6684_v50, %v6680_v48 }
 0x1e1   :  { %v6691_v52 = vpop.eup %6124  ;;  %439 = vperm.xlu0 %6075, %v6654_v5   ;;  %v5040_v53 = vpack.c.bf16 %v6666_v41, %v6686_v51 }
 0x1e2   :  { %v5043_v54 = vpack.c.bf16 %v6654_v5, %v6691_v52  ;;  %v613_v5 = vld [vmem:[%s9544_s7 + $0x40] sm:$0xff] }
 0x1e3   :  { %v5058_v16 = vpack.c.bf16 %v614_v6, %v613_v5  ;;  %v744_v6 = vld [vmem:[%s9547_s10 + $0x158] sm:$0xff] }
 0x1e4   :  { %404 = vperm.xlu1 %6076, %v6672_v45   ;;  %v615_v45 = vld [vmem:[%s9544_s7 + $0x50] sm:$0xff] }
 0x1e8   :  { %409 = vperm.xlu1 %6076, %v6677_v47   ;;  %v617_v47 = vld [vmem:[%s9544_s7 + $0x60] sm:$0xff] }
 0x1ec   :  { %414 = vperm.xlu1 %6076, %v6680_v48  }
 0x1f0   :  { %419 = vperm.xlu1 %6076, %v6684_v50  }
 0x1f4   :  { %424 = vperm.xlu1 %6076, %v6686_v51   ;;  %v619_v51 = vld [vmem:[%s9544_s7 + $0x70] sm:$0xff] }
 0x1f8   :  { %434 = vperm.xlu1 %6076, %v6691_v52  }
 0x257   :  { %v390_v56 = vpop.permute.xlu1 %389 }
 0x258   :  { %v443_v57 = vmul.f32 %v390_v56, %v6515_v26  ;;  %v385_v58 = vpop.permute.xlu0 %384 }
 0x259   :  { %v442_v59 = vmul.f32 %v385_v58, %v6479_v10  ;;  %v704_v58 = vld [vmem:[%s9547_s10 + $0x18] sm:$0xff] }
 0x25b   :  { %v395_v60 = vpop.permute.xlu1 %394  ;;  %v5010_v62 = vpack.c.bf16 %v443_v57, %v442_v59  ;;  %v701_v57 = vld [vmem:[%s9547_s10] sm:$0xff] }
 0x25c   :  { %v444_v2 = vmul.f32 %v395_v60, %v6520_v27  ;;  %v430_v15 = vpop.permute.xlu0 %429  ;;  %v6826_v60 = vpack.c.bf16 %v704_v58, %v701_v57  ;;  %v721_v58 = vld [vmem:[%s9547_s10 + $0xa0] sm:$0xff] }
 0x25d   :  { %5011 = vmatpush3.bf16.msra.mxu1 %v5010_v62  ;;  %v451_v22 = vmul.f32 %v430_v15, %v6563_v34  ;;  %v606_v34 = vld [vmem:[%s9544_s7 + $0x8] sm:$0xff]  ;;  %v708_v62 = vld [vmem:[%s9547_s10 + $0x38] sm:$0xff] }
 0x25e   :  { %5012 = vmatprep.subr.bf16.mxu1 %v9558_v43 }
 0x25f   :  { %v400_v0 = vpop.permute.xlu1 %399 }
 0x260   :  { %v445_v3 = vmul.f32 %v400_v0, %v6527_v28  ;;  %v711_v0 = vld [vmem:[%s9547_s10 + $0x50] sm:$0xff] }
 0x262   :  { %v5013_v4 = vpack.c.bf16 %v445_v3, %v444_v2  ;;  %v6837_v2 = vld [vmem:[%s9546_s9] sm:$0x1]  ;;  %v6840_v3 = vpack.c.bf16 %v711_v0, %v708_v62  ;;  %v724_v62 = vld [vmem:[%s9547_s10 + $0xb8] sm:$0xff] }
 0x263   :  { %v405_v7 = vpop.permute.xlu1 %404  ;;  %v7006_v0 = vpack.c.bf16 %v724_v62, %v721_v58  ;;  %v763_v58 = vld [vmem:[%s9547_s10 + $0x1f0] sm:$0xff]  ;;  %v766_v62 = vld [vmem:[%s9547_s10 + $0x208] sm:$0xff] }
 0x264   :  { %5014 = vmatpush3.bf16.msra.mxu1 %v5013_v4  ;;  %v446_v26 = vmul.f32 %v405_v7, %v6532_v29  ;;  %v440_v29 = vpop.permute.xlu0 %439  ;;  %v707_v4 = vld [vmem:[%s9547_s10 + $0x30] sm:$0xff]  ;;  %v710_v7 = vld [vmem:[%s9547_s10 + $0x48] sm:$0xff] }
 0x265   :  { %5015 = vmatprep.subr.bf16.mxu1 %v9558_v43  ;;  %v453_v37 = vmul.f32 %v440_v29, %v6575_v36  ;;  %v722_v29 = vld [vmem:[%s9547_s10 + $0xa8] sm:$0xff] }
 0x267   :  { %v410_v8 = vpop.permute.xlu1 %409 }
 0x268   :  { %v447_v10 = vmul.f32 %v410_v8, %v6539_v30 }
 0x26a   :  { %v5016_v9 = vpack.c.bf16 %v447_v10, %v446_v26  ;;  %v6852_v26 = vpack.c.bf16 %v710_v7, %v707_v4  ;;  %v714_v10 = vld [vmem:[%s9547_s10 + $0x68] sm:$0xff]  ;;  %v727_v4 = vld [vmem:[%s9547_s10 + $0xd0] sm:$0xff] }
 0x26b   :  { %v415_v13 = vpop.permute.xlu1 %414  ;;  %v730_v7 = vld [vmem:[%s9547_s10 + $0xe8] sm:$0xff] }
 0x26c   :  { %5017 = vmatpush3.bf16.msra.mxu1 %v5016_v9  ;;  %v448_v27 = vmul.f32 %v415_v13, %v6544_v31  ;;  %v717_v9 = vld [vmem:[%s9547_s10 + $0x80] sm:$0xff] }
 0x26d   :  { %5018 = vmatprep.subr.bf16.mxu1 %v9558_v43  ;;  %v6865_v15 = vpack.c.bf16 %v717_v9, %v714_v10  ;;  %v7016_v10 = vpack.c.bf16 %v730_v7, %v727_v4  ;;  %v733_v9 = vld [vmem:[%s9547_s10 + $0x100] sm:$0xff]  ;;  %v768_v4 = vld [vmem:[%s9547_s10 + $0x218] sm:$0xff]  ;;  %v771_v7 = vld [vmem:[%s9547_s10 + $0x230] sm:$0xff] }
 0x26f   :  { %v420_v18 = vpop.permute.xlu1 %419  ;;  %9677 = vst [vmem:[#allocation21_spill] sm:$0xff] %v7016_v10 }
 0x270   :  { %v449_v28 = vmul.f32 %v420_v18, %v6551_v32  ;;  %v381_v32 = vld [vmem:[%s9669_s19] sm:$0x3f]  ;;  %s6348_s19 = smov 64  }
 0x271   :  { %v713_v18 = vld [vmem:[%s9547_s10 + $0x60] sm:$0xff] }
 0x272   :  { %v5019_v19 = vpack.c.bf16 %v449_v28, %v448_v27  ;;  %v716_v27 = vld [vmem:[%s9547_s10 + $0x78] sm:$0xff] }
 0x273   :  { %v425_v21 = vpop.permute.xlu1 %424  ;;  %v6876_v28 = vpack.c.bf16 %v716_v27, %v713_v18  ;;  %v736_v18 = vld [vmem:[%s9547_s10 + $0x118] sm:$0xff] }
 0x274   :  { %v450_v23 = vmul.f32 %v425_v21, %v6556_v33  ;;  %5020 = vmatpush3.bf16.msra.mxu1 %v5019_v19  ;;  %v605_v33 = vld [vmem:[%s9544_s7] sm:$0xff]  ;;  %v720_v19 = vld [vmem:[%s9547_s10 + $0x98] sm:$0xff]  ;;  %v723_v21 = vld [vmem:[%s9547_s10 + $0xb0] sm:$0xff]  ;;  %v7026_v27 = vpack.c.bf16 %v736_v18, %v733_v9  ;;  %v7134_v18 = vpack.c.bf16 %v766_v62, %v763_v58 }
 0x275   :  { %5021 = vmatprep.subr.bf16.mxu1 %v9558_v43  ;;  %v5046_v36 = vpack.c.bf16 %v606_v34, %v605_v33  ;;  %v732_v34 = vld [vmem:[%s9547_s10 + $0xf8] sm:$0xff] }
 0x276   :  { %v5022_v30 = vpack.c.bf16 %v451_v22, %v450_v23  ;;  %v6885_v22 = vpack.c.bf16 %v723_v21, %v720_v19  ;;  %v719_v23 = vld [vmem:[%s9547_s10 + $0x90] sm:$0xff]  ;;  %9678 = vst [vmem:[#allocation22_spill] sm:$0xff] %v7026_v27  ;;  %v742_v21 = vld [vmem:[%s9547_s10 + $0x148] sm:$0xff]  ;;  %9689 = vst [vmem:[#allocation33_spill] sm:$0xff] %v7134_v18 }
 0x277   :  { %v435_v25 = vpop.permute.xlu1 %434  ;;  %5047 = vmatpush3.bf16.msra.mxu0 %v5046_v36  ;;  %v739_v19 = vld [vmem:[%s9547_s10 + $0x130] sm:$0xff] }
 0x278   :  { %v452_v63 = vmul.f32 %v435_v25, %v6568_v35  ;;  %5023 = vmatpush3.bf16.msra.mxu1 %v5022_v30  ;;  %v607_v35 = vld [vmem:[%s9544_s7 + $0x10] sm:$0xff]  ;;  %5048 = vmatprep.subr.bf16.mxu0 %v9558_v43  ;;  %v6894_v30 = vpack.c.bf16 %v722_v29, %v719_v23  ;;  %v726_v25 = vld [vmem:[%s9547_s10 + $0xc8] sm:$0xff]  ;;  %v7036_v23 = vpack.c.bf16 %v742_v21, %v739_v19  ;;  %v745_v29 = vld [vmem:[%s9547_s10 + $0x160] sm:$0xff] }
 0x279   :  { %5024 = vmatprep.subr.bf16.mxu1 %v9558_v43  ;;  %v5049_v11 = vpack.c.bf16 %v608_v12, %v607_v35  ;;  %v735_v35 = vld [vmem:[%s9547_s10 + $0x110] sm:$0xff]  ;;  %v7141_v21 = vpack.c.bf16 %v771_v7, %v768_v4  ;;  %v7238_v4 = vld [vmem:[%s9548_s11] sm:$0x7]  ;;  %s6349_s11 = smov 32  }
 0x27a   :  { %v5025_v31 = vpack.c.bf16 %v453_v37, %v452_v63  ;;  %v729_v37 = vld [vmem:[%s9547_s10 + $0xe0] sm:$0xff]  ;;  %v6921_v36 = vpack.c.bf16 %v735_v35, %v732_v34  ;;  %v731_v12 = vld [vmem:[%s9547_s10 + $0xf0] sm:$0xff]  ;;  %9679 = vst [vmem:[#allocation23_spill] sm:$0xff] %v7036_v23 }
 0x27b   :  { %5050 = vmatpush3.bf16.msra.mxu0 %v5049_v11  ;;  %v6903_v63 = vpack.c.bf16 %v729_v37, %v726_v25  ;;  %v734_v11 = vld [vmem:[%s9547_s10 + $0x108] sm:$0xff]  ;;  %v748_v25 = vld [vmem:[%s9547_s10 + $0x178] sm:$0xff]  ;;  %v749_v34 = vld [vmem:[%s9547_s10 + $0x180] sm:$0xff]  ;;  %9690 = vst [vmem:[#allocation34_spill] sm:$0xff] %v7141_v21 }
 0x27c   :  { %5026 = vmatpush3.bf16.msra.mxu1 %v5025_v31  ;;  %5051 = vmatprep.subr.bf16.mxu0 %v9558_v43  ;;  %v725_v31 = vld [vmem:[%s9547_s10 + $0xc0] sm:$0xff]  ;;  %9671 = vst [vmem:[#allocation15_spill] sm:$0xff] %v6921_v36  ;;  %v6930_v14 = vpack.c.bf16 %v734_v11, %v731_v12  ;;  %v7046_v37 = vpack.c.bf16 %v748_v25, %v745_v29  ;;  %v752_v12 = vld [vmem:[%s9547_s10 + $0x198] sm:$0xff]  ;;  %v751_v11 = vld [vmem:[%s9547_s10 + $0x190] sm:$0xff] }
 0x27d   :  { %5027 = vmatprep.subr.bf16.mxu1 %v9558_v43  ;;  %v767_v19 = vld [vmem:[%s9547_s10 + $0x210] sm:$0xff]  ;;  %v770_v29 = vld [vmem:[%s9547_s10 + $0x228] sm:$0xff]  ;;  %v769_v25 = vld [vmem:[%s9547_s10 + $0x220] sm:$0xff] }
 0x27e   :  { %9672 = vst [vmem:[#allocation16_spill] sm:$0xff] %v6930_v14  ;;  %9680 = vst [vmem:[#allocation24_spill] sm:$0xff] %v7046_v37 }
 0x27f   :  { %4913 = vmatmul.mubr.msk.f32.vlgmr.msra.gmra.mrb[0].mxu1 %vm454_vm2, %v381_v32  ;;  %5053 = vmatpush3.bf16.msra.mxu0 %v5052_v1  ;;  %v741_v1 = vld [vmem:[%s9547_s10 + $0x140] sm:$0xff] }
 0x280   :  { %5029 = vmatpush3.bf16.msra.mxu1 %v5028_v40  ;;  %4939 = vmatprep.mubr.msk.f32.mxu1 %vm6346_vm1, %v6347_v55  ;;  %v705_v55 = vld [vmem:[%s9547_s10 + $0x20] sm:$0xff]  ;;  %v6939_v38 = vpack.c.bf16 %v741_v1, %v738_v17  ;;  %v754_v17 = vld [vmem:[%s9547_s10 + $0x1a8] sm:$0xff]  ;;  %v7071_v1 = vpack.c.bf16 %v752_v12, %v749_v34 }
 0x281   :  { %5030 = vmatprep.subr.bf16.mxu1 %v9558_v43  ;;  %5054 = vmatprep.subr.bf16.mxu0 %v9558_v43  ;;  %v4691_v12 = vld [vmem:[%s9545_s8] ss:$0 sm:$0xff] }
 0x282   :  { %9673 = vst [vmem:[#allocation17_spill] sm:$0xff] %v6939_v38  ;;  %9682 = vst [vmem:[#allocation26_spill] sm:$0xff] %v7071_v1 }
 0x283   :  { %5056 = vmatpush3.bf16.msra.mxu0 %v5055_v39  ;;  %v740_v39 = vld [vmem:[%s9547_s10 + $0x138] sm:$0xff] }
 0x284   :  { %5032 = vmatpush3.bf16.msra.mxu1 %v5031_v46  ;;  %5057 = vmatprep.subr.bf16.mxu0 %v9558_v43  ;;  %v616_v46 = vld [vmem:[%s9544_s7 + $0x58] sm:$0xff]  ;;  %v6948_v5 = vpack.c.bf16 %v740_v39, %v737_v61  ;;  %v7073_v61 = vpack.c.bf16 %v754_v17, %v751_v11 }
 0x285   :  { %5033 = vmatprep.subr.bf16.mxu1 %v9558_v43  ;;  %v5061_v48 = vpack.c.bf16 %v616_v46, %v615_v45  ;;  %v756_v39 = vld [vmem:[%s9547_s10 + $0x1b8] sm:$0xff] }
 0x286   :  { %9674 = vst [vmem:[#allocation18_spill] sm:$0xff] %v6948_v5  ;;  %9683 = vst [vmem:[#allocation27_spill] sm:$0xff] %v7073_v61 }
 0x287   :  { %5059 = vmatpush3.bf16.msra.mxu0 %v5058_v16  ;;  %v747_v16 = vld [vmem:[%s9547_s10 + $0x170] sm:$0xff] }
 0x288   :  { %5035 = vmatpush3.bf16.msra.mxu1 %v5034_v49  ;;  %5060 = vmatprep.subr.bf16.mxu0 %v9558_v43  ;;  %v618_v49 = vld [vmem:[%s9544_s7 + $0x68] sm:$0xff] }
 0x289   :  { %5036 = vmatprep.subr.bf16.mxu1 %v9558_v43  ;;  %v5064_v50 = vpack.c.bf16 %v618_v49, %v617_v47  ;;  %v703_v47 = vld [vmem:[%s9547_s10 + $0x10] sm:$0xff] }
 0x28b   :  { %5062 = vmatpush3.bf16.msra.mxu0 %v5061_v48  ;;  %v706_v48 = vld [vmem:[%s9547_s10 + $0x28] sm:$0xff] }
 0x28c   :  { %5038 = vmatpush3.bf16.msra.mxu1 %v5037_v42  ;;  %5063 = vmatprep.subr.bf16.mxu0 %v9558_v43  ;;  %v620_v42 = vld [vmem:[%s9544_s7 + $0x78] sm:$0xff]  ;;  %s4622_s7 = sshll.u32 %s6354_s0, 4  ;;  %s4623_s7 = int_to_ptr.vmem [resolvable:$true] %s4622_s7 }
 0x28d   :  { %5039 = vmatprep.subr.bf16.mxu1 %v9558_v43  ;;  %v5067_v52 = vpack.c.bf16 %v620_v42, %v619_v51  ;;  %v709_v42 = vld [vmem:[%s9547_s10 + $0x40] sm:$0xff] }
 0x28f   :  { %5065 = vmatpush3.bf16.msra.mxu0 %v5064_v50  ;;  %v6976_v50 = vpack.c.bf16 %v706_v48, %v703_v47  ;;  %v760_v47 = vld [vmem:[%s9547_s10 + $0x1d8] sm:$0xff] }
 0x290   :  { %5041 = vmatpush3.bf16.msra.mxu1 %v5040_v53  ;;  %5066 = vmatprep.subr.bf16.mxu0 %v9558_v43  ;;  %v777_v53 = vlaneseq }
 0x291   :  { %5042 = vmatprep.subr.bf16.mxu1 %v9558_v43 }
 0x292   :  { %v6824_v59 = vshrl.u32 %v777_v53, 7  ;;  %v7233_v62 = vand.u32 127, %v777_v53  ;;  %v9695_v53 = vmov 0 }
 0x293   :  { %5068 = vmatpush3.bf16.msra.mxu0 %v5067_v52  ;;  %v712_v52 = vld [vmem:[%s9547_s10 + $0x58] sm:$0xff] }
 0x294   :  { %5044 = vmatpush3.bf16.msra.mxu1 %v5043_v54  ;;  %5117 = vmatprep.subr.bf16.mxu0 %v9558_v43  ;;  %v702_v54 = vld [vmem:[%s9547_s10 + $0x8] sm:$0xff]  ;;  %v6849_v8 = vsub.s32 0, %v6824_v59  ;;  %vm9596_vm4 = vcmp.eq.s32.totalorder %v6824_v59, 0  ;;  %9693 = vst [vmem:[#allocation37_spill] sm:$0xff] %v7233_v62  ;;  %vm994_vm6 = vcmp.ge.s32.totalorder %v7233_v62, 10  ;;  %vm995_vm7 = vcmp.lt.s32.totalorder %v7233_v62, 13 }
 0x295   :  { %v6815_v56 = vpack.c.bf16 %v705_v55, %v702_v54  ;;  %v6986_v54 = vpack.c.bf16 %v712_v52, %v709_v42  ;;  %v715_v55 = vld [vmem:[%s9547_s10 + $0x70] sm:$0xff]  ;;  %v765_v42 = vld [vmem:[%s9547_s10 + $0x200] sm:$0xff]  ;;  %vm979_vm8 = vcmp.ge.s32.totalorder %v7233_v62, 2  ;;  %vm980_vm9 = vcmp.lt.s32.totalorder %v7233_v62, 10  ;;  %vm7248_vm10 = vmand %vm994_vm6, %vm995_vm7 }
 0x296   :  { %v6863_v13 = vrot.slane %v6837_v2, %v6849_v8  ;;  %v761_v52 = vld [vmem:[%s9547_s10 + $0x1e0] sm:$0xff]  ;;  %v7244_v7 = vrot.slane %v7238_v4, %v6849_v8  ;;  %v9696_v53 = vsel %vm7248_vm10, 4294967295, %v9695_v53  ;;  %vm7254_vm11 = vmand %vm979_vm8, %vm980_vm9  ;;  %vm9622_vm1 = vcmp.eq.s32.totalorder %v7233_v62, 0 }
 0x297   :  { %4940 = vmatmul.mubr.msk.f32.vlgmr.msra.gmra.mrb[2].mxu1 %vm454_vm2, %v381_v32  ;;  %9670 = vst [vmem:[#allocation14_spill] sm:$0xff] %v6815_v56  ;;  %5070 = vmatprep.subr.bf16.mxu1 %v6815_v56  ;;  %v728_v32 = vld [vmem:[%s9547_s10 + $0xd8] sm:$0xff]  ;;  %9697 = vst [vmem:[#allocation39_spill] sm:$0xff] %v9696_v53  ;;  %vm9663_vm2 = vcmp.lt.s32.totalorder %v7233_v62, 2  ;;  %vm9624_vm7 = vcmask 1042432   ;;  %vm9621_vm8 = vcmask 256000  }
 0x298   :  { %5072 = vmatpush1.bf16.msra.mxu1 %v6826_v60  ;;  %796 = vrot.lane.b32.xlu0 %v6863_v13, %s6348_s19  ;;  %v6912_v33 = vpack.c.bf16 %v728_v32, %v725_v31  ;;  %v750_v31 = vld [vmem:[%s9547_s10 + $0x188] sm:$0xff]  ;;  %v753_v32 = vld [vmem:[%s9547_s10 + $0x1a0] sm:$0xff]  ;;  %9694 = vst [vmem:[#allocation38_spill] sm:$0xff] %v7244_v7  ;;  %vm7286_vm6 = vmand %vm9663_vm2, %vm9622_vm1  ;;  %vm1022_vm9 = vcmask 261120  }
 0x299   :  { %5074 = vmatprep.subr.bf16.mxu1 %v6840_v3  ;;  %v7060_v35 = vpack.c.bf16 %v753_v32, %v750_v31  ;;  %v772_v31 = vld [vmem:[%s9547_s10 + $0x238] sm:$0xff]  ;;  %v7154_v32 = vpack.c.bf16 %v770_v29, %v767_v19 }
 0x29a   :  { %v7156_v34 = vpack.c.bf16 %v772_v31, %v769_v25  ;;  %v9698_v25 = vmov 0 }
 0x29b   :  { %9681 = vst [vmem:[#allocation25_spill] sm:$0xff] %v7060_v35  ;;  %9691 = vst [vmem:[#allocation35_spill] sm:$0xff] %v7154_v32  ;;  %v9699_v25 = vsel %vm7254_vm11, 4294967295, %v9698_v25 }
 0x29c   :  { %5076 = vmatpush1.bf16.msra.mxu1 %v6852_v26  ;;  %9692 = vst [vmem:[#allocation36_spill] sm:$0xff] %v7156_v34  ;;  %9700 = vst [vmem:[#allocation40_spill] sm:$0xff] %v9699_v25 }
 0x29d   :  { %5078 = vmatprep.subr.bf16.mxu1 %v6865_v15 }
 0x2a0   :  { %5080 = vmatpush1.bf16.msra.mxu1 %v6876_v28 }
 0x2a1   :  { %5082 = vmatprep.subr.bf16.mxu1 %v6885_v22 }
 0x2a4   :  { %5084 = vmatpush1.bf16.msra.mxu1 %v6894_v30 }
 0x2a5   :  { %5086 = vmatprep.subr.bf16.mxu1 %v6903_v63 }
 0x2a8   :  { %5088 = vmatpush1.bf16.msra.mxu1 %v6912_v33 }
 0x2a9   :  { %5090 = vmatprep.subr.bf16.mxu1 %v6921_v36 }
 0x2ac   :  { %5092 = vmatpush1.bf16.msra.mxu1 %v6930_v14 }
 0x2ad   :  { %5094 = vmatprep.subr.bf16.mxu1 %v6939_v38 }
 0x2b0   :  { %5096 = vmatpush1.bf16.msra.mxu1 %v6948_v5 }
 0x352   :  { %v6786_v20 = vpop.f32.mrb[0].mxu1 }
 0x353   :  { %v4914_v40 = vpop.f32.mrb[1].mxu1 }
 0x354   :  { %v6957_v40 = vpack.c.bf16 %v747_v16, %v744_v6  ;;  %v759_v6 = vld [vmem:[%s9547_s10 + $0x1d0] sm:$0xff] }
 0x355   :  { %v755_v16 = vld [vmem:[%s9547_s10 + $0x1b0] sm:$0xff] }
 0x356   :  { %9675 = vst [vmem:[#allocation19_spill] sm:$0xff] %v6957_v40  ;;  %5098 = vmatprep.subr.bf16.mxu1 %v6957_v40 }
 0x36a   :  { %v594_v41 = vpop.f32.mrb[2].mxu1 }
 0x36b   :  { %600 = vperm.xlu1 %6076, %v594_v41   ;;  %v4941_v44 = vpop.f32.mrb[3].mxu1  ;;  %v743_v41 = vld [vmem:[%s9547_s10 + $0x150] sm:$0xff] }
 0x36c   :  { %v746_v44 = vld [vmem:[%s9547_s10 + $0x168] sm:$0xff] }
 0x36d   :  { %v6966_v45 = vpack.c.bf16 %v746_v44, %v743_v41  ;;  %v7085_v41 = vpack.c.bf16 %v759_v6, %v756_v39  ;;  %v758_v44 = vld [vmem:[%s9547_s10 + $0x1c8] sm:$0xff] }
 0x36e   :  { %v7098_v48 = vpack.c.bf16 %v758_v44, %v755_v16 }
 0x36f   :  { %9676 = vst [vmem:[#allocation20_spill] sm:$0xff] %v6966_v45  ;;  %5100 = vmatpush1.bf16.msra.mxu1 %v6966_v45  ;;  %9684 = vst [vmem:[#allocation28_spill] sm:$0xff] %v7085_v41 }
 0x370   :  { %5102 = vmatprep.subr.bf16.mxu1 %v7060_v35  ;;  %9685 = vst [vmem:[#allocation29_spill] sm:$0xff] %v7098_v48 }
 0x373   :  { %5104 = vmatpush1.bf16.msra.mxu1 %v7071_v1 }
 0x374   :  { %5106 = vmatprep.subr.bf16.mxu1 %v7085_v41 }
 0x377   :  { %5108 = vmatpush1.bf16.msra.mxu1 %v7098_v48 }
 0x3ea   :  { %v601_v46 = vpop.permute.xlu1 %600 }
 0x3eb   :  { %6126 = vrcp.f32 %v601_v46  ;;  %v757_v46 = vld [vmem:[%s9547_s10 + $0x1c0] sm:$0xff] }
 0x3f5   :  { %v6127_v49 = vpop.eup %6126 }
 0x3f6   :  { %v604_v51 = vmul.f32 %v6127_v49, %v6786_v20  ;;  %v718_v20 = vld [vmem:[%s9547_s10 + $0x88] sm:$0xff]  ;;  %v7100_v49 = vpack.c.bf16 %v760_v47, %v757_v46 }
 0x3f7   :  { %v6996_v57 = vpack.c.bf16 %v718_v20, %v715_v55  ;;  %v764_v20 = vld [vmem:[%s9547_s10 + $0x1f8] sm:$0xff] }
 0x3f8   :  { %4975 = vmatmul.mubr.f32.vlgmr.msra.gmra.mrb[12].mxu0 %v604_v51  ;;  %9686 = vst [vmem:[#allocation30_spill] sm:$0xff] %v7100_v49  ;;  %v762_v51 = vld [vmem:[%s9547_s10 + $0x1e8] sm:$0xff]  ;;  %v7132_v9 = vpack.c.bf16 %v764_v20, %v761_v52 }
 0x3f9   :  { %5119 = vmatpush1.bf16.msra.mxu0 %v6976_v50  ;;  %v7113_v55 = vpack.c.bf16 %v765_v42, %v762_v51  ;;  %v797_v42 = vpop.permute.xlu0 %796 }
 0x3fa   :  { %5120 = vmatprep.subr.bf16.mxu0 %v9558_v43  ;;  %9688 = vst [vmem:[#allocation32_spill] sm:$0xff] %v7132_v9  ;;  %v800_v20 = vsel %vm799_vm5, %v6837_v2, %v797_v42 }
 0x3fb   :  { %9687 = vst [vmem:[#allocation31_spill] sm:$0xff] %v7113_v55  ;;  %5110 = vmatprep.subr.bf16.mxu1 %v7113_v55 }
 0x3fc   :  { %5112 = vmatpush1.bf16.msra.mxu1 %v7132_v9 }
 0x3fd   :  { %5122 = vmatpush1.bf16.msra.mxu0 %v6986_v54  ;;  %5114 = vmatprep.subr.bf16.mxu1 %v7141_v21 }
 0x3fe   :  { %5123 = vmatprep.subr.bf16.mxu0 %v9558_v43 }
 0x400   :  { %5116 = vmatpush1.bf16.msra.mxu1 %v7154_v32 }
 0x401   :  { %5125 = vmatpush1.bf16.msra.mxu0 %v6996_v57  ;;  %5154 = vmatprep.subr.bf16.mxu1 %v6815_v56 }
 0x402   :  { %5126 = vmatprep.subr.bf16.mxu0 %v9558_v43 }
 0x405   :  { %5128 = vmatpush1.bf16.msra.mxu0 %v7006_v0 }
 0x406   :  { %5129 = vmatprep.subr.bf16.mxu0 %v9558_v43 }
 0x409   :  { %5131 = vmatpush1.bf16.msra.mxu0 %v7016_v10 }
 0x40a   :  { %5132 = vmatprep.subr.bf16.mxu0 %v9558_v43 }
 0x40d   :  { %5134 = vmatpush1.bf16.msra.mxu0 %v7026_v27 }
 0x40e   :  { %5135 = vmatprep.subr.bf16.mxu0 %v9558_v43 }
 0x411   :  { %5137 = vmatpush1.bf16.msra.mxu0 %v7036_v23 }
 0x412   :  { %5138 = vmatprep.subr.bf16.mxu0 %v9558_v43 }
 0x415   :  { %5140 = vmatpush1.bf16.msra.mxu0 %v7046_v37 }
 0x416   :  { %5141 = vmatprep.subr.bf16.mxu0 %v9558_v43 }
 0x419   :  { %5143 = vmatpush1.bf16.msra.mxu0 %v7073_v61 }
 0x41a   :  { %5144 = vmatprep.subr.bf16.mxu0 %v9558_v43 }
 0x41d   :  { %5146 = vmatpush1.bf16.msra.mxu0 %v7100_v49 }
 0x41e   :  { %5147 = vmatprep.subr.bf16.mxu0 %v9558_v43 }
 0x421   :  { %5149 = vmatpush1.bf16.msra.mxu0 %v7134_v18 }
 0x422   :  { %5150 = vmatprep.subr.bf16.mxu0 %v9558_v43 }
 0x425   :  { %5152 = vmatpush1.bf16.msra.mxu0 %v7156_v34 }
 0x426   :  { %5201 = vmatprep.subr.bf16.mxu0 %v9558_v43 }
 0x4cb   :  { %v694_v11 = vpop.f32.mrb[12].mxu0 }
 0x4cc   :  { %v7168_v17 = vadd.f32 %v4691_v12, %v694_v11  ;;  %v4976_v39 = vpop.f32.mrb[13].mxu0 }
 0x4ce   :  { %v783_v6 = vsel %vm9596_vm4, %v7168_v17, 0.0  ;;  %699 = vst.msk [vmem:[#allocation3] sm:$0x3f] %vm698_vm3, %v7168_v17 }
 0x4cf   :  { %v784_v16 = vsel %vm698_vm3, %v783_v6, 0.0 }
 0x4d0   :  { %v785_v44 = vrot.slane %v784_v16, 4 }
 0x4d2   :  { %v786_v46 = vadd.f32 %v785_v44, %v784_v16 }
 0x4d4   :  { %v787_v47 = vrot.slane %v786_v46, 2 }
 0x4d6   :  { %v788_v51 = vadd.f32 %v787_v47, %v786_v46  ;;  %v7268_v46 = vcvt.s32.f32 %v7233_v62 }
 0x4d8   :  { %v789_v52 = vrot.slane %v788_v51, 1 }
 0x4da   :  { %v7178_v58 = vadd.f32 %v789_v52, %v788_v51 }
 0x4dc   :  { %4692 = vmatprep.mubr.msk.f32.mxu1 %vm799_vm5, %v7178_v58  ;;  %4693 = vmatprep.mubr.msk.f32.mxu0 %vm799_vm5, %v7178_v58 }
 0x4dd   :  { %885 = vmatmul.mubr.f32.vlgmr.msra.gmra.mrb[4].mxu1 %v800_v20  ;;  %956 = vmatmul.mubr.f32.vlgmr.msra.gmra.mrb[14].mxu0 %v800_v20 }
 0x4de   :  { %5156 = vmatpush1.bf16.msra.mxu1 %v6826_v60  ;;  %5203 = vmatpush1.bf16.msra.mxu0 %v6976_v50 }
 0x4df   :  { %5158 = vmatprep.subr.bf16.mxu1 %v6840_v3  ;;  %5204 = vmatprep.subr.bf16.mxu0 %v9558_v43 }
 0x4e2   :  { %5160 = vmatpush1.bf16.msra.mxu1 %v6852_v26  ;;  %5206 = vmatpush1.bf16.msra.mxu0 %v6986_v54 }
 0x4e3   :  { %5162 = vmatprep.subr.bf16.mxu1 %v6865_v15  ;;  %5207 = vmatprep.subr.bf16.mxu0 %v9558_v43 }
 0x4e6   :  { %5164 = vmatpush1.bf16.msra.mxu1 %v6876_v28  ;;  %5209 = vmatpush1.bf16.msra.mxu0 %v6996_v57 }
 0x4e7   :  { %5166 = vmatprep.subr.bf16.mxu1 %v6885_v22  ;;  %5210 = vmatprep.subr.bf16.mxu0 %v9558_v43 }
 0x4ea   :  { %5168 = vmatpush1.bf16.msra.mxu1 %v6894_v30  ;;  %5212 = vmatpush1.bf16.msra.mxu0 %v7006_v0 }
 0x4eb   :  { %5170 = vmatprep.subr.bf16.mxu1 %v6903_v63  ;;  %5213 = vmatprep.subr.bf16.mxu0 %v9558_v43 }
 0x4ee   :  { %5172 = vmatpush1.bf16.msra.mxu1 %v6912_v33  ;;  %5215 = vmatpush1.bf16.msra.mxu0 %v7016_v10 }
 0x4ef   :  { %5174 = vmatprep.subr.bf16.mxu1 %v6921_v36  ;;  %5216 = vmatprep.subr.bf16.mxu0 %v9558_v43 }
 0x4f2   :  { %5176 = vmatpush1.bf16.msra.mxu1 %v6930_v14  ;;  %5218 = vmatpush1.bf16.msra.mxu0 %v7026_v27 }
 0x4f3   :  { %5178 = vmatprep.subr.bf16.mxu1 %v6939_v38  ;;  %5219 = vmatprep.subr.bf16.mxu0 %v9558_v43 }
 0x4f6   :  { %5180 = vmatpush1.bf16.msra.mxu1 %v6948_v5  ;;  %5221 = vmatpush1.bf16.msra.mxu0 %v7036_v23 }
 0x4f7   :  { %5182 = vmatprep.subr.bf16.mxu1 %v6957_v40  ;;  %5222 = vmatprep.subr.bf16.mxu0 %v9558_v43 }
 0x4fa   :  { %5184 = vmatpush1.bf16.msra.mxu1 %v6966_v45  ;;  %5224 = vmatpush1.bf16.msra.mxu0 %v7046_v37 }
 0x4fb   :  { %5186 = vmatprep.subr.bf16.mxu1 %v7060_v35  ;;  %5225 = vmatprep.subr.bf16.mxu0 %v9558_v43 }
 0x4fe   :  { %5188 = vmatpush1.bf16.msra.mxu1 %v7071_v1  ;;  %5227 = vmatpush1.bf16.msra.mxu0 %v7073_v61 }
 0x4ff   :  { %5190 = vmatprep.subr.bf16.mxu1 %v7085_v41  ;;  %5228 = vmatprep.subr.bf16.mxu0 %v9558_v43 }
 0x502   :  { %5192 = vmatpush1.bf16.msra.mxu1 %v7098_v48  ;;  %5230 = vmatpush1.bf16.msra.mxu0 %v7100_v49 }
 0x503   :  { %5194 = vmatprep.subr.bf16.mxu1 %v7113_v55  ;;  %5231 = vmatprep.subr.bf16.mxu0 %v9558_v43 }
 0x506   :  { %5196 = vmatpush1.bf16.msra.mxu1 %v7132_v9  ;;  %5233 = vmatpush1.bf16.msra.mxu0 %v7134_v18 }
 0x507   :  { %5198 = vmatprep.subr.bf16.mxu1 %v7141_v21  ;;  %5234 = vmatprep.subr.bf16.mxu0 %v9558_v43 }
 0x50a   :  { %5200 = vmatpush1.bf16.msra.mxu1 %v7154_v32  ;;  %5236 = vmatpush1.bf16.msra.mxu0 %v7156_v34 }
 0x50b   :  { %5238 = vmatprep.subr.bf16.mxu1 %v6815_v56  ;;  %5285 = vmatprep.subr.bf16.mxu0 %v9558_v43 }
 0x5b0   :  { %v886_v19 = vpop.f32.mrb[4].mxu1  ;;  %v7252_v29 = vpop.f32.mrb[14].mxu0 }
 0x5b1   :  { %v887_v31 = vadd.f32 %v886_v19, %v7244_v7  ;;  %v7259_v12 = vpop.f32.mrb[5].mxu1  ;;  %v959_v11 = vpop.f32.mrb[15].mxu0 }
 0x5b3   :  { %v997_v39 = vsel %vm7248_vm10, %v887_v31, -1e+30  ;;  %v982_v6 = vsel %vm7254_vm11, %v887_v31, -1e+30 }
 0x5b4   :  { %v998_v16 = vsel %vm967_vm12, %v997_v39, -inf  ;;  %v983_v44 = vsel %vm967_vm12, %v982_v6, -inf }
 0x5b5   :  { %999 = vmax.xlane.f32.xlu1 %v998_v16  ;;  %984 = vmax.xlane.f32.xlu0 %v983_v44 }
 0x642   :  { %v1000_v47 = vpop.xlane.xlu1 %999  ;;  %v985_v51 = vpop.xlane.xlu0 %984 }
 0x643   :  { %vm1001_vm13 = vcmp.ge.f32.partialorder %v997_v39, %v1000_v47  ;;  %vm986_vm14 = vcmp.ge.f32.partialorder %v982_v6, %v985_v51  ;;  %v7292_v39 = vsel %vm7286_vm6, %v887_v31, -1e+30  ;;  %v7299_v51 = vld [vmem:[%s9550_s13] sm:$0x77] }
 0x644   :  { %vm1002_vm15 = vmand %vm7248_vm10, %vm1001_vm13  ;;  %v968_v6 = vsel %vm967_vm12, %v7292_v39, -inf  ;;  %9703 = vst [vmem:[#allocation41_spill] sm:$0xff] %v7299_v51  ;;  %v7307_v31 = vcombine.high %v7299_v51, %v7299_v51 }
 0x645   :  { %v1003_v42 = vsel %vm1002_vm15, %v7268_v46, 1e+09  ;;  %vm987_vm0 = vmand %vm7254_vm11, %vm986_vm14 }
 0x646   :  { %v1004_v52 = vsel %vm967_vm12, %v1003_v42, inf  ;;  %v988_v20 = vsel %vm987_vm0, %v7268_v46, 1e+09  ;;  %9706 = vst [vmem:[#allocation44_spill] sm:$0xff] %v7307_v31 }
 0x647   :  { %1005 = vmin.xlane.f32.xlu0 %v1004_v52  ;;  %v989_v19 = vsel %vm967_vm12, %v988_v20, inf }
 0x648   :  { %990 = vmin.xlane.f32.xlu1 %v989_v19 }
 0x65d   :  { %1074 = vrot.lane.b32.xlu0 %v6863_v13, %s6349_s11 }
 0x67c   :  { %969 = vmax.xlane.f32.xlu0 %v968_v6 }
 0x6d4   :  { %v1006_v13 = vpop.xlane.xlu0 %1005 }
 0x6d5   :  { %v991_v16 = vpop.xlane.xlu1 %990  ;;  %v5997_v44 = vtrunc.f32 %v1006_v13  ;;  %v7314_v13 = vld [vmem:[%s9549_s12] sm:$0xff] }
 0x6d6   :  { %v5995_v47 = vtrunc.f32 %v991_v16  ;;  %9707 = vst [vmem:[#allocation45_spill] sm:$0xff] %v7314_v13  ;;  %v7319_v16 = vld [vmem:[%s9549_s12 + $0x8] sm:$0xff] }
 0x6d7   :  { %v5998_v42 = vcvt.f32.s32 %v5997_v44  ;;  %9708 = vst [vmem:[#allocation46_spill] sm:$0xff] %v7319_v16 }
 0x6d8   :  { %v5996_v52 = vcvt.f32.s32 %v5995_v47 }
 0x6d9   :  { %v7301_v20 = vadd.s32 4294967286, %v5998_v42 }
 0x6da   :  { %v7303_v19 = vadd.s32 4294967294, %v5996_v52 }
 0x6db   :  { %9704 = vst [vmem:[#allocation42_spill] sm:$0xff] %v7301_v20  ;;  %v1033_v6 = vrot.slane %v7301_v20, %v6849_v8 }
 0x6dc   :  { %9705 = vst [vmem:[#allocation43_spill] sm:$0xff] %v7303_v19  ;;  %v1012_v44 = vrot.slane %v7303_v19, %v6849_v8 }
 0x6dd   :  { %vm1034_vm13 = vcmp.eq.s32.totalorder %v6824_v59, %v1033_v6 }
 0x6de   :  { %vm1013_vm14 = vcmp.eq.s32.totalorder %v6824_v59, %v1012_v44  ;;  %v1038_v47 = vsel %vm1034_vm13, %v7299_v51, 0.0  ;;  %v1039_v42 = vsel %vm1034_vm13, %v7307_v31, 0.0  ;;  %v808_v31 = vsub.s32 1, %v6824_v59 }
 0x6df   :  { %v1014_v52 = vsel %vm1013_vm14, %v7314_v13, 0.0  ;;  %v1015_v43 = vsel %vm1013_vm14, %v7319_v16, 0.0  ;;  %v1041_v24 = vsel %vm9624_vm7, %v1038_v47, 0.0  ;;  %v1049_v62 = vsel %vm9621_vm8, %v1039_v42, 0.0 }
 0x6e0   :  { %v1016_v19 = vrot.slane %v1014_v52, 4  ;;  %v1023_v20 = vsel %vm1022_vm9, %v1015_v43, 0.0  ;;  %v1042_v25 = vrot.slane %v1041_v24, 4  ;;  %v1050_v53 = vrot.slane %v1049_v62, 4 }
 0x6e1   :  { %v1024_v6 = vrot.slane %v1023_v20, 4  ;;  %v812_v16 = vsub.s32 2, %v6824_v59  ;;  %v7335_v43 = vrot.slane %v7238_v4, %v808_v31 }
 0x6e2   :  { %v1017_v7 = vadd.f32 %v1016_v19, %v1014_v52  ;;  %v1043_v44 = vadd.f32 %v1042_v25, %v1041_v24  ;;  %v1051_v56 = vadd.f32 %v1050_v53, %v1049_v62 }
 0x6e3   :  { %v1025_v51 = vadd.f32 %v1024_v6, %v1023_v20  ;;  %v7338_v62 = vrot.slane %v7238_v4, %v812_v16 }
 0x6e4   :  { %v1018_v34 = vrot.slane %v1017_v7, 2  ;;  %v1044_v13 = vrot.slane %v1043_v44, 2  ;;  %v1052_v32 = vrot.slane %v1051_v56, 2 }
 0x6e5   :  { %v1026_v47 = vrot.slane %v1025_v51, 2 }
 0x6e6   :  { %v1019_v21 = vadd.f32 %v1018_v34, %v1017_v7  ;;  %v1045_v42 = vadd.f32 %v1044_v13, %v1043_v44  ;;  %v1053_v18 = vadd.f32 %v1052_v32, %v1051_v56  ;;  %v889_v34 = vadd.f32 %v7259_v12, %v7335_v43 }
 0x6e7   :  { %v1027_v9 = vadd.f32 %v1026_v47, %v1025_v51  ;;  %v958_v56 = vadd.f32 %v7252_v29, %v7338_v62 }
 0x6e8   :  { %v1020_v55 = vrot.slane %v1019_v21, 1  ;;  %v1046_v19 = vrot.slane %v1045_v42, 1  ;;  %v1054_v24 = vrot.slane %v1053_v18, 1 }
 0x6e9   :  { %v1028_v53 = vrot.slane %v1027_v9, 1 }
 0x6ea   :  { %v1021_v25 = vadd.f32 %v1020_v55, %v1019_v21  ;;  %v1047_v20 = vadd.f32 %v1046_v19, %v1045_v42  ;;  %v1055_v52 = vadd.f32 %v1054_v24, %v1053_v18 }
 0x6eb   :  { %v1029_v6 = vadd.f32 %v1028_v53, %v1027_v9  ;;  %v1075_v9 = vpop.permute.xlu0 %1074 }
 0x6ec   :  { %v1056_v7 = vadd.f32 %v1047_v20, %v1021_v25 }
 0x6ed   :  { %v1057_v32 = vadd.f32 %v1055_v52, %v1029_v6 }
 0x6ee   :  { %v1058_v51 = vadd.f32 %v1056_v7, %v889_v34 }
 0x6ef   :  { %v1059_v31 = vadd.f32 %v1057_v32, %v958_v56 }
 0x6f0   :  { %v4696_v13 = vmul.f32 -1.442695, %v1058_v51 }
 0x6f2   :  { %6128 = vpow2.f32 %v4696_v13 }
 0x6fc   :  { %v6129_v44 = vpop.eup %6128 }
 0x6fd   :  { %v1063_v4 = vadd.f32 1.0, %v6129_v44 }
 0x6ff   :  { %6130 = vrcp.f32 %v1063_v4 }
 0x700   :  { %6132 = vtanh.f32 %v1059_v31 }
 0x709   :  { %v6131_v16 = vpop.eup %6130  ;;  %v970_v53 = vpop.xlane.xlu0 %969 }
 0x70a   :  { %v1068_v55 = vmul.f32 %v6131_v16, %v6837_v2  ;;  %v1077_v18 = vmul.f32 %v6131_v16, %v1075_v9  ;;  %v6133_v21 = vpop.eup %6132  ;;  %vm971_vm15 = vcmp.ge.f32.partialorder %v7292_v39, %v970_v53  ;;  %v9709_v39 = vmov 0  }
 0x70b   :  { %v1067_v12 = vmul.f32 %v6133_v21, %v6131_v16  ;;  %vm972_vm0 = vmand %vm7286_vm6, %vm971_vm15  ;;  %v9594_v21 = vmov 4294967295  }
 0x70c   :  { %1070 = vrot.lane.b32.xlu1 %v1068_v55, %s6350_s29  ;;  %v974_v25 = vsel %vm972_vm0, %v7268_v46, 1e+09 }
 0x70d   :  { %v975_v20 = vsel %vm967_vm12, %v974_v25, inf }
 0x710   :  { %1079 = vrot.lane.b32.xlu1 %v1077_v18, %s6348_s19 }
 0x77e   :  { %v1071_v29 = vpop.permute.xlu1 %1070 }
 0x77f   :  { %v1073_v47 = vadd.f32 %v1071_v29, %v1067_v12  ;;  %v6352_v12 = vmov 4294967294  }
 0x782   :  { %v1080_v42 = vpop.permute.xlu1 %1079 }
 0x783   :  { %v1082_v19 = vadd.f32 %v1080_v42, %v1073_v47 }
 0x785   :  { %6134 = vtanh.f32 %v1082_v19 }
 0x78f   :  { %v6135_v24 = vpop.eup %6134 }
 0x790   :  { %1085 = vrot.lane.b32.xlu1 %v6135_v24, %s6350_s29 }
 0x7b4   :  { %976 = vmin.xlane.f32.xlu1 %v975_v20 }
 0x7c5   :  { %1094 = vrot.lane.b32.xlu1 %v1082_v19, %s6349_s11 }
 0x802   :  { %v1086_v52 = vpop.permute.xlu1 %1085 }
 0x803   :  { %v1088_v6 = vmul.f32 %v6131_v16, %v1086_v52 }
 0x805   :  { %1090 = vrot.lane.b32.xlu0 %v1088_v6, %s6349_s11 }
 0x841   :  { %v977_v34 = vpop.xlane.xlu1 %976 }
 0x842   :  { %v5993_v7 = vtrunc.f32 %v977_v34 }
 0x844   :  { %v7355_v56 = vcvt.f32.s32 %v5993_v7 }
 0x845   :  { %v1095_v19 = vpop.permute.xlu1 %1094 }
 0x846   :  { %vm1098_vm13 = vcmp.eq.s32.totalorder %v7355_v56, 0 }
 0x847   :  { %v7361_v11 = vsel %vm1098_vm13, 1, %v9709_v39  ;;  %v7381_v29 = vsel %vm1098_vm13, 1, %v9594_v21  ;;  %v1102_v47 = vsel %vm1098_vm13, 0, %v6352_v12 }
 0x848   :  { %v1160_v32 = vrot.slane %v7361_v11, %v6849_v8  ;;  %vm1156_vm14 = vcmp.lt.s32.totalorder %v7361_v11, 6  ;;  %v4698_v42 = vadd.s32 4294967295, %v7381_v29  ;;  %v1106_v24 = vrot.slane %v1102_v47, %v6849_v8 }
 0x84a   :  { %vm1161_vm6 = vcmp.eq.s32.totalorder %v6824_v59, %v1160_v32  ;;  %v1143_v25 = vrot.slane %v4698_v42, %v6849_v8  ;;  %vm1107_vm15 = vcmp.eq.s32.totalorder %v6824_v59, %v1106_v24 }
 0x84b   :  { %v1162_v51 = vsel %vm1161_vm6, %v7168_v17, 0.0 }
 0x84c   :  { %v1163_v31 = vsel %vm698_vm3, %v1162_v51, 0.0  ;;  %vm1144_vm0 = vcmp.eq.s32.totalorder %v6824_v59, %v1143_v25 }
 0x84d   :  { %v1164_v13 = vrot.slane %v1163_v31, 4 }
 0x84f   :  { %v1165_v44 = vadd.f32 %v1164_v13, %v1163_v31 }
 0x851   :  { %v1166_v4 = vrot.slane %v1165_v44, 2 }
 0x853   :  { %v1167_v16 = vadd.f32 %v1166_v4, %v1165_v44 }
 0x855   :  { %v1168_v55 = vrot.slane %v1167_v16, 1 }
 0x857   :  { %v1169_v9 = vadd.f32 %v1168_v55, %v1167_v16  ;;  %v7410_v55 = vadd.s32 4294967294, %v7381_v29 }
 0x859   :  { %v7372_v18 = vsel %vm1156_vm14, %v1169_v9, %v6837_v2  ;;  %v1125_v9 = vrot.slane %v7410_v55, %v6849_v8 }
 0x85a   :  { %4699 = vmatprep.mubr.msk.f32.mxu1 %vm799_vm5, %v7372_v18  ;;  %4700 = vmatprep.mubr.msk.f32.mxu0 %vm799_vm5, %v7372_v18 }
 0x85b   :  { %vm1126_vm6 = vcmp.eq.s32.totalorder %v6824_v59, %v1125_v9  ;;  %v9717_v9 = vld [vmem:[#allocation14_spill] sm:$0xff] }
 0x877   :  { %v1091_v53 = vpop.permute.xlu0 %1090 }
 0x878   :  { %v1097_v20 = vsel %vm1022_vm9, %v1091_v53, %v1095_v19 }
 0x879   :  { %v1101_v52 = vsel %vm1098_vm13, %v7178_v58, %v1097_v20 }
 0x87a   :  { %v7393_v6 = vrot.slane %v1101_v52, %v6849_v8 }
 0x87c   :  { %v7398_v34 = vsel %vm1107_vm15, %v7393_v6, 0.0 }
 0x87d   :  { %v1145_v7 = vsel %vm1144_vm0, %v7398_v34, 0.0  ;;  %v1127_v12 = vsel %vm1126_vm6, %v7398_v34, 0.0 }
 0x87e   :  { %v1146_v32 = vsel %vm698_vm3, %v1145_v7, 0.0  ;;  %v1128_v47 = vsel %vm698_vm3, %v1127_v12, 0.0 }
 0x87f   :  { %v1147_v51 = vrot.slane %v1146_v32, 4  ;;  %v1129_v42 = vrot.slane %v1128_v47, 4 }
 0x881   :  { %v1148_v31 = vadd.f32 %v1147_v51, %v1146_v32  ;;  %v1130_v19 = vadd.f32 %v1129_v42, %v1128_v47  ;;  %v9710_v51 = vmov 0.0|0.0   ;;  %v9718_v42 = vld [vmem:[#allocation38_spill] sm:$0xff] }
 0x883   :  { %v1149_v13 = vrot.slane %v1148_v31, 2  ;;  %v1131_v24 = vrot.slane %v1130_v19, 2 }
 0x885   :  { %v1150_v44 = vadd.f32 %v1149_v13, %v1148_v31  ;;  %v1132_v53 = vadd.f32 %v1131_v24, %v1130_v19  ;;  %v9712_v31 = vld [vmem:[#allocation32_spill] sm:$0xff]  ;;  %v9713_v13 = vld [vmem:[#allocation33_spill] sm:$0xff] }
 0x887   :  { %v1151_v4 = vrot.slane %v1150_v44, 1  ;;  %v1133_v25 = vrot.slane %v1132_v53, 1 }
 0x889   :  { %v1152_v58 = vadd.f32 %v1151_v4, %v1150_v44  ;;  %v1134_v20 = vadd.f32 %v1133_v25, %v1132_v53  ;;  %v9714_v44 = vld [vmem:[#allocation34_spill] sm:$0xff]  ;;  %v9715_v4 = vld [vmem:[#allocation35_spill] sm:$0xff] }
 0x88a   :  { %v9721_v25 = vld [vmem:[#allocation42_spill] sm:$0xff] }
 0x88b   :  { %v7405_v16 = vsel %vm1098_vm13, %v1152_v58, %v6837_v2  ;;  %vm1120_vm13 = vcmp.ge.s32.totalorder %v7381_v29, 2  ;;  %v9716_v58 = vld [vmem:[#allocation36_spill] sm:$0xff] }
 0x88c   :  { %1174 = vrot.lane.b32.xlu0 %v7405_v16, %s6348_s19  ;;  %v7421_v7 = vsel %vm1120_vm13, %v1134_v20, %v6837_v2  ;;  %v9711_v2 = vld [vmem:[#allocation31_spill] sm:$0xff] }
 0x8fe   :  { %v1175_v52 = vpop.permute.xlu0 %1174 }
 0x8ff   :  { %v1177_v32 = vsel %vm799_vm5, %v7421_v7, %v1175_v52  ;;  %v9726_v52 = vld [vmem:[#allocation44_spill] sm:$0xff] }
 0x900   :  { %1246 = vmatmul.mubr.f32.vlgmr.msra.gmra.mrb[6].mxu1 %v1177_v32  ;;  %1317 = vmatmul.mubr.f32.vlgmr.msra.gmra.mrb[16].mxu0 %v1177_v32 }
 0x901   :  { %5240 = vmatpush1.bf16.msra.mxu1 %v6826_v60  ;;  %5287 = vmatpush1.bf16.msra.mxu0 %v6976_v50 }
 0x902   :  { %5242 = vmatprep.subr.bf16.mxu1 %v6840_v3  ;;  %5288 = vmatprep.subr.bf16.mxu0 %v9710_v51 }
 0x905   :  { %5244 = vmatpush1.bf16.msra.mxu1 %v6852_v26  ;;  %5290 = vmatpush1.bf16.msra.mxu0 %v6986_v54 }
 0x906   :  { %5246 = vmatprep.subr.bf16.mxu1 %v6865_v15  ;;  %5291 = vmatprep.subr.bf16.mxu0 %v9710_v51 }
 0x909   :  { %5248 = vmatpush1.bf16.msra.mxu1 %v6876_v28  ;;  %5293 = vmatpush1.bf16.msra.mxu0 %v6996_v57 }
 0x90a   :  { %5250 = vmatprep.subr.bf16.mxu1 %v6885_v22  ;;  %5294 = vmatprep.subr.bf16.mxu0 %v9710_v51 }
 0x90d   :  { %5252 = vmatpush1.bf16.msra.mxu1 %v6894_v30  ;;  %5296 = vmatpush1.bf16.msra.mxu0 %v7006_v0 }
 0x90e   :  { %5254 = vmatprep.subr.bf16.mxu1 %v6903_v63  ;;  %5297 = vmatprep.subr.bf16.mxu0 %v9710_v51 }
 0x911   :  { %5256 = vmatpush1.bf16.msra.mxu1 %v6912_v33  ;;  %5299 = vmatpush1.bf16.msra.mxu0 %v7016_v10 }
 0x912   :  { %5258 = vmatprep.subr.bf16.mxu1 %v6921_v36  ;;  %5300 = vmatprep.subr.bf16.mxu0 %v9710_v51 }
 0x915   :  { %5260 = vmatpush1.bf16.msra.mxu1 %v6930_v14  ;;  %5302 = vmatpush1.bf16.msra.mxu0 %v7026_v27 }
 0x916   :  { %5262 = vmatprep.subr.bf16.mxu1 %v6939_v38  ;;  %5303 = vmatprep.subr.bf16.mxu0 %v9710_v51 }
 0x919   :  { %5264 = vmatpush1.bf16.msra.mxu1 %v6948_v5  ;;  %5305 = vmatpush1.bf16.msra.mxu0 %v7036_v23 }
 0x91a   :  { %5266 = vmatprep.subr.bf16.mxu1 %v6957_v40  ;;  %5306 = vmatprep.subr.bf16.mxu0 %v9710_v51 }
 0x91d   :  { %5268 = vmatpush1.bf16.msra.mxu1 %v6966_v45  ;;  %5308 = vmatpush1.bf16.msra.mxu0 %v7046_v37 }
 0x91e   :  { %5270 = vmatprep.subr.bf16.mxu1 %v7060_v35  ;;  %5309 = vmatprep.subr.bf16.mxu0 %v9710_v51 }
 0x921   :  { %5272 = vmatpush1.bf16.msra.mxu1 %v7071_v1  ;;  %5311 = vmatpush1.bf16.msra.mxu0 %v7073_v61 }
 0x922   :  { %5274 = vmatprep.subr.bf16.mxu1 %v7085_v41  ;;  %5312 = vmatprep.subr.bf16.mxu0 %v9710_v51 }
 0x925   :  { %5276 = vmatpush1.bf16.msra.mxu1 %v7098_v48  ;;  %5314 = vmatpush1.bf16.msra.mxu0 %v7100_v49 }
 0x926   :  { %5278 = vmatprep.subr.bf16.mxu1 %v9711_v2  ;;  %5315 = vmatprep.subr.bf16.mxu0 %v9710_v51 }
 0x929   :  { %5280 = vmatpush1.bf16.msra.mxu1 %v9712_v31  ;;  %5317 = vmatpush1.bf16.msra.mxu0 %v9713_v13  ;;  %v1116_v13 = vsel %vm9622_vm1, %v9721_v25, 0 }
 0x92a   :  { %5282 = vmatprep.subr.bf16.mxu1 %v9714_v44  ;;  %5318 = vmatprep.subr.bf16.mxu0 %v9710_v51  ;;  %v9722_v44 = vld [vmem:[#allocation37_spill] sm:$0xff] }
 0x92d   :  { %5284 = vmatpush1.bf16.msra.mxu1 %v9715_v4  ;;  %5320 = vmatpush1.bf16.msra.mxu0 %v9716_v58 }
 0x92e   :  { %5322 = vmatprep.subr.bf16.mxu1 %v9717_v9  ;;  %5369 = vmatprep.subr.bf16.mxu0 %v9710_v51 }
 0x9d3   :  { %v1247_v12 = vpop.f32.mrb[6].mxu1  ;;  %v7473_v47 = vpop.f32.mrb[16].mxu0 }
 0x9d4   :  { %v7476_v19 = vadd.f32 %v1247_v12, %v9718_v42  ;;  %v7478_v24 = vpop.f32.mrb[7].mxu1  ;;  %v1320_v53 = vpop.f32.mrb[17].mxu0 }
 0x9d6   :  { %v1350_v20 = vsel %vm7248_vm10, %v7476_v19, -1e+30  ;;  %v1338_v32 = vsel %vm7254_vm11, %v7476_v19, -1e+30 }
 0x9d7   :  { %v1351_v21 = vsel %vm967_vm12, %v1350_v20, -inf  ;;  %v1339_v9 = vsel %vm967_vm12, %v1338_v32, -inf }
 0x9d8   :  { %1352 = vmax.xlane.f32.xlu0 %v1351_v21  ;;  %1340 = vmax.xlane.f32.xlu1 %v1339_v9 }
 0x9e9   :  { %1421 = vrot.lane.b32.xlu1 %v7405_v16, %s6349_s11 }
 0xa65   :  { %v1353_v12 = vpop.xlane.xlu0 %1352  ;;  %v1341_v42 = vpop.xlane.xlu1 %1340 }
 0xa66   :  { %vm1354_vm15 = vcmp.ge.f32.partialorder %v1350_v20, %v1353_v12  ;;  %vm1342_vm0 = vcmp.ge.f32.partialorder %v1338_v32, %v1341_v42 }
 0xa67   :  { %vm1355_vm6 = vmand %vm7248_vm10, %vm1354_vm15  ;;  %vm9623_vm15 = vcmp.eq.s32.totalorder %v9722_v44, 1 }
 0xa68   :  { %v1356_v53 = vsel %vm1355_vm6, %v7268_v46, 1e+09  ;;  %vm1343_vm4 = vmand %vm7254_vm11, %vm1342_vm0 }
 0xa69   :  { %v1357_v58 = vsel %vm967_vm12, %v1356_v53, inf  ;;  %v1344_v21 = vsel %vm1343_vm4, %v7268_v46, 1e+09  ;;  %vm1322_vm6 = vmand %vm9622_vm1, %vm1156_vm14 }
 0xa6a   :  { %1358 = vmin.xlane.f32.xlu0 %v1357_v58  ;;  %v1345_v9 = vsel %vm967_vm12, %v1344_v21, inf }
 0xa6e   :  { %1346 = vmin.xlane.f32.xlu0 %v1345_v9 }
 0xaf7   :  { %v1359_v16 = vpop.xlane.xlu0 %1358 }
 0xaf8   :  { %v6003_v4 = vtrunc.f32 %v1359_v16 }
 0xafa   :  { %v6004_v20 = vcvt.f32.s32 %v6003_v4  ;;  %v9724_v4 = vld [vmem:[#allocation43_spill] sm:$0xff] }
 0xafb   :  { %v1347_v42 = vpop.xlane.xlu0 %1346  ;;  %v1115_v16 = vsel %vm9622_vm1, %v9724_v4, 0  ;;  %v9728_v4 = vld [vmem:[#allocation45_spill] sm:$0xff] }
 0xafc   :  { %v4702_v32 = vadd.s32 4294967286, %v6004_v20  ;;  %v6001_v12 = vtrunc.f32 %v1347_v42  ;;  %v9725_v20 = vld [vmem:[#allocation41_spill] sm:$0xff] }
 0xafe   :  { %v1385_v53 = vrot.slane %v4702_v32, %v6849_v8  ;;  %v7505_v58 = vsel %vm9623_vm15, %v4702_v32, %v1116_v13  ;;  %v6002_v21 = vcvt.f32.s32 %v6001_v12 }
 0xaff   :  { %9723 = vst [vmem:[#allocation42_spill] sm:$0xff] %v7505_v58  ;;  %v9729_v58 = vld [vmem:[#allocation46_spill] sm:$0xff] }
 0xb00   :  { %vm1386_vm4 = vcmp.eq.s32.totalorder %v6824_v59, %v1385_v53  ;;  %v4701_v9 = vadd.s32 4294967294, %v6002_v21 }
 0xb01   :  { %v1387_v42 = vsel %vm1386_vm4, %v9725_v20, 0.0  ;;  %v1388_v25 = vsel %vm1386_vm4, %v9726_v52, 0.0  ;;  %vm1324_vm4 = vmand %vm9623_vm15, %vm1120_vm13 }
 0xb02   :  { %v1389_v31 = vsel %vm9624_vm7, %v1387_v42, 0.0  ;;  %v1396_v2 = vsel %vm9621_vm8, %v1388_v25, 0.0  ;;  %v1365_v49 = vrot.slane %v4701_v9, %v6849_v8  ;;  %v7518_v13 = vsel %vm9623_vm15, %v4701_v9, %v1115_v16 }
 0xb03   :  { %9727 = vst [vmem:[#allocation37_spill] sm:$0xff] %v7518_v13  ;;  %v1390_v32 = vrot.slane %v1389_v31, 4  ;;  %v1397_v12 = vrot.slane %v1396_v2, 4 }
 0xb04   :  { %vm1366_vm0 = vcmp.eq.s32.totalorder %v6824_v59, %v1365_v49 }
 0xb05   :  { %v1391_v53 = vadd.f32 %v1390_v32, %v1389_v31  ;;  %v1398_v21 = vadd.f32 %v1397_v12, %v1396_v2  ;;  %v1367_v20 = vsel %vm1366_vm0, %v9728_v4, 0.0  ;;  %v1368_v52 = vsel %vm1366_vm0, %v9729_v58, 0.0  ;;  %vm1325_vm0 = vmor %vm1322_vm6, %vm1324_vm4 }
 0xb06   :  { %v1369_v48 = vrot.slane %v1367_v20, 4  ;;  %v1375_v42 = vsel %vm1022_vm9, %v1368_v52, 0.0  ;;  %v1250_v52 = vadd.f32 %v7478_v24, %v7335_v43  ;;  %vm7541_vm8 = vmand %vm9663_vm2, %vm1325_vm0 }
 0xb07   :  { %v1392_v25 = vrot.slane %v1391_v53, 2  ;;  %v1399_v41 = vrot.slane %v1398_v21, 2  ;;  %v1376_v61 = vrot.slane %v1375_v42, 4 }
 0xb08   :  { %v1370_v1 = vadd.f32 %v1369_v48, %v1367_v20 }
 0xb09   :  { %v1393_v35 = vadd.f32 %v1392_v25, %v1391_v53  ;;  %v1400_v9 = vadd.f32 %v1399_v41, %v1398_v21  ;;  %v1377_v16 = vadd.f32 %v1376_v61, %v1375_v42  ;;  %v1319_v41 = vadd.f32 %v7473_v47, %v7338_v62 }
 0xb0a   :  { %v1371_v13 = vrot.slane %v1370_v1, 2 }
 0xb0b   :  { %v1378_v37 = vrot.slane %v1377_v16, 2  ;;  %v1394_v45 = vrot.slane %v1393_v35, 1  ;;  %v1401_v31 = vrot.slane %v1400_v9, 1 }
 0xb0c   :  { %v1372_v49 = vadd.f32 %v1371_v13, %v1370_v1 }
 0xb0d   :  { %v1379_v2 = vadd.f32 %v1378_v37, %v1377_v16  ;;  %v1395_v4 = vadd.f32 %v1394_v45, %v1393_v35  ;;  %v1402_v40 = vadd.f32 %v1401_v31, %v1400_v9  ;;  %v1422_v45 = vpop.permute.xlu1 %1421 }
 0xb0e   :  { %v1373_v32 = vrot.slane %v1372_v49, 1 }
 0xb0f   :  { %v1380_v12 = vrot.slane %v1379_v2, 1 }
 0xb10   :  { %v1374_v58 = vadd.f32 %v1373_v32, %v1372_v49 }
 0xb11   :  { %v1381_v23 = vadd.f32 %v1380_v12, %v1379_v2 }
 0xb12   :  { %v1403_v5 = vadd.f32 %v1395_v4, %v1374_v58 }
 0xb13   :  { %v1404_v61 = vadd.f32 %v1402_v40, %v1381_v23  ;;  %v1327_v40 = vsel %vm7541_vm8, %v7476_v19, -1e+30 }
 0xb14   :  { %v1405_v48 = vadd.f32 %v1403_v5, %v1250_v52  ;;  %v1328_v23 = vsel %vm967_vm12, %v1327_v40, -inf  ;;  %v1114_v52 = vsel %vm9622_vm1, %v7355_v56, 0 }
 0xb15   :  { %v1406_v20 = vadd.f32 %v1404_v61, %v1319_v41 }
 0xb16   :  { %v4703_v53 = vmul.f32 -1.442695, %v1405_v48  ;;  %v9732_v48 = vmov 4294967295  }
 0xb18   :  { %6136 = vpow2.f32 %v4703_v53 }
 0xb22   :  { %v6137_v1 = vpop.eup %6136 }
 0xb23   :  { %v1410_v37 = vadd.f32 1.0, %v6137_v1 }
 0xb25   :  { %6138 = vrcp.f32 %v1410_v37 }
 0xb26   :  { %6140 = vtanh.f32 %v1406_v20 }
 0xb2f   :  { %v6139_v13 = vpop.eup %6138 }
 0xb30   :  { %v1415_v35 = vmul.f32 %v6139_v13, %v7421_v7  ;;  %v1424_v21 = vmul.f32 %v6139_v13, %v1422_v45  ;;  %v6141_v7 = vpop.eup %6140 }
 0xb31   :  { %v1414_v47 = vmul.f32 %v6141_v7, %v6139_v13 }
 0xb32   :  { %1417 = vrot.lane.b32.xlu0 %v1415_v35, %s6350_s29  ;;  %1426 = vrot.lane.b32.xlu1 %v1424_v21, %s6348_s19 }
 0xb56   :  { %1329 = vmax.xlane.f32.xlu1 %v1328_v23 }
 0xba4   :  { %v1418_v24 = vpop.permute.xlu0 %1417  ;;  %v1427_v4 = vpop.permute.xlu1 %1426 }
 0xba5   :  { %v1420_v58 = vadd.f32 %v1418_v24, %v1414_v47  ;;  %v7601_v47 = vld [vmem:[%s9546_s9] sm:$0x1] }
 0xba7   :  { %v1429_v42 = vadd.f32 %v1427_v4, %v1420_v58 }
 0xba9   :  { %6142 = vtanh.f32 %v1429_v42 }
 0xbb3   :  { %v6143_v25 = vpop.eup %6142 }
 0xbb4   :  { %1432 = vrot.lane.b32.xlu0 %v6143_v25, %s6350_s29 }
 0xbe3   :  { %v1330_v9 = vpop.xlane.xlu1 %1329 }
 0xbe4   :  { %vm1331_vm14 = vcmp.ge.f32.partialorder %v1327_v40, %v1330_v9 }
 0xbe5   :  { %vm1332_vm13 = vmand %vm7541_vm8, %vm1331_vm14 }
 0xbe6   :  { %v1333_v19 = vsel %vm1332_vm13, %v7268_v46, 1e+09 }
 0xbe7   :  { %v1334_v16 = vsel %vm967_vm12, %v1333_v19, inf }
 0xbe8   :  { %1335 = vmin.xlane.f32.xlu0 %v1334_v16 }
 0xbfe   :  { %1441 = vrot.lane.b32.xlu0 %v1429_v42, %s6349_s11 }
 0xc26   :  { %v1433_v49 = vpop.permute.xlu0 %1432 }
 0xc27   :  { %v1435_v31 = vmul.f32 %v6139_v13, %v1433_v49 }
 0xc29   :  { %1437 = vrot.lane.b32.xlu1 %v1435_v31, %s6349_s11 }
 0xc75   :  { %v1336_v2 = vpop.xlane.xlu0 %1335 }
 0xc76   :  { %v5999_v32 = vtrunc.f32 %v1336_v2 }
 0xc78   :  { %v6000_v12 = vcvt.f32.s32 %v5999_v32 }
 0xc79   :  { %v1442_v25 = vpop.permute.xlu0 %1441 }
 0xc7a   :  { %vm1445_vm6 = vcmp.eq.s32.totalorder %v6000_v12, 0  ;;  %v7561_v41 = vsel %vm9623_vm15, %v6000_v12, %v1114_v52 }
 0xc7b   :  { %v1446_v61 = vsel %vm1445_vm6, 1, %v9709_v39  ;;  %v1460_v20 = vsel %vm1445_vm6, 1, %v9732_v48  ;;  %v1449_v58 = vsel %vm1445_vm6, %v7381_v29, %v7410_v55 }
 0xc7c   :  { %v7568_v53 = vadd.s32 %v1460_v20, %v7381_v29  ;;  %v7571_v1 = vadd.s32 %v1446_v61, %v7361_v11  ;;  %v1453_v42 = vrot.slane %v1449_v58, %v6849_v8 }
 0xc7e   :  { %v1510_v56 = vrot.slane %v7571_v1, %v6849_v8  ;;  %vm1506_vm8 = vcmp.lt.s32.totalorder %v7571_v1, 6  ;;  %vm1470_vm4 = vcmp.ge.s32.totalorder %v7568_v53, 2  ;;  %v4705_v4 = vadd.s32 4294967295, %v7568_v53 }
 0xc7f   :  { %vm7579_vm0 = vmand %vm9622_vm1, %vm1506_vm8 }
 0xc80   :  { %vm1511_vm14 = vcmp.eq.s32.totalorder %v6824_v59, %v1510_v56  ;;  %vm7588_vm13 = vmand %vm9623_vm15, %vm1470_vm4  ;;  %v1493_v19 = vrot.slane %v4705_v4, %v6849_v8  ;;  %vm1454_vm15 = vcmp.eq.s32.totalorder %v6824_v59, %v1453_v42 }
 0xc81   :  { %v1512_v13 = vsel %vm1511_vm14, %v7168_v17, 0.0  ;;  %vm1674_vm1 = vmor %vm7579_vm0, %vm7588_vm13  ;;  %vm9737_vm14 = vcmp.eq.s32.totalorder %v6824_v59, 0  ;;  %vm1812_vm0 = vcmp.eq.s32.totalorder %v9722_v44, 2 }
 0xc82   :  { %v1513_v45 = vsel %vm698_vm3, %v1512_v13, 0.0  ;;  %v1118_v29 = vsel %vm9737_vm14, %v7393_v6, 0.0  ;;  %vm1494_vm7 = vcmp.eq.s32.totalorder %v6824_v59, %v1493_v19  ;;  %v9738_v19 = vld [vmem:[#allocation18_spill] sm:$0xff] }
 0xc83   :  { %v1514_v35 = vrot.slane %v1513_v45, 4 }
 0xc85   :  { %v1515_v21 = vadd.f32 %v1514_v35, %v1513_v45 }
 0xc87   :  { %v1516_v5 = vrot.slane %v1515_v21, 2 }
 0xc89   :  { %v1517_v40 = vadd.f32 %v1516_v5, %v1515_v21 }
 0xc8b   :  { %v1518_v23 = vrot.slane %v1517_v40, 1 }
 0xc8d   :  { %v1519_v7 = vadd.f32 %v1518_v23, %v1517_v40 }
 0xc8f   :  { %v7604_v24 = vsel %vm1506_vm8, %v1519_v7, %v7601_v47  ;;  %vm1466_vm8 = vcmp.eq.s32.totalorder %v6824_v59, 1 }
 0xc90   :  { %4706 = vmatprep.mubr.msk.f32.mxu1 %vm799_vm5, %v7604_v24  ;;  %4707 = vmatprep.mubr.msk.f32.mxu0 %vm799_vm5, %v7604_v24 }
 0xc9b   :  { %v1438_v9 = vpop.permute.xlu1 %1437 }
 0xc9c   :  { %v1444_v16 = vsel %vm1022_vm9, %v1438_v9, %v1442_v25 }
 0xc9d   :  { %v1448_v49 = vsel %vm1445_vm6, %v7372_v18, %v1444_v16  ;;  %vm1488_vm6 = vcmp.ge.s32.totalorder %v7568_v53, 1  ;;  %v9739_v16 = vld [vmem:[#allocation23_spill] sm:$0xff] }
 0xc9e   :  { %v1458_v31 = vrot.slane %v1448_v49, %v6849_v8  ;;  %v9740_v49 = vld [vmem:[#allocation19_spill] sm:$0xff] }
 0xca0   :  { %v7627_v55 = vsel %vm1454_vm15, %v1458_v31, %v7398_v34  ;;  %v7629_v2 = vsel %vm1466_vm8, %v1458_v31, %v1118_v29  ;;  %v7640_v34 = vadd.s32 4294967294, %v7568_v53  ;;  %v9741_v31 = vld [vmem:[#allocation20_spill] sm:$0xff] }
 0xca1   :  { %v1495_v32 = vsel %vm1494_vm7, %v7627_v55, 0.0  ;;  %v9742_v29 = vld [vmem:[#allocation24_spill] sm:$0xff] }
 0xca2   :  { %v1496_v12 = vsel %vm698_vm3, %v1495_v32, 0.0  ;;  %v1475_v45 = vrot.slane %v7640_v34, %v6849_v8  ;;  %v9743_v32 = vld [vmem:[#allocation25_spill] sm:$0xff] }
 0xca3   :  { %v1497_v18 = vrot.slane %v1496_v12, 4 }
 0xca4   :  { %vm1476_vm7 = vcmp.eq.s32.totalorder %v6824_v59, %v1475_v45  ;;  %v9751_v45 = vld [vmem:[#allocation33_spill] sm:$0xff] }
 0xca5   :  { %v1498_v52 = vadd.f32 %v1497_v18, %v1496_v12  ;;  %v1477_v35 = vsel %vm1476_vm7, %v7627_v55, 0.0  ;;  %v9744_v12 = vld [vmem:[#allocation26_spill] sm:$0xff]  ;;  %v9745_v18 = vld [vmem:[#allocation27_spill] sm:$0xff]  ;;  %vm9769_vm7 = vcmask 1042432  }
 0xca6   :  { %v1478_v21 = vsel %vm698_vm3, %v1477_v35, 0.0  ;;  %v9752_v35 = vld [vmem:[#allocation34_spill] sm:$0xff] }
 0xca7   :  { %v1499_v61 = vrot.slane %v1498_v52, 2  ;;  %v1479_v5 = vrot.slane %v1478_v21, 4 }
 0xca9   :  { %v1500_v20 = vadd.f32 %v1499_v61, %v1498_v52  ;;  %v1480_v40 = vadd.f32 %v1479_v5, %v1478_v21  ;;  %v9746_v52 = vld [vmem:[#allocation28_spill] sm:$0xff]  ;;  %v9747_v61 = vld [vmem:[#allocation29_spill] sm:$0xff]  ;;  %v9753_v21 = vld [vmem:[#allocation35_spill] sm:$0xff] }
 0xcaa   :  { %v9754_v5 = vld [vmem:[#allocation36_spill] sm:$0xff] }
 0xcab   :  { %v1501_v56 = vrot.slane %v1500_v20, 1  ;;  %v1481_v23 = vrot.slane %v1480_v40, 2 }
 0xcad   :  { %v1502_v13 = vadd.f32 %v1501_v56, %v1500_v20  ;;  %v1482_v7 = vadd.f32 %v1481_v23, %v1480_v40  ;;  %v9748_v20 = vld [vmem:[#allocation30_spill] sm:$0xff]  ;;  %v9749_v56 = vld [vmem:[#allocation31_spill] sm:$0xff] }
 0xcae   :  { %v9755_v40 = vld [vmem:[#allocation14_spill] sm:$0xff] }
 0xcaf   :  { %v7635_v6 = vsel %vm1488_vm6, %v1502_v13, %v7601_v47  ;;  %v1483_v58 = vrot.slane %v1482_v7, 1  ;;  %v9750_v13 = vld [vmem:[#allocation32_spill] sm:$0xff]  ;;  %vm7730_vm6 = vmand %vm9663_vm2, %vm1674_vm1 }
 0xcb0   :  { %1524 = vrot.lane.b32.xlu1 %v7635_v6, %s6348_s19 }
 0xcb1   :  { %v1484_v4 = vadd.f32 %v1483_v58, %v1482_v7  ;;  %v9756_v58 = vld [vmem:[#allocation38_spill] sm:$0xff] }
 0xcb3   :  { %v7650_v25 = vsel %vm1470_vm4, %v1484_v4, %v7601_v47 }
 0xd22   :  { %v1525_v42 = vpop.permute.xlu1 %1524 }
 0xd23   :  { %v1527_v9 = vsel %vm799_vm5, %v7650_v25, %v1525_v42 }
 0xd24   :  { %1596 = vmatmul.mubr.f32.vlgmr.msra.gmra.mrb[8].mxu1 %v1527_v9  ;;  %1667 = vmatmul.mubr.f32.vlgmr.msra.gmra.mrb[18].mxu0 %v1527_v9 }
 0xd25   :  { %5324 = vmatpush1.bf16.msra.mxu1 %v6826_v60  ;;  %5371 = vmatpush1.bf16.msra.mxu0 %v6976_v50 }
 0xd26   :  { %5326 = vmatprep.subr.bf16.mxu1 %v6840_v3  ;;  %5372 = vmatprep.subr.bf16.mxu0 %v9710_v51 }
 0xd29   :  { %5328 = vmatpush1.bf16.msra.mxu1 %v6852_v26  ;;  %5374 = vmatpush1.bf16.msra.mxu0 %v6986_v54 }
 0xd2a   :  { %5330 = vmatprep.subr.bf16.mxu1 %v6865_v15  ;;  %5375 = vmatprep.subr.bf16.mxu0 %v9710_v51 }
 0xd2d   :  { %5332 = vmatpush1.bf16.msra.mxu1 %v6876_v28  ;;  %5377 = vmatpush1.bf16.msra.mxu0 %v6996_v57 }
 0xd2e   :  { %5334 = vmatprep.subr.bf16.mxu1 %v6885_v22  ;;  %5378 = vmatprep.subr.bf16.mxu0 %v9710_v51 }
 0xd31   :  { %5336 = vmatpush1.bf16.msra.mxu1 %v6894_v30  ;;  %5380 = vmatpush1.bf16.msra.mxu0 %v7006_v0 }
 0xd32   :  { %5338 = vmatprep.subr.bf16.mxu1 %v6903_v63  ;;  %5381 = vmatprep.subr.bf16.mxu0 %v9710_v51 }
 0xd35   :  { %5340 = vmatpush1.bf16.msra.mxu1 %v6912_v33  ;;  %5383 = vmatpush1.bf16.msra.mxu0 %v7016_v10 }
 0xd36   :  { %5342 = vmatprep.subr.bf16.mxu1 %v6921_v36  ;;  %5384 = vmatprep.subr.bf16.mxu0 %v9710_v51 }
 0xd39   :  { %5344 = vmatpush1.bf16.msra.mxu1 %v6930_v14  ;;  %5386 = vmatpush1.bf16.msra.mxu0 %v7026_v27 }
 0xd3a   :  { %5346 = vmatprep.subr.bf16.mxu1 %v6939_v38  ;;  %5387 = vmatprep.subr.bf16.mxu0 %v9710_v51 }
 0xd3d   :  { %5348 = vmatpush1.bf16.msra.mxu1 %v9738_v19  ;;  %5389 = vmatpush1.bf16.msra.mxu0 %v9739_v16 }
 0xd3e   :  { %5350 = vmatprep.subr.bf16.mxu1 %v9740_v49  ;;  %5390 = vmatprep.subr.bf16.mxu0 %v9710_v51 }
 0xd41   :  { %5352 = vmatpush1.bf16.msra.mxu1 %v9741_v31  ;;  %5392 = vmatpush1.bf16.msra.mxu0 %v9742_v29 }
 0xd42   :  { %5354 = vmatprep.subr.bf16.mxu1 %v9743_v32  ;;  %5393 = vmatprep.subr.bf16.mxu0 %v9710_v51 }
 0xd45   :  { %5356 = vmatpush1.bf16.msra.mxu1 %v9744_v12  ;;  %5395 = vmatpush1.bf16.msra.mxu0 %v9745_v18 }
 0xd46   :  { %5358 = vmatprep.subr.bf16.mxu1 %v9746_v52  ;;  %5396 = vmatprep.subr.bf16.mxu0 %v9710_v51  ;;  %v9768_v52 = vld [vmem:[#allocation46_spill] sm:$0xff] }
 0xd49   :  { %5360 = vmatpush1.bf16.msra.mxu1 %v9747_v61  ;;  %5398 = vmatpush1.bf16.msra.mxu0 %v9748_v20 }
 0xd4a   :  { %5362 = vmatprep.subr.bf16.mxu1 %v9749_v56  ;;  %5399 = vmatprep.subr.bf16.mxu0 %v9710_v51 }
 0xd4d   :  { %5364 = vmatpush1.bf16.msra.mxu1 %v9750_v13  ;;  %5401 = vmatpush1.bf16.msra.mxu0 %v9751_v45  ;;  %v9761_v13 = vld [vmem:[#allocation42_spill] sm:$0xff] }
 0xd4e   :  { %5366 = vmatprep.subr.bf16.mxu1 %v9752_v35  ;;  %5402 = vmatprep.subr.bf16.mxu0 %v9710_v51 }
 0xd51   :  { %5368 = vmatpush1.bf16.msra.mxu1 %v9753_v21  ;;  %5404 = vmatpush1.bf16.msra.mxu0 %v9754_v5 }
 0xd52   :  { %5406 = vmatprep.subr.bf16.mxu1 %v9755_v40  ;;  %5453 = vmatprep.subr.bf16.mxu0 %v9710_v51 }
 0xdf7   :  { %v1597_v23 = vpop.f32.mrb[8].mxu1  ;;  %v7702_v7 = vpop.f32.mrb[18].mxu0 }
 0xdf8   :  { %v1598_v4 = vadd.f32 %v1597_v23, %v9756_v58  ;;  %v7705_v42 = vpop.f32.mrb[9].mxu1  ;;  %v1670_v9 = vpop.f32.mrb[19].mxu0 }
 0xdfa   :  { %v1699_v35 = vsel %vm7248_vm10, %v1598_v4, -1e+30  ;;  %v1687_v21 = vsel %vm7254_vm11, %v1598_v4, -1e+30 }
 0xdfb   :  { %v1700_v5 = vsel %vm967_vm12, %v1699_v35, -inf  ;;  %v1688_v40 = vsel %vm967_vm12, %v1687_v21, -inf }
 0xdfc   :  { %1701 = vmax.xlane.f32.xlu1 %v1700_v5  ;;  %1689 = vmax.xlane.f32.xlu0 %v1688_v40 }
 0xe89   :  { %v1702_v56 = vpop.xlane.xlu1 %1701  ;;  %v1690_v20 = vpop.xlane.xlu0 %1689 }
 0xe8a   :  { %vm1703_vm15 = vcmp.ge.f32.partialorder %v1699_v35, %v1702_v56  ;;  %vm1691_vm4 = vcmp.ge.f32.partialorder %v1687_v21, %v1690_v20  ;;  %v7736_v56 = vsel %vm7730_vm6, %v1598_v4, -1e+30 }
 0xe8b   :  { %vm1704_vm8 = vmand %vm7248_vm10, %vm1703_vm15  ;;  %v1677_v35 = vsel %vm967_vm12, %v7736_v56, -inf  ;;  %vm9770_vm15 = vcmask 256000  }
 0xe8c   :  { %v1705_v23 = vsel %vm1704_vm8, %v7268_v46, 1e+09  ;;  %vm1692_vm14 = vmand %vm7254_vm11, %vm1691_vm4 }
 0xe8d   :  { %v1706_v9 = vsel %vm967_vm12, %v1705_v23, inf  ;;  %v1693_v58 = vsel %vm1692_vm14, %v7268_v46, 1e+09 }
 0xe8e   :  { %1707 = vmin.xlane.f32.xlu0 %v1706_v9  ;;  %v1694_v5 = vsel %vm967_vm12, %v1693_v58, inf }
 0xe8f   :  { %1695 = vmin.xlane.f32.xlu1 %v1694_v5 }
 0xea4   :  { %1770 = vrot.lane.b32.xlu0 %v7635_v6, %s6349_s11 }
 0xec3   :  { %1678 = vmax.xlane.f32.xlu0 %v1677_v35  ;;  %v9763_v35 = vld [vmem:[#allocation37_spill] sm:$0xff] }
 0xf1b   :  { %v1708_v6 = vpop.xlane.xlu0 %1707 }
 0xf1c   :  { %v1696_v21 = vpop.xlane.xlu1 %1695  ;;  %v6009_v37 = vtrunc.f32 %v1708_v6 }
 0xf1d   :  { %v6007_v40 = vtrunc.f32 %v1696_v21  ;;  %v9765_v21 = vld [vmem:[#allocation41_spill] sm:$0xff] }
 0xf1e   :  { %v6010_v11 = vcvt.f32.s32 %v6009_v37 }
 0xf1f   :  { %v6008_v58 = vcvt.f32.s32 %v6007_v40  ;;  %v9766_v40 = vld [vmem:[#allocation44_spill] sm:$0xff] }
 0xf20   :  { %v4709_v23 = vadd.s32 4294967286, %v6010_v11 }
 0xf21   :  { %v4708_v9 = vadd.s32 4294967294, %v6008_v58  ;;  %v9767_v58 = vld [vmem:[#allocation45_spill] sm:$0xff] }
 0xf22   :  { %v1734_v5 = vrot.slane %v4709_v23, %v6849_v8  ;;  %v7745_v4 = vsel %vm1812_vm0, %v4709_v23, %v9761_v13 }
 0xf23   :  { %9762 = vst [vmem:[#allocation43_spill] sm:$0xff] %v7745_v4  ;;  %v1714_v45 = vrot.slane %v4708_v9, %v6849_v8  ;;  %v7751_v6 = vsel %vm1812_vm0, %v4708_v9, %v9763_v35 }
 0xf24   :  { %9764 = vst [vmem:[#allocation42_spill] sm:$0xff] %v7751_v6  ;;  %vm1735_vm1 = vcmp.eq.s32.totalorder %v6824_v59, %v1734_v5 }
 0xf25   :  { %vm1715_vm13 = vcmp.eq.s32.totalorder %v6824_v59, %v1714_v45  ;;  %v1736_v37 = vsel %vm1735_vm1, %v9765_v21, 0.0  ;;  %v1737_v11 = vsel %vm1735_vm1, %v9766_v40, 0.0  ;;  %vm9771_vm1 = vcmp.eq.s32.totalorder %v9722_v44, 0 }
 0xf26   :  { %v1716_v61 = vsel %vm1715_vm13, %v9767_v58, 0.0  ;;  %v1717_v13 = vsel %vm1715_vm13, %v9768_v52, 0.0  ;;  %v1738_v23 = vsel %vm9769_vm7, %v1736_v37, 0.0  ;;  %v1745_v4 = vsel %vm9770_vm15, %v1737_v11, 0.0 }
 0xf27   :  { %v1718_v18 = vrot.slane %v1716_v61, 4  ;;  %v1724_v9 = vsel %vm1022_vm9, %v1717_v13, 0.0  ;;  %v1739_v35 = vrot.slane %v1738_v23, 4  ;;  %v1746_v6 = vrot.slane %v1745_v4, 4 }
 0xf28   :  { %v1725_v5 = vrot.slane %v1724_v9, 4  ;;  %vm9774_vm15 = vcmp.eq.s32.totalorder %v9722_v44, 1 }
 0xf29   :  { %v1719_v12 = vadd.f32 %v1718_v18, %v1716_v61  ;;  %v1740_v45 = vadd.f32 %v1739_v35, %v1738_v23  ;;  %v1747_v32 = vadd.f32 %v1746_v6, %v1745_v4  ;;  %v1600_v18 = vadd.f32 %v7705_v42, %v7335_v43 }
 0xf2a   :  { %v1726_v21 = vadd.f32 %v1725_v5, %v1724_v9  ;;  %v1669_v4 = vadd.f32 %v7702_v7, %v7338_v62 }
 0xf2b   :  { %v1720_v29 = vrot.slane %v1719_v12, 2  ;;  %v1741_v40 = vrot.slane %v1740_v45, 2  ;;  %v1748_v31 = vrot.slane %v1747_v32, 2 }
 0xf2c   :  { %v1727_v58 = vrot.slane %v1726_v21, 2 }
 0xf2d   :  { %v1721_v49 = vadd.f32 %v1720_v29, %v1719_v12  ;;  %v1742_v52 = vadd.f32 %v1741_v40, %v1740_v45  ;;  %v1749_v16 = vadd.f32 %v1748_v31, %v1747_v32 }
 0xf2e   :  { %v1728_v37 = vadd.f32 %v1727_v58, %v1726_v21 }
 0xf2f   :  { %v1722_v19 = vrot.slane %v1721_v49, 1  ;;  %v1743_v11 = vrot.slane %v1742_v52, 1  ;;  %v1750_v38 = vrot.slane %v1749_v16, 1 }
 0xf30   :  { %v1729_v27 = vrot.slane %v1728_v37, 1 }
 0xf31   :  { %v1723_v13 = vadd.f32 %v1722_v19, %v1721_v49  ;;  %v1744_v14 = vadd.f32 %v1743_v11, %v1742_v52  ;;  %v1751_v36 = vadd.f32 %v1750_v38, %v1749_v16  ;;  %v1771_v38 = vpop.permute.xlu0 %1770 }
 0xf32   :  { %v1730_v10 = vadd.f32 %v1729_v27, %v1728_v37 }
 0xf33   :  { %v1752_v61 = vadd.f32 %v1744_v14, %v1723_v13 }
 0xf34   :  { %v1753_v6 = vadd.f32 %v1751_v36, %v1730_v10 }
 0xf35   :  { %v1754_v29 = vadd.f32 %v1752_v61, %v1600_v18 }
 0xf36   :  { %v1755_v12 = vadd.f32 %v1753_v6, %v1669_v4 }
 0xf37   :  { %v4710_v31 = vmul.f32 -1.442695, %v1754_v29 }
 0xf39   :  { %6144 = vpow2.f32 %v4710_v31 }
 0xf43   :  { %v6145_v32 = vpop.eup %6144 }
 0xf44   :  { %v1759_v40 = vadd.f32 1.0, %v6145_v32 }
 0xf46   :  { %6146 = vrcp.f32 %v1759_v40 }
 0xf47   :  { %6148 = vtanh.f32 %v1755_v12 }
 0xf50   :  { %v6147_v23 = vpop.eup %6146  ;;  %v1679_v9 = vpop.xlane.xlu0 %1678 }
 0xf51   :  { %v1764_v19 = vmul.f32 %v6147_v23, %v7650_v25  ;;  %v1773_v27 = vmul.f32 %v6147_v23, %v1771_v38  ;;  %v6149_v14 = vpop.eup %6148  ;;  %vm1680_vm4 = vcmp.ge.f32.partialorder %v7736_v56, %v1679_v9 }
 0xf52   :  { %v1763_v36 = vmul.f32 %v6149_v14, %v6147_v23  ;;  %vm1681_vm8 = vmand %vm7730_vm6, %vm1680_vm4 }
 0xf53   :  { %1766 = vrot.lane.b32.xlu1 %v1764_v19, %s6350_s29  ;;  %v1682_v25 = vsel %vm1681_vm8, %v7268_v46, 1e+09 }
 0xf54   :  { %v1683_v35 = vsel %vm967_vm12, %v1682_v25, inf }
 0xf57   :  { %1775 = vrot.lane.b32.xlu1 %v1773_v27, %s6348_s19 }
 0xfc5   :  { %v1767_v16 = vpop.permute.xlu1 %1766 }
 0xfc6   :  { %v1769_v10 = vadd.f32 %v1767_v16, %v1763_v36 }
 0xfc9   :  { %v1776_v49 = vpop.permute.xlu1 %1775 }
 0xfca   :  { %v1778_v7 = vadd.f32 %v1776_v49, %v1769_v10 }
 0xfcc   :  { %6150 = vtanh.f32 %v1778_v7 }
 0xfd6   :  { %v6151_v42 = vpop.eup %6150 }
 0xfd7   :  { %1781 = vrot.lane.b32.xlu1 %v6151_v42, %s6350_s29 }
 0xffb   :  { %1684 = vmin.xlane.f32.xlu1 %v1683_v35 }
0x100c   :  { %1790 = vrot.lane.b32.xlu1 %v1778_v7, %s6349_s11 }
0x1049   :  { %v1782_v5 = vpop.permute.xlu1 %1781 }
0x104a   :  { %v1784_v45 = vmul.f32 %v6147_v23, %v1782_v5 }
0x104c   :  { %1786 = vrot.lane.b32.xlu0 %v1784_v45, %s6349_s11 }
0x1088   :  { %v1685_v21 = vpop.xlane.xlu1 %1684 }
0x1089   :  { %v6005_v58 = vtrunc.f32 %v1685_v21 }
0x108b   :  { %v6006_v52 = vcvt.f32.s32 %v6005_v58 }
0x108c   :  { %v1791_v14 = vpop.permute.xlu1 %1790 }
0x108d   :  { %vm1794_vm14 = vcmp.eq.s32.totalorder %v6006_v52, 0  ;;  %v7780_v20 = vsel %vm1812_vm0, %v6006_v52, %v7561_v41 }
0x108e   :  { %v1795_v56 = vsel %vm1794_vm14, 1, %v9709_v39  ;;  %v1809_v37 = vsel %vm1794_vm14, 1, %v9732_v48  ;;  %v1798_v19 = vsel %vm1794_vm14, %v7568_v53, %v7640_v34 }
0x108f   :  { %v7787_v11 = vadd.s32 %v1809_v37, %v7568_v53  ;;  %v7790_v13 = vadd.s32 %v1795_v56, %v7571_v1  ;;  %v1802_v27 = vrot.slane %v1798_v19, %v6849_v8  ;;  %v9778_v19 = vld [vmem:[#allocation15_spill] sm:$0xff] }
0x1091   :  { %v1860_v18 = vrot.slane %v7790_v13, %v6849_v8  ;;  %vm1856_vm6 = vcmp.lt.s32.totalorder %v7790_v13, 6  ;;  %vm1820_vm0 = vcmp.ge.s32.totalorder %v7787_v11, 2  ;;  %v4712_v38 = vadd.s32 4294967295, %v7787_v11 }
0x1092   :  { %vm7798_vm13 = vmand %vm9771_vm1, %vm1856_vm6  ;;  %vm1803_vm1 = vcmp.eq.s32.totalorder %v6824_v59, %v1802_v27  ;;  %v9780_v27 = vld [vmem:[#allocation22_spill] sm:$0xff] }
0x1093   :  { %vm1861_vm7 = vcmp.eq.s32.totalorder %v6824_v59, %v1860_v18  ;;  %vm7807_vm4 = vmand %vm9774_vm15, %vm1820_vm0  ;;  %v1843_v36 = vrot.slane %v4712_v38, %v6849_v8  ;;  %v9779_v38 = vld [vmem:[#allocation16_spill] sm:$0xff] }
0x1094   :  { %v1862_v61 = vsel %vm1861_vm7, %v7168_v17, 0.0  ;;  %vm2024_vm8 = vmor %vm7798_vm13, %vm7807_vm4 }
0x1095   :  { %v1863_v4 = vsel %vm698_vm3, %v1862_v61, 0.0  ;;  %vm1844_vm7 = vcmp.eq.s32.totalorder %v6824_v59, %v1843_v36  ;;  %v9783_v36 = vld [vmem:[#allocation23_spill] sm:$0xff] }
0x1096   :  { %v1864_v6 = vrot.slane %v1863_v4, 4 }
0x1098   :  { %v1865_v29 = vadd.f32 %v1864_v6, %v1863_v4 }
0x109a   :  { %v1866_v12 = vrot.slane %v1865_v29, 2 }
0x109c   :  { %v1867_v31 = vadd.f32 %v1866_v12, %v1865_v29 }
0x109e   :  { %v1868_v32 = vrot.slane %v1867_v31, 1 }
0x10a0   :  { %v1869_v40 = vadd.f32 %v1868_v32, %v1867_v31 }
0x10a2   :  { %v7818_v23 = vsel %vm1856_vm6, %v1869_v40, %v7601_v47  ;;  %vm1816_vm6 = vcmp.eq.s32.totalorder %v6824_v59, 2  ;;  %v9777_v40 = vld [vmem:[#allocation21_spill] sm:$0xff] }
0x10a3   :  { %4713 = vmatprep.mubr.msk.f32.mxu1 %vm799_vm5, %v7818_v23  ;;  %4714 = vmatprep.mubr.msk.f32.mxu0 %vm799_vm5, %v7818_v23 }
0x10be   :  { %v1787_v16 = vpop.permute.xlu0 %1786 }
0x10bf   :  { %v1793_v10 = vsel %vm1022_vm9, %v1787_v16, %v1791_v14  ;;  %v9781_v14 = vld [vmem:[#allocation17_spill] sm:$0xff]  ;;  %v9782_v16 = vld [vmem:[#allocation18_spill] sm:$0xff] }
0x10c0   :  { %v1797_v49 = vsel %vm1794_vm14, %v7604_v24, %v1793_v10  ;;  %vm1838_vm14 = vcmp.ge.s32.totalorder %v7787_v11, 1  ;;  %v9784_v10 = vld [vmem:[#allocation19_spill] sm:$0xff] }
0x10c1   :  { %v1807_v7 = vrot.slane %v1797_v49, %v6849_v8  ;;  %v9785_v49 = vld [vmem:[#allocation20_spill] sm:$0xff] }
0x10c3   :  { %v7838_v53 = vsel %vm1803_vm1, %v1807_v7, %v7627_v55  ;;  %v7841_v34 = vsel %vm1816_vm6, %v1807_v7, %v7629_v2  ;;  %v7852_v55 = vadd.s32 4294967294, %v7787_v11  ;;  %v9786_v7 = vld [vmem:[#allocation24_spill] sm:$0xff] }
0x10c4   :  { %v1845_v42 = vsel %vm1844_vm7, %v7838_v53, 0.0 }
0x10c5   :  { %v1846_v9 = vsel %vm698_vm3, %v1845_v42, 0.0  ;;  %v1825_v2 = vrot.slane %v7852_v55, %v6849_v8  ;;  %v9787_v42 = vld [vmem:[#allocation25_spill] sm:$0xff] }
0x10c6   :  { %v1847_v25 = vrot.slane %v1846_v9, 4 }
0x10c7   :  { %vm1826_vm15 = vcmp.eq.s32.totalorder %v6824_v59, %v1825_v2  ;;  %v9795_v2 = vld [vmem:[#allocation33_spill] sm:$0xff] }
0x10c8   :  { %v1848_v35 = vadd.f32 %v1847_v25, %v1846_v9  ;;  %v1827_v52 = vsel %vm1826_vm15, %v7838_v53, 0.0  ;;  %v9788_v9 = vld [vmem:[#allocation26_spill] sm:$0xff]  ;;  %v9789_v25 = vld [vmem:[#allocation27_spill] sm:$0xff] }
0x10c9   :  { %v1828_v56 = vsel %vm698_vm3, %v1827_v52, 0.0  ;;  %v9796_v52 = vld [vmem:[#allocation34_spill] sm:$0xff] }
0x10ca   :  { %v1849_v5 = vrot.slane %v1848_v35, 2  ;;  %v1829_v37 = vrot.slane %v1828_v56, 4 }
0x10cc   :  { %v1850_v24 = vadd.f32 %v1849_v5, %v1848_v35  ;;  %v1830_v18 = vadd.f32 %v1829_v37, %v1828_v56  ;;  %v9790_v35 = vld [vmem:[#allocation28_spill] sm:$0xff]  ;;  %v9791_v5 = vld [vmem:[#allocation29_spill] sm:$0xff]  ;;  %v9797_v56 = vld [vmem:[#allocation35_spill] sm:$0xff] }
0x10cd   :  { %v9798_v37 = vld [vmem:[#allocation36_spill] sm:$0xff] }
0x10ce   :  { %v1851_v45 = vrot.slane %v1850_v24, 1  ;;  %v1831_v61 = vrot.slane %v1830_v18, 2 }
0x10d0   :  { %v1852_v21 = vadd.f32 %v1851_v45, %v1850_v24  ;;  %v1832_v4 = vadd.f32 %v1831_v61, %v1830_v18  ;;  %v9792_v24 = vld [vmem:[#allocation30_spill] sm:$0xff]  ;;  %v9793_v45 = vld [vmem:[#allocation31_spill] sm:$0xff] }
0x10d1   :  { %v9799_v18 = vld [vmem:[#allocation14_spill] sm:$0xff] }
0x10d2   :  { %v7847_v58 = vsel %vm1838_vm14, %v1852_v21, %v7601_v47  ;;  %v1833_v6 = vrot.slane %v1832_v4, 1  ;;  %v9794_v21 = vld [vmem:[#allocation32_spill] sm:$0xff]  ;;  %vm2162_vm14 = vcmp.eq.s32.totalorder %v9722_v44, 3 }
0x10d3   :  { %1874 = vrot.lane.b32.xlu0 %v7847_v58, %s6348_s19 }
0x10d4   :  { %v1834_v29 = vadd.f32 %v1833_v6, %v1832_v4  ;;  %v9800_v6 = vld [vmem:[#allocation38_spill] sm:$0xff] }
0x10d6   :  { %v7862_v31 = vsel %vm1820_vm0, %v1834_v29, %v7601_v47 }
0x1145   :  { %v1875_v12 = vpop.permute.xlu0 %1874 }
0x1146   :  { %v1877_v32 = vsel %vm799_vm5, %v7862_v31, %v1875_v12 }
0x1147   :  { %1946 = vmatmul.mubr.f32.vlgmr.msra.gmra.mrb[10].mxu1 %v1877_v32  ;;  %2017 = vmatmul.mubr.f32.vlgmr.msra.gmra.mrb[20].mxu0 %v1877_v32 }
0x1148   :  { %5408 = vmatpush1.bf16.msra.mxu1 %v6826_v60  ;;  %5455 = vmatpush1.bf16.msra.mxu0 %v6976_v50 }
0x1149   :  { %5410 = vmatprep.subr.bf16.mxu1 %v6840_v3  ;;  %5456 = vmatprep.subr.bf16.mxu0 %v9710_v51 }
0x114c   :  { %5412 = vmatpush1.bf16.msra.mxu1 %v6852_v26  ;;  %5458 = vmatpush1.bf16.msra.mxu0 %v6986_v54 }
0x114d   :  { %5414 = vmatprep.subr.bf16.mxu1 %v6865_v15  ;;  %5459 = vmatprep.subr.bf16.mxu0 %v9710_v51 }
0x1150   :  { %5416 = vmatpush1.bf16.msra.mxu1 %v6876_v28  ;;  %5461 = vmatpush1.bf16.msra.mxu0 %v6996_v57 }
0x1151   :  { %5418 = vmatprep.subr.bf16.mxu1 %v6885_v22  ;;  %5462 = vmatprep.subr.bf16.mxu0 %v9710_v51 }
0x1154   :  { %5420 = vmatpush1.bf16.msra.mxu1 %v6894_v30  ;;  %5464 = vmatpush1.bf16.msra.mxu0 %v7006_v0 }
0x1155   :  { %5422 = vmatprep.subr.bf16.mxu1 %v6903_v63  ;;  %5465 = vmatprep.subr.bf16.mxu0 %v9710_v51 }
0x1158   :  { %5424 = vmatpush1.bf16.msra.mxu1 %v6912_v33  ;;  %5467 = vmatpush1.bf16.msra.mxu0 %v9777_v40 }
0x1159   :  { %5426 = vmatprep.subr.bf16.mxu1 %v9778_v19  ;;  %5468 = vmatprep.subr.bf16.mxu0 %v9710_v51 }
0x115c   :  { %5428 = vmatpush1.bf16.msra.mxu1 %v9779_v38  ;;  %5470 = vmatpush1.bf16.msra.mxu0 %v9780_v27 }
0x115d   :  { %5430 = vmatprep.subr.bf16.mxu1 %v9781_v14  ;;  %5471 = vmatprep.subr.bf16.mxu0 %v9710_v51 }
0x1160   :  { %5432 = vmatpush1.bf16.msra.mxu1 %v9782_v16  ;;  %5473 = vmatpush1.bf16.msra.mxu0 %v9783_v36 }
0x1161   :  { %5434 = vmatprep.subr.bf16.mxu1 %v9784_v10  ;;  %5474 = vmatprep.subr.bf16.mxu0 %v9710_v51 }
0x1164   :  { %5436 = vmatpush1.bf16.msra.mxu1 %v9785_v49  ;;  %5476 = vmatpush1.bf16.msra.mxu0 %v9786_v7 }
0x1165   :  { %5438 = vmatprep.subr.bf16.mxu1 %v9787_v42  ;;  %5477 = vmatprep.subr.bf16.mxu0 %v9710_v51 }
0x1168   :  { %5440 = vmatpush1.bf16.msra.mxu1 %v9788_v9  ;;  %5479 = vmatpush1.bf16.msra.mxu0 %v9789_v25 }
0x1169   :  { %5442 = vmatprep.subr.bf16.mxu1 %v9790_v35  ;;  %5480 = vmatprep.subr.bf16.mxu0 %v9710_v51 }
0x116c   :  { %5444 = vmatpush1.bf16.msra.mxu1 %v9791_v5  ;;  %5482 = vmatpush1.bf16.msra.mxu0 %v9792_v24 }
0x116d   :  { %5446 = vmatprep.subr.bf16.mxu1 %v9793_v45  ;;  %5483 = vmatprep.subr.bf16.mxu0 %v9710_v51 }
0x1170   :  { %5448 = vmatpush1.bf16.msra.mxu1 %v9794_v21  ;;  %5485 = vmatpush1.bf16.msra.mxu0 %v9795_v2 }
0x1171   :  { %5450 = vmatprep.subr.bf16.mxu1 %v9796_v52  ;;  %5486 = vmatprep.subr.bf16.mxu0 %v9710_v51 }
0x1174   :  { %5452 = vmatpush1.bf16.msra.mxu1 %v9797_v56  ;;  %5488 = vmatpush1.bf16.msra.mxu0 %v9798_v37  ;;  %v9803_v56 = vld [vmem:[#allocation43_spill] sm:$0xff] }
0x1175   :  { %5490 = vmatprep.subr.bf16.mxu1 %v9799_v18  ;;  %5537 = vmatprep.subr.bf16.mxu0 %v9710_v51 }
0x121a   :  { %v1947_v61 = vpop.f32.mrb[10].mxu1  ;;  %v7914_v4 = vpop.f32.mrb[20].mxu0 }
0x121b   :  { %v7917_v29 = vadd.f32 %v1947_v61, %v9800_v6  ;;  %v7919_v12 = vpop.f32.mrb[11].mxu1  ;;  %v2020_v32 = vpop.f32.mrb[21].mxu0 }
0x121d   :  { %v2049_v2 = vsel %vm7248_vm10, %v7917_v29, -1e+30  ;;  %v2037_v37 = vsel %vm7254_vm11, %v7917_v29, -1e+30 }
0x121e   :  { %v2050_v18 = vsel %vm967_vm12, %v2049_v2, -inf  ;;  %v2038_v21 = vsel %vm967_vm12, %v2037_v37, -inf }
0x121f   :  { %2051 = vmax.xlane.f32.xlu0 %v2050_v18  ;;  %2039 = vmax.xlane.f32.xlu1 %v2038_v21 }
0x1230   :  { %2120 = vrot.lane.b32.xlu1 %v7847_v58, %s6349_s11 }
0x12ac   :  { %v2052_v61 = vpop.xlane.xlu0 %2051  ;;  %v2040_v6 = vpop.xlane.xlu1 %2039 }
0x12ad   :  { %vm2053_vm0 = vcmp.ge.f32.partialorder %v2049_v2, %v2052_v61  ;;  %vm2041_vm6 = vcmp.ge.f32.partialorder %v2037_v37, %v2040_v6 }
0x12ae   :  { %vm2054_vm1 = vmand %vm7248_vm10, %vm2053_vm0  ;;  %vm9807_vm0 = vcmask 1042432  }
0x12af   :  { %v2055_v32 = vsel %vm2054_vm1, %v7268_v46, 1e+09  ;;  %vm2042_vm7 = vmand %vm7254_vm11, %vm2041_vm6  ;;  %vm9808_vm6 = vcmask 256000  }
0x12b0   :  { %v2056_v45 = vsel %vm967_vm12, %v2055_v32, inf  ;;  %v2043_v21 = vsel %vm2042_vm7, %v7268_v46, 1e+09  ;;  %vm7990_vm7 = vmand %vm9663_vm2, %vm2024_vm8 }
0x12b1   :  { %2057 = vmin.xlane.f32.xlu0 %v2056_v45  ;;  %v2044_v18 = vsel %vm967_vm12, %v2043_v21, inf }
0x12b5   :  { %2045 = vmin.xlane.f32.xlu0 %v2044_v18 }
0x133e   :  { %v2058_v58 = vpop.xlane.xlu0 %2057 }
0x133f   :  { %v6015_v24 = vtrunc.f32 %v2058_v58  ;;  %v9806_v58 = vld [vmem:[#allocation44_spill] sm:$0xff] }
0x1341   :  { %v6016_v2 = vcvt.f32.s32 %v6015_v24  ;;  %v7950_v24 = vld [vmem:[%s9550_s13] sm:$0x77] }
0x1342   :  { %v2046_v37 = vpop.xlane.xlu0 %2045  ;;  %9805 = vst [vmem:[#allocation41_spill] sm:$0xff] %v7950_v24 }
0x1343   :  { %v4716_v6 = vadd.s32 4294967286, %v6016_v2  ;;  %v6013_v61 = vtrunc.f32 %v2046_v37 }
0x1345   :  { %v2084_v52 = vrot.slane %v4716_v6, %v6849_v8  ;;  %v7944_v32 = vsel %vm2162_vm14, %v4716_v6, %v9803_v56  ;;  %v6014_v45 = vcvt.f32.s32 %v6013_v61  ;;  %v9809_v6 = vld [vmem:[#allocation42_spill] sm:$0xff] }
0x1346   :  { %9804 = vst [vmem:[#allocation37_spill] sm:$0xff] %v7944_v32 }
0x1347   :  { %vm2085_vm15 = vcmp.eq.s32.totalorder %v6824_v59, %v2084_v52  ;;  %v4715_v21 = vadd.s32 4294967294, %v6014_v45 }
0x1348   :  { %v2086_v18 = vsel %vm2085_vm15, %v7950_v24, 0.0  ;;  %v2087_v2 = vsel %vm2085_vm15, %v9806_v58, 0.0  ;;  %v7966_v58 = vld [vmem:[%s9549_s12] sm:$0xff] }
0x1349   :  { %v2088_v37 = vsel %vm9807_vm0, %v2086_v18, 0.0  ;;  %v2095_v5 = vsel %vm9808_vm6, %v2087_v2, 0.0  ;;  %v2064_v56 = vrot.slane %v4715_v21, %v6849_v8  ;;  %v7960_v52 = vsel %vm2162_vm14, %v4715_v21, %v9809_v6  ;;  %9811 = vst [vmem:[#allocation46_spill] sm:$0xff] %v7966_v58  ;;  %v7972_v2 = vld [vmem:[%s9549_s12 + $0x8] sm:$0xff] }
0x134a   :  { %9810 = vst [vmem:[#allocation45_spill] sm:$0xff] %v7960_v52  ;;  %v2089_v61 = vrot.slane %v2088_v37, 4  ;;  %v2096_v45 = vrot.slane %v2095_v5, 4  ;;  %9812 = vst [vmem:[#allocation43_spill] sm:$0xff] %v7972_v2  ;;  %vm9815_vm0 = vcmp.eq.s32.totalorder %v9722_v44, 0 }
0x134b   :  { %vm2065_vm1 = vcmp.eq.s32.totalorder %v6824_v59, %v2064_v56 }
0x134c   :  { %v2090_v32 = vadd.f32 %v2089_v61, %v2088_v37  ;;  %v2097_v35 = vadd.f32 %v2096_v45, %v2095_v5  ;;  %v2066_v18 = vsel %vm2065_vm1, %v7966_v58, 0.0  ;;  %v2067_v21 = vsel %vm2065_vm1, %v7972_v2, 0.0 }
0x134d   :  { %v2068_v6 = vrot.slane %v2066_v18, 4  ;;  %v2074_v24 = vsel %vm1022_vm9, %v2067_v21, 0.0  ;;  %v1950_v21 = vadd.f32 %v7919_v12, %v7335_v43 }
0x134e   :  { %v2091_v56 = vrot.slane %v2090_v32, 2  ;;  %v2098_v37 = vrot.slane %v2097_v35, 2  ;;  %v2075_v5 = vrot.slane %v2074_v24, 4 }
0x134f   :  { %v2069_v61 = vadd.f32 %v2068_v6, %v2066_v18 }
0x1350   :  { %v2092_v45 = vadd.f32 %v2091_v56, %v2090_v32  ;;  %v2099_v52 = vadd.f32 %v2098_v37, %v2097_v35  ;;  %v2076_v25 = vadd.f32 %v2075_v5, %v2074_v24  ;;  %v2019_v35 = vadd.f32 %v7914_v4, %v7338_v62 }
0x1351   :  { %v2070_v9 = vrot.slane %v2069_v61, 2 }
0x1352   :  { %v2077_v42 = vrot.slane %v2076_v25, 2  ;;  %v2093_v58 = vrot.slane %v2092_v45, 1  ;;  %v2100_v49 = vrot.slane %v2099_v52, 1 }
0x1353   :  { %v2071_v7 = vadd.f32 %v2070_v9, %v2069_v61 }
0x1354   :  { %v2078_v10 = vadd.f32 %v2077_v42, %v2076_v25  ;;  %v2094_v14 = vadd.f32 %v2093_v58, %v2092_v45  ;;  %v2101_v27 = vadd.f32 %v2100_v49, %v2099_v52  ;;  %v2121_v58 = vpop.permute.xlu1 %2120 }
0x1355   :  { %v2072_v36 = vrot.slane %v2071_v7, 1 }
0x1356   :  { %v2079_v16 = vrot.slane %v2078_v10, 1 }
0x1357   :  { %v2073_v2 = vadd.f32 %v2072_v36, %v2071_v7 }
0x1358   :  { %v2080_v38 = vadd.f32 %v2079_v16, %v2078_v10 }
0x1359   :  { %v2102_v19 = vadd.f32 %v2094_v14, %v2073_v2 }
0x135a   :  { %v2103_v32 = vadd.f32 %v2101_v27, %v2080_v38 }
0x135b   :  { %v2104_v24 = vadd.f32 %v2102_v19, %v1950_v21 }
0x135c   :  { %v2105_v18 = vadd.f32 %v2103_v32, %v2019_v35 }
0x135d   :  { %v4717_v6 = vmul.f32 -1.442695, %v2104_v24 }
0x135f   :  { %6152 = vpow2.f32 %v4717_v6 }
0x1369   :  { %v6153_v9 = vpop.eup %6152 }
0x136a   :  { %v2109_v42 = vadd.f32 1.0, %v6153_v9 }
0x136c   :  { %6154 = vrcp.f32 %v2109_v42 }
0x136d   :  { %6156 = vtanh.f32 %v2105_v18 }
0x1376   :  { %v6155_v25 = vpop.eup %6154 }
0x1377   :  { %v2114_v36 = vmul.f32 %v6155_v25, %v7862_v31  ;;  %v2123_v16 = vmul.f32 %v6155_v25, %v2121_v58  ;;  %v2026_v31 = vsel %vm7990_vm7, %v7917_v29, -1e+30  ;;  %v6157_v27 = vpop.eup %6156 }
0x1378   :  { %v2027_v38 = vsel %vm967_vm12, %v2026_v31, -inf  ;;  %v2113_v14 = vmul.f32 %v6157_v27, %v6155_v25 }
0x1379   :  { %2116 = vrot.lane.b32.xlu0 %v2114_v36, %s6350_s29  ;;  %2125 = vrot.lane.b32.xlu1 %v2123_v16, %s6348_s19 }
0x139d   :  { %2028 = vmax.xlane.f32.xlu1 %v2027_v38 }
0x13eb   :  { %v2117_v41 = vpop.permute.xlu0 %2116  ;;  %v2126_v1 = vpop.permute.xlu1 %2125 }
0x13ec   :  { %v2119_v10 = vadd.f32 %v2117_v41, %v2113_v14 }
0x13ee   :  { %v2128_v49 = vadd.f32 %v2126_v1, %v2119_v10 }
0x13f0   :  { %6158 = vtanh.f32 %v2128_v49 }
0x13fa   :  { %v6159_v7 = vpop.eup %6158 }
0x13fb   :  { %2131 = vrot.lane.b32.xlu0 %v6159_v7, %s6350_s29 }
0x142a   :  { %v2029_v4 = vpop.xlane.xlu1 %2028 }
0x142b   :  { %vm2030_vm13 = vcmp.ge.f32.partialorder %v2026_v31, %v2029_v4 }
0x142c   :  { %vm2031_vm4 = vmand %vm7990_vm7, %vm2030_vm13  ;;  %vm9818_vm7 = vcmp.eq.s32.totalorder %v9722_v44, 1 }
0x142d   :  { %v2032_v29 = vsel %vm2031_vm4, %v7268_v46, 1e+09 }
0x142e   :  { %v2033_v12 = vsel %vm967_vm12, %v2032_v29, inf }
0x142f   :  { %2034 = vmin.xlane.f32.xlu0 %v2033_v12 }
0x1445   :  { %2140 = vrot.lane.b32.xlu0 %v2128_v49, %s6349_s11 }
0x146d   :  { %v2132_v52 = vpop.permute.xlu0 %2131 }
0x146e   :  { %v2134_v2 = vmul.f32 %v6155_v25, %v2132_v52 }
0x1470   :  { %2136 = vrot.lane.b32.xlu1 %v2134_v2, %s6349_s11 }
0x14bc   :  { %v2035_v56 = vpop.xlane.xlu0 %2034 }
0x14bd   :  { %v6011_v37 = vtrunc.f32 %v2035_v56 }
0x14bf   :  { %v6012_v5 = vcvt.f32.s32 %v6011_v37 }
0x14c0   :  { %v2141_v14 = vpop.permute.xlu0 %2140 }
0x14c1   :  { %vm2144_vm8 = vcmp.eq.s32.totalorder %v6012_v5, 0  ;;  %v8008_v61 = vsel %vm2162_vm14, %v6012_v5, %v7780_v20 }
0x14c2   :  { %v2145_v45 = vsel %vm2144_vm8, 1, %v9709_v39  ;;  %v2159_v21 = vsel %vm2144_vm8, 1, %v9732_v48  ;;  %v2148_v31 = vsel %vm2144_vm8, %v7787_v11, %v7852_v55 }
0x14c3   :  { %v8015_v35 = vadd.s32 %v2159_v21, %v7787_v11  ;;  %v8018_v32 = vadd.s32 %v2145_v45, %v7790_v13  ;;  %v2152_v27 = vrot.slane %v2148_v31, %v6849_v8  ;;  %v9822_v31 = vld [vmem:[#allocation16_spill] sm:$0xff] }
0x14c5   :  { %v2210_v24 = vrot.slane %v8018_v32, %v6849_v8  ;;  %vm2206_vm15 = vcmp.lt.s32.totalorder %v8018_v32, 6  ;;  %vm2170_vm14 = vcmp.ge.s32.totalorder %v8015_v35, 2  ;;  %v4719_v38 = vadd.s32 4294967295, %v8015_v35 }
0x14c6   :  { %vm8026_vm6 = vmand %vm9815_vm0, %vm2206_vm15  ;;  %vm2153_vm0 = vcmp.eq.s32.totalorder %v6824_v59, %v2152_v27  ;;  %v9824_v27 = vld [vmem:[#allocation17_spill] sm:$0xff] }
0x14c7   :  { %vm2211_vm1 = vcmp.eq.s32.totalorder %v6824_v59, %v2210_v24  ;;  %vm8035_vm13 = vmand %vm9818_vm7, %vm2170_vm14  ;;  %v2193_v10 = vrot.slane %v4719_v38, %v6849_v8  ;;  %v9823_v38 = vld [vmem:[#allocation22_spill] sm:$0xff] }
0x14c8   :  { %v2212_v18 = vsel %vm2211_vm1, %v7168_v17, 0.0  ;;  %vm2374_vm4 = vmor %vm8026_vm6, %vm8035_vm13  ;;  %vm2512_vm6 = vcmp.eq.s32.totalorder %v9722_v44, 4 }
0x14c9   :  { %v2213_v6 = vsel %vm698_vm3, %v2212_v18, 0.0  ;;  %vm2194_vm1 = vcmp.eq.s32.totalorder %v6824_v59, %v2193_v10  ;;  %v9827_v10 = vld [vmem:[#allocation19_spill] sm:$0xff] }
0x14ca   :  { %v2214_v9 = vrot.slane %v2213_v6, 4 }
0x14cc   :  { %v2215_v42 = vadd.f32 %v2214_v9, %v2213_v6 }
0x14ce   :  { %v2216_v25 = vrot.slane %v2215_v42, 2 }
0x14d0   :  { %v2217_v58 = vadd.f32 %v2216_v25, %v2215_v42 }
0x14d2   :  { %v2218_v36 = vrot.slane %v2217_v58, 1 }
0x14d4   :  { %v2219_v16 = vadd.f32 %v2218_v36, %v2217_v58 }
0x14d6   :  { %v8046_v19 = vsel %vm2206_vm15, %v2219_v16, %v7601_v47  ;;  %vm2166_vm15 = vcmp.eq.s32.totalorder %v6824_v59, 3 }
0x14d7   :  { %4720 = vmatprep.mubr.msk.f32.mxu1 %vm799_vm5, %v8046_v19  ;;  %4721 = vmatprep.mubr.msk.f32.mxu0 %vm799_vm5, %v8046_v19 }
0x14e2   :  { %v2137_v41 = vpop.permute.xlu1 %2136 }
0x14e3   :  { %v2143_v1 = vsel %vm1022_vm9, %v2137_v41, %v2141_v14  ;;  %v9825_v14 = vld [vmem:[#allocation18_spill] sm:$0xff]  ;;  %v9826_v41 = vld [vmem:[#allocation23_spill] sm:$0xff] }
0x14e4   :  { %v2147_v49 = vsel %vm2144_vm8, %v7818_v23, %v2143_v1  ;;  %vm2188_vm8 = vcmp.ge.s32.totalorder %v8015_v35, 1  ;;  %v9828_v1 = vld [vmem:[#allocation20_spill] sm:$0xff] }
0x14e5   :  { %v2157_v7 = vrot.slane %v2147_v49, %v6849_v8  ;;  %v9829_v49 = vld [vmem:[#allocation24_spill] sm:$0xff] }
0x14e7   :  { %v8066_v11 = vsel %vm2153_vm0, %v2157_v7, %v7838_v53  ;;  %v8069_v55 = vsel %vm2166_vm15, %v2157_v7, %v7841_v34  ;;  %v8080_v53 = vadd.s32 4294967294, %v8015_v35  ;;  %v9830_v7 = vld [vmem:[#allocation25_spill] sm:$0xff] }
0x14e8   :  { %v2195_v4 = vsel %vm2194_vm1, %v8066_v11, 0.0 }
0x14e9   :  { %v2196_v29 = vsel %vm698_vm3, %v2195_v4, 0.0  ;;  %v2175_v34 = vrot.slane %v8080_v53, %v6849_v8  ;;  %v9831_v4 = vld [vmem:[#allocation26_spill] sm:$0xff] }
0x14ea   :  { %v2197_v12 = vrot.slane %v2196_v29, 4 }
0x14eb   :  { %vm2176_vm7 = vcmp.eq.s32.totalorder %v6824_v59, %v2175_v34  ;;  %v9839_v34 = vld [vmem:[#allocation34_spill] sm:$0xff] }
0x14ec   :  { %v2198_v52 = vadd.f32 %v2197_v12, %v2196_v29  ;;  %v2177_v45 = vsel %vm2176_vm7, %v8066_v11, 0.0  ;;  %v9832_v29 = vld [vmem:[#allocation27_spill] sm:$0xff]  ;;  %v9833_v12 = vld [vmem:[#allocation28_spill] sm:$0xff]  ;;  %vm9856_vm7 = vcmask 1042432  }
0x14ed   :  { %v2178_v21 = vsel %vm698_vm3, %v2177_v45, 0.0  ;;  %v9840_v45 = vld [vmem:[#allocation35_spill] sm:$0xff] }
0x14ee   :  { %v2199_v2 = vrot.slane %v2198_v52, 2  ;;  %v2179_v24 = vrot.slane %v2178_v21, 4 }
0x14f0   :  { %v2200_v23 = vadd.f32 %v2199_v2, %v2198_v52  ;;  %v2180_v18 = vadd.f32 %v2179_v24, %v2178_v21  ;;  %v9834_v52 = vld [vmem:[#allocation29_spill] sm:$0xff]  ;;  %v9835_v2 = vld [vmem:[#allocation30_spill] sm:$0xff]  ;;  %v9841_v21 = vld [vmem:[#allocation36_spill] sm:$0xff] }
0x14f1   :  { %v9842_v24 = vld [vmem:[#allocation14_spill] sm:$0xff] }
0x14f2   :  { %v2201_v56 = vrot.slane %v2200_v23, 1  ;;  %v2181_v6 = vrot.slane %v2180_v18, 2 }
0x14f4   :  { %v2202_v37 = vadd.f32 %v2201_v56, %v2200_v23  ;;  %v2182_v9 = vadd.f32 %v2181_v6, %v2180_v18  ;;  %v9836_v23 = vld [vmem:[#allocation31_spill] sm:$0xff]  ;;  %v9837_v56 = vld [vmem:[#allocation32_spill] sm:$0xff] }
0x14f6   :  { %v8075_v5 = vsel %vm2188_vm8, %v2202_v37, %v7601_v47  ;;  %v2183_v42 = vrot.slane %v2182_v9, 1  ;;  %v9838_v37 = vld [vmem:[#allocation33_spill] sm:$0xff]  ;;  %vm8170_vm8 = vmand %vm9663_vm2, %vm2374_vm4 }
0x14f7   :  { %2224 = vrot.lane.b32.xlu1 %v8075_v5, %s6348_s19 }
0x14f8   :  { %v2184_v25 = vadd.f32 %v2183_v42, %v2182_v9  ;;  %v9843_v9 = vld [vmem:[#allocation38_spill] sm:$0xff] }
0x14fa   :  { %v8090_v36 = vsel %vm2170_vm14, %v2184_v25, %v7601_v47  ;;  %v9821_v47 = vld [vmem:[#allocation15_spill] sm:$0xff] }
0x1569   :  { %v2225_v58 = vpop.permute.xlu1 %2224 }
0x156a   :  { %v2227_v16 = vsel %vm799_vm5, %v8090_v36, %v2225_v58 }
0x156b   :  { %2296 = vmatmul.mubr.f32.vlgmr.msra.gmra.mrb[12].mxu1 %v2227_v16  ;;  %2367 = vmatmul.mubr.f32.vlgmr.msra.gmra.mrb[22].mxu0 %v2227_v16 }
0x156c   :  { %5492 = vmatpush1.bf16.msra.mxu1 %v6826_v60  ;;  %5539 = vmatpush1.bf16.msra.mxu0 %v6976_v50 }
0x156d   :  { %5494 = vmatprep.subr.bf16.mxu1 %v6840_v3  ;;  %5540 = vmatprep.subr.bf16.mxu0 %v9710_v51 }
0x1570   :  { %5496 = vmatpush1.bf16.msra.mxu1 %v6852_v26  ;;  %5542 = vmatpush1.bf16.msra.mxu0 %v6986_v54 }
0x1571   :  { %5498 = vmatprep.subr.bf16.mxu1 %v6865_v15  ;;  %5543 = vmatprep.subr.bf16.mxu0 %v9710_v51 }
0x1574   :  { %5500 = vmatpush1.bf16.msra.mxu1 %v6876_v28  ;;  %5545 = vmatpush1.bf16.msra.mxu0 %v6996_v57 }
0x1575   :  { %5502 = vmatprep.subr.bf16.mxu1 %v6885_v22  ;;  %5546 = vmatprep.subr.bf16.mxu0 %v9710_v51 }
0x1578   :  { %5504 = vmatpush1.bf16.msra.mxu1 %v6894_v30  ;;  %5548 = vmatpush1.bf16.msra.mxu0 %v7006_v0 }
0x1579   :  { %5506 = vmatprep.subr.bf16.mxu1 %v6903_v63  ;;  %5549 = vmatprep.subr.bf16.mxu0 %v9710_v51 }
0x157c   :  { %5508 = vmatpush1.bf16.msra.mxu1 %v6912_v33  ;;  %5551 = vmatpush1.bf16.msra.mxu0 %v9777_v40 }
0x157d   :  { %5510 = vmatprep.subr.bf16.mxu1 %v9821_v47  ;;  %5552 = vmatprep.subr.bf16.mxu0 %v9710_v51 }
0x1580   :  { %5512 = vmatpush1.bf16.msra.mxu1 %v9822_v31  ;;  %5554 = vmatpush1.bf16.msra.mxu0 %v9823_v38 }
0x1581   :  { %5514 = vmatprep.subr.bf16.mxu1 %v9824_v27  ;;  %5555 = vmatprep.subr.bf16.mxu0 %v9710_v51 }
0x1584   :  { %5516 = vmatpush1.bf16.msra.mxu1 %v9825_v14  ;;  %5557 = vmatpush1.bf16.msra.mxu0 %v9826_v41 }
0x1585   :  { %5518 = vmatprep.subr.bf16.mxu1 %v9827_v10  ;;  %5558 = vmatprep.subr.bf16.mxu0 %v9710_v51 }
0x1588   :  { %5520 = vmatpush1.bf16.msra.mxu1 %v9828_v1  ;;  %5560 = vmatpush1.bf16.msra.mxu0 %v9829_v49 }
0x1589   :  { %5522 = vmatprep.subr.bf16.mxu1 %v9830_v7  ;;  %5561 = vmatprep.subr.bf16.mxu0 %v9710_v51 }
0x158c   :  { %5524 = vmatpush1.bf16.msra.mxu1 %v9831_v4  ;;  %5563 = vmatpush1.bf16.msra.mxu0 %v9832_v29 }
0x158d   :  { %5526 = vmatprep.subr.bf16.mxu1 %v9833_v12  ;;  %5564 = vmatprep.subr.bf16.mxu0 %v9710_v51 }
0x1590   :  { %5528 = vmatpush1.bf16.msra.mxu1 %v9834_v52  ;;  %5566 = vmatpush1.bf16.msra.mxu0 %v9835_v2  ;;  %v9855_v52 = vld [vmem:[#allocation43_spill] sm:$0xff] }
0x1591   :  { %5530 = vmatprep.subr.bf16.mxu1 %v9836_v23  ;;  %5567 = vmatprep.subr.bf16.mxu0 %v9710_v51 }
0x1594   :  { %5532 = vmatpush1.bf16.msra.mxu1 %v9837_v56  ;;  %5569 = vmatpush1.bf16.msra.mxu0 %v9838_v37  ;;  %v9848_v37 = vld [vmem:[#allocation37_spill] sm:$0xff] }
0x1595   :  { %5534 = vmatprep.subr.bf16.mxu1 %v9839_v34  ;;  %5570 = vmatprep.subr.bf16.mxu0 %v9710_v51 }
0x1598   :  { %5536 = vmatpush1.bf16.msra.mxu1 %v9840_v45  ;;  %5572 = vmatpush1.bf16.msra.mxu0 %v9841_v21 }
0x1599   :  { %5574 = vmatprep.subr.bf16.mxu1 %v9842_v24  ;;  %5621 = vmatprep.subr.bf16.mxu0 %v9710_v51 }
0x163e   :  { %v2297_v18 = vpop.f32.mrb[12].mxu1  ;;  %v8142_v6 = vpop.f32.mrb[22].mxu0 }
0x163f   :  { %v2298_v42 = vadd.f32 %v2297_v18, %v9843_v9  ;;  %v8145_v25 = vpop.f32.mrb[13].mxu1  ;;  %v2370_v58 = vpop.f32.mrb[23].mxu0 }
0x1641   :  { %v2399_v34 = vsel %vm7248_vm10, %v2298_v42, -1e+30  ;;  %v2387_v45 = vsel %vm7254_vm11, %v2298_v42, -1e+30 }
0x1642   :  { %v2400_v21 = vsel %vm967_vm12, %v2399_v34, -inf  ;;  %v2388_v24 = vsel %vm967_vm12, %v2387_v45, -inf }
0x1643   :  { %2401 = vmax.xlane.f32.xlu1 %v2400_v21  ;;  %2389 = vmax.xlane.f32.xlu0 %v2388_v24 }
0x16d0   :  { %v2402_v56 = vpop.xlane.xlu1 %2401  ;;  %v2390_v23 = vpop.xlane.xlu0 %2389 }
0x16d1   :  { %vm2403_vm14 = vcmp.ge.f32.partialorder %v2399_v34, %v2402_v56  ;;  %vm2391_vm15 = vcmp.ge.f32.partialorder %v2387_v45, %v2390_v23  ;;  %v8176_v56 = vsel %vm8170_vm8, %v2298_v42, -1e+30 }
0x16d2   :  { %vm2404_vm0 = vmand %vm7248_vm10, %vm2403_vm14  ;;  %v2377_v34 = vsel %vm967_vm12, %v8176_v56, -inf  ;;  %vm9857_vm14 = vcmask 256000  }
0x16d3   :  { %vm2392_vm1 = vmand %vm7254_vm11, %vm2391_vm15  ;;  %v2405_v18 = vsel %vm2404_vm0, %v7268_v46, 1e+09 }
0x16d4   :  { %v2406_v58 = vsel %vm967_vm12, %v2405_v18, inf  ;;  %v2393_v9 = vsel %vm2392_vm1, %v7268_v46, 1e+09 }
0x16d5   :  { %2407 = vmin.xlane.f32.xlu0 %v2406_v58  ;;  %v2394_v21 = vsel %vm967_vm12, %v2393_v9, inf }
0x16d6   :  { %2395 = vmin.xlane.f32.xlu1 %v2394_v21 }
0x16eb   :  { %2470 = vrot.lane.b32.xlu0 %v8075_v5, %s6349_s11 }
0x170a   :  { %2378 = vmax.xlane.f32.xlu0 %v2377_v34  ;;  %v9850_v34 = vld [vmem:[#allocation45_spill] sm:$0xff] }
0x1762   :  { %v2408_v5 = vpop.xlane.xlu0 %2407 }
0x1763   :  { %v2396_v45 = vpop.xlane.xlu1 %2395  ;;  %v6021_v20 = vtrunc.f32 %v2408_v5 }
0x1764   :  { %v6019_v24 = vtrunc.f32 %v2396_v45  ;;  %v9852_v45 = vld [vmem:[#allocation41_spill] sm:$0xff] }
0x1765   :  { %v6022_v13 = vcvt.f32.s32 %v6021_v20 }
0x1766   :  { %v6020_v9 = vcvt.f32.s32 %v6019_v24  ;;  %v9853_v24 = vld [vmem:[#allocation44_spill] sm:$0xff] }
0x1767   :  { %v4723_v18 = vadd.s32 4294967286, %v6022_v13 }
0x1768   :  { %v4722_v58 = vadd.s32 4294967294, %v6020_v9  ;;  %v9854_v9 = vld [vmem:[#allocation46_spill] sm:$0xff] }
0x1769   :  { %v2434_v21 = vrot.slane %v4723_v18, %v6849_v8  ;;  %v8185_v42 = vsel %vm2512_vm6, %v4723_v18, %v9848_v37 }
0x176a   :  { %9849 = vst [vmem:[#allocation42_spill] sm:$0xff] %v8185_v42  ;;  %v2414_v16 = vrot.slane %v4722_v58, %v6849_v8  ;;  %v8191_v5 = vsel %vm2512_vm6, %v4722_v58, %v9850_v34 }
0x176b   :  { %9851 = vst [vmem:[#allocation37_spill] sm:$0xff] %v8191_v5  ;;  %vm2435_vm13 = vcmp.eq.s32.totalorder %v6824_v59, %v2434_v21 }
0x176c   :  { %vm2415_vm4 = vcmp.eq.s32.totalorder %v6824_v59, %v2414_v16  ;;  %v2436_v20 = vsel %vm2435_vm13, %v9852_v45, 0.0  ;;  %v2437_v13 = vsel %vm2435_vm13, %v9853_v24, 0.0  ;;  %vm9858_vm13 = vcmp.eq.s32.totalorder %v9722_v44, 0 }
0x176d   :  { %v2416_v2 = vsel %vm2415_vm4, %v9854_v9, 0.0  ;;  %v2417_v37 = vsel %vm2415_vm4, %v9855_v52, 0.0  ;;  %v2438_v18 = vsel %vm9856_vm7, %v2436_v20, 0.0  ;;  %v2445_v42 = vsel %vm9857_vm14, %v2437_v13, 0.0 }
0x176e   :  { %v2418_v12 = vrot.slane %v2416_v2, 4  ;;  %v2424_v58 = vsel %vm1022_vm9, %v2417_v37, 0.0  ;;  %v2439_v34 = vrot.slane %v2438_v18, 4  ;;  %v2446_v5 = vrot.slane %v2445_v42, 4 }
0x176f   :  { %v2425_v21 = vrot.slane %v2424_v58, 4  ;;  %vm9861_vm14 = vcmp.eq.s32.totalorder %v9722_v44, 1 }
0x1770   :  { %v2419_v29 = vadd.f32 %v2418_v12, %v2416_v2  ;;  %v2440_v16 = vadd.f32 %v2439_v34, %v2438_v18  ;;  %v2447_v4 = vadd.f32 %v2446_v5, %v2445_v42  ;;  %v2300_v12 = vadd.f32 %v8145_v25, %v7335_v43 }
0x1771   :  { %v2426_v45 = vadd.f32 %v2425_v21, %v2424_v58  ;;  %v2369_v42 = vadd.f32 %v8142_v6, %v7338_v62 }
0x1772   :  { %v2420_v7 = vrot.slane %v2419_v29, 2  ;;  %v2441_v24 = vrot.slane %v2440_v16, 2  ;;  %v2448_v49 = vrot.slane %v2447_v4, 2 }
0x1773   :  { %v2427_v9 = vrot.slane %v2426_v45, 2 }
0x1774   :  { %v2421_v1 = vadd.f32 %v2420_v7, %v2419_v29  ;;  %v2442_v52 = vadd.f32 %v2441_v24, %v2440_v16  ;;  %v2449_v10 = vadd.f32 %v2448_v49, %v2447_v4 }
0x1775   :  { %v2428_v20 = vadd.f32 %v2427_v9, %v2426_v45 }
0x1776   :  { %v2422_v41 = vrot.slane %v2421_v1, 1  ;;  %v2443_v13 = vrot.slane %v2442_v52, 1  ;;  %v2450_v14 = vrot.slane %v2449_v10, 1 }
0x1777   :  { %v2429_v27 = vrot.slane %v2428_v20, 1 }
0x1778   :  { %v2423_v37 = vadd.f32 %v2422_v41, %v2421_v1  ;;  %v2444_v38 = vadd.f32 %v2443_v13, %v2442_v52  ;;  %v2451_v31 = vadd.f32 %v2450_v14, %v2449_v10 }
0x1779   :  { %v2430_v47 = vadd.f32 %v2429_v27, %v2428_v20  ;;  %v2471_v27 = vpop.permute.xlu0 %2470 }
0x177a   :  { %v2452_v2 = vadd.f32 %v2444_v38, %v2423_v37 }
0x177b   :  { %v2453_v5 = vadd.f32 %v2451_v31, %v2430_v47 }
0x177c   :  { %v2454_v7 = vadd.f32 %v2452_v2, %v2300_v12 }
0x177d   :  { %v2455_v29 = vadd.f32 %v2453_v5, %v2369_v42 }
0x177e   :  { %v4724_v49 = vmul.f32 -1.442695, %v2454_v7 }
0x1780   :  { %6160 = vpow2.f32 %v4724_v49 }
0x178a   :  { %v6161_v4 = vpop.eup %6160 }
0x178b   :  { %v2459_v45 = vadd.f32 1.0, %v6161_v4 }
0x178d   :  { %6162 = vrcp.f32 %v2459_v45 }
0x178e   :  { %6164 = vtanh.f32 %v2455_v29 }
0x1797   :  { %v6163_v24 = vpop.eup %6162  ;;  %v2379_v25 = vpop.xlane.xlu0 %2378 }
0x1798   :  { %v2464_v41 = vmul.f32 %v6163_v24, %v8090_v36  ;;  %v2473_v14 = vmul.f32 %v6163_v24, %v2471_v27  ;;  %v6165_v38 = vpop.eup %6164  ;;  %vm2380_vm15 = vcmp.ge.f32.partialorder %v8176_v56, %v2379_v25 }
0x1799   :  { %v2463_v47 = vmul.f32 %v6165_v38, %v6163_v24  ;;  %vm2381_vm0 = vmand %vm8170_vm8, %vm2380_vm15 }
0x179a   :  { %2466 = vrot.lane.b32.xlu1 %v2464_v41, %s6350_s29  ;;  %v2382_v36 = vsel %vm2381_vm0, %v7268_v46, 1e+09 }
0x179b   :  { %v2383_v9 = vsel %vm967_vm12, %v2382_v36, inf }
0x179e   :  { %2475 = vrot.lane.b32.xlu1 %v2473_v14, %s6348_s19 }
0x180c   :  { %v2467_v10 = vpop.permute.xlu1 %2466 }
0x180d   :  { %v2469_v31 = vadd.f32 %v2467_v10, %v2463_v47 }
0x1810   :  { %v2476_v1 = vpop.permute.xlu1 %2475 }
0x1811   :  { %v2478_v52 = vadd.f32 %v2476_v1, %v2469_v31 }
0x1813   :  { %6166 = vtanh.f32 %v2478_v52 }
0x181d   :  { %v6167_v6 = vpop.eup %6166 }
0x181e   :  { %2481 = vrot.lane.b32.xlu1 %v6167_v6, %s6350_s29 }
0x1842   :  { %2384 = vmin.xlane.f32.xlu1 %v2383_v9 }
0x1853   :  { %2490 = vrot.lane.b32.xlu1 %v2478_v52, %s6349_s11 }
0x1890   :  { %v2482_v18 = vpop.permute.xlu1 %2481 }
0x1891   :  { %v2484_v58 = vmul.f32 %v6163_v24, %v2482_v18  ;;  %v8260_v24 = vld [vmem:[%s9546_s9] sm:$0x1] }
0x1893   :  { %2486 = vrot.lane.b32.xlu0 %v2484_v58, %s6349_s11 }
0x18cf   :  { %v2385_v34 = vpop.xlane.xlu1 %2384 }
0x18d0   :  { %v6017_v21 = vtrunc.f32 %v2385_v34 }
0x18d2   :  { %v6018_v16 = vcvt.f32.s32 %v6017_v21 }
0x18d3   :  { %v2491_v10 = vpop.permute.xlu1 %2490 }
0x18d4   :  { %vm2494_vm1 = vcmp.eq.s32.totalorder %v6018_v16, 0  ;;  %v8220_v23 = vsel %vm2512_vm6, %v6018_v16, %v8008_v61 }
0x18d5   :  { %v2495_v56 = vsel %vm2494_vm1, 1, %v9709_v39  ;;  %v2509_v20 = vsel %vm2494_vm1, 1, %v9732_v48  ;;  %v2498_v27 = vsel %vm2494_vm1, %v8015_v35, %v8080_v53 }
0x18d6   :  { %v8227_v13 = vadd.s32 %v2509_v20, %v8015_v35  ;;  %v8230_v37 = vadd.s32 %v2495_v56, %v8018_v32  ;;  %v2502_v38 = vrot.slane %v2498_v27, %v6849_v8  ;;  %v9864_v27 = vld [vmem:[#allocation15_spill] sm:$0xff] }
0x18d8   :  { %v2560_v12 = vrot.slane %v8230_v37, %v6849_v8  ;;  %vm2556_vm8 = vcmp.lt.s32.totalorder %v8230_v37, 6  ;;  %vm2520_vm6 = vcmp.ge.s32.totalorder %v8227_v13, 2  ;;  %v4726_v14 = vadd.s32 4294967295, %v8227_v13 }
0x18d9   :  { %vm8238_vm4 = vmand %vm9858_vm13, %vm2556_vm8  ;;  %vm2503_vm13 = vcmp.eq.s32.totalorder %v6824_v59, %v2502_v38  ;;  %v9866_v38 = vld [vmem:[#allocation22_spill] sm:$0xff] }
0x18da   :  { %vm2561_vm7 = vcmp.eq.s32.totalorder %v6824_v59, %v2560_v12  ;;  %vm8247_vm15 = vmand %vm9861_vm14, %vm2520_vm6  ;;  %v2543_v31 = vrot.slane %v4726_v14, %v6849_v8  ;;  %v9865_v14 = vld [vmem:[#allocation16_spill] sm:$0xff] }
0x18db   :  { %v2562_v2 = vsel %vm2561_vm7, %v7168_v17, 0.0  ;;  %vm2724_vm0 = vmor %vm8238_vm4, %vm8247_vm15 }
0x18dc   :  { %v2563_v42 = vsel %vm698_vm3, %v2562_v2, 0.0  ;;  %vm2544_vm7 = vcmp.eq.s32.totalorder %v6824_v59, %v2543_v31  ;;  %v9869_v31 = vld [vmem:[#allocation23_spill] sm:$0xff] }
0x18dd   :  { %v2564_v5 = vrot.slane %v2563_v42, 4 }
0x18df   :  { %v2565_v7 = vadd.f32 %v2564_v5, %v2563_v42 }
0x18e1   :  { %v2566_v29 = vrot.slane %v2565_v7, 2 }
0x18e3   :  { %v2567_v49 = vadd.f32 %v2566_v29, %v2565_v7 }
0x18e5   :  { %v2568_v4 = vrot.slane %v2567_v49, 1 }
0x18e7   :  { %v2569_v45 = vadd.f32 %v2568_v4, %v2567_v49 }
0x18e9   :  { %v8263_v41 = vsel %vm2556_vm8, %v2569_v45, %v8260_v24  ;;  %vm2516_vm8 = vcmp.eq.s32.totalorder %v6824_v59, 4 }
0x18ea   :  { %4727 = vmatprep.mubr.msk.f32.mxu1 %vm799_vm5, %v8263_v41  ;;  %4728 = vmatprep.mubr.msk.f32.mxu0 %vm799_vm5, %v8263_v41 }
0x1905   :  { %v2487_v47 = vpop.permute.xlu0 %2486 }
0x1906   :  { %v2493_v1 = vsel %vm1022_vm9, %v2487_v47, %v2491_v10  ;;  %v9867_v10 = vld [vmem:[#allocation17_spill] sm:$0xff]  ;;  %v9868_v47 = vld [vmem:[#allocation18_spill] sm:$0xff] }
0x1907   :  { %v2497_v52 = vsel %vm2494_vm1, %v8046_v19, %v2493_v1  ;;  %vm2538_vm1 = vcmp.ge.s32.totalorder %v8227_v13, 1  ;;  %v9870_v1 = vld [vmem:[#allocation19_spill] sm:$0xff] }
0x1908   :  { %v2507_v6 = vrot.slane %v2497_v52, %v6849_v8  ;;  %v9871_v52 = vld [vmem:[#allocation20_spill] sm:$0xff] }
0x190a   :  { %v8283_v35 = vsel %vm2503_vm13, %v2507_v6, %v8066_v11  ;;  %v8286_v53 = vsel %vm2516_vm8, %v2507_v6, %v8069_v55  ;;  %v8297_v11 = vadd.s32 4294967294, %v8227_v13  ;;  %v9872_v6 = vld [vmem:[#allocation24_spill] sm:$0xff] }
0x190b   :  { %v2545_v25 = vsel %vm2544_vm7, %v8283_v35, 0.0 }
0x190c   :  { %v2546_v36 = vsel %vm698_vm3, %v2545_v25, 0.0  ;;  %v2525_v55 = vrot.slane %v8297_v11, %v6849_v8  ;;  %v9873_v25 = vld [vmem:[#allocation25_spill] sm:$0xff] }
0x190d   :  { %v2547_v9 = vrot.slane %v2546_v36, 4 }
0x190e   :  { %vm2526_vm14 = vcmp.eq.s32.totalorder %v6824_v59, %v2525_v55  ;;  %v9881_v55 = vld [vmem:[#allocation33_spill] sm:$0xff] }
0x190f   :  { %v2548_v18 = vadd.f32 %v2547_v9, %v2546_v36  ;;  %v2527_v56 = vsel %vm2526_vm14, %v8283_v35, 0.0  ;;  %v9874_v36 = vld [vmem:[#allocation26_spill] sm:$0xff]  ;;  %v9875_v9 = vld [vmem:[#allocation27_spill] sm:$0xff] }
0x1910   :  { %v2528_v20 = vsel %vm698_vm3, %v2527_v56, 0.0  ;;  %v9882_v56 = vld [vmem:[#allocation34_spill] sm:$0xff] }
0x1911   :  { %v2549_v58 = vrot.slane %v2548_v18, 2  ;;  %v2529_v12 = vrot.slane %v2528_v20, 4 }
0x1913   :  { %v2550_v19 = vadd.f32 %v2549_v58, %v2548_v18  ;;  %v2530_v2 = vadd.f32 %v2529_v12, %v2528_v20  ;;  %v9876_v18 = vld [vmem:[#allocation28_spill] sm:$0xff]  ;;  %v9877_v58 = vld [vmem:[#allocation29_spill] sm:$0xff]  ;;  %v9883_v20 = vld [vmem:[#allocation35_spill] sm:$0xff] }
0x1914   :  { %v9884_v12 = vld [vmem:[#allocation36_spill] sm:$0xff] }
0x1915   :  { %v2551_v34 = vrot.slane %v2550_v19, 1  ;;  %v2531_v42 = vrot.slane %v2530_v2, 2 }
0x1917   :  { %v2552_v21 = vadd.f32 %v2551_v34, %v2550_v19  ;;  %v2532_v5 = vadd.f32 %v2531_v42, %v2530_v2  ;;  %v9878_v19 = vld [vmem:[#allocation30_spill] sm:$0xff]  ;;  %v9879_v34 = vld [vmem:[#allocation31_spill] sm:$0xff] }
0x1918   :  { %v9885_v2 = vld [vmem:[#allocation14_spill] sm:$0xff] }
0x1919   :  { %v8292_v16 = vsel %vm2538_vm1, %v2552_v21, %v8260_v24  ;;  %v2533_v7 = vrot.slane %v2532_v5, 1  ;;  %v9880_v21 = vld [vmem:[#allocation32_spill] sm:$0xff]  ;;  %vm2862_vm1 = vcmp.eq.s32.totalorder %v9722_v44, 5 }
0x191a   :  { %2574 = vrot.lane.b32.xlu0 %v8292_v16, %s6348_s19 }
0x191b   :  { %v2534_v29 = vadd.f32 %v2533_v7, %v2532_v5  ;;  %v9886_v7 = vld [vmem:[#allocation38_spill] sm:$0xff] }
0x191d   :  { %v8307_v4 = vsel %vm2520_vm6, %v2534_v29, %v8260_v24 }
0x198c   :  { %v2575_v49 = vpop.permute.xlu0 %2574 }
0x198d   :  { %v2577_v45 = vsel %vm799_vm5, %v8307_v4, %v2575_v49 }
0x198e   :  { %2646 = vmatmul.mubr.f32.vlgmr.msra.gmra.mrb[14].mxu1 %v2577_v45  ;;  %2717 = vmatmul.mubr.f32.vlgmr.msra.gmra.mrb[24].mxu0 %v2577_v45 }
0x198f   :  { %5576 = vmatpush1.bf16.msra.mxu1 %v6826_v60  ;;  %5623 = vmatpush1.bf16.msra.mxu0 %v6976_v50 }
0x1990   :  { %5578 = vmatprep.subr.bf16.mxu1 %v6840_v3  ;;  %5624 = vmatprep.subr.bf16.mxu0 %v9710_v51 }
0x1993   :  { %5580 = vmatpush1.bf16.msra.mxu1 %v6852_v26  ;;  %5626 = vmatpush1.bf16.msra.mxu0 %v6986_v54 }
0x1994   :  { %5582 = vmatprep.subr.bf16.mxu1 %v6865_v15  ;;  %5627 = vmatprep.subr.bf16.mxu0 %v9710_v51 }
0x1997   :  { %5584 = vmatpush1.bf16.msra.mxu1 %v6876_v28  ;;  %5629 = vmatpush1.bf16.msra.mxu0 %v6996_v57 }
0x1998   :  { %5586 = vmatprep.subr.bf16.mxu1 %v6885_v22  ;;  %5630 = vmatprep.subr.bf16.mxu0 %v9710_v51 }
0x199b   :  { %5588 = vmatpush1.bf16.msra.mxu1 %v6894_v30  ;;  %5632 = vmatpush1.bf16.msra.mxu0 %v7006_v0 }
0x199c   :  { %5590 = vmatprep.subr.bf16.mxu1 %v6903_v63  ;;  %5633 = vmatprep.subr.bf16.mxu0 %v9710_v51 }
0x199f   :  { %5592 = vmatpush1.bf16.msra.mxu1 %v6912_v33  ;;  %5635 = vmatpush1.bf16.msra.mxu0 %v9777_v40 }
0x19a0   :  { %5594 = vmatprep.subr.bf16.mxu1 %v9864_v27  ;;  %5636 = vmatprep.subr.bf16.mxu0 %v9710_v51 }
0x19a3   :  { %5596 = vmatpush1.bf16.msra.mxu1 %v9865_v14  ;;  %5638 = vmatpush1.bf16.msra.mxu0 %v9866_v38 }
0x19a4   :  { %5598 = vmatprep.subr.bf16.mxu1 %v9867_v10  ;;  %5639 = vmatprep.subr.bf16.mxu0 %v9710_v51 }
0x19a7   :  { %5600 = vmatpush1.bf16.msra.mxu1 %v9868_v47  ;;  %5641 = vmatpush1.bf16.msra.mxu0 %v9869_v31 }
0x19a8   :  { %5602 = vmatprep.subr.bf16.mxu1 %v9870_v1  ;;  %5642 = vmatprep.subr.bf16.mxu0 %v9710_v51 }
0x19ab   :  { %5604 = vmatpush1.bf16.msra.mxu1 %v9871_v52  ;;  %5644 = vmatpush1.bf16.msra.mxu0 %v9872_v6 }
0x19ac   :  { %5606 = vmatprep.subr.bf16.mxu1 %v9873_v25  ;;  %5645 = vmatprep.subr.bf16.mxu0 %v9710_v51 }
0x19af   :  { %5608 = vmatpush1.bf16.msra.mxu1 %v9874_v36  ;;  %5647 = vmatpush1.bf16.msra.mxu0 %v9875_v9  ;;  %v9895_v9 = vld [vmem:[#allocation37_spill] sm:$0xff] }
0x19b0   :  { %5610 = vmatprep.subr.bf16.mxu1 %v9876_v18  ;;  %5648 = vmatprep.subr.bf16.mxu0 %v9710_v51 }
0x19b3   :  { %5612 = vmatpush1.bf16.msra.mxu1 %v9877_v58  ;;  %5650 = vmatpush1.bf16.msra.mxu0 %v9878_v19 }
0x19b4   :  { %5614 = vmatprep.subr.bf16.mxu1 %v9879_v34  ;;  %5651 = vmatprep.subr.bf16.mxu0 %v9710_v51 }
0x19b7   :  { %5616 = vmatpush1.bf16.msra.mxu1 %v9880_v21  ;;  %5653 = vmatpush1.bf16.msra.mxu0 %v9881_v55 }
0x19b8   :  { %5618 = vmatprep.subr.bf16.mxu1 %v9882_v56  ;;  %5654 = vmatprep.subr.bf16.mxu0 %v9710_v51  ;;  %v9889_v56 = vld [vmem:[#allocation42_spill] sm:$0xff] }
0x19bb   :  { %5620 = vmatpush1.bf16.msra.mxu1 %v9883_v20  ;;  %5656 = vmatpush1.bf16.msra.mxu0 %v9884_v12 }
0x19bc   :  { %5658 = vmatprep.subr.bf16.mxu1 %v9885_v2  ;;  %5705 = vmatprep.subr.bf16.mxu0 %v9710_v51 }
0x1a61   :  { %v2647_v42 = vpop.f32.mrb[14].mxu1  ;;  %v8359_v5 = vpop.f32.mrb[24].mxu0 }
0x1a62   :  { %v8362_v29 = vadd.f32 %v2647_v42, %v9886_v7  ;;  %v8364_v49 = vpop.f32.mrb[15].mxu1  ;;  %v2720_v45 = vpop.f32.mrb[25].mxu0 }
0x1a64   :  { %v2749_v55 = vsel %vm7248_vm10, %v8362_v29, -1e+30  ;;  %v2737_v12 = vsel %vm7254_vm11, %v8362_v29, -1e+30 }
0x1a65   :  { %v2750_v2 = vsel %vm967_vm12, %v2749_v55, -inf  ;;  %v2738_v21 = vsel %vm967_vm12, %v2737_v12, -inf }
0x1a66   :  { %2751 = vmax.xlane.f32.xlu0 %v2750_v2  ;;  %2739 = vmax.xlane.f32.xlu1 %v2738_v21 }
0x1a77   :  { %2820 = vrot.lane.b32.xlu1 %v8292_v16, %s6349_s11 }
0x1af3   :  { %v2752_v42 = vpop.xlane.xlu0 %2751  ;;  %v2740_v7 = vpop.xlane.xlu1 %2739 }
0x1af4   :  { %vm2753_vm6 = vcmp.ge.f32.partialorder %v2749_v55, %v2752_v42  ;;  %vm2741_vm8 = vcmp.ge.f32.partialorder %v2737_v12, %v2740_v7 }
0x1af5   :  { %vm2754_vm13 = vmand %vm7248_vm10, %vm2753_vm6  ;;  %vm9893_vm6 = vcmask 1042432  }
0x1af6   :  { %vm2742_vm7 = vmand %vm7254_vm11, %vm2741_vm8  ;;  %v2755_v45 = vsel %vm2754_vm13, %v7268_v46, 1e+09  ;;  %vm9894_vm8 = vcmask 256000  }
0x1af7   :  { %v2756_v34 = vsel %vm967_vm12, %v2755_v45, inf  ;;  %v2743_v21 = vsel %vm2742_vm7, %v7268_v46, 1e+09  ;;  %vm8420_vm7 = vmand %vm9663_vm2, %vm2724_vm0 }
0x1af8   :  { %2757 = vmin.xlane.f32.xlu0 %v2756_v34  ;;  %v2744_v2 = vsel %vm967_vm12, %v2743_v21, inf }
0x1afc   :  { %2745 = vmin.xlane.f32.xlu0 %v2744_v2  ;;  %v9891_v2 = vld [vmem:[#allocation41_spill] sm:$0xff] }
0x1b85   :  { %v2758_v16 = vpop.xlane.xlu0 %2757 }
0x1b86   :  { %v6027_v19 = vtrunc.f32 %v2758_v16  ;;  %v9892_v16 = vld [vmem:[#allocation44_spill] sm:$0xff] }
0x1b88   :  { %v6028_v55 = vcvt.f32.s32 %v6027_v19 }
0x1b89   :  { %v2746_v12 = vpop.xlane.xlu0 %2745 }
0x1b8a   :  { %v4730_v7 = vadd.s32 4294967286, %v6028_v55  ;;  %v6025_v42 = vtrunc.f32 %v2746_v12 }
0x1b8c   :  { %v2784_v20 = vrot.slane %v4730_v7, %v6849_v8  ;;  %v8389_v45 = vsel %vm2862_vm1, %v4730_v7, %v9889_v56  ;;  %v6026_v34 = vcvt.f32.s32 %v6025_v42 }
0x1b8d   :  { %9890 = vst [vmem:[#allocation45_spill] sm:$0xff] %v8389_v45 }
0x1b8e   :  { %vm2785_vm14 = vcmp.eq.s32.totalorder %v6824_v59, %v2784_v20  ;;  %v4729_v21 = vadd.s32 4294967294, %v6026_v34  ;;  %v9897_v34 = vld [vmem:[#allocation46_spill] sm:$0xff] }
0x1b8f   :  { %v2786_v58 = vsel %vm2785_vm14, %v9891_v2, 0.0  ;;  %v2787_v19 = vsel %vm2785_vm14, %v9892_v16, 0.0  ;;  %v9898_v16 = vld [vmem:[#allocation43_spill] sm:$0xff] }
0x1b90   :  { %v2788_v18 = vsel %vm9893_vm6, %v2786_v58, 0.0  ;;  %v2795_v55 = vsel %vm9894_vm8, %v2787_v19, 0.0  ;;  %v2764_v12 = vrot.slane %v4729_v21, %v6849_v8  ;;  %v8400_v36 = vsel %vm2862_vm1, %v4729_v21, %v9895_v9 }
0x1b91   :  { %9896 = vst [vmem:[#allocation42_spill] sm:$0xff] %v8400_v36  ;;  %v2789_v56 = vrot.slane %v2788_v18, 4  ;;  %v2796_v7 = vrot.slane %v2795_v55, 4  ;;  %vm9901_vm6 = vcmp.eq.s32.totalorder %v9722_v44, 0 }
0x1b92   :  { %vm2765_vm13 = vcmp.eq.s32.totalorder %v6824_v59, %v2764_v12 }
0x1b93   :  { %v2790_v20 = vadd.f32 %v2789_v56, %v2788_v18  ;;  %v2797_v42 = vadd.f32 %v2796_v7, %v2795_v55  ;;  %v2766_v2 = vsel %vm2765_vm13, %v9897_v34, 0.0  ;;  %v2767_v45 = vsel %vm2765_vm13, %v9898_v16, 0.0 }
0x1b94   :  { %v2768_v58 = vrot.slane %v2766_v2, 4  ;;  %v2774_v19 = vsel %vm1022_vm9, %v2767_v45, 0.0  ;;  %v2650_v45 = vadd.f32 %v8364_v49, %v7335_v43 }
0x1b95   :  { %v2791_v25 = vrot.slane %v2790_v20, 2  ;;  %v2798_v6 = vrot.slane %v2797_v42, 2  ;;  %v2775_v52 = vrot.slane %v2774_v19, 4 }
0x1b96   :  { %v2769_v1 = vadd.f32 %v2768_v58, %v2766_v2 }
0x1b97   :  { %v2792_v31 = vadd.f32 %v2791_v25, %v2790_v20  ;;  %v2799_v9 = vadd.f32 %v2798_v6, %v2797_v42  ;;  %v2776_v21 = vadd.f32 %v2775_v52, %v2774_v19  ;;  %v2719_v6 = vadd.f32 %v8359_v5, %v7338_v62 }
0x1b98   :  { %v2770_v36 = vrot.slane %v2769_v1, 2 }
0x1b99   :  { %v2777_v47 = vrot.slane %v2776_v21, 2  ;;  %v2793_v10 = vrot.slane %v2792_v31, 1  ;;  %v2800_v18 = vrot.slane %v2799_v9, 1 }
0x1b9a   :  { %v2771_v12 = vadd.f32 %v2770_v36, %v2769_v1 }
0x1b9b   :  { %v2778_v55 = vadd.f32 %v2777_v47, %v2776_v21  ;;  %v2794_v34 = vadd.f32 %v2793_v10, %v2792_v31  ;;  %v2801_v38 = vadd.f32 %v2800_v18, %v2799_v9  ;;  %v2821_v10 = vpop.permute.xlu1 %2820 }
0x1b9c   :  { %v2772_v56 = vrot.slane %v2771_v12, 1 }
0x1b9d   :  { %v2779_v7 = vrot.slane %v2778_v55, 1 }
0x1b9e   :  { %v2773_v16 = vadd.f32 %v2772_v56, %v2771_v12 }
0x1b9f   :  { %v2780_v14 = vadd.f32 %v2779_v7, %v2778_v55 }
0x1ba0   :  { %v2802_v27 = vadd.f32 %v2794_v34, %v2773_v16 }
0x1ba1   :  { %v2803_v52 = vadd.f32 %v2801_v38, %v2780_v14 }
0x1ba2   :  { %v2804_v25 = vadd.f32 %v2802_v27, %v2650_v45 }
0x1ba3   :  { %v2805_v20 = vadd.f32 %v2803_v52, %v2719_v6 }
0x1ba4   :  { %v4731_v42 = vmul.f32 -1.442695, %v2804_v25 }
0x1ba6   :  { %6168 = vpow2.f32 %v4731_v42 }
0x1bb0   :  { %v6169_v1 = vpop.eup %6168 }
0x1bb1   :  { %v2809_v47 = vadd.f32 1.0, %v6169_v1 }
0x1bb3   :  { %6170 = vrcp.f32 %v2809_v47 }
0x1bb4   :  { %6172 = vtanh.f32 %v2805_v20 }
0x1bbd   :  { %v6171_v36 = vpop.eup %6170 }
0x1bbe   :  { %v2814_v31 = vmul.f32 %v6171_v36, %v8307_v4  ;;  %v2823_v2 = vmul.f32 %v6171_v36, %v2821_v10  ;;  %v2726_v4 = vsel %vm8420_vm7, %v8362_v29, -1e+30  ;;  %v6173_v38 = vpop.eup %6172 }
0x1bbf   :  { %v2727_v14 = vsel %vm967_vm12, %v2726_v4, -inf  ;;  %v2813_v5 = vmul.f32 %v6173_v38, %v6171_v36 }
0x1bc0   :  { %2816 = vrot.lane.b32.xlu0 %v2814_v31, %s6350_s29  ;;  %2825 = vrot.lane.b32.xlu1 %v2823_v2, %s6348_s19 }
0x1be4   :  { %2728 = vmax.xlane.f32.xlu1 %v2727_v14 }
0x1c32   :  { %v2817_v61 = vpop.permute.xlu0 %2816  ;;  %v2826_v32 = vpop.permute.xlu1 %2825 }
0x1c33   :  { %v2819_v49 = vadd.f32 %v2817_v61, %v2813_v5 }
0x1c35   :  { %v2828_v58 = vadd.f32 %v2826_v32, %v2819_v49 }
0x1c37   :  { %6174 = vtanh.f32 %v2828_v58 }
0x1c41   :  { %v6175_v19 = vpop.eup %6174 }
0x1c42   :  { %2831 = vrot.lane.b32.xlu0 %v6175_v19, %s6350_s29 }
0x1c71   :  { %v2729_v9 = vpop.xlane.xlu1 %2728 }
0x1c72   :  { %vm2730_vm4 = vcmp.ge.f32.partialorder %v2726_v4, %v2729_v9 }
0x1c73   :  { %vm2731_vm15 = vmand %vm8420_vm7, %vm2730_vm4  ;;  %vm9904_vm7 = vcmp.eq.s32.totalorder %v9722_v44, 1 }
0x1c74   :  { %v2732_v29 = vsel %vm2731_vm15, %v7268_v46, 1e+09 }
0x1c75   :  { %v2733_v21 = vsel %vm967_vm12, %v2732_v29, inf }
0x1c76   :  { %2734 = vmin.xlane.f32.xlu0 %v2733_v21 }
0x1c8c   :  { %2840 = vrot.lane.b32.xlu0 %v2828_v58, %s6349_s11 }
0x1cb4   :  { %v2832_v12 = vpop.permute.xlu0 %2831 }
0x1cb5   :  { %v2834_v18 = vmul.f32 %v6171_v36, %v2832_v12 }
0x1cb7   :  { %2836 = vrot.lane.b32.xlu1 %v2834_v18, %s6349_s11 }
0x1d03   :  { %v2735_v55 = vpop.xlane.xlu0 %2734 }
0x1d04   :  { %v6023_v56 = vtrunc.f32 %v2735_v55 }
0x1d06   :  { %v6024_v7 = vcvt.f32.s32 %v6023_v56 }
0x1d07   :  { %v2841_v5 = vpop.permute.xlu0 %2840 }
0x1d08   :  { %vm2844_vm0 = vcmp.eq.s32.totalorder %v6024_v7, 0  ;;  %v8438_v34 = vsel %vm2862_vm1, %v6024_v7, %v8220_v23 }
0x1d09   :  { %v2845_v16 = vsel %vm2844_vm0, 1, %v9709_v39  ;;  %v2859_v45 = vsel %vm2844_vm0, 1, %v9732_v48  ;;  %v2848_v4 = vsel %vm2844_vm0, %v8227_v13, %v8297_v11 }
0x1d0a   :  { %v8445_v6 = vadd.s32 %v2859_v45, %v8227_v13  ;;  %v8448_v52 = vadd.s32 %v2845_v16, %v8230_v37  ;;  %v2852_v38 = vrot.slane %v2848_v4, %v6849_v8  ;;  %v9907_v4 = vld [vmem:[#allocation15_spill] sm:$0xff] }
0x1d0c   :  { %v2910_v25 = vrot.slane %v8448_v52, %v6849_v8  ;;  %vm2906_vm14 = vcmp.lt.s32.totalorder %v8448_v52, 6  ;;  %vm2870_vm1 = vcmp.ge.s32.totalorder %v8445_v6, 2  ;;  %v4733_v14 = vadd.s32 4294967295, %v8445_v6 }
0x1d0d   :  { %vm8456_vm8 = vmand %vm9901_vm6, %vm2906_vm14  ;;  %vm2853_vm6 = vcmp.eq.s32.totalorder %v6824_v59, %v2852_v38  ;;  %v9909_v38 = vld [vmem:[#allocation22_spill] sm:$0xff] }
0x1d0e   :  { %vm2911_vm13 = vcmp.eq.s32.totalorder %v6824_v59, %v2910_v25  ;;  %vm8465_vm4 = vmand %vm9904_vm7, %vm2870_vm1  ;;  %v2893_v49 = vrot.slane %v4733_v14, %v6849_v8  ;;  %v9908_v14 = vld [vmem:[#allocation16_spill] sm:$0xff] }
0x1d0f   :  { %v2912_v20 = vsel %vm2911_vm13, %v7168_v17, 0.0  ;;  %vm3074_vm15 = vmor %vm8456_vm8, %vm8465_vm4  ;;  %vm3212_vm8 = vcmp.eq.s32.totalorder %v9722_v44, 6 }
0x1d10   :  { %v2913_v42 = vsel %vm698_vm3, %v2912_v20, 0.0  ;;  %vm2894_vm13 = vcmp.eq.s32.totalorder %v6824_v59, %v2893_v49  ;;  %v9912_v49 = vld [vmem:[#allocation23_spill] sm:$0xff] }
0x1d11   :  { %v2914_v1 = vrot.slane %v2913_v42, 4 }
0x1d13   :  { %v2915_v47 = vadd.f32 %v2914_v1, %v2913_v42 }
0x1d15   :  { %v2916_v36 = vrot.slane %v2915_v47, 2 }
0x1d17   :  { %v2917_v10 = vadd.f32 %v2916_v36, %v2915_v47 }
0x1d19   :  { %v2918_v31 = vrot.slane %v2917_v10, 1 }
0x1d1b   :  { %v2919_v2 = vadd.f32 %v2918_v31, %v2917_v10 }
0x1d1d   :  { %v8476_v27 = vsel %vm2906_vm14, %v2919_v2, %v8260_v24  ;;  %vm2866_vm14 = vcmp.eq.s32.totalorder %v6824_v59, 5 }
0x1d1e   :  { %4734 = vmatprep.mubr.msk.f32.mxu1 %vm799_vm5, %v8476_v27  ;;  %4735 = vmatprep.mubr.msk.f32.mxu0 %vm799_vm5, %v8476_v27 }
0x1d29   :  { %v2837_v61 = vpop.permute.xlu1 %2836 }
0x1d2a   :  { %v2843_v32 = vsel %vm1022_vm9, %v2837_v61, %v2841_v5  ;;  %v9910_v5 = vld [vmem:[#allocation17_spill] sm:$0xff]  ;;  %v9911_v61 = vld [vmem:[#allocation18_spill] sm:$0xff] }
0x1d2b   :  { %v2847_v58 = vsel %vm2844_vm0, %v8263_v41, %v2843_v32  ;;  %vm2888_vm0 = vcmp.ge.s32.totalorder %v8445_v6, 1  ;;  %v9913_v32 = vld [vmem:[#allocation19_spill] sm:$0xff] }
0x1d2c   :  { %v2857_v19 = vrot.slane %v2847_v58, %v6849_v8  ;;  %v9914_v58 = vld [vmem:[#allocation20_spill] sm:$0xff] }
0x1d2e   :  { %v8496_v13 = vsel %vm2853_vm6, %v2857_v19, %v8283_v35  ;;  %v8499_v11 = vsel %vm2866_vm14, %v2857_v19, %v8286_v53  ;;  %v8510_v35 = vadd.s32 4294967294, %v8445_v6  ;;  %v9915_v19 = vld [vmem:[#allocation24_spill] sm:$0xff] }
0x1d2f   :  { %v2895_v9 = vsel %vm2894_vm13, %v8496_v13, 0.0 }
0x1d30   :  { %v2896_v29 = vsel %vm698_vm3, %v2895_v9, 0.0  ;;  %v2875_v53 = vrot.slane %v8510_v35, %v6849_v8  ;;  %v9916_v9 = vld [vmem:[#allocation25_spill] sm:$0xff] }
0x1d31   :  { %v2897_v21 = vrot.slane %v2896_v29, 4 }
0x1d32   :  { %vm2876_vm7 = vcmp.eq.s32.totalorder %v6824_v59, %v2875_v53  ;;  %v9924_v53 = vld [vmem:[#allocation33_spill] sm:$0xff] }
0x1d33   :  { %v2898_v12 = vadd.f32 %v2897_v21, %v2896_v29  ;;  %v2877_v16 = vsel %vm2876_vm7, %v8496_v13, 0.0  ;;  %v9917_v29 = vld [vmem:[#allocation26_spill] sm:$0xff]  ;;  %v9918_v21 = vld [vmem:[#allocation27_spill] sm:$0xff]  ;;  %vm9942_vm7 = vcmask 1042432  }
0x1d34   :  { %v2878_v45 = vsel %vm698_vm3, %v2877_v16, 0.0  ;;  %v9925_v16 = vld [vmem:[#allocation34_spill] sm:$0xff] }
0x1d35   :  { %v2899_v18 = vrot.slane %v2898_v12, 2  ;;  %v2879_v25 = vrot.slane %v2878_v45, 4 }
0x1d37   :  { %v2900_v41 = vadd.f32 %v2899_v18, %v2898_v12  ;;  %v2880_v20 = vadd.f32 %v2879_v25, %v2878_v45  ;;  %v9919_v12 = vld [vmem:[#allocation28_spill] sm:$0xff]  ;;  %v9920_v18 = vld [vmem:[#allocation29_spill] sm:$0xff]  ;;  %v9926_v45 = vld [vmem:[#allocation35_spill] sm:$0xff] }
0x1d38   :  { %v9927_v25 = vld [vmem:[#allocation36_spill] sm:$0xff] }
0x1d39   :  { %v2901_v55 = vrot.slane %v2900_v41, 1  ;;  %v2881_v42 = vrot.slane %v2880_v20, 2 }
0x1d3b   :  { %v2902_v56 = vadd.f32 %v2901_v55, %v2900_v41  ;;  %v2882_v1 = vadd.f32 %v2881_v42, %v2880_v20  ;;  %v9921_v41 = vld [vmem:[#allocation30_spill] sm:$0xff]  ;;  %v9922_v55 = vld [vmem:[#allocation31_spill] sm:$0xff] }
0x1d3c   :  { %v9928_v20 = vld [vmem:[#allocation14_spill] sm:$0xff] }
0x1d3d   :  { %v8505_v7 = vsel %vm2888_vm0, %v2902_v56, %v8260_v24  ;;  %v2883_v47 = vrot.slane %v2882_v1, 1  ;;  %v9923_v56 = vld [vmem:[#allocation32_spill] sm:$0xff]  ;;  %vm8600_vm0 = vmand %vm9663_vm2, %vm3074_vm15 }
0x1d3e   :  { %2924 = vrot.lane.b32.xlu1 %v8505_v7, %s6348_s19 }
0x1d3f   :  { %v2884_v36 = vadd.f32 %v2883_v47, %v2882_v1  ;;  %v9929_v47 = vld [vmem:[#allocation38_spill] sm:$0xff] }
0x1d41   :  { %v8520_v31 = vsel %vm2870_vm1, %v2884_v36, %v8260_v24 }
0x1db0   :  { %v2925_v10 = vpop.permute.xlu1 %2924 }
0x1db1   :  { %v2927_v2 = vsel %vm799_vm5, %v8520_v31, %v2925_v10 }
0x1db2   :  { %2996 = vmatmul.mubr.f32.vlgmr.msra.gmra.mrb[16].mxu1 %v2927_v2  ;;  %3067 = vmatmul.mubr.f32.vlgmr.msra.gmra.mrb[26].mxu0 %v2927_v2 }
0x1db3   :  { %5660 = vmatpush1.bf16.msra.mxu1 %v6826_v60  ;;  %5707 = vmatpush1.bf16.msra.mxu0 %v6976_v50 }
0x1db4   :  { %5662 = vmatprep.subr.bf16.mxu1 %v6840_v3  ;;  %5708 = vmatprep.subr.bf16.mxu0 %v9710_v51 }
0x1db7   :  { %5664 = vmatpush1.bf16.msra.mxu1 %v6852_v26  ;;  %5710 = vmatpush1.bf16.msra.mxu0 %v6986_v54 }
0x1db8   :  { %5666 = vmatprep.subr.bf16.mxu1 %v6865_v15  ;;  %5711 = vmatprep.subr.bf16.mxu0 %v9710_v51 }
0x1dbb   :  { %5668 = vmatpush1.bf16.msra.mxu1 %v6876_v28  ;;  %5713 = vmatpush1.bf16.msra.mxu0 %v6996_v57 }
0x1dbc   :  { %5670 = vmatprep.subr.bf16.mxu1 %v6885_v22  ;;  %5714 = vmatprep.subr.bf16.mxu0 %v9710_v51 }
0x1dbf   :  { %5672 = vmatpush1.bf16.msra.mxu1 %v6894_v30  ;;  %5716 = vmatpush1.bf16.msra.mxu0 %v7006_v0 }
0x1dc0   :  { %5674 = vmatprep.subr.bf16.mxu1 %v6903_v63  ;;  %5717 = vmatprep.subr.bf16.mxu0 %v9710_v51 }
0x1dc3   :  { %5676 = vmatpush1.bf16.msra.mxu1 %v6912_v33  ;;  %5719 = vmatpush1.bf16.msra.mxu0 %v9777_v40 }
0x1dc4   :  { %5678 = vmatprep.subr.bf16.mxu1 %v9907_v4  ;;  %5720 = vmatprep.subr.bf16.mxu0 %v9710_v51 }
0x1dc7   :  { %5680 = vmatpush1.bf16.msra.mxu1 %v9908_v14  ;;  %5722 = vmatpush1.bf16.msra.mxu0 %v9909_v38 }
0x1dc8   :  { %5682 = vmatprep.subr.bf16.mxu1 %v9910_v5  ;;  %5723 = vmatprep.subr.bf16.mxu0 %v9710_v51 }
0x1dcb   :  { %5684 = vmatpush1.bf16.msra.mxu1 %v9911_v61  ;;  %5725 = vmatpush1.bf16.msra.mxu0 %v9912_v49 }
0x1dcc   :  { %5686 = vmatprep.subr.bf16.mxu1 %v9913_v32  ;;  %5726 = vmatprep.subr.bf16.mxu0 %v9710_v51 }
0x1dcf   :  { %5688 = vmatpush1.bf16.msra.mxu1 %v9914_v58  ;;  %5728 = vmatpush1.bf16.msra.mxu0 %v9915_v19 }
0x1dd0   :  { %5690 = vmatprep.subr.bf16.mxu1 %v9916_v9  ;;  %5729 = vmatprep.subr.bf16.mxu0 %v9710_v51 }
0x1dd3   :  { %5692 = vmatpush1.bf16.msra.mxu1 %v9917_v29  ;;  %5731 = vmatpush1.bf16.msra.mxu0 %v9918_v21 }
0x1dd4   :  { %5694 = vmatprep.subr.bf16.mxu1 %v9919_v12  ;;  %5732 = vmatprep.subr.bf16.mxu0 %v9710_v51 }
0x1dd7   :  { %5696 = vmatpush1.bf16.msra.mxu1 %v9920_v18  ;;  %5734 = vmatpush1.bf16.msra.mxu0 %v9921_v41 }
0x1dd8   :  { %5698 = vmatprep.subr.bf16.mxu1 %v9922_v55  ;;  %5735 = vmatprep.subr.bf16.mxu0 %v9710_v51 }
0x1ddb   :  { %5700 = vmatpush1.bf16.msra.mxu1 %v9923_v56  ;;  %5737 = vmatpush1.bf16.msra.mxu0 %v9924_v53  ;;  %v9934_v56 = vld [vmem:[#allocation45_spill] sm:$0xff] }
0x1ddc   :  { %5702 = vmatprep.subr.bf16.mxu1 %v9925_v16  ;;  %5738 = vmatprep.subr.bf16.mxu0 %v9710_v51 }
0x1ddf   :  { %5704 = vmatpush1.bf16.msra.mxu1 %v9926_v45  ;;  %5740 = vmatpush1.bf16.msra.mxu0 %v9927_v25 }
0x1de0   :  { %5742 = vmatprep.subr.bf16.mxu1 %v9928_v20  ;;  %5789 = vmatprep.subr.bf16.mxu0 %v9710_v51 }
0x1e85   :  { %v2997_v42 = vpop.f32.mrb[16].mxu1  ;;  %v8572_v1 = vpop.f32.mrb[26].mxu0 }
0x1e86   :  { %v2998_v36 = vadd.f32 %v2997_v42, %v9929_v47  ;;  %v8575_v10 = vpop.f32.mrb[17].mxu1  ;;  %v3070_v2 = vpop.f32.mrb[27].mxu0 }
0x1e88   :  { %v3099_v16 = vsel %vm7248_vm10, %v2998_v36, -1e+30  ;;  %v3087_v45 = vsel %vm7254_vm11, %v2998_v36, -1e+30 }
0x1e89   :  { %v3100_v25 = vsel %vm967_vm12, %v3099_v16, -inf  ;;  %v3088_v20 = vsel %vm967_vm12, %v3087_v45, -inf }
0x1e8a   :  { %3101 = vmax.xlane.f32.xlu1 %v3100_v25  ;;  %3089 = vmax.xlane.f32.xlu0 %v3088_v20 }
0x1f17   :  { %v3102_v55 = vpop.xlane.xlu1 %3101  ;;  %v3090_v41 = vpop.xlane.xlu0 %3089 }
0x1f18   :  { %vm3103_vm1 = vcmp.ge.f32.partialorder %v3099_v16, %v3102_v55  ;;  %vm3091_vm14 = vcmp.ge.f32.partialorder %v3087_v45, %v3090_v41  ;;  %v8606_v55 = vsel %vm8600_vm0, %v2998_v36, -1e+30 }
0x1f19   :  { %vm3104_vm6 = vmand %vm7248_vm10, %vm3103_vm1  ;;  %v3077_v16 = vsel %vm967_vm12, %v8606_v55, -inf  ;;  %vm9943_vm1 = vcmask 256000  }
0x1f1a   :  { %v3105_v42 = vsel %vm3104_vm6, %v7268_v46, 1e+09  ;;  %vm3092_vm13 = vmand %vm7254_vm11, %vm3091_vm14 }
0x1f1b   :  { %v3093_v2 = vsel %vm3092_vm13, %v7268_v46, 1e+09  ;;  %v3106_v47 = vsel %vm967_vm12, %v3105_v42, inf }
0x1f1c   :  { %3107 = vmin.xlane.f32.xlu0 %v3106_v47  ;;  %v3094_v25 = vsel %vm967_vm12, %v3093_v2, inf }
0x1f1d   :  { %3095 = vmin.xlane.f32.xlu1 %v3094_v25 }
0x1f32   :  { %3170 = vrot.lane.b32.xlu0 %v8505_v7, %s6349_s11 }
0x1f51   :  { %3078 = vmax.xlane.f32.xlu0 %v3077_v16  ;;  %v9936_v16 = vld [vmem:[#allocation42_spill] sm:$0xff] }
0x1fa9   :  { %v3108_v7 = vpop.xlane.xlu0 %3107 }
0x1faa   :  { %v3096_v45 = vpop.xlane.xlu1 %3095  ;;  %v6033_v23 = vtrunc.f32 %v3108_v7 }
0x1fab   :  { %v6031_v20 = vtrunc.f32 %v3096_v45  ;;  %v8628_v45 = vld [vmem:[%s9550_s13] sm:$0x77] }
0x1fac   :  { %v6034_v37 = vcvt.f32.s32 %v6033_v23  ;;  %9938 = vst [vmem:[#allocation46_spill] sm:$0xff] %v8628_v45 }
0x1fad   :  { %v6032_v47 = vcvt.f32.s32 %v6031_v20 }
0x1fae   :  { %v4737_v42 = vadd.s32 4294967286, %v6034_v37  ;;  %v8635_v37 = vld [vmem:[%s9549_s12] sm:$0xff] }
0x1faf   :  { %v4736_v2 = vadd.s32 4294967294, %v6032_v47  ;;  %9940 = vst [vmem:[#allocation43_spill] sm:$0xff] %v8635_v37 }
0x1fb0   :  { %v3134_v25 = vrot.slane %v4737_v42, %v6849_v8  ;;  %v8615_v36 = vsel %vm3212_vm8, %v4737_v42, %v9934_v56  ;;  %v9939_v56 = vld [vmem:[#allocation44_spill] sm:$0xff] }
0x1fb1   :  { %9935 = vst [vmem:[#allocation41_spill] sm:$0xff] %v8615_v36  ;;  %v3114_v53 = vrot.slane %v4736_v2, %v6849_v8  ;;  %v8621_v7 = vsel %vm3212_vm8, %v4736_v2, %v9936_v16 }
0x1fb2   :  { %9937 = vst [vmem:[#allocation37_spill] sm:$0xff] %v8621_v7  ;;  %vm3135_vm4 = vcmp.eq.s32.totalorder %v6824_v59, %v3134_v25 }
0x1fb3   :  { %vm3115_vm15 = vcmp.eq.s32.totalorder %v6824_v59, %v3114_v53  ;;  %v3136_v23 = vsel %vm3135_vm4, %v8628_v45, 0.0  ;;  %v3137_v20 = vsel %vm3135_vm4, %v9939_v56, 0.0  ;;  %v8641_v53 = vld [vmem:[%s9549_s12 + $0x8] sm:$0xff]  ;;  %vm9944_vm4 = vcmp.eq.s32.totalorder %v9722_v44, 0 }
0x1fb4   :  { %v3116_v47 = vsel %vm3115_vm15, %v8635_v37, 0.0  ;;  %9941 = vst [vmem:[#allocation45_spill] sm:$0xff] %v8641_v53  ;;  %v3117_v42 = vsel %vm3115_vm15, %v8641_v53, 0.0  ;;  %v3138_v2 = vsel %vm9942_vm7, %v3136_v23, 0.0  ;;  %v3145_v25 = vsel %vm9943_vm1, %v3137_v20, 0.0 }
0x1fb5   :  { %v3118_v16 = vrot.slane %v3116_v47, 4  ;;  %v3124_v7 = vsel %vm1022_vm9, %v3117_v42, 0.0  ;;  %v3139_v56 = vrot.slane %v3138_v2, 4  ;;  %v3146_v45 = vrot.slane %v3145_v25, 4 }
0x1fb6   :  { %v3125_v36 = vrot.slane %v3124_v7, 4  ;;  %vm9947_vm1 = vcmp.eq.s32.totalorder %v9722_v44, 1 }
0x1fb7   :  { %v3119_v18 = vadd.f32 %v3118_v16, %v3116_v47  ;;  %v3140_v12 = vadd.f32 %v3139_v56, %v3138_v2  ;;  %v3147_v37 = vadd.f32 %v3146_v45, %v3145_v25  ;;  %v3000_v45 = vadd.f32 %v8575_v10, %v7335_v43 }
0x1fb8   :  { %v3126_v21 = vadd.f32 %v3125_v36, %v3124_v7  ;;  %v3069_v7 = vadd.f32 %v8572_v1, %v7338_v62 }
0x1fb9   :  { %v3120_v29 = vrot.slane %v3119_v18, 2  ;;  %v3141_v9 = vrot.slane %v3140_v12, 2  ;;  %v3148_v19 = vrot.slane %v3147_v37, 2 }
0x1fba   :  { %v3127_v58 = vrot.slane %v3126_v21, 2 }
0x1fbb   :  { %v3121_v32 = vadd.f32 %v3120_v29, %v3119_v18  ;;  %v3142_v53 = vadd.f32 %v3141_v9, %v3140_v12  ;;  %v3149_v49 = vadd.f32 %v3148_v19, %v3147_v37 }
0x1fbc   :  { %v3128_v23 = vadd.f32 %v3127_v58, %v3126_v21 }
0x1fbd   :  { %v3122_v61 = vrot.slane %v3121_v32, 1  ;;  %v3143_v20 = vrot.slane %v3142_v53, 1  ;;  %v3150_v5 = vrot.slane %v3149_v49, 1 }
0x1fbe   :  { %v3129_v38 = vrot.slane %v3128_v23, 1 }
0x1fbf   :  { %v3123_v42 = vadd.f32 %v3122_v61, %v3121_v32  ;;  %v3144_v14 = vadd.f32 %v3143_v20, %v3142_v53  ;;  %v3151_v4 = vadd.f32 %v3150_v5, %v3149_v49 }
0x1fc0   :  { %v3130_v40 = vadd.f32 %v3129_v38, %v3128_v23  ;;  %v3171_v38 = vpop.permute.xlu0 %3170 }
0x1fc1   :  { %v3152_v36 = vadd.f32 %v3144_v14, %v3123_v42 }
0x1fc2   :  { %v3153_v56 = vadd.f32 %v3151_v4, %v3130_v40 }
0x1fc3   :  { %v3154_v29 = vadd.f32 %v3152_v36, %v3000_v45 }
0x1fc4   :  { %v3155_v9 = vadd.f32 %v3153_v56, %v3069_v7 }
0x1fc5   :  { %v4738_v19 = vmul.f32 -1.442695, %v3154_v29 }
0x1fc7   :  { %6176 = vpow2.f32 %v4738_v19 }
0x1fd1   :  { %v6177_v58 = vpop.eup %6176 }
0x1fd2   :  { %v3159_v21 = vadd.f32 1.0, %v6177_v58 }
0x1fd4   :  { %6178 = vrcp.f32 %v3159_v21 }
0x1fd5   :  { %6180 = vtanh.f32 %v3155_v9 }
0x1fde   :  { %v6179_v12 = vpop.eup %6178  ;;  %v3079_v10 = vpop.xlane.xlu0 %3078 }
0x1fdf   :  { %v3164_v61 = vmul.f32 %v6179_v12, %v8520_v31  ;;  %v3173_v5 = vmul.f32 %v6179_v12, %v3171_v38  ;;  %v6181_v14 = vpop.eup %6180  ;;  %vm3080_vm14 = vcmp.ge.f32.partialorder %v8606_v55, %v3079_v10 }
0x1fe0   :  { %v3163_v40 = vmul.f32 %v6181_v14, %v6179_v12  ;;  %vm3081_vm6 = vmand %vm8600_vm0, %vm3080_vm14 }
0x1fe1   :  { %3166 = vrot.lane.b32.xlu1 %v3164_v61, %s6350_s29  ;;  %v3082_v31 = vsel %vm3081_vm6, %v7268_v46, 1e+09 }
0x1fe2   :  { %v3083_v37 = vsel %vm967_vm12, %v3082_v31, inf }
0x1fe5   :  { %3175 = vrot.lane.b32.xlu1 %v3173_v5, %s6348_s19 }
0x2053   :  { %v3167_v49 = vpop.permute.xlu1 %3166 }
0x2054   :  { %v3169_v4 = vadd.f32 %v3167_v49, %v3163_v40 }
0x2057   :  { %v3176_v32 = vpop.permute.xlu1 %3175 }
0x2058   :  { %v3178_v18 = vadd.f32 %v3176_v32, %v3169_v4 }
0x205a   :  { %6182 = vtanh.f32 %v3178_v18 }
0x2064   :  { %v6183_v1 = vpop.eup %6182 }
0x2065   :  { %3181 = vrot.lane.b32.xlu1 %v6183_v1, %s6350_s29 }
0x2089   :  { %3084 = vmin.xlane.f32.xlu1 %v3083_v37 }
0x209a   :  { %3190 = vrot.lane.b32.xlu1 %v3178_v18, %s6349_s11 }
0x20d7   :  { %v3182_v47 = vpop.permute.xlu1 %3181 }
0x20d8   :  { %v3184_v53 = vmul.f32 %v6179_v12, %v3182_v47 }
0x20da   :  { %3186 = vrot.lane.b32.xlu0 %v3184_v53, %s6349_s11 }
0x2116   :  { %v3085_v2 = vpop.xlane.xlu1 %3084 }
0x2117   :  { %v6029_v25 = vtrunc.f32 %v3085_v2 }
0x2119   :  { %v6030_v16 = vcvt.f32.s32 %v6029_v25 }
0x211a   :  { %v3191_v14 = vpop.permute.xlu1 %3190 }
0x211b   :  { %vm3194_vm13 = vcmp.eq.s32.totalorder %v6030_v16, 0  ;;  %v8665_v41 = vsel %vm3212_vm8, %v6030_v16, %v8438_v34 }
0x211c   :  { %v3195_v55 = vsel %vm3194_vm13, 1, %v9709_v39  ;;  %v3209_v23 = vsel %vm3194_vm13, 1, %v9732_v48  ;;  %v3198_v61 = vsel %vm3194_vm13, %v8445_v6, %v8510_v35 }
0x211d   :  { %v8672_v20 = vadd.s32 %v3209_v23, %v8445_v6  ;;  %v8675_v42 = vadd.s32 %v3195_v55, %v8448_v52  ;;  %v3202_v5 = vrot.slane %v3198_v61, %v6849_v8  ;;  %v9952_v61 = vld [vmem:[#allocation16_spill] sm:$0xff] }
0x211f   :  { %v3260_v45 = vrot.slane %v8675_v42, %v6849_v8  ;;  %vm3256_vm0 = vcmp.lt.s32.totalorder %v8675_v42, 6  ;;  %vm3220_vm8 = vcmp.ge.s32.totalorder %v8672_v20, 2  ;;  %v4740_v38 = vadd.s32 4294967295, %v8672_v20 }
0x2120   :  { %vm8683_vm15 = vmand %vm9944_vm4, %vm3256_vm0  ;;  %vm3203_vm4 = vcmp.eq.s32.totalorder %v6824_v59, %v3202_v5  ;;  %v9954_v5 = vld [vmem:[#allocation17_spill] sm:$0xff] }
0x2121   :  { %vm3261_vm7 = vcmp.eq.s32.totalorder %v6824_v59, %v3260_v45  ;;  %vm8692_vm14 = vmand %vm9947_vm1, %vm3220_vm8  ;;  %v3243_v40 = vrot.slane %v4740_v38, %v6849_v8  ;;  %v9953_v38 = vld [vmem:[#allocation22_spill] sm:$0xff] }
0x2122   :  { %v3262_v36 = vsel %vm3261_vm7, %v7168_v17, 0.0  ;;  %vm3424_vm6 = vmor %vm8683_vm15, %vm8692_vm14 }
0x2123   :  { %v3263_v7 = vsel %vm698_vm3, %v3262_v36, 0.0  ;;  %vm3244_vm7 = vcmp.eq.s32.totalorder %v6824_v59, %v3243_v40  ;;  %v9957_v40 = vld [vmem:[#allocation19_spill] sm:$0xff] }
0x2124   :  { %v3264_v56 = vrot.slane %v3263_v7, 4 }
0x2126   :  { %v3265_v29 = vadd.f32 %v3264_v56, %v3263_v7 }
0x2128   :  { %v3266_v9 = vrot.slane %v3265_v29, 2 }
0x212a   :  { %v3267_v19 = vadd.f32 %v3266_v9, %v3265_v29 }
0x212c   :  { %v3268_v58 = vrot.slane %v3267_v19, 1 }
0x212e   :  { %v3269_v21 = vadd.f32 %v3268_v58, %v3267_v19 }
0x2130   :  { %v8703_v12 = vsel %vm3256_vm0, %v3269_v21, %v8260_v24  ;;  %vm3216_vm0 = vcmp.eq.s32.totalorder %v6824_v59, 6  ;;  %v9951_v21 = vld [vmem:[#allocation15_spill] sm:$0xff] }
0x2131   :  { %4741 = vmatprep.mubr.msk.f32.mxu1 %vm799_vm5, %v8703_v12  ;;  %4742 = vmatprep.mubr.msk.f32.mxu0 %vm799_vm5, %v8703_v12 }
0x214c   :  { %v3187_v49 = vpop.permute.xlu0 %3186 }
0x214d   :  { %v3193_v4 = vsel %vm1022_vm9, %v3187_v49, %v3191_v14  ;;  %v9955_v14 = vld [vmem:[#allocation18_spill] sm:$0xff]  ;;  %v9956_v49 = vld [vmem:[#allocation23_spill] sm:$0xff] }
0x214e   :  { %v3197_v32 = vsel %vm3194_vm13, %v8476_v27, %v3193_v4  ;;  %vm3238_vm13 = vcmp.ge.s32.totalorder %v8672_v20, 1  ;;  %v9958_v4 = vld [vmem:[#allocation20_spill] sm:$0xff] }
0x214f   :  { %v3207_v18 = vrot.slane %v3197_v32, %v6849_v8  ;;  %v9959_v32 = vld [vmem:[#allocation24_spill] sm:$0xff] }
0x2151   :  { %v8723_v6 = vsel %vm3203_vm4, %v3207_v18, %v8496_v13  ;;  %v8726_v35 = vsel %vm3216_vm0, %v3207_v18, %v8499_v11  ;;  %v8737_v13 = vadd.s32 4294967294, %v8672_v20  ;;  %v9960_v18 = vld [vmem:[#allocation25_spill] sm:$0xff] }
0x2152   :  { %v3245_v1 = vsel %vm3244_vm7, %v8723_v6, 0.0 }
0x2153   :  { %v3246_v10 = vsel %vm698_vm3, %v3245_v1, 0.0  ;;  %v3225_v11 = vrot.slane %v8737_v13, %v6849_v8  ;;  %v9961_v1 = vld [vmem:[#allocation26_spill] sm:$0xff] }
0x2154   :  { %v3247_v31 = vrot.slane %v3246_v10, 4 }
0x2155   :  { %vm3226_vm1 = vcmp.eq.s32.totalorder %v6824_v59, %v3225_v11  ;;  %v9969_v11 = vld [vmem:[#allocation34_spill] sm:$0xff] }
0x2156   :  { %v3248_v27 = vadd.f32 %v3247_v31, %v3246_v10  ;;  %v3227_v16 = vsel %vm3226_vm1, %v8723_v6, 0.0  ;;  %v9962_v10 = vld [vmem:[#allocation27_spill] sm:$0xff]  ;;  %v9963_v31 = vld [vmem:[#allocation28_spill] sm:$0xff] }
0x2157   :  { %v3228_v55 = vsel %vm698_vm3, %v3227_v16, 0.0  ;;  %v9970_v16 = vld [vmem:[#allocation35_spill] sm:$0xff] }
0x2158   :  { %v3249_v37 = vrot.slane %v3248_v27, 2  ;;  %v3229_v23 = vrot.slane %v3228_v55, 4 }
0x215a   :  { %v3250_v47 = vadd.f32 %v3249_v37, %v3248_v27  ;;  %v3230_v45 = vadd.f32 %v3229_v23, %v3228_v55  ;;  %v9964_v27 = vld [vmem:[#allocation29_spill] sm:$0xff]  ;;  %v9965_v37 = vld [vmem:[#allocation30_spill] sm:$0xff]  ;;  %v9971_v55 = vld [vmem:[#allocation36_spill] sm:$0xff] }
0x215b   :  { %v9972_v23 = vld [vmem:[#allocation14_spill] sm:$0xff] }
0x215c   :  { %v3251_v53 = vrot.slane %v3250_v47, 1  ;;  %v3231_v36 = vrot.slane %v3230_v45, 2 }
0x215e   :  { %v3252_v2 = vadd.f32 %v3251_v53, %v3250_v47  ;;  %v3232_v7 = vadd.f32 %v3231_v36, %v3230_v45  ;;  %v9966_v47 = vld [vmem:[#allocation31_spill] sm:$0xff]  ;;  %v9967_v53 = vld [vmem:[#allocation32_spill] sm:$0xff] }
0x2160   :  { %v8732_v25 = vsel %vm3238_vm13, %v3252_v2, %v8260_v24  ;;  %v3233_v56 = vrot.slane %v3232_v7, 1  ;;  %v9968_v2 = vld [vmem:[#allocation33_spill] sm:$0xff]  ;;  %vm3562_vm13 = vcmp.eq.s32.totalorder %v9722_v44, 7 }
0x2161   :  { %3274 = vrot.lane.b32.xlu0 %v8732_v25, %s6348_s19 }
0x2162   :  { %v3234_v29 = vadd.f32 %v3233_v56, %v3232_v7  ;;  %v9973_v7 = vld [vmem:[#allocation38_spill] sm:$0xff] }
0x2164   :  { %v8747_v19 = vsel %vm3220_vm8, %v3234_v29, %v8260_v24  ;;  %v9950_v24 = vld [vmem:[#allocation21_spill] sm:$0xff] }
0x21d3   :  { %v3275_v9 = vpop.permute.xlu0 %3274 }
0x21d4   :  { %v3277_v58 = vsel %vm799_vm5, %v8747_v19, %v3275_v9 }
0x21d5   :  { %3346 = vmatmul.mubr.f32.vlgmr.msra.gmra.mrb[18].mxu1 %v3277_v58  ;;  %3417 = vmatmul.mubr.f32.vlgmr.msra.gmra.mrb[28].mxu0 %v3277_v58 }
0x21d6   :  { %5744 = vmatpush1.bf16.msra.mxu1 %v6826_v60  ;;  %5791 = vmatpush1.bf16.msra.mxu0 %v6976_v50 }
0x21d7   :  { %5746 = vmatprep.subr.bf16.mxu1 %v6840_v3  ;;  %5792 = vmatprep.subr.bf16.mxu0 %v9710_v51 }
0x21da   :  { %5748 = vmatpush1.bf16.msra.mxu1 %v6852_v26  ;;  %5794 = vmatpush1.bf16.msra.mxu0 %v6986_v54 }
0x21db   :  { %5750 = vmatprep.subr.bf16.mxu1 %v6865_v15  ;;  %5795 = vmatprep.subr.bf16.mxu0 %v9710_v51 }
0x21de   :  { %5752 = vmatpush1.bf16.msra.mxu1 %v6876_v28  ;;  %5797 = vmatpush1.bf16.msra.mxu0 %v6996_v57 }
0x21df   :  { %5754 = vmatprep.subr.bf16.mxu1 %v6885_v22  ;;  %5798 = vmatprep.subr.bf16.mxu0 %v9710_v51 }
0x21e2   :  { %5756 = vmatpush1.bf16.msra.mxu1 %v6894_v30  ;;  %5800 = vmatpush1.bf16.msra.mxu0 %v7006_v0 }
0x21e3   :  { %5758 = vmatprep.subr.bf16.mxu1 %v6903_v63  ;;  %5801 = vmatprep.subr.bf16.mxu0 %v9710_v51 }
0x21e6   :  { %5760 = vmatpush1.bf16.msra.mxu1 %v6912_v33  ;;  %5803 = vmatpush1.bf16.msra.mxu0 %v9950_v24 }
0x21e7   :  { %5762 = vmatprep.subr.bf16.mxu1 %v9951_v21  ;;  %5804 = vmatprep.subr.bf16.mxu0 %v9710_v51 }
0x21ea   :  { %5764 = vmatpush1.bf16.msra.mxu1 %v9952_v61  ;;  %5806 = vmatpush1.bf16.msra.mxu0 %v9953_v38 }
0x21eb   :  { %5766 = vmatprep.subr.bf16.mxu1 %v9954_v5  ;;  %5807 = vmatprep.subr.bf16.mxu0 %v9710_v51 }
0x21ee   :  { %5768 = vmatpush1.bf16.msra.mxu1 %v9955_v14  ;;  %5809 = vmatpush1.bf16.msra.mxu0 %v9956_v49 }
0x21ef   :  { %5770 = vmatprep.subr.bf16.mxu1 %v9957_v40  ;;  %5810 = vmatprep.subr.bf16.mxu0 %v9710_v51 }
0x21f2   :  { %5772 = vmatpush1.bf16.msra.mxu1 %v9958_v4  ;;  %5812 = vmatpush1.bf16.msra.mxu0 %v9959_v32 }
0x21f3   :  { %5774 = vmatprep.subr.bf16.mxu1 %v9960_v18  ;;  %5813 = vmatprep.subr.bf16.mxu0 %v9710_v51 }
0x21f6   :  { %5776 = vmatpush1.bf16.msra.mxu1 %v9961_v1  ;;  %5815 = vmatpush1.bf16.msra.mxu0 %v9962_v10 }
0x21f7   :  { %5778 = vmatprep.subr.bf16.mxu1 %v9963_v31  ;;  %5816 = vmatprep.subr.bf16.mxu0 %v9710_v51  ;;  %v9982_v31 = vld [vmem:[#allocation37_spill] sm:$0xff] }
0x21fa   :  { %5780 = vmatpush1.bf16.msra.mxu1 %v9964_v27  ;;  %5818 = vmatpush1.bf16.msra.mxu0 %v9965_v37 }
0x21fb   :  { %5782 = vmatprep.subr.bf16.mxu1 %v9966_v47  ;;  %5819 = vmatprep.subr.bf16.mxu0 %v9710_v51 }
0x21fe   :  { %5784 = vmatpush1.bf16.msra.mxu1 %v9967_v53  ;;  %5821 = vmatpush1.bf16.msra.mxu0 %v9968_v2 }
0x21ff   :  { %5786 = vmatprep.subr.bf16.mxu1 %v9969_v11  ;;  %5822 = vmatprep.subr.bf16.mxu0 %v9710_v51 }
0x2202   :  { %5788 = vmatpush1.bf16.msra.mxu1 %v9970_v16  ;;  %5824 = vmatpush1.bf16.msra.mxu0 %v9971_v55  ;;  %v9976_v16 = vld [vmem:[#allocation41_spill] sm:$0xff] }
0x2203   :  { %5826 = vmatprep.subr.bf16.mxu1 %v9972_v23  ;;  %5873 = vmatprep.subr.bf16.mxu0 %v9710_v51 }
0x22a8   :  { %v3347_v45 = vpop.f32.mrb[18].mxu1  ;;  %v8799_v36 = vpop.f32.mrb[28].mxu0 }
0x22a9   :  { %v8802_v56 = vadd.f32 %v3347_v45, %v9973_v7  ;;  %v8804_v29 = vpop.f32.mrb[19].mxu1  ;;  %v3420_v9 = vpop.f32.mrb[29].mxu0 }
0x22ab   :  { %v3449_v11 = vsel %vm7248_vm10, %v8802_v56, -1e+30  ;;  %v3437_v55 = vsel %vm7254_vm11, %v8802_v56, -1e+30 }
0x22ac   :  { %v3450_v23 = vsel %vm967_vm12, %v3449_v11, -inf  ;;  %v3438_v2 = vsel %vm967_vm12, %v3437_v55, -inf }
0x22ad   :  { %3451 = vmax.xlane.f32.xlu0 %v3450_v23  ;;  %3439 = vmax.xlane.f32.xlu1 %v3438_v2 }
0x22be   :  { %3520 = vrot.lane.b32.xlu1 %v8732_v25, %s6349_s11 }
0x233a   :  { %v3452_v45 = vpop.xlane.xlu0 %3451  ;;  %v3440_v7 = vpop.xlane.xlu1 %3439 }
0x233b   :  { %vm3453_vm8 = vcmp.ge.f32.partialorder %v3449_v11, %v3452_v45  ;;  %vm3441_vm0 = vcmp.ge.f32.partialorder %v3437_v55, %v3440_v7 }
0x233c   :  { %vm3454_vm4 = vmand %vm7248_vm10, %vm3453_vm8  ;;  %vm9980_vm8 = vcmask 1042432  }
0x233d   :  { %v3455_v9 = vsel %vm3454_vm4, %v7268_v46, 1e+09  ;;  %vm3442_vm7 = vmand %vm7254_vm11, %vm3441_vm0  ;;  %vm9981_vm0 = vcmask 256000  }
0x233e   :  { %v3456_v53 = vsel %vm967_vm12, %v3455_v9, inf  ;;  %v3443_v23 = vsel %vm3442_vm7, %v7268_v46, 1e+09  ;;  %vm8860_vm7 = vmand %vm9663_vm2, %vm3424_vm6 }
0x233f   :  { %3457 = vmin.xlane.f32.xlu0 %v3456_v53  ;;  %v3444_v2 = vsel %vm967_vm12, %v3443_v23, inf  ;;  %v9978_v23 = vld [vmem:[#allocation46_spill] sm:$0xff] }
0x2343   :  { %3445 = vmin.xlane.f32.xlu0 %v3444_v2 }
0x23cc   :  { %v3458_v25 = vpop.xlane.xlu0 %3457 }
0x23cd   :  { %v6039_v47 = vtrunc.f32 %v3458_v25  ;;  %v9979_v25 = vld [vmem:[#allocation44_spill] sm:$0xff] }
0x23cf   :  { %v6040_v11 = vcvt.f32.s32 %v6039_v47 }
0x23d0   :  { %v3446_v55 = vpop.xlane.xlu0 %3445 }
0x23d1   :  { %v4744_v7 = vadd.s32 4294967286, %v6040_v11  ;;  %v6037_v45 = vtrunc.f32 %v3446_v55 }
0x23d3   :  { %v3484_v58 = vrot.slane %v4744_v7, %v6849_v8  ;;  %v8829_v9 = vsel %vm3562_vm13, %v4744_v7, %v9976_v16  ;;  %v6038_v37 = vcvt.f32.s32 %v6037_v45  ;;  %v9984_v45 = vld [vmem:[#allocation43_spill] sm:$0xff] }
0x23d4   :  { %9977 = vst [vmem:[#allocation42_spill] sm:$0xff] %v8829_v9 }
0x23d5   :  { %vm3485_vm1 = vcmp.eq.s32.totalorder %v6824_v59, %v3484_v58  ;;  %v4743_v53 = vadd.s32 4294967294, %v6038_v37 }
0x23d6   :  { %v3486_v2 = vsel %vm3485_vm1, %v9978_v23, 0.0  ;;  %v3487_v47 = vsel %vm3485_vm1, %v9979_v25, 0.0  ;;  %v9985_v25 = vld [vmem:[#allocation45_spill] sm:$0xff] }
0x23d7   :  { %v3488_v27 = vsel %vm9980_vm8, %v3486_v2, 0.0  ;;  %v3495_v11 = vsel %vm9981_vm0, %v3487_v47, 0.0  ;;  %v3464_v55 = vrot.slane %v4743_v53, %v6849_v8  ;;  %v8840_v10 = vsel %vm3562_vm13, %v4743_v53, %v9982_v31 }
0x23d8   :  { %9983 = vst [vmem:[#allocation21_spill] sm:$0xff] %v8840_v10  ;;  %v3489_v16 = vrot.slane %v3488_v27, 4  ;;  %v3496_v7 = vrot.slane %v3495_v11, 4  ;;  %vm9988_vm8 = vcmp.eq.s32.totalorder %v9722_v44, 0 }
0x23d9   :  { %vm3465_vm4 = vcmp.eq.s32.totalorder %v6824_v59, %v3464_v55 }
0x23da   :  { %v3490_v37 = vadd.f32 %v3489_v16, %v3488_v27  ;;  %v3497_v58 = vadd.f32 %v3496_v7, %v3495_v11  ;;  %v3466_v23 = vsel %vm3465_vm4, %v9984_v45, 0.0  ;;  %v3467_v9 = vsel %vm3465_vm4, %v9985_v25, 0.0 }
0x23db   :  { %v3468_v2 = vrot.slane %v3466_v23, 4  ;;  %v3474_v47 = vsel %vm1022_vm9, %v3467_v9, 0.0  ;;  %v3350_v9 = vadd.f32 %v8804_v29, %v7335_v43 }
0x23dc   :  { %v3491_v1 = vrot.slane %v3490_v37, 2  ;;  %v3498_v18 = vrot.slane %v3497_v58, 2  ;;  %v3475_v32 = vrot.slane %v3474_v47, 4 }
0x23dd   :  { %v3469_v4 = vadd.f32 %v3468_v2, %v3466_v23 }
0x23de   :  { %v3492_v40 = vadd.f32 %v3491_v1, %v3490_v37  ;;  %v3499_v31 = vadd.f32 %v3498_v18, %v3497_v58  ;;  %v3476_v53 = vadd.f32 %v3475_v32, %v3474_v47  ;;  %v3419_v18 = vadd.f32 %v8799_v36, %v7338_v62 }
0x23df   :  { %v3470_v10 = vrot.slane %v3469_v4, 2 }
0x23e0   :  { %v3477_v49 = vrot.slane %v3476_v53, 2  ;;  %v3493_v14 = vrot.slane %v3492_v40, 1  ;;  %v3500_v27 = vrot.slane %v3499_v31, 1 }
0x23e1   :  { %v3471_v55 = vadd.f32 %v3470_v10, %v3469_v4 }
0x23e2   :  { %v3478_v11 = vadd.f32 %v3477_v49, %v3476_v53  ;;  %v3494_v45 = vadd.f32 %v3493_v14, %v3492_v40  ;;  %v3501_v5 = vadd.f32 %v3500_v27, %v3499_v31  ;;  %v3521_v14 = vpop.permute.xlu1 %3520 }
0x23e3   :  { %v3472_v16 = vrot.slane %v3471_v55, 1 }
0x23e4   :  { %v3479_v7 = vrot.slane %v3478_v11, 1 }
0x23e5   :  { %v3473_v25 = vadd.f32 %v3472_v16, %v3471_v55 }
0x23e6   :  { %v3480_v38 = vadd.f32 %v3479_v7, %v3478_v11 }
0x23e7   :  { %v3502_v61 = vadd.f32 %v3494_v45, %v3473_v25 }
0x23e8   :  { %v3503_v32 = vadd.f32 %v3501_v5, %v3480_v38 }
0x23e9   :  { %v3504_v1 = vadd.f32 %v3502_v61, %v3350_v9  ;;  %v8918_v61 = vld [vmem:[%s9546_s9] sm:$0x1] }
0x23ea   :  { %v3505_v23 = vadd.f32 %v3503_v32, %v3419_v18 }
0x23eb   :  { %v4745_v37 = vmul.f32 -1.442695, %v3504_v1 }
0x23ed   :  { %6184 = vpow2.f32 %v4745_v37 }
0x23f7   :  { %v6185_v4 = vpop.eup %6184 }
0x23f8   :  { %v3509_v49 = vadd.f32 1.0, %v6185_v4 }
0x23fa   :  { %6186 = vrcp.f32 %v3509_v49 }
0x23fb   :  { %6188 = vtanh.f32 %v3505_v23 }
0x2404   :  { %v6187_v10 = vpop.eup %6186 }
0x2405   :  { %v3514_v40 = vmul.f32 %v6187_v10, %v8747_v19  ;;  %v3523_v58 = vmul.f32 %v6187_v10, %v3521_v14  ;;  %v3426_v19 = vsel %vm8860_vm7, %v8802_v56, -1e+30  ;;  %v6189_v5 = vpop.eup %6188 }
0x2406   :  { %v3427_v38 = vsel %vm967_vm12, %v3426_v19, -inf  ;;  %v3513_v36 = vmul.f32 %v6189_v5, %v6187_v10 }
0x2407   :  { %3516 = vrot.lane.b32.xlu0 %v3514_v40, %s6350_s29  ;;  %3525 = vrot.lane.b32.xlu1 %v3523_v58, %s6348_s19 }
0x242b   :  { %3428 = vmax.xlane.f32.xlu1 %v3427_v38 }
0x2479   :  { %v3517_v34 = vpop.permute.xlu0 %3516  ;;  %v3526_v52 = vpop.permute.xlu1 %3525 }
0x247a   :  { %v3519_v29 = vadd.f32 %v3517_v34, %v3513_v36 }
0x247c   :  { %v3528_v25 = vadd.f32 %v3526_v52, %v3519_v29 }
0x247e   :  { %6190 = vtanh.f32 %v3528_v25 }
0x2488   :  { %v6191_v45 = vpop.eup %6190 }
0x2489   :  { %3531 = vrot.lane.b32.xlu0 %v6191_v45, %s6350_s29 }
0x24b8   :  { %v3429_v2 = vpop.xlane.xlu1 %3428 }
0x24b9   :  { %vm3430_vm15 = vcmp.ge.f32.partialorder %v3426_v19, %v3429_v2 }
0x24ba   :  { %vm3431_vm14 = vmand %vm8860_vm7, %vm3430_vm15  ;;  %vm9991_vm7 = vcmp.eq.s32.totalorder %v9722_v44, 1 }
0x24bb   :  { %v3432_v56 = vsel %vm3431_vm14, %v7268_v46, 1e+09 }
0x24bc   :  { %v3433_v47 = vsel %vm967_vm12, %v3432_v56, inf }
0x24bd   :  { %3434 = vmin.xlane.f32.xlu0 %v3433_v47 }
0x24d3   :  { %3540 = vrot.lane.b32.xlu0 %v3528_v25, %s6349_s11 }
0x24fb   :  { %v3532_v31 = vpop.permute.xlu0 %3531 }
0x24fc   :  { %v3534_v53 = vmul.f32 %v6187_v10, %v3532_v31 }
0x24fe   :  { %3536 = vrot.lane.b32.xlu1 %v3534_v53, %s6349_s11 }
0x254a   :  { %v3435_v55 = vpop.xlane.xlu0 %3434 }
0x254b   :  { %v6035_v27 = vtrunc.f32 %v3435_v55 }
0x254d   :  { %v6036_v11 = vcvt.f32.s32 %v6035_v27 }
0x254e   :  { %v3541_v34 = vpop.permute.xlu0 %3540 }
0x254f   :  { %vm3544_vm6 = vcmp.eq.s32.totalorder %v6036_v11, 0  ;;  %v8878_v16 = vsel %vm3562_vm13, %v6036_v11, %v8665_v41 }
0x2550   :  { %v3545_v7 = vsel %vm3544_vm6, 1, %v9709_v39  ;;  %v3559_v9 = vsel %vm3544_vm6, 1, %v9732_v48  ;;  %v3548_v38 = vsel %vm3544_vm6, %v8672_v20, %v8737_v13 }
0x2551   :  { %v8885_v18 = vadd.s32 %v3559_v9, %v8672_v20  ;;  %v8888_v32 = vadd.s32 %v3545_v7, %v8675_v42  ;;  %v3552_v36 = vrot.slane %v3548_v38, %v6849_v8 }
0x2553   :  { %v3610_v1 = vrot.slane %v8888_v32, %v6849_v8  ;;  %vm3606_vm1 = vcmp.lt.s32.totalorder %v8888_v32, 6  ;;  %vm3570_vm13 = vcmp.ge.s32.totalorder %v8885_v18, 2  ;;  %v4747_v5 = vadd.s32 4294967295, %v8885_v18 }
0x2554   :  { %vm8896_vm0 = vmand %vm9988_vm8, %vm3606_vm1  ;;  %vm3553_vm8 = vcmp.eq.s32.totalorder %v6824_v59, %v3552_v36  ;;  %v9995_v36 = vld [vmem:[#allocation22_spill] sm:$0xff] }
0x2555   :  { %vm3611_vm4 = vcmp.eq.s32.totalorder %v6824_v59, %v3610_v1  ;;  %vm8905_vm15 = vmand %vm9991_vm7, %vm3570_vm13  ;;  %v3593_v52 = vrot.slane %v4747_v5, %v6849_v8  ;;  %v9994_v5 = vld [vmem:[#allocation16_spill] sm:$0xff] }
0x2556   :  { %v3612_v23 = vsel %vm3611_vm4, %v7168_v17, 0.0  ;;  %vm3774_vm14 = vmor %vm8896_vm0, %vm8905_vm15  ;;  %vm3912_vm0 = vcmp.eq.s32.totalorder %v9722_v44, 8 }
0x2557   :  { %v3613_v37 = vsel %vm698_vm3, %v3612_v23, 0.0  ;;  %vm3594_vm4 = vcmp.eq.s32.totalorder %v6824_v59, %v3593_v52  ;;  %v9998_v52 = vld [vmem:[#allocation23_spill] sm:$0xff] }
0x2558   :  { %v3614_v4 = vrot.slane %v3613_v37, 4 }
0x255a   :  { %v3615_v49 = vadd.f32 %v3614_v4, %v3613_v37 }
0x255c   :  { %v3616_v10 = vrot.slane %v3615_v49, 2 }
0x255e   :  { %v3617_v14 = vadd.f32 %v3616_v10, %v3615_v49 }
0x2560   :  { %v3618_v40 = vrot.slane %v3617_v14, 1 }
0x2562   :  { %v3619_v58 = vadd.f32 %v3618_v40, %v3617_v14 }
0x2564   :  { %v8921_v19 = vsel %vm3606_vm1, %v3619_v58, %v8918_v61  ;;  %vm3566_vm1 = vcmp.eq.s32.totalorder %v6824_v59, 7 }
0x2565   :  { %4748 = vmatprep.mubr.msk.f32.mxu1 %vm799_vm5, %v8921_v19  ;;  %4749 = vmatprep.mubr.msk.f32.mxu0 %vm799_vm5, %v8921_v19 }
0x2570   :  { %v3537_v29 = vpop.permute.xlu1 %3536 }
0x2571   :  { %v3543_v25 = vsel %vm1022_vm9, %v3537_v29, %v3541_v34  ;;  %v9996_v34 = vld [vmem:[#allocation17_spill] sm:$0xff]  ;;  %v9997_v29 = vld [vmem:[#allocation18_spill] sm:$0xff] }
0x2572   :  { %v3547_v45 = vsel %vm3544_vm6, %v8703_v12, %v3543_v25  ;;  %vm3588_vm6 = vcmp.ge.s32.totalorder %v8885_v18, 1  ;;  %v9999_v25 = vld [vmem:[#allocation19_spill] sm:$0xff] }
0x2573   :  { %v3557_v2 = vrot.slane %v3547_v45, %v6849_v8  ;;  %v10000_v45 = vld [vmem:[#allocation20_spill] sm:$0xff] }
0x2575   :  { %v8941_v20 = vsel %vm3553_vm8, %v3557_v2, %v8723_v6  ;;  %v3568_v13 = vsel %vm3566_vm1, %v3557_v2, %v8726_v35  ;;  %v8954_v6 = vadd.s32 4294967294, %v8885_v18  ;;  %v10001_v2 = vld [vmem:[#allocation24_spill] sm:$0xff] }
0x2576   :  { %v3595_v56 = vsel %vm3594_vm4, %v8941_v20, 0.0  ;;  %4610 = vst.msk [vmem:[#allocation5] sm:$0xff] %vm799_vm5, %v3568_v13  ;;  %v10002_v13 = vld [vmem:[#allocation25_spill] sm:$0xff] }
0x2577   :  { %v3596_v47 = vsel %vm698_vm3, %v3595_v56, 0.0  ;;  %v3575_v35 = vrot.slane %v8954_v6, %v6849_v8  ;;  %v10003_v56 = vld [vmem:[#allocation26_spill] sm:$0xff] }
0x2578   :  { %v3597_v12 = vrot.slane %v3596_v47, 4 }
0x2579   :  { %vm3576_vm7 = vcmp.eq.s32.totalorder %v6824_v59, %v3575_v35  ;;  %v10011_v35 = vld [vmem:[#allocation34_spill] sm:$0xff] }
0x257a   :  { %v3598_v31 = vadd.f32 %v3597_v12, %v3596_v47  ;;  %v3577_v9 = vsel %vm3576_vm7, %v8941_v20, 0.0  ;;  %v10004_v47 = vld [vmem:[#allocation27_spill] sm:$0xff]  ;;  %v10005_v12 = vld [vmem:[#allocation28_spill] sm:$0xff]  ;;  %vm10028_vm7 = vcmask 1042432  }
0x257b   :  { %v3578_v1 = vsel %vm698_vm3, %v3577_v9, 0.0  ;;  %v10012_v9 = vld [vmem:[#allocation35_spill] sm:$0xff] }
0x257c   :  { %v3599_v53 = vrot.slane %v3598_v31, 2  ;;  %v3579_v23 = vrot.slane %v3578_v1, 4 }
0x257e   :  { %v3600_v55 = vadd.f32 %v3599_v53, %v3598_v31  ;;  %v3580_v37 = vadd.f32 %v3579_v23, %v3578_v1  ;;  %v10006_v31 = vld [vmem:[#allocation29_spill] sm:$0xff]  ;;  %v10007_v53 = vld [vmem:[#allocation30_spill] sm:$0xff]  ;;  %v10013_v1 = vld [vmem:[#allocation36_spill] sm:$0xff] }
0x257f   :  { %v10014_v23 = vld [vmem:[#allocation14_spill] sm:$0xff] }
0x2580   :  { %v3601_v27 = vrot.slane %v3600_v55, 1  ;;  %v3581_v4 = vrot.slane %v3580_v37, 2 }
0x2582   :  { %v3602_v11 = vadd.f32 %v3601_v27, %v3600_v55  ;;  %v3582_v49 = vadd.f32 %v3581_v4, %v3580_v37  ;;  %v10008_v55 = vld [vmem:[#allocation31_spill] sm:$0xff]  ;;  %v10009_v27 = vld [vmem:[#allocation32_spill] sm:$0xff] }
0x2584   :  { %v8949_v7 = vsel %vm3588_vm6, %v3602_v11, %v8918_v61  ;;  %v3583_v10 = vrot.slane %v3582_v49, 1  ;;  %v10010_v11 = vld [vmem:[#allocation33_spill] sm:$0xff]  ;;  %vm9044_vm6 = vmand %vm9663_vm2, %vm3774_vm14 }
0x2585   :  { %3624 = vrot.lane.b32.xlu1 %v8949_v7, %s6348_s19 }
0x2586   :  { %v3584_v14 = vadd.f32 %v3583_v10, %v3582_v49  ;;  %v10015_v49 = vld [vmem:[#allocation38_spill] sm:$0xff] }
0x2588   :  { %v8964_v58 = vsel %vm3570_vm13, %v3584_v14, %v8918_v61 }
0x25f7   :  { %v3625_v40 = vpop.permute.xlu1 %3624 }
0x25f8   :  { %v3627_v38 = vsel %vm799_vm5, %v8964_v58, %v3625_v40 }
0x25f9   :  { %3696 = vmatmul.mubr.f32.vlgmr.msra.gmra.mrb[20].mxu1 %v3627_v38  ;;  %3767 = vmatmul.mubr.f32.vlgmr.msra.gmra.mrb[30].mxu0 %v3627_v38 }
0x25fa   :  { %5828 = vmatpush1.bf16.msra.mxu1 %v6826_v60  ;;  %5875 = vmatpush1.bf16.msra.mxu0 %v6976_v50 }
0x25fb   :  { %5830 = vmatprep.subr.bf16.mxu1 %v6840_v3  ;;  %5876 = vmatprep.subr.bf16.mxu0 %v9710_v51 }
0x25fe   :  { %5832 = vmatpush1.bf16.msra.mxu1 %v6852_v26  ;;  %5878 = vmatpush1.bf16.msra.mxu0 %v6986_v54 }
0x25ff   :  { %5834 = vmatprep.subr.bf16.mxu1 %v6865_v15  ;;  %5879 = vmatprep.subr.bf16.mxu0 %v9710_v51 }
0x2602   :  { %5836 = vmatpush1.bf16.msra.mxu1 %v6876_v28  ;;  %5881 = vmatpush1.bf16.msra.mxu0 %v6996_v57 }
0x2603   :  { %5838 = vmatprep.subr.bf16.mxu1 %v6885_v22  ;;  %5882 = vmatprep.subr.bf16.mxu0 %v9710_v51 }
0x2606   :  { %5840 = vmatpush1.bf16.msra.mxu1 %v6894_v30  ;;  %5884 = vmatpush1.bf16.msra.mxu0 %v7006_v0 }
0x2607   :  { %5842 = vmatprep.subr.bf16.mxu1 %v6903_v63  ;;  %5885 = vmatprep.subr.bf16.mxu0 %v9710_v51 }
0x260a   :  { %5844 = vmatpush1.bf16.msra.mxu1 %v6912_v33  ;;  %5887 = vmatpush1.bf16.msra.mxu0 %v9950_v24 }
0x260b   :  { %5846 = vmatprep.subr.bf16.mxu1 %v9951_v21  ;;  %5888 = vmatprep.subr.bf16.mxu0 %v9710_v51 }
0x260e   :  { %5848 = vmatpush1.bf16.msra.mxu1 %v9994_v5  ;;  %5890 = vmatpush1.bf16.msra.mxu0 %v9995_v36 }
0x260f   :  { %5850 = vmatprep.subr.bf16.mxu1 %v9996_v34  ;;  %5891 = vmatprep.subr.bf16.mxu0 %v9710_v51 }
0x2612   :  { %5852 = vmatpush1.bf16.msra.mxu1 %v9997_v29  ;;  %5893 = vmatpush1.bf16.msra.mxu0 %v9998_v52 }
0x2613   :  { %5854 = vmatprep.subr.bf16.mxu1 %v9999_v25  ;;  %5894 = vmatprep.subr.bf16.mxu0 %v9710_v51 }
0x2616   :  { %5856 = vmatpush1.bf16.msra.mxu1 %v10000_v45  ;;  %5896 = vmatpush1.bf16.msra.mxu0 %v10001_v2 }
0x2617   :  { %5858 = vmatprep.subr.bf16.mxu1 %v10002_v13  ;;  %5897 = vmatprep.subr.bf16.mxu0 %v9710_v51 }
0x261a   :  { %5860 = vmatpush1.bf16.msra.mxu1 %v10003_v56  ;;  %5899 = vmatpush1.bf16.msra.mxu0 %v10004_v47 }
0x261b   :  { %5862 = vmatprep.subr.bf16.mxu1 %v10005_v12  ;;  %5900 = vmatprep.subr.bf16.mxu0 %v9710_v51 }
0x261e   :  { %5864 = vmatpush1.bf16.msra.mxu1 %v10006_v31  ;;  %5902 = vmatpush1.bf16.msra.mxu0 %v10007_v53  ;;  %v10027_v31 = vld [vmem:[#allocation45_spill] sm:$0xff] }
0x261f   :  { %5866 = vmatprep.subr.bf16.mxu1 %v10008_v55  ;;  %5903 = vmatprep.subr.bf16.mxu0 %v9710_v51 }
0x2622   :  { %5868 = vmatpush1.bf16.msra.mxu1 %v10009_v27  ;;  %5905 = vmatpush1.bf16.msra.mxu0 %v10010_v11  ;;  %v10020_v11 = vld [vmem:[#allocation42_spill] sm:$0xff] }
0x2623   :  { %5870 = vmatprep.subr.bf16.mxu1 %v10011_v35  ;;  %5906 = vmatprep.subr.bf16.mxu0 %v9710_v51 }
0x2626   :  { %5872 = vmatpush1.bf16.msra.mxu1 %v10012_v9  ;;  %5908 = vmatpush1.bf16.msra.mxu0 %v10013_v1 }
0x2627   :  { %5910 = vmatprep.subr.bf16.mxu1 %v10014_v23  ;;  %5957 = vmatprep.subr.bf16.mxu0 %v9710_v51 }
0x26cc   :  { %v3697_v37 = vpop.f32.mrb[20].mxu1  ;;  %v9016_v4 = vpop.f32.mrb[30].mxu0 }
0x26cd   :  { %v3698_v10 = vadd.f32 %v3697_v37, %v10015_v49  ;;  %v9019_v14 = vpop.f32.mrb[21].mxu1  ;;  %v3770_v40 = vpop.f32.mrb[31].mxu0 }
0x26cf   :  { %v3799_v35 = vsel %vm7248_vm10, %v3698_v10, -1e+30  ;;  %v3787_v9 = vsel %vm7254_vm11, %v3698_v10, -1e+30 }
0x26d0   :  { %v3800_v1 = vsel %vm967_vm12, %v3799_v35, -inf  ;;  %v3788_v23 = vsel %vm967_vm12, %v3787_v9, -inf }
0x26d1   :  { %3801 = vmax.xlane.f32.xlu1 %v3800_v1  ;;  %3789 = vmax.xlane.f32.xlu0 %v3788_v23 }
0x275e   :  { %v3802_v27 = vpop.xlane.xlu1 %3801  ;;  %v3790_v55 = vpop.xlane.xlu0 %3789 }
0x275f   :  { %vm3803_vm13 = vcmp.ge.f32.partialorder %v3799_v35, %v3802_v27  ;;  %vm3791_vm1 = vcmp.ge.f32.partialorder %v3787_v9, %v3790_v55  ;;  %v9050_v27 = vsel %vm9044_vm6, %v3698_v10, -1e+30 }
0x2760   :  { %vm3804_vm8 = vmand %vm7248_vm10, %vm3803_vm13  ;;  %v3777_v35 = vsel %vm967_vm12, %v9050_v27, -inf  ;;  %vm10029_vm13 = vcmask 256000  }
0x2761   :  { %v3805_v37 = vsel %vm3804_vm8, %v7268_v46, 1e+09  ;;  %vm3792_vm4 = vmand %vm7254_vm11, %vm3791_vm1 }
0x2762   :  { %v3793_v40 = vsel %vm3792_vm4, %v7268_v46, 1e+09  ;;  %v3806_v49 = vsel %vm967_vm12, %v3805_v37, inf }
0x2763   :  { %3807 = vmin.xlane.f32.xlu0 %v3806_v49  ;;  %v3794_v1 = vsel %vm967_vm12, %v3793_v40, inf }
0x2764   :  { %3795 = vmin.xlane.f32.xlu1 %v3794_v1 }
0x2779   :  { %3870 = vrot.lane.b32.xlu0 %v8949_v7, %s6349_s11 }
0x2798   :  { %3778 = vmax.xlane.f32.xlu0 %v3777_v35  ;;  %v10022_v35 = vld [vmem:[#allocation21_spill] sm:$0xff] }
0x27f0   :  { %v3808_v7 = vpop.xlane.xlu0 %3807 }
0x27f1   :  { %v3796_v9 = vpop.xlane.xlu1 %3795  ;;  %v6045_v41 = vtrunc.f32 %v3808_v7 }
0x27f2   :  { %v6043_v49 = vtrunc.f32 %v3796_v9  ;;  %v10024_v9 = vld [vmem:[#allocation46_spill] sm:$0xff] }
0x27f3   :  { %v6046_v42 = vcvt.f32.s32 %v6045_v41 }
0x27f4   :  { %v6044_v23 = vcvt.f32.s32 %v6043_v49  ;;  %v10025_v49 = vld [vmem:[#allocation44_spill] sm:$0xff] }
0x27f5   :  { %v4751_v37 = vadd.s32 4294967286, %v6046_v42 }
0x27f6   :  { %v4750_v40 = vadd.s32 4294967294, %v6044_v23  ;;  %v10026_v23 = vld [vmem:[#allocation43_spill] sm:$0xff] }
0x27f7   :  { %v3834_v1 = vrot.slane %v4751_v37, %v6849_v8  ;;  %v9059_v10 = vsel %vm3912_vm0, %v4751_v37, %v10020_v11 }
0x27f8   :  { %10021 = vst [vmem:[#allocation41_spill] sm:$0xff] %v9059_v10  ;;  %v3814_v38 = vrot.slane %v4750_v40, %v6849_v8  ;;  %v9065_v7 = vsel %vm3912_vm0, %v4750_v40, %v10022_v35 }
0x27f9   :  { %10023 = vst [vmem:[#allocation37_spill] sm:$0xff] %v9065_v7  ;;  %vm3835_vm15 = vcmp.eq.s32.totalorder %v6824_v59, %v3834_v1 }
0x27fa   :  { %vm3815_vm14 = vcmp.eq.s32.totalorder %v6824_v59, %v3814_v38  ;;  %v3836_v41 = vsel %vm3835_vm15, %v10024_v9, 0.0  ;;  %v3837_v42 = vsel %vm3835_vm15, %v10025_v49, 0.0  ;;  %vm10030_vm15 = vcmp.eq.s32.totalorder %v9722_v44, 0 }
0x27fb   :  { %v3816_v53 = vsel %vm3815_vm14, %v10026_v23, 0.0  ;;  %v3817_v11 = vsel %vm3815_vm14, %v10027_v31, 0.0  ;;  %v3838_v37 = vsel %vm10028_vm7, %v3836_v41, 0.0  ;;  %v3845_v10 = vsel %vm10029_vm13, %v3837_v42, 0.0 }
0x27fc   :  { %v3818_v12 = vrot.slane %v3816_v53, 4  ;;  %v3824_v40 = vsel %vm1022_vm9, %v3817_v11, 0.0  ;;  %v3839_v35 = vrot.slane %v3838_v37, 4  ;;  %v3846_v7 = vrot.slane %v3845_v10, 4 }
0x27fd   :  { %v3825_v1 = vrot.slane %v3824_v40, 4  ;;  %vm10033_vm13 = vcmp.eq.s32.totalorder %v9722_v44, 1 }
0x27fe   :  { %v3819_v47 = vadd.f32 %v3818_v12, %v3816_v53  ;;  %v3840_v38 = vadd.f32 %v3839_v35, %v3838_v37  ;;  %v3847_v56 = vadd.f32 %v3846_v7, %v3845_v10  ;;  %v3700_v12 = vadd.f32 %v9019_v14, %v7335_v43 }
0x27ff   :  { %v3826_v9 = vadd.f32 %v3825_v1, %v3824_v40  ;;  %v3769_v10 = vadd.f32 %v9016_v4, %v7338_v62 }
0x2800   :  { %v3820_v13 = vrot.slane %v3819_v47, 2  ;;  %v3841_v49 = vrot.slane %v3840_v38, 2  ;;  %v3848_v2 = vrot.slane %v3847_v56, 2 }
0x2801   :  { %v3827_v23 = vrot.slane %v3826_v9, 2 }
0x2802   :  { %v3821_v45 = vadd.f32 %v3820_v13, %v3819_v47  ;;  %v3842_v31 = vadd.f32 %v3841_v49, %v3840_v38  ;;  %v3849_v25 = vadd.f32 %v3848_v2, %v3847_v56 }
0x2803   :  { %v3828_v41 = vadd.f32 %v3827_v23, %v3826_v9 }
0x2804   :  { %v3822_v52 = vrot.slane %v3821_v45, 1  ;;  %v3843_v42 = vrot.slane %v3842_v31, 1  ;;  %v3850_v29 = vrot.slane %v3849_v25, 1 }
0x2805   :  { %v3829_v34 = vrot.slane %v3828_v41, 1 }
0x2806   :  { %v3823_v11 = vadd.f32 %v3822_v52, %v3821_v45  ;;  %v3844_v36 = vadd.f32 %v3843_v42, %v3842_v31  ;;  %v3851_v5 = vadd.f32 %v3850_v29, %v3849_v25 }
0x2807   :  { %v3830_v21 = vadd.f32 %v3829_v34, %v3828_v41  ;;  %v3871_v34 = vpop.permute.xlu0 %3870 }
0x2808   :  { %v3852_v53 = vadd.f32 %v3844_v36, %v3823_v11 }
0x2809   :  { %v3853_v7 = vadd.f32 %v3851_v5, %v3830_v21 }
0x280a   :  { %v3854_v13 = vadd.f32 %v3852_v53, %v3700_v12 }
0x280b   :  { %v3855_v47 = vadd.f32 %v3853_v7, %v3769_v10 }
0x280c   :  { %v4752_v2 = vmul.f32 -1.442695, %v3854_v13 }
0x280e   :  { %6192 = vpow2.f32 %v4752_v2 }
0x2818   :  { %v6193_v56 = vpop.eup %6192 }
0x2819   :  { %v3859_v49 = vadd.f32 1.0, %v6193_v56 }
0x281b   :  { %6194 = vrcp.f32 %v3859_v49 }
0x281c   :  { %6196 = vtanh.f32 %v3855_v47 }
0x2825   :  { %v6195_v37 = vpop.eup %6194  ;;  %v3779_v40 = vpop.xlane.xlu0 %3778 }
0x2826   :  { %v3864_v52 = vmul.f32 %v6195_v37, %v8964_v58  ;;  %v3873_v29 = vmul.f32 %v6195_v37, %v3871_v34  ;;  %v6197_v36 = vpop.eup %6196  ;;  %vm3780_vm1 = vcmp.ge.f32.partialorder %v9050_v27, %v3779_v40 }
0x2827   :  { %v3863_v21 = vmul.f32 %v6197_v36, %v6195_v37  ;;  %vm3781_vm8 = vmand %vm9044_vm6, %vm3780_vm1 }
0x2828   :  { %3866 = vrot.lane.b32.xlu1 %v3864_v52, %s6350_s29  ;;  %v3782_v58 = vsel %vm3781_vm8, %v7268_v46, 1e+09 }
0x2829   :  { %v3783_v35 = vsel %vm967_vm12, %v3782_v58, inf }
0x282c   :  { %3875 = vrot.lane.b32.xlu1 %v3873_v29, %s6348_s19 }
0x289a   :  { %v3867_v25 = vpop.permute.xlu1 %3866 }
0x289b   :  { %v3869_v5 = vadd.f32 %v3867_v25, %v3863_v21 }
0x289e   :  { %v3876_v45 = vpop.permute.xlu1 %3875 }
0x289f   :  { %v3878_v4 = vadd.f32 %v3876_v45, %v3869_v5 }
0x28a1   :  { %6198 = vtanh.f32 %v3878_v4 }
0x28ab   :  { %v6199_v14 = vpop.eup %6198 }
0x28ac   :  { %3881 = vrot.lane.b32.xlu1 %v6199_v14, %s6350_s29 }
0x28d0   :  { %3784 = vmin.xlane.f32.xlu1 %v3783_v35 }
0x28e1   :  { %3890 = vrot.lane.b32.xlu1 %v3878_v4, %s6349_s11 }
0x291e   :  { %v3882_v1 = vpop.permute.xlu1 %3881 }
0x291f   :  { %v3884_v38 = vmul.f32 %v6195_v37, %v3882_v1 }
0x2921   :  { %3886 = vrot.lane.b32.xlu0 %v3884_v38, %s6349_s11 }
0x295d   :  { %v3785_v9 = vpop.xlane.xlu1 %3784 }
0x295e   :  { %v6041_v23 = vtrunc.f32 %v3785_v9 }
0x2960   :  { %v6042_v31 = vcvt.f32.s32 %v6041_v23 }
0x2961   :  { %v3891_v36 = vpop.permute.xlu1 %3890 }
0x2962   :  { %vm3894_vm4 = vcmp.eq.s32.totalorder %v6042_v31, 0  ;;  %v9094_v55 = vsel %vm3912_vm0, %v6042_v31, %v8878_v16 }
0x2963   :  { %v3895_v27 = vsel %vm3894_vm4, 1, %v9709_v39  ;;  %v3909_v41 = vsel %vm3894_vm4, 1, %v9732_v48  ;;  %v3898_v52 = vsel %vm3894_vm4, %v8885_v18, %v8954_v6 }
0x2964   :  { %v9101_v42 = vadd.s32 %v3909_v41, %v8885_v18  ;;  %v9104_v11 = vadd.s32 %v3895_v27, %v8888_v32  ;;  %v3902_v29 = vrot.slane %v3898_v52, %v6849_v8  ;;  %v10051_v52 = vld [vmem:[#allocation31_spill] sm:$0xff] }
0x2966   :  { %v3960_v12 = vrot.slane %v9104_v11, %v6849_v8  ;;  %vm3956_vm6 = vcmp.lt.s32.totalorder %v9104_v11, 6  ;;  %vm3920_vm0 = vcmp.ge.s32.totalorder %v9101_v42, 2  ;;  %v4754_v34 = vadd.s32 4294967295, %v9101_v42 }
0x2967   :  { %vm9112_vm14 = vmand %vm10030_vm15, %vm3956_vm6 }
0x2968   :  { %vm3961_vm7 = vcmp.eq.s32.totalorder %v6824_v59, %v3960_v12  ;;  %vm9121_vm1 = vmand %vm10033_vm13, %vm3920_vm0  ;;  %v3943_v21 = vrot.slane %v4754_v34, %v6849_v8  ;;  %v10052_v34 = vld [vmem:[#allocation32_spill] sm:$0xff] }
0x2969   :  { %v3962_v53 = vsel %vm3961_vm7, %v7168_v17, 0.0  ;;  %vm4124_vm8 = vmor %vm9112_vm14, %vm9121_vm1 }
0x296a   :  { %v3963_v10 = vsel %vm698_vm3, %v3962_v53, 0.0  ;;  %vm3944_vm15 = vcmp.eq.s32.totalorder %v6824_v59, %v3943_v21  ;;  %v10056_v21 = vld [vmem:[#allocation36_spill] sm:$0xff] }
0x296b   :  { %v3964_v7 = vrot.slane %v3963_v10, 4 }
0x296d   :  { %v3965_v13 = vadd.f32 %v3964_v7, %v3963_v10 }
0x296f   :  { %v3966_v47 = vrot.slane %v3965_v13, 2 }
0x2971   :  { %v3967_v2 = vadd.f32 %v3966_v47, %v3965_v13 }
0x2973   :  { %v3968_v56 = vrot.slane %v3967_v2, 1 }
0x2975   :  { %v3969_v49 = vadd.f32 %v3968_v56, %v3967_v2 }
0x2977   :  { %v9132_v37 = vsel %vm3956_vm6, %v3969_v49, %v8918_v61  ;;  %vm3903_vm6 = vcmp.eq.s32.totalorder %v6824_v59, %v3902_v29  ;;  %v10050_v49 = vld [vmem:[#allocation30_spill] sm:$0xff]  ;;  %v10053_v29 = vld [vmem:[#allocation33_spill] sm:$0xff] }
0x2978   :  { %4755 = vmatprep.mubr.msk.f32.mxu1 %vm799_vm5, %v9132_v37  ;;  %4756 = vmatprep.mubr.msk.f32.mxu0 %vm799_vm5, %v9132_v37 }
0x2993   :  { %v3887_v25 = vpop.permute.xlu0 %3886 }
0x2994   :  { %v3893_v5 = vsel %vm1022_vm9, %v3887_v25, %v3891_v36  ;;  %v10054_v36 = vld [vmem:[#allocation34_spill] sm:$0xff]  ;;  %v10055_v25 = vld [vmem:[#allocation35_spill] sm:$0xff] }
0x2995   :  { %v3897_v45 = vsel %vm3894_vm4, %v8921_v19, %v3893_v5  ;;  %vm3938_vm4 = vcmp.ge.s32.totalorder %v9101_v42, 1 }
0x2996   :  { %v9148_v4 = vrot.slane %v3897_v45, %v6849_v8 }
0x2998   :  { %v9154_v18 = vsel %vm3903_vm6, %v9148_v4, %v8941_v20  ;;  %v9165_v20 = vadd.s32 4294967294, %v9101_v42 }
0x2999   :  { %v3945_v6 = vsel %vm3944_vm15, %v9154_v18, 0.0 }
0x299a   :  { %v3946_v14 = vsel %vm698_vm3, %v3945_v6, 0.0  ;;  %v3925_v23 = vrot.slane %v9165_v20, %v6849_v8  ;;  %v10057_v6 = vld [vmem:[#allocation38_spill] sm:$0xff] }
0x299b   :  { %v3947_v40 = vrot.slane %v3946_v14, 4 }
0x299c   :  { %vm3926_vm7 = vcmp.eq.s32.totalorder %v6824_v59, %v3925_v23 }
0x299d   :  { %v3948_v58 = vadd.f32 %v3947_v40, %v3946_v14  ;;  %v3927_v31 = vsel %vm3926_vm7, %v9154_v18, 0.0 }
0x299e   :  { %v3928_v27 = vsel %vm698_vm3, %v3927_v31, 0.0 }
0x299f   :  { %v3949_v35 = vrot.slane %v3948_v58, 2  ;;  %v3929_v41 = vrot.slane %v3928_v27, 4 }
0x29a1   :  { %v3950_v1 = vadd.f32 %v3949_v35, %v3948_v58  ;;  %v3930_v12 = vadd.f32 %v3929_v41, %v3928_v27 }
0x29a3   :  { %v3951_v19 = vrot.slane %v3950_v1, 1  ;;  %v3931_v53 = vrot.slane %v3930_v12, 2 }
0x29a5   :  { %v3952_v38 = vadd.f32 %v3951_v19, %v3950_v1  ;;  %v3932_v10 = vadd.f32 %v3931_v53, %v3930_v12 }
0x29a7   :  { %v9160_v9 = vsel %vm3938_vm4, %v3952_v38, %v8918_v61  ;;  %v3933_v7 = vrot.slane %v3932_v10, 1  ;;  %vm4262_vm4 = vcmp.eq.s32.totalorder %v9722_v44, 9 }
0x29a8   :  { %3974 = vrot.lane.b32.xlu0 %v9160_v9, %s6348_s19 }
0x29a9   :  { %v3934_v13 = vadd.f32 %v3933_v7, %v3932_v10 }
0x29ab   :  { %v9175_v2 = vsel %vm3920_vm0, %v3934_v13, %v8918_v61 }
0x2a1a   :  { %v3975_v47 = vpop.permute.xlu0 %3974 }
0x2a1b   :  { %v3977_v56 = vsel %vm799_vm5, %v9175_v2, %v3975_v47 }
0x2a1c   :  { %4046 = vmatmul.mubr.f32.vlgmr.msra.gmra.mrb[22].mxu1 %v3977_v56  ;;  %4117 = vmatmul.mubr.f32.vlgmr.msra.gmra.mrb[32].mxu0 %v3977_v56 }
0x2a1d   :  { %5912 = vmatpush1.bf16.msra.mxu1 %v6826_v60  ;;  %5959 = vmatpush1.bf16.msra.mxu0 %v6976_v50  ;;  %v10036_v60 = vld [vmem:[#allocation15_spill] sm:$0xff]  ;;  %v10045_v50 = vld [vmem:[#allocation25_spill] sm:$0xff] }
0x2a1e   :  { %5914 = vmatprep.subr.bf16.mxu1 %v6840_v3  ;;  %5960 = vmatprep.subr.bf16.mxu0 %v9710_v51  ;;  %v10037_v3 = vld [vmem:[#allocation16_spill] sm:$0xff] }
0x2a21   :  { %5916 = vmatpush1.bf16.msra.mxu1 %v6852_v26  ;;  %5962 = vmatpush1.bf16.msra.mxu0 %v6986_v54  ;;  %v10038_v26 = vld [vmem:[#allocation22_spill] sm:$0xff] }
0x2a22   :  { %5918 = vmatprep.subr.bf16.mxu1 %v6865_v15  ;;  %5963 = vmatprep.subr.bf16.mxu0 %v9710_v51  ;;  %v10039_v15 = vld [vmem:[#allocation17_spill] sm:$0xff]  ;;  %v10046_v54 = vld [vmem:[#allocation26_spill] sm:$0xff] }
0x2a25   :  { %5920 = vmatpush1.bf16.msra.mxu1 %v6876_v28  ;;  %5965 = vmatpush1.bf16.msra.mxu0 %v6996_v57  ;;  %v10040_v28 = vld [vmem:[#allocation18_spill] sm:$0xff]  ;;  %v10047_v57 = vld [vmem:[#allocation27_spill] sm:$0xff] }
0x2a26   :  { %5922 = vmatprep.subr.bf16.mxu1 %v6885_v22  ;;  %5966 = vmatprep.subr.bf16.mxu0 %v9710_v51  ;;  %v10041_v22 = vld [vmem:[#allocation23_spill] sm:$0xff] }
0x2a29   :  { %5924 = vmatpush1.bf16.msra.mxu1 %v6894_v30  ;;  %5968 = vmatpush1.bf16.msra.mxu0 %v7006_v0  ;;  %v10042_v30 = vld [vmem:[#allocation19_spill] sm:$0xff]  ;;  %v10048_v0 = vld [vmem:[#allocation28_spill] sm:$0xff] }
0x2a2a   :  { %5926 = vmatprep.subr.bf16.mxu1 %v6903_v63  ;;  %5969 = vmatprep.subr.bf16.mxu0 %v9710_v51  ;;  %v10043_v63 = vld [vmem:[#allocation20_spill] sm:$0xff] }
0x2a2d   :  { %5928 = vmatpush1.bf16.msra.mxu1 %v6912_v33  ;;  %5971 = vmatpush1.bf16.msra.mxu0 %v9950_v24  ;;  %v10044_v33 = vld [vmem:[#allocation24_spill] sm:$0xff]  ;;  %v10049_v24 = vld [vmem:[#allocation29_spill] sm:$0xff] }
0x2a2e   :  { %5930 = vmatprep.subr.bf16.mxu1 %v10036_v60  ;;  %5972 = vmatprep.subr.bf16.mxu0 %v9710_v51 }
0x2a31   :  { %5932 = vmatpush1.bf16.msra.mxu1 %v10037_v3  ;;  %5974 = vmatpush1.bf16.msra.mxu0 %v10038_v26 }
0x2a32   :  { %5934 = vmatprep.subr.bf16.mxu1 %v10039_v15  ;;  %5975 = vmatprep.subr.bf16.mxu0 %v9710_v51  ;;  %v10060_v15 = vld [vmem:[#allocation41_spill] sm:$0xff] }
0x2a35   :  { %5936 = vmatpush1.bf16.msra.mxu1 %v10040_v28  ;;  %5977 = vmatpush1.bf16.msra.mxu0 %v10041_v22 }
0x2a36   :  { %5938 = vmatprep.subr.bf16.mxu1 %v10042_v30  ;;  %5978 = vmatprep.subr.bf16.mxu0 %v9710_v51  ;;  %v9261_v30 = vld [vmem:[%s9550_s13] sm:$0x77] }
0x2a39   :  { %5940 = vmatpush1.bf16.msra.mxu1 %v10043_v63  ;;  %5980 = vmatpush1.bf16.msra.mxu0 %v10044_v33  ;;  %v10061_v33 = vld [vmem:[#allocation44_spill] sm:$0xff] }
0x2a3a   :  { %5942 = vmatprep.subr.bf16.mxu1 %v10045_v50  ;;  %5981 = vmatprep.subr.bf16.mxu0 %v9710_v51 }
0x2a3d   :  { %5944 = vmatpush1.bf16.msra.mxu1 %v10046_v54  ;;  %5983 = vmatpush1.bf16.msra.mxu0 %v10047_v57 }
0x2a3e   :  { %5946 = vmatprep.subr.bf16.mxu1 %v10048_v0  ;;  %5984 = vmatprep.subr.bf16.mxu0 %v9710_v51 }
0x2a41   :  { %5948 = vmatpush1.bf16.msra.mxu1 %v10049_v24  ;;  %5986 = vmatpush1.bf16.msra.mxu0 %v10050_v49  ;;  %v10064_v24 = vld [vmem:[#allocation37_spill] sm:$0xff] }
0x2a42   :  { %5950 = vmatprep.subr.bf16.mxu1 %v10051_v52  ;;  %5987 = vmatprep.subr.bf16.mxu0 %v9710_v51 }
0x2a45   :  { %5952 = vmatpush1.bf16.msra.mxu1 %v10052_v34  ;;  %5989 = vmatpush1.bf16.msra.mxu0 %v10053_v29 }
0x2a46   :  { %5954 = vmatprep.subr.bf16.mxu1 %v10054_v36  ;;  %5990 = vmatprep.subr.bf16.mxu0 %v9710_v51 }
0x2a49   :  { %5956 = vmatpush1.bf16.msra.mxu1 %v10055_v25  ;;  %5992 = vmatpush1.bf16.msra.mxu0 %v10056_v21  ;;  %v9277_v25 = vld [vmem:[%s9549_s12] sm:$0xff] }
0x2aef   :  { %v4047_v5 = vpop.f32.mrb[22].mxu1  ;;  %v9225_v45 = vpop.f32.mrb[32].mxu0 }
0x2af0   :  { %v9228_v14 = vadd.f32 %v4047_v5, %v10057_v6  ;;  %v9230_v40 = vpop.f32.mrb[23].mxu1  ;;  %v4120_v58 = vpop.f32.mrb[33].mxu0  ;;  %v9283_v5 = vld [vmem:[%s9549_s12 + $0x8] sm:$0xff]  ;;  %s6353_s12 = smov [#allocation8]  }
0x2af2   :  { %v4149_v1 = vsel %vm7248_vm10, %v9228_v14, -1e+30  ;;  %v4137_v51 = vsel %vm7254_vm11, %v9228_v14, -1e+30 }
0x2af3   :  { %v4150_v38 = vsel %vm967_vm12, %v4149_v1, -inf  ;;  %v4138_v23 = vsel %vm967_vm12, %v4137_v51, -inf }
0x2af4   :  { %4151 = vmax.xlane.f32.xlu0 %v4150_v38  ;;  %4139 = vmax.xlane.f32.xlu1 %v4138_v23 }
0x2b05   :  { %4220 = vrot.lane.b32.xlu1 %v9160_v9, %s6349_s11 }
0x2b81   :  { %v4152_v31 = vpop.xlane.xlu0 %4151  ;;  %v4140_v27 = vpop.xlane.xlu1 %4139 }
0x2b82   :  { %vm4153_vm0 = vcmp.ge.f32.partialorder %v4149_v1, %v4152_v31  ;;  %vm4141_vm13 = vcmp.ge.f32.partialorder %v4137_v51, %v4140_v27 }
0x2b83   :  { %vm4154_vm6 = vmand %vm7248_vm10, %vm4153_vm0  ;;  %vm10062_vm0 = vcmask 1042432  }
0x2b84   :  { %v4155_v41 = vsel %vm4154_vm6, %v7268_v46, 1e+09  ;;  %vm4142_vm15 = vmand %vm7254_vm11, %vm4141_vm13  ;;  %vm10063_vm13 = vcmask 256000  }
0x2b85   :  { %v4156_v12 = vsel %vm967_vm12, %v4155_v41, inf  ;;  %v4143_v53 = vsel %vm4142_vm15, %v7268_v46, 1e+09  ;;  %vm9301_vm15 = vmand %vm9663_vm2, %vm4124_vm8 }
0x2b86   :  { %4157 = vmin.xlane.f32.xlu0 %v4156_v12  ;;  %v4144_v10 = vsel %vm967_vm12, %v4143_v53, inf }
0x2b8a   :  { %4145 = vmin.xlane.f32.xlu0 %v4144_v10 }
0x2c13   :  { %v4158_v9 = vpop.xlane.xlu0 %4157 }
0x2c14   :  { %v6051_v7 = vtrunc.f32 %v4158_v9 }
0x2c16   :  { %v6052_v13 = vcvt.f32.s32 %v6051_v7 }
0x2c17   :  { %v4146_v47 = vpop.xlane.xlu0 %4145 }
0x2c18   :  { %v4758_v56 = vadd.s32 4294967286, %v6052_v13  ;;  %v6049_v60 = vtrunc.f32 %v4146_v47 }
0x2c1a   :  { %v4184_v3 = vrot.slane %v4758_v56, %v6849_v8  ;;  %v6050_v26 = vcvt.f32.s32 %v6049_v60  ;;  %v9255_v28 = vsel %vm4262_vm4, %v4758_v56, %v10060_v15 }
0x2c1c   :  { %vm4185_vm7 = vcmp.eq.s32.totalorder %v6824_v59, %v4184_v3  ;;  %v4757_v22 = vadd.s32 4294967294, %v6050_v26 }
0x2c1d   :  { %v4186_v63 = vsel %vm4185_vm7, %v9261_v30, 0.0  ;;  %v4187_v50 = vsel %vm4185_vm7, %v10061_v33, 0.0 }
0x2c1e   :  { %v4188_v54 = vsel %vm10062_vm0, %v4186_v63, 0.0  ;;  %v4195_v57 = vsel %vm10063_vm13, %v4187_v50, 0.0  ;;  %v4164_v0 = vrot.slane %v4757_v22, %v6849_v8  ;;  %v9271_v49 = vsel %vm4262_vm4, %v4757_v22, %v10064_v24 }
0x2c1f   :  { %v4189_v52 = vrot.slane %v4188_v54, 4  ;;  %v4196_v34 = vrot.slane %v4195_v57, 4  ;;  %v4050_v50 = vadd.f32 %v9230_v40, %v7335_v43  ;;  %vm10067_vm13 = vcmp.eq.s32.totalorder %v9722_v44, 0 }
0x2c20   :  { %vm4165_vm6 = vcmp.eq.s32.totalorder %v6824_v59, %v4164_v0 }
0x2c21   :  { %v4190_v29 = vadd.f32 %v4189_v52, %v4188_v54  ;;  %v4197_v36 = vadd.f32 %v4196_v34, %v4195_v57  ;;  %v4166_v21 = vsel %vm4165_vm6, %v9277_v25, 0.0  ;;  %v4167_v58 = vsel %vm4165_vm6, %v9283_v5, 0.0 }
0x2c22   :  { %v4168_v1 = vrot.slane %v4166_v21, 4  ;;  %v4174_v51 = vsel %vm1022_vm9, %v4167_v58, 0.0  ;;  %v4119_v57 = vadd.f32 %v9225_v45, %v7338_v62  ;;  %v4221_v58 = vpop.permute.xlu1 %4220 }
0x2c23   :  { %v4191_v38 = vrot.slane %v4190_v29, 2  ;;  %v4198_v23 = vrot.slane %v4197_v36, 2  ;;  %v4175_v31 = vrot.slane %v4174_v51, 4 }
0x2c24   :  { %v4169_v27 = vadd.f32 %v4168_v1, %v4166_v21 }
0x2c25   :  { %v4192_v41 = vadd.f32 %v4191_v38, %v4190_v29  ;;  %v4199_v12 = vadd.f32 %v4198_v23, %v4197_v36  ;;  %v4176_v53 = vadd.f32 %v4175_v31, %v4174_v51 }
0x2c26   :  { %v4170_v10 = vrot.slane %v4169_v27, 2 }
0x2c27   :  { %v4177_v9 = vrot.slane %v4176_v53, 2  ;;  %v4193_v7 = vrot.slane %v4192_v41, 1  ;;  %v4200_v47 = vrot.slane %v4199_v12, 1 }
0x2c28   :  { %v4171_v13 = vadd.f32 %v4170_v10, %v4169_v27 }
0x2c29   :  { %v4178_v56 = vadd.f32 %v4177_v9, %v4176_v53  ;;  %v4194_v26 = vadd.f32 %v4193_v7, %v4192_v41  ;;  %v4201_v22 = vadd.f32 %v4200_v47, %v4199_v12 }
0x2c2a   :  { %v4172_v60 = vrot.slane %v4171_v13, 1 }
0x2c2b   :  { %v4179_v3 = vrot.slane %v4178_v56, 1 }
0x2c2c   :  { %v4173_v15 = vadd.f32 %v4172_v60, %v4171_v13 }
0x2c2d   :  { %v4180_v63 = vadd.f32 %v4179_v3, %v4178_v56 }
0x2c2e   :  { %v4202_v54 = vadd.f32 %v4194_v26, %v4173_v15 }
0x2c2f   :  { %v4203_v0 = vadd.f32 %v4201_v22, %v4180_v63 }
0x2c30   :  { %v4204_v24 = vadd.f32 %v4202_v54, %v4050_v50 }
0x2c31   :  { %v4205_v52 = vadd.f32 %v4203_v0, %v4119_v57 }
0x2c32   :  { %v4759_v34 = vmul.f32 -1.442695, %v4204_v24 }
0x2c34   :  { %6200 = vpow2.f32 %v4759_v34 }
0x2c3e   :  { %v6201_v29 = vpop.eup %6200 }
0x2c3f   :  { %v4209_v36 = vadd.f32 1.0, %v6201_v29 }
0x2c41   :  { %6202 = vrcp.f32 %v4209_v36 }
0x2c42   :  { %6204 = vtanh.f32 %v4205_v52 }
0x2c4b   :  { %v6203_v21 = vpop.eup %6202 }
0x2c4c   :  { %v4214_v1 = vmul.f32 %v6203_v21, %v9175_v2  ;;  %v4223_v51 = vmul.f32 %v6203_v21, %v4221_v58  ;;  %v4126_v2 = vsel %vm9301_vm15, %v9228_v14, -1e+30  ;;  %v6205_v38 = vpop.eup %6204 }
0x2c4d   :  { %v4127_v40 = vsel %vm967_vm12, %v4126_v2, -inf  ;;  %v4213_v23 = vmul.f32 %v6205_v38, %v6203_v21 }
0x2c4e   :  { %4216 = vrot.lane.b32.xlu0 %v4214_v1, %s6350_s29  ;;  %4225 = vrot.lane.b32.xlu1 %v4223_v51, %s6348_s19 }
0x2c72   :  { %4128 = vmax.xlane.f32.xlu1 %v4127_v40 }
0x2cc0   :  { %v4217_v16 = vpop.permute.xlu0 %4216  ;;  %v4226_v32 = vpop.permute.xlu1 %4225 }
0x2cc1   :  { %v4219_v31 = vadd.f32 %v4217_v16, %v4213_v23 }
0x2cc3   :  { %v4228_v27 = vadd.f32 %v4226_v32, %v4219_v31 }
0x2cc5   :  { %6206 = vtanh.f32 %v4228_v27 }
0x2ccf   :  { %v6207_v41 = vpop.eup %6206 }
0x2cd0   :  { %4231 = vrot.lane.b32.xlu0 %v6207_v41, %s6350_s29 }
0x2cff   :  { %v4129_v12 = vpop.xlane.xlu1 %4128 }
0x2d00   :  { %vm4130_vm14 = vcmp.ge.f32.partialorder %v4126_v2, %v4129_v12 }
0x2d01   :  { %vm4131_vm1 = vmand %vm9301_vm15, %vm4130_vm14  ;;  %vm10070_vm15 = vcmp.eq.s32.totalorder %v9722_v44, 1 }
0x2d02   :  { %v4132_v14 = vsel %vm4131_vm1, %v7268_v46, 1e+09 }
0x2d03   :  { %v4133_v53 = vsel %vm967_vm12, %v4132_v14, inf }
0x2d04   :  { %4134 = vmin.xlane.f32.xlu0 %v4133_v53 }
0x2d1a   :  { %4240 = vrot.lane.b32.xlu0 %v4228_v27, %s6349_s11 }
0x2d42   :  { %v4232_v10 = vpop.permute.xlu0 %4231 }
0x2d43   :  { %v4234_v9 = vmul.f32 %v6203_v21, %v4232_v10 }
0x2d45   :  { %4236 = vrot.lane.b32.xlu1 %v4234_v9, %s6349_s11 }
0x2d91   :  { %v4135_v7 = vpop.xlane.xlu0 %4134 }
0x2d92   :  { %v6047_v13 = vtrunc.f32 %v4135_v7 }
0x2d94   :  { %v6048_v47 = vcvt.f32.s32 %v6047_v13 }
0x2d95   :  { %v4241_v58 = vpop.permute.xlu0 %4240 }
0x2d96   :  { %vm4244_vm8 = vcmp.eq.s32.totalorder %v6048_v47, 0  ;;  %v9319_v56 = vsel %vm4262_vm4, %v6048_v47, %v9094_v55 }
0x2d97   :  { %v4245_v60 = vsel %vm4244_vm8, 1, %v9709_v39  ;;  %v4259_v3 = vsel %vm4244_vm8, 1, %v9732_v48  ;;  %v4248_v34 = vsel %vm4244_vm8, %v9101_v42, %v9165_v20 }
0x2d98   :  { %v4260_v26 = vadd.s32 %v4259_v3, %v9101_v42  ;;  %v4261_v15 = vadd.s32 %v4245_v60, %v9104_v11  ;;  %v4252_v21 = vrot.slane %v4248_v34, %v6849_v8 }
0x2d9a   :  { %vm4306_vm7 = vcmp.lt.s32.totalorder %v4261_v15, 6  ;;  %v4310_v22 = vrot.slane %v4261_v15, %v6849_v8  ;;  %vm4270_vm0 = vcmp.ge.s32.totalorder %v4260_v26, 2  ;;  %v4760_v29 = vadd.s32 4294967294, %v4260_v26 }
0x2d9b   :  { %vm9330_vm6 = vmand %vm10067_vm13, %vm4306_vm7  ;;  %v4761_v36 = vadd.s32 4294967295, %v4260_v26 }
0x2d9c   :  { %vm4311_vm4 = vcmp.eq.s32.totalorder %v6824_v59, %v4310_v22  ;;  %vm9338_vm14 = vmand %vm10070_vm15, %vm4270_vm0  ;;  %v4275_v51 = vrot.slane %v4760_v29, %v6849_v8 }
0x2d9d   :  { %v4312_v48 = vsel %vm4311_vm4, %v7168_v17, 0.0  ;;  %vm4474_vm1 = vmor %vm9330_vm6, %vm9338_vm14  ;;  %v9356_v17 = vadd.s32 8, %v6824_v59  ;;  %v4293_v45 = vrot.slane %v4761_v36, %v6849_v8  ;;  %vm4253_vm4 = vcmp.eq.s32.totalorder %v6824_v59, %v4252_v21 }
0x2d9e   :  { %v4313_v55 = vsel %vm698_vm3, %v4312_v48, 0.0  ;;  %vm4276_vm15 = vcmp.eq.s32.totalorder %v6824_v59, %v4275_v51  ;;  %vm4612_vm6 = vcmask 122880  }
0x2d9f   :  { %v4314_v11 = vrot.slane %v4313_v55, 4  ;;  %vm4267_vm13 = vcmp.eq.s32.totalorder %v9356_v17, 9  ;;  %vm4294_vm2 = vcmp.eq.s32.totalorder %v6824_v59, %v4293_v45 }
0x2da1   :  { %v4315_v50 = vadd.f32 %v4314_v11, %v4313_v55 }
0x2da3   :  { %v4316_v54 = vrot.slane %v4315_v50, 2 }
0x2da5   :  { %v4317_v57 = vadd.f32 %v4316_v54, %v4315_v50 }
0x2da7   :  { %v4318_v0 = vrot.slane %v4317_v57, 1 }
0x2da9   :  { %v4319_v24 = vadd.f32 %v4318_v0, %v4317_v57 }
0x2dab   :  { %v9349_v52 = vsel %vm4306_vm7, %v4319_v24, %v8918_v61  ;;  %vm3917_vm7 = vcmp.eq.s32.totalorder %v9356_v17, 8 }
0x2dac   :  { %4762 = vmatprep.mubr.msk.f32.mxu1 %vm799_vm5, %v9349_v52  ;;  %4763 = vmatprep.mubr.msk.f32.mxu0 %vm799_vm5, %v9349_v52  ;;  %v3919_v20 = vsel %vm3917_vm7, %v9148_v4, 0.0 }
0x2db7   :  { %v4237_v1 = vpop.permute.xlu1 %4236 }
0x2db8   :  { %v4243_v2 = vsel %vm1022_vm9, %v4237_v1, %v4241_v58 }
0x2db9   :  { %v4247_v40 = vsel %vm4244_vm8, %v9132_v37, %v4243_v2  ;;  %vm4288_vm8 = vcmp.ge.s32.totalorder %v4260_v26, 1 }
0x2dba   :  { %v4257_v42 = vrot.slane %v4247_v40, %v6849_v8 }
0x2dbc   :  { %v4258_v38 = vsel %vm4253_vm4, %v4257_v42, %v9154_v18  ;;  %v9375_v23 = vsel %vm4267_vm13, %v4257_v42, %v3919_v20  ;;  %vm10076_vm4 = vcmask 1042432  }
0x2dbd   :  { %v4277_v16 = vsel %vm4276_vm15, %v4258_v38, 0.0  ;;  %v4295_v31 = vsel %vm4294_vm2, %v4258_v38, 0.0  ;;  %vm10077_vm15 = vcmask 256000  }
0x2dbe   :  { %v4278_v37 = vsel %vm698_vm3, %v4277_v16, 0.0  ;;  %v4296_v32 = vsel %vm698_vm3, %v4295_v31, 0.0 }
0x2dbf   :  { %v4279_v27 = vrot.slane %v4278_v37, 4  ;;  %v4297_v41 = vrot.slane %v4296_v32, 4 }
0x2dc1   :  { %v4298_v12 = vadd.f32 %v4297_v41, %v4296_v32  ;;  %v4280_v4 = vadd.f32 %v4279_v27, %v4278_v37 }
0x2dc3   :  { %v4299_v14 = vrot.slane %v4298_v12, 2  ;;  %v4281_v53 = vrot.slane %v4280_v4, 2 }
0x2dc5   :  { %v4300_v10 = vadd.f32 %v4299_v14, %v4298_v12  ;;  %v4282_v9 = vadd.f32 %v4281_v53, %v4280_v4 }
0x2dc7   :  { %v4301_v7 = vrot.slane %v4300_v10, 1  ;;  %v4283_v13 = vrot.slane %v4282_v9, 1 }
0x2dc9   :  { %v4302_v47 = vadd.f32 %v4301_v7, %v4300_v10  ;;  %v4284_v18 = vadd.f32 %v4283_v13, %v4282_v9 }
0x2dcb   :  { %v4305_v60 = vsel %vm4288_vm8, %v4302_v47, %v8918_v61  ;;  %v9382_v3 = vsel %vm4270_vm0, %v4284_v18, %v8918_v61 }
0x2dcc   :  { %4324 = vrot.lane.b32.xlu1 %v4305_v60, %s6348_s19 }
0x2e3e   :  { %v4325_v15 = vpop.permute.xlu1 %4324 }
0x2e3f   :  { %v4327_v22 = vsel %vm799_vm5, %v9382_v3, %v4325_v15 }
0x2e40   :  { %4396 = vmatmul.mubr.f32.vlgmr.msra.gmra.mrb[24].mxu1 %v4327_v22  ;;  %4467 = vmatmul.mubr.f32.vlgmr.msra.gmra.mrb[34].mxu0 %v4327_v22 }
0x2f13   :  { %v4397_v48 = vpop.f32.mrb[24].mxu1  ;;  %v9387_v55 = vpop.f32.mrb[34].mxu0 }
0x2f14   :  { %v4398_v11 = vadd.f32 %v4397_v48, %v10057_v6  ;;  %v9390_v50 = vpop.f32.mrb[25].mxu1  ;;  %v4470_v54 = vpop.f32.mrb[35].mxu0 }
0x2f16   :  { %v4499_v61 = vsel %vm7248_vm10, %v4398_v11, -1e+30  ;;  %v4487_v26 = vsel %vm7254_vm11, %v4398_v11, -1e+30 }
0x2f17   :  { %v4500_v57 = vsel %vm967_vm12, %v4499_v61, -inf  ;;  %v4488_v0 = vsel %vm967_vm12, %v4487_v26, -inf }
0x2f18   :  { %4501 = vmax.xlane.f32.xlu1 %v4500_v57  ;;  %4489 = vmax.xlane.f32.xlu0 %v4488_v0 }
0x2fa5   :  { %v4502_v24 = vpop.xlane.xlu1 %4501  ;;  %v4490_v34 = vpop.xlane.xlu0 %4489 }
0x2fa6   :  { %vm4503_vm3 = vcmp.ge.f32.partialorder %v4499_v61, %v4502_v24  ;;  %vm4491_vm2 = vcmp.ge.f32.partialorder %v4487_v26, %v4490_v34  ;;  %v4400_v24 = vadd.f32 %v9390_v50, %v7335_v43 }
0x2fa7   :  { %vm4504_vm0 = vmand %vm7248_vm10, %vm4503_vm3  ;;  %vm10073_vm10 = vcmp.lt.s32.totalorder %v9722_v44, 2 }
0x2fa8   :  { %v4505_v6 = vsel %vm4504_vm0, %v7268_v46, 1e+09  ;;  %vm4492_vm7 = vmand %vm7254_vm11, %vm4491_vm2  ;;  %vm4598_vm11 = vcmp.eq.s32.totalorder %v9722_v44, 10 }
0x2fa9   :  { %v4493_v29 = vsel %vm4492_vm7, %v7268_v46, 1e+09  ;;  %v4506_v36 = vsel %vm967_vm12, %v4505_v6, inf  ;;  %vm9414_vm13 = vmand %vm10073_vm10, %vm4474_vm1  ;;  %v4469_v6 = vadd.f32 %v9387_v55, %v7338_v62 }
0x2faa   :  { %4507 = vmin.xlane.f32.xlu0 %v4506_v36  ;;  %v4494_v21 = vsel %vm967_vm12, %v4493_v29, inf  ;;  %v9420_v19 = vsel %vm9414_vm13, %v4398_v11, -1e+30 }
0x2fab   :  { %4495 = vmin.xlane.f32.xlu1 %v4494_v21  ;;  %v4477_v58 = vsel %vm967_vm12, %v9420_v19, -inf }
0x2fc0   :  { %4570 = vrot.lane.b32.xlu0 %v4305_v60, %s6349_s11 }
0x2fdf   :  { %4478 = vmax.xlane.f32.xlu0 %v4477_v58 }
0x3037   :  { %v4508_v1 = vpop.xlane.xlu0 %4507 }
0x3038   :  { %v4496_v51 = vpop.xlane.xlu1 %4495  ;;  %v6057_v63 = vtrunc.f32 %v4508_v1 }
0x3039   :  { %v6055_v45 = vtrunc.f32 %v4496_v51 }
0x303a   :  { %v6058_v39 = vcvt.f32.s32 %v6057_v63 }
0x303b   :  { %v6056_v2 = vcvt.f32.s32 %v6055_v45 }
0x303c   :  { %v4765_v40 = vadd.s32 4294967286, %v6058_v39  ;;  %v4571_v39 = vpop.permute.xlu0 %4570 }
0x303d   :  { %v4764_v42 = vadd.s32 4294967294, %v6056_v2 }
0x303e   :  { %v4534_v20 = vrot.slane %v4765_v40, %v6849_v8  ;;  %v4601_v38 = vsel %vm4598_vm11, %v4765_v40, %v9255_v28 }
0x303f   :  { %v4514_v16 = vrot.slane %v4764_v42, %v6849_v8  ;;  %v4600_v31 = vsel %vm4598_vm11, %v4764_v42, %v9271_v49  ;;  %4615 = vst.msk [vmem:[#allocation10] sm:$0x1] %vm4612_vm6, %v4601_v38 }
0x3040   :  { %vm4535_vm14 = vcmp.eq.s32.totalorder %v6824_v59, %v4534_v20  ;;  %4614 = vst.msk [vmem:[#allocation8] sm:$0x1] %vm4612_vm6, %v4600_v31 }
0x3041   :  { %vm4515_vm1 = vcmp.eq.s32.totalorder %v6824_v59, %v4514_v16  ;;  %v4536_v37 = vsel %vm4535_vm14, %v9261_v30, 0.0  ;;  %v4537_v32 = vsel %vm4535_vm14, %v10061_v33, 0.0 }
0x3042   :  { %v4516_v28 = vsel %vm4515_vm1, %v9277_v25, 0.0  ;;  %v4517_v27 = vsel %vm4515_vm1, %v9283_v5, 0.0  ;;  %v4538_v41 = vsel %vm10076_vm4, %v4536_v37, 0.0  ;;  %v4545_v49 = vsel %vm10077_vm15, %v4537_v32, 0.0 }
0x3043   :  { %v4518_v12 = vrot.slane %v4516_v28, 4  ;;  %v4524_v4 = vsel %vm1022_vm9, %v4517_v27, 0.0  ;;  %v4539_v14 = vrot.slane %v4538_v41, 4  ;;  %v4546_v53 = vrot.slane %v4545_v49, 4 }
0x3044   :  { %v4525_v10 = vrot.slane %v4524_v4, 4 }
0x3045   :  { %v4519_v9 = vadd.f32 %v4518_v12, %v4516_v28  ;;  %v4540_v59 = vadd.f32 %v4539_v14, %v4538_v41  ;;  %v4547_v7 = vadd.f32 %v4546_v53, %v4545_v49 }
0x3046   :  { %v4526_v30 = vadd.f32 %v4525_v10, %v4524_v4 }
0x3047   :  { %v4520_v13 = vrot.slane %v4519_v9, 2  ;;  %v4541_v33 = vrot.slane %v4540_v59, 2  ;;  %v4548_v47 = vrot.slane %v4547_v7, 2 }
0x3048   :  { %v4527_v25 = vrot.slane %v4526_v30, 2 }
0x3049   :  { %v4521_v18 = vadd.f32 %v4520_v13, %v4519_v9  ;;  %v4542_v5 = vadd.f32 %v4541_v33, %v4540_v59  ;;  %v4549_v60 = vadd.f32 %v4548_v47, %v4547_v7 }
0x304a   :  { %v4528_v15 = vadd.f32 %v4527_v25, %v4526_v30 }
0x304b   :  { %v4522_v22 = vrot.slane %v4521_v18, 1  ;;  %v4543_v48 = vrot.slane %v4542_v5, 1  ;;  %v4550_v11 = vrot.slane %v4549_v60, 1 }
0x304c   :  { %v4529_v54 = vrot.slane %v4528_v15, 1 }
0x304d   :  { %v4523_v61 = vadd.f32 %v4522_v22, %v4521_v18  ;;  %v4544_v26 = vadd.f32 %v4543_v48, %v4542_v5  ;;  %v4551_v57 = vadd.f32 %v4550_v11, %v4549_v60 }
0x304e   :  { %v4530_v0 = vadd.f32 %v4529_v54, %v4528_v15 }
0x304f   :  { %v4552_v34 = vadd.f32 %v4544_v26, %v4523_v61 }
0x3050   :  { %v4553_v29 = vadd.f32 %v4551_v57, %v4530_v0 }
0x3051   :  { %v4554_v36 = vadd.f32 %v4552_v34, %v4400_v24 }
0x3052   :  { %v4555_v21 = vadd.f32 %v4553_v29, %v4469_v6 }
0x3053   :  { %v4766_v58 = vmul.f32 -1.442695, %v4554_v36 }
0x3055   :  { %6208 = vpow2.f32 %v4766_v58 }
0x305f   :  { %v6209_v1 = vpop.eup %6208 }
0x3060   :  { %v4559_v51 = vadd.f32 1.0, %v6209_v1 }
0x3062   :  { %6210 = vrcp.f32 %v4559_v51 }
0x3063   :  { %6212 = vtanh.f32 %v4555_v21 }
0x306c   :  { %v6211_v63 = vpop.eup %6210  ;;  %v4479_v38 = vpop.xlane.xlu0 %4478 }
0x306d   :  { %v4564_v45 = vmul.f32 %v6211_v63, %v9382_v3  ;;  %v4573_v2 = vmul.f32 %v6211_v63, %v4571_v39  ;;  %v6213_v43 = vpop.eup %6212  ;;  %vm4480_vm8 = vcmp.ge.f32.partialorder %v9420_v19, %v4479_v38 }
0x306e   :  { %v4563_v55 = vmul.f32 %v6213_v43, %v6211_v63  ;;  %vm4481_vm3 = vmand %vm9414_vm13, %vm4480_vm8 }
0x306f   :  { %4566 = vrot.lane.b32.xlu1 %v4564_v45, %s6350_s29  ;;  %v4482_v3 = vsel %vm4481_vm3, %v7268_v46, 1e+09 }
0x3070   :  { %v4483_v16 = vsel %vm967_vm12, %v4482_v3, inf }
0x3073   :  { %4575 = vrot.lane.b32.xlu1 %v4573_v2, %s6348_s19  ;;  %s4654_s19 = sshll.u32 %s6353_s12, 4  ;;  %s4655_s19 = int_to_ptr.vmem [resolvable:$true] %s4654_s19 }
0x3074   :  { %s6232_s1 = scalar_lea.vmem %s4655_s19, 32  ;;  %p6233_p1 = scmp.lt.s32.totalorder %s4655_s19, %s4655_s19 }
0x30e1   :  { %v4567_v62 = vpop.permute.xlu1 %4566 }
0x30e2   :  { %v4569_v50 = vadd.f32 %v4567_v62, %v4563_v55 }
0x30e5   :  { %v4576_v40 = vpop.permute.xlu1 %4575 }
0x30e6   :  { %v4578_v42 = vadd.f32 %v4576_v40, %v4569_v50 }
0x30e8   :  { %6214 = vtanh.f32 %v4578_v42 }
0x30f2   :  { %v6215_v20 = vpop.eup %6214 }
0x30f3   :  { %4581 = vrot.lane.b32.xlu1 %v6215_v20, %s6350_s29  ;;  %s6228_s29 = scalar_lea.vmem %s4655_s19, 16 }
0x30f4   :  { %p6229_p0 = scmp.ne.s32.totalorder %s4655_s19, %s6228_s29  ;;  %p6234_p2 = scmp.lt.s32.totalorder %s6232_s1, %s6228_s29 }
0x30f6   :  { %p6235_p3 = por %p6234_p2, %p6233_p1 }
0x30f8   :  { %p6236_p4 = pnand %p6235_p3, %p6229_p0 }
0x3117   :  { %4484 = vmin.xlane.f32.xlu1 %v4483_v16 }
0x3128   :  { %4590 = vrot.lane.b32.xlu1 %v4578_v42, %s6349_s11 }
0x3165   :  { %v4582_v31 = vpop.permute.xlu1 %4581 }
0x3166   :  { %6239 = shalt.err (!%p6236_p4)
}
0x3167   :  { %s6240_s22 = scalar_lea.hbm %s9554_s17, 16 }
0x3168   :  { %p6241_p5 = scmp.ne.s32.totalorder %s9554_s17, %s6240_s22  ;;  %p6244_p6 = scmp.lt.u32.totalorder %s6240_s22, %s9554_s17 }
0x316a   :  { %p6246_p7 = pnand %p6244_p6, %p6241_p5 }
0x316c   :  { %6249 = shalt.err (!%p6246_p7)
}
0x316d   :  { %4657 = dma.vmem_to_hbm [thread:$0]  %s4655_s19, 16, %s9554_s17, [#allocation9]   ;;  %v4584_v46 = vmul.f32 %v6211_v63, %v4582_v31 }
0x316e   :  { %s6250_s27 = scalar_lea.vmem %s4623_s7, 128  ;;  %p6255_p9 = scmp.lt.s32.totalorder %s4623_s7, %s4623_s7 }
0x316f   :  { %p6251_p8 = scmp.ne.s32.totalorder %s4623_s7, %s6250_s27  ;;  %p6256_p10 = scmp.lt.s32.totalorder %s6250_s27, %s6250_s27 }
0x3171   :  { %p6257_p11 = por %p6256_p10, %p6255_p9 }
0x3173   :  { %p6258_p12 = pnand %p6257_p11, %p6251_p8 }
0x3175   :  { %6261 = shalt.err (!%p6258_p12)
}
0x3176   :  { %s6262_s5 = scalar_lea.hbm %s9551_s14, 128 }
0x3177   :  { %p6263_p13 = scmp.ne.s32.totalorder %s9551_s14, %s6262_s5  ;;  %p6266_p0 = scmp.lt.u32.totalorder %s6262_s5, %s9551_s14 }
0x3179   :  { %p6268_p1 = pnand %p6266_p0, %p6263_p13 }
0x317b   :  { %6271 = shalt.err (!%p6268_p1)
}
0x317c   :  { %4625 = dma.vmem_to_hbm [thread:$0]  %s4623_s7, 128, %s9551_s14, [#allocation4]   ;;  %4586 = vrot.lane.b32.xlu0 %v4584_v46, %s6349_s11 }
0x317d   :  { %s6355_s25 = smov [#allocation10]  }
0x317e   :  { %s4664_s12 = sshll.u32 %s6355_s25, 4  ;;  %s4665_s12 = int_to_ptr.vmem [resolvable:$true] %s4664_s12 }
0x317f   :  { %s6272_s19 = scalar_lea.vmem %s4665_s12, 16  ;;  %s6276_s0 = scalar_lea.vmem %s4665_s12, 32 }
0x3180   :  { %p6273_p2 = scmp.ne.s32.totalorder %s4665_s12, %s6272_s19  ;;  %p6277_p3 = scmp.lt.s32.totalorder %s4665_s12, %s4665_s12 }
0x3181   :  { %p6278_p4 = scmp.lt.s32.totalorder %s6276_s0, %s6272_s19 }
0x3183   :  { %p6279_p5 = por %p6278_p4, %p6277_p3 }
0x3185   :  { %p6280_p6 = pnand %p6279_p5, %p6273_p2 }
0x3187   :  { %6283 = shalt.err (!%p6280_p6)
}
0x3188   :  { %s6284_s20 = scalar_lea.hbm %s9555_s18, 16 }
0x3189   :  { %p6285_p7 = scmp.ne.s32.totalorder %s9555_s18, %s6284_s20  ;;  %p6288_p8 = scmp.lt.u32.totalorder %s6284_s20, %s9555_s18 }
0x318b   :  { %p6290_p9 = pnand %p6288_p8, %p6285_p7 }
0x318d   :  { %6293 = shalt.err (!%p6290_p9)
}
0x318e   :  { %4667 = dma.vmem_to_hbm [thread:$0]  %s4665_s12, 16, %s9555_s18, [#allocation9]   ;;  %vm4603_vm2 = vcmp.eq.s32.totalorder %v9356_v17, 10 }
0x318f   :  { %s6356_s6 = smov [#allocation5]   ;;  %s6357_s18 = smov [#allocation7]  }
0x3190   :  { %s4631_s10 = sshll.u32 %s6356_s6, 4  ;;  %s4644_s2 = sshll.u32 %s6357_s18, 4  ;;  %s4632_s10 = int_to_ptr.vmem [resolvable:$true] %s4631_s10  ;;  %s9504_s2 = int_to_ptr.vmem [resolvable:$true] %s4644_s2 }
0x3191   :  { %s6294_s8 = scalar_lea.vmem %s4632_s10, 256  ;;  %p6299_p11 = scmp.lt.s32.totalorder %s4632_s10, %s4632_s10 }
0x3192   :  { %p6295_p10 = scmp.ne.s32.totalorder %s4632_s10, %s6294_s8  ;;  %p6300_p12 = scmp.lt.s32.totalorder %s6294_s8, %s6294_s8 }
0x3194   :  { %p6301_p13 = por %p6300_p12, %p6299_p11 }
0x3196   :  { %p6302_p0 = pnand %p6301_p13, %p6295_p10 }
0x31a4   :  { %v4485_v35 = vpop.xlane.xlu1 %4484 }
0x31a5   :  { %v6053_v19 = vtrunc.f32 %v4485_v35 }
0x31a7   :  { %v6054_v37 = vcvt.f32.s32 %v6053_v19 }
0x31a8   :  { %v4591_v28 = vpop.permute.xlu1 %4590 }
0x31a9   :  { %v4599_v32 = vsel %vm4598_vm11, %v6054_v37, %v9319_v56  ;;  %vm4594_vm12 = vcmp.eq.s32.totalorder %v6054_v37, 0 }
0x31aa   :  { %4613 = vst.msk [vmem:[#allocation7] sm:$0x1] %vm4612_vm6, %v4599_v32 }
0x31ee   :  { %v4587_v27 = vpop.permute.xlu0 %4586 }
0x31ef   :  { %v4593_v41 = vsel %vm1022_vm9, %v4587_v27, %v4591_v28 }
0x31f0   :  { %v4597_v49 = vsel %vm4594_vm12, %v9349_v52, %v4593_v41 }
0x31f1   :  { %v4607_v12 = vrot.slane %v4597_v49, %v6849_v8 }
0x31f3   :  { %v4609_v44 = vsel %vm4603_vm2, %v4607_v12, %v9375_v23 }
0x31f4   :  { %4611 = vst.msk [vmem:[#allocation5 + $0x8] sm:$0xff] %vm799_vm5, %v4609_v44 }
0x31f5   :  { %6305 = shalt.err (!%p6302_p0)
}
0x31f6   :  { %s6306_s24 = scalar_lea.hbm %s9552_s15, 256 }
0x31f7   :  { %p6307_p1 = scmp.ne.s32.totalorder %s9552_s15, %s6306_s24  ;;  %p6310_p2 = scmp.lt.u32.totalorder %s6306_s24, %s9552_s15 }
0x31f9   :  { %p6312_p3 = pnand %p6310_p2, %p6307_p1 }
0x31fb   :  { %6315 = shalt.err (!%p6312_p3)
}
0x31fc   :  { %s6358_s13 = smov 128   ;;  %s6359_s28 = smov 8  }
0x31fd   :  { %4637 = dma.vmem_to_hbm [thread:$0]  %s4632_s10, 256, %s9552_s15, [#allocation6], %s6358_s13, %s6358_s13, %s6359_s28  }
0x31fe   :  { %s6316_s25 = scalar_lea.vmem %s9504_s2, 16  ;;  %s6320_s12 = scalar_lea.vmem %s9504_s2, 32 }
0x31ff   :  { %p6317_p4 = scmp.ne.s32.totalorder %s9504_s2, %s6316_s25  ;;  %p6321_p5 = scmp.lt.s32.totalorder %s9504_s2, %s9504_s2 }
0x3200   :  { %p6322_p6 = scmp.lt.s32.totalorder %s6320_s12, %s6316_s25 }
0x3202   :  { %p6323_p7 = por %p6322_p6, %p6321_p5 }
0x3204   :  { %p6324_p8 = pnand %p6323_p7, %p6317_p4 }
0x3206   :  { %6327 = shalt.err (!%p6324_p8)
}
0x3207   :  { %s6328_s29 = scalar_lea.hbm %s9553_s16, 16 }
0x3208   :  { %p6329_p9 = scmp.ne.s32.totalorder %s9553_s16, %s6328_s29  ;;  %p6332_p10 = scmp.lt.u32.totalorder %s6328_s29, %s9553_s16 }
0x320a   :  { %p6334_p11 = pnand %p6332_p10, %p6329_p9 }
0x320c   :  { %6337 = shalt.err (!%p6334_p11)
}
0x320d   :  { %4647 = dma.vmem_to_hbm [thread:$0]  %s9504_s2, 16, %s9553_s16, [#allocation6]  }
0x320e   :  { %6338 = dma.done.wait [#allocation4], 128  }
0x320f   :  { %6339 = vsyncadd [#allocation4], 4294967168 }
0x3210   :  { %6340 = dma.done.wait [#allocation6], 272  }
0x3211   :  { %6341 = vsyncadd [#allocation6], 4294967024 }
0x3212   :  { %6342 = dma.done.wait [#allocation9], 32  }
0x3213   :  { %6343 = vsyncadd [#allocation9], 4294967264 }
0x3214   :  { %4683 = vsyncpa [#allocation4], 1 }
0x3215   :  { %4684 = vsyncpa [#allocation6], 1 }
0x3216   :  { %4685 = vsyncpa [#allocation9], 1 }

</bundles_post_ra>
